<compile_context>
chip_gen: v6e
topology: v6e:2x2x1
jax: 0.10.0
libtpu: 0.0.40
codegen_flags: <defaults>
</compile_context>

<pallas_src>
import functools

import jax
import jax.numpy as jnp
from jax import lax
from jax.experimental import pallas as pl
from jax.experimental.pallas import tpu as pltpu


NCH = 128            # lane-padded channel / contraction width used everywhere
KVOL = 27            # 3x3x3 taps


def _round_up(a, b):
    return (a + b - 1) // b * b


# ------------------------------ fused kernel --------------------------------

def _fused_kernel(x_ref, w1_ref, b1_ref, w2_ref, b2_ref, wf_ref, bf_ref,
                  out_ref, y1_ref, p1p_ref, *,
                  D, H, W, Do, Ho, Wo, Qp2, RQ2, PD, PH, PW, M2):
    """Whole CNN3D forward for ONE batch element (grid axis 0 = batch).

    x_ref  : (D, H*W, 128)   bf16 im2col patches, lane = tap*Cin + ci (81 used)
    w1_ref : (128, 128)      bf16 packed conv1 weights (row = tap*Cin + ci)
    w2_ref : (27, 128, 128)  bf16 conv2 taps (ci & co lane-padded)
    wf_ref : (128, 128)      f32  fc weight (padded)
    b*_ref : (1, 128)        f32  biases (padded)
    out_ref: (1, 128)        f32  padded logits
    y1_ref : (D, H*W, 128)   bf16 conv1+ReLU output
    p1p_ref: (Dp2*RQ2, 128)  f32  zero-padded pool1 output (conv2 input)
    """
    f32 = jnp.float32
    bf16 = jnp.bfloat16

    b1v = b1_ref[...]        # bias reads hoisted out of the depth loops
    b2v = b2_ref[...]

    # ---------------- conv1 + bias + ReLU: one 128-deep matmul per depth ----
    for d in range(D):
        acc = jnp.dot(x_ref[d], w1_ref[...],
                      preferred_element_type=f32)              # (H*W, 128)
        y1_ref[d] = jnp.maximum(acc + b1v, 0.0).astype(y1_ref.dtype)

    # ---------------- MaxPool3d (PD,PH,PW), channels in lanes ---------------
    # Zero-init doubles as conv2's spatial zero padding.
    p1p_ref[...] = jnp.zeros_like(p1p_ref)
    for do in range(Do):
        for ho in range(Ho):
            mall = None
            for dd in range(PD):
                for hh in range(PH):
                    r0 = (PH * ho + hh) * W
                    row = y1_ref[PD * do + dd, r0:r0 + W, :].astype(f32)
                    mall = row if mall is None else jnp.maximum(mall, row)
            parts = [jnp.max(mall[wo * PW:(wo + 1) * PW, :], axis=0,
                             keepdims=True) for wo in range(Wo)]
            pooled = jnp.concatenate(parts, axis=0)            # (Wo, 128)
            prow = (do + 1) * RQ2 + (ho + 1) * Qp2 + 1
            p1p_ref[prow:prow + Wo, :] = pooled

    # ---------------- conv2 + bias + ReLU + global avg pool + fc ------------
    gsum = jnp.zeros((1, NCH), f32)
    for d in range(Do):
        acc = jnp.zeros((M2, NCH), f32)
        for t in range(KVOL):              # fully unrolled, static addresses
            kd, kh, kw = t // 9, (t % 9) // 3, t % 3
            base = (d + kd) * RQ2 + kh * Qp2 + kw
            lhs = p1p_ref[base:base + M2, :].astype(bf16)      # (M2, 128)
            acc = acc + jnp.dot(lhs, w2_ref[t], preferred_element_type=f32)
        a2 = jnp.maximum(acc + b2v, 0.0)                       # (M2, 128)
        # AdaptiveAvgPool3d((1,1,1)): sum only the valid (Ho, Wo) rows.
        valid = a2[0:Wo, :]
        for h in range(1, Ho):
            valid = valid + a2[h * Qp2:h * Qp2 + Wo, :]
        gsum = gsum + jnp.sum(valid, axis=0, keepdims=True)

    mean = gsum * (1.0 / float(Do * Ho * Wo))                  # (1, 128)
    out_ref[...] = jnp.dot(mean, wf_ref[...],
                           preferred_element_type=f32) + bf_ref[...]


# ------------------------------- wrapper ------------------------------------

def cnn3d_forward(x, params):
    """x: (N, 3, D, H, W) f32, PyTorch NCDHW. Returns (N, num_classes) f32."""
    w1, b1, w2, b2, wf, bf = params
    N, Cin, D, H, W = x.shape
    Cout1, Cout2 = w1.shape[0], w2.shape[0]
    num_classes = wf.shape[1]
    PD, PH, PW = 2, 4, 4                       # pool1 kernel == stride
    assert Cin == w1.shape[1] and Cout1 == w2.shape[1] and Cout2 == wf.shape[0]
    assert D % PD == 0 and H % PH == 0 and W % PW == 0
    assert KVOL * Cin <= NCH and Cout1 <= NCH and Cout2 <= NCH
    assert num_classes <= NCH
    assert (H * W) % 8 == 0
    Do, Ho, Wo = D // PD, H // PH, W // PW

    # conv2 padded-plane geometry (flat (h,w) planes with zero padding).
    Qp2 = _round_up(Wo + 2, 8)
    Rp2 = _round_up(Ho + 2, 8)
    RQ2 = Rp2 * Qp2
    Dp2 = Do + 2
    M2 = _round_up((Ho - 1) * Qp2 + Wo, 8)     # valid conv2 rows per depth

    # --- wrapper-side im2col for conv1: lanes pack taps*Cin (81 -> 128) -----
    x_cl = jnp.transpose(x, (0, 2, 3, 4, 1))                   # NDHWC
    x_p = jnp.pad(x_cl, ((0, 0), (1, 1), (1, 1), (1, 1), (0, 0)))
    taps = []
    for kd in range(3):
        for kh in range(3):
            for kw in range(3):
                taps.append(lax.slice(x_p, (0, kd, kh, kw, 0),
                                      (N, kd + D, kh + H, kw + W, Cin)))
    patches = jnp.concatenate(taps, axis=-1)                   # (N,D,H,W,81)
    patches = jnp.pad(patches,
                      ((0, 0), (0, 0), (0, 0), (0, 0), (0, NCH - KVOL * Cin)))
    patches = patches.reshape(N, D, H * W, NCH).astype(jnp.bfloat16)

    # --- packed weights / biases --------------------------------------------
    w1p = jnp.transpose(w1, (2, 3, 4, 1, 0)).reshape(KVOL * Cin, Cout1)
    w1p = jnp.pad(w1p, ((0, NCH - KVOL * Cin),
                        (0, NCH - Cout1))).astype(jnp.bfloat16)
    w2p = jnp.transpose(w2, (2, 3, 4, 1, 0)).reshape(KVOL, Cout1, Cout2)
    w2p = jnp.pad(w2p, ((0, 0), (0, NCH - Cout1),
                        (0, NCH - Cout2))).astype(jnp.bfloat16)
    b1p = jnp.pad(b1, (0, NCH - Cout1)).reshape(1, NCH).astype(jnp.float32)
    b2p = jnp.pad(b2, (0, NCH - Cout2)).reshape(1, NCH).astype(jnp.float32)
    wfp = jnp.pad(wf, ((0, NCH - Cout2),
                       (0, NCH - num_classes))).astype(jnp.float32)
    bfp = jnp.pad(bf, (0, NCH - num_classes)).reshape(1, NCH).astype(jnp.float32)

    kernel = functools.partial(
        _fused_kernel, D=D, H=H, W=W, Do=Do, Ho=Ho, Wo=Wo,
        Qp2=Qp2, RQ2=RQ2, PD=PD, PH=PH, PW=PW, M2=M2)

    out = pl.pallas_call(
        kernel,
        out_shape=jax.ShapeDtypeStruct((N, 1, NCH), jnp.float32),
        grid_spec=pltpu.PrefetchScalarGridSpec(
            num_scalar_prefetch=0,
            grid=(N,),
            in_specs=[
                pl.BlockSpec((None, D, H * W, NCH), lambda n: (n, 0, 0, 0)),
                pl.BlockSpec((NCH, NCH), lambda n: (0, 0)),
                pl.BlockSpec((1, NCH), lambda n: (0, 0)),
                pl.BlockSpec((KVOL, NCH, NCH), lambda n: (0, 0, 0)),
                pl.BlockSpec((1, NCH), lambda n: (0, 0)),
                pl.BlockSpec((NCH, NCH), lambda n: (0, 0)),
                pl.BlockSpec((1, NCH), lambda n: (0, 0)),
            ],
            out_specs=pl.BlockSpec((None, 1, NCH), lambda n: (n, 0, 0)),
            scratch_shapes=[
                pltpu.VMEM((D, H * W, NCH), jnp.bfloat16),   # conv1+ReLU out
                pltpu.VMEM((Dp2 * RQ2, NCH), jnp.float32),   # padded pool1 out
            ]),
        compiler_params=pltpu.CompilerParams(
            dimension_semantics=("parallel",),
            vmem_limit_bytes=32 * 1024 * 1024),
    )(patches, w1p, b1p, w2p, b2p, wfp, bfp)

    return out.reshape(N, NCH)[:, :num_classes]


# ------------------------- params / reference -------------------------------

def init_params(key, num_classes):
    k1, k2, k3, k4, k5, k6 = jax.random.split(key, 6)
    w1 = jax.random.normal(k1, (12, 3, 3, 3, 3), jnp.float32) * (1.0 / (3 * 27) ** 0.5)
    b1 = jax.random.normal(k2, (12,), jnp.float32) * 0.1
    w2 = jax.random.normal(k3, (24, 12, 3, 3, 3), jnp.float32) * (1.0 / (12 * 27) ** 0.5)
    b2 = jax.random.normal(k4, (24,), jnp.float32) * 0.1
    wf = jax.random.normal(k5, (24, num_classes), jnp.float32) * (1.0 / 24 ** 0.5)
    bf = jax.random.normal(k6, (num_classes,), jnp.float32) * 0.1
    return (w1, b1, w2, b2, wf, bf)


def reference_forward(x, params):
    """Pure-JAX f32 reference mirroring the PyTorch forward."""
    w1, b1, w2, b2, wf, bf = params
    dn = ("NCDHW", "OIDHW", "NCDHW")
    y = lax.conv_general_dilated(x, w1, (1, 1, 1), [(1, 1)] * 3, dimension_numbers=dn)
    y = jnp.maximum(y + b1[None, :, None, None, None], 0.0)
    y = lax.reduce_window(y, -jnp.inf, lax.max,
                          (1, 1, 2, 4, 4), (1, 1, 2, 4, 4), "VALID")
    y = lax.conv_general_dilated(y, w2, (1, 1, 1), [(1, 1)] * 3, dimension_numbers=dn)
    y = jnp.maximum(y + b2[None, :, None, None, None], 0.0)
    y = jnp.mean(y, axis=(2, 3, 4))
    return y @ wf + bf


# --------------------------------- main --------------------------------------

if __name__ == "__main__":
    num_classes = 5
    key = jax.random.PRNGKey(0)
    kx, kp = jax.random.split(key)
    # (N, C, D, H, W) -- small shapes consistent with the module's layer stack.
    x = jax.random.normal(kx, (2, 3, 4, 16, 16), jnp.float32)
    params = init_params(kp, num_classes)

    out = jax.jit(cnn3d_forward)(x, params)
    out = jax.block_until_ready(out)

    ref = reference_forward(x, params)
    assert out.shape == (2, num_classes)
    # Tolerance reflects bf16 MXU operands with f32 accumulation.
    assert bool(jnp.allclose(out, ref, atol=3e-2, rtol=3e-2))
    print("KERNEL_OK")
</pallas_src>

<mosaic_0001>
module attributes {stable_mosaic.version = 11 : i64} {
  func.func @_fused_kernel(%arg0: i32, %arg1: memref<1x4x256x128xbf16, #tpu.memory_space<vmem>>, %arg2: memref<128x128xbf16, #tpu.memory_space<vmem>>, %arg3: memref<1x128xf32, #tpu.memory_space<vmem>>, %arg4: memref<27x128x128xbf16, #tpu.memory_space<vmem>>, %arg5: memref<1x128xf32, #tpu.memory_space<vmem>>, %arg6: memref<128x128xf32, #tpu.memory_space<vmem>>, %arg7: memref<1x128xf32, #tpu.memory_space<vmem>>, %arg8: memref<1x1x128xf32, #tpu.memory_space<vmem>>, %arg9: memref<4x256x128xbf16, #tpu.memory_space<vmem>>, %arg10: memref<256x128xf32, #tpu.memory_space<vmem>>) attributes {dimension_semantics = [#tpu.dimension_semantics<parallel>], iteration_bounds = array<i64: 2>, scalar_prefetch = 0 : i64, scratch_operands = 2 : i64, tpu.core_type = #tpu.core_type<tc>, window_params = [{transform_indices = @transform_0, window_bounds = array<i64: 1, 4, 256, 128>}, {pipeline_mode = #tpu.pipeline_mode<synchronous>, transform_indices = @transform_1, window_bounds = array<i64: 128, 128>}, {pipeline_mode = #tpu.pipeline_mode<synchronous>, transform_indices = @transform_2, window_bounds = array<i64: 1, 128>}, {pipeline_mode = #tpu.pipeline_mode<synchronous>, transform_indices = @transform_3, window_bounds = array<i64: 27, 128, 128>}, {pipeline_mode = #tpu.pipeline_mode<synchronous>, transform_indices = @transform_4, window_bounds = array<i64: 1, 128>}, {pipeline_mode = #tpu.pipeline_mode<synchronous>, transform_indices = @transform_5, window_bounds = array<i64: 128, 128>}, {pipeline_mode = #tpu.pipeline_mode<synchronous>, transform_indices = @transform_6, window_bounds = array<i64: 1, 128>}, {transform_indices = @transform_7, window_bounds = array<i64: 1, 1, 128>}]} {
    %c0 = arith.constant 0 : index
    %c0_0 = arith.constant 0 : index
    %0 = vector.load %arg3[%c0, %c0_0] : memref<1x128xf32, #tpu.memory_space<vmem>>, vector<1x128xf32>
    %c0_1 = arith.constant 0 : index
    %c0_2 = arith.constant 0 : index
    %1 = vector.load %arg5[%c0_1, %c0_2] : memref<1x128xf32, #tpu.memory_space<vmem>>, vector<1x128xf32>
    %c0_3 = arith.constant 0 : index
    %c0_4 = arith.constant 0 : index
    %c0_5 = arith.constant 0 : index
    %c0_6 = arith.constant 0 : index
    %2 = vector.load %arg1[%c0_3, %c0_4, %c0_5, %c0_6] : memref<1x4x256x128xbf16, #tpu.memory_space<vmem>>, vector<1x1x256x128xbf16>
    %3 = vector.shape_cast %2 : vector<1x1x256x128xbf16> to vector<256x128xbf16>
    %c0_7 = arith.constant 0 : index
    %c0_8 = arith.constant 0 : index
    %4 = vector.load %arg2[%c0_7, %c0_8] : memref<128x128xbf16, #tpu.memory_space<vmem>>, vector<128x128xbf16>
    %cst = arith.constant dense<0.000000e+00> : vector<256x128xf32>
    %5 = tpu.matmul %3, %4, %cst {dimension_numbers = #tpu.dot_dimension_numbers<[1], [0], [0], [1], [0, 0, 1, 1], [], []>} : vector<256x128xbf16>, vector<128x128xbf16>, vector<256x128xf32> -> vector<256x128xf32>
    %6 = vector.broadcast %0 : vector<1x128xf32> to vector<256x128xf32>
    %7 = arith.addf %5, %6 : vector<256x128xf32>
    %cst_9 = arith.constant 0.000000e+00 : f32
    %8 = vector.broadcast %cst_9 : f32 to vector<256x128xf32>
    %9 = arith.maximumf %7, %8 : vector<256x128xf32>
    %10 = arith.truncf %9 : vector<256x128xf32> to vector<256x128xbf16>
    %c0_10 = arith.constant 0 : index
    %c0_11 = arith.constant 0 : index
    %c0_12 = arith.constant 0 : index
    %11 = vector.load %arg9[%c0_10, %c0_11, %c0_12] : memref<4x256x128xbf16, #tpu.memory_space<vmem>>, vector<1x256x128xbf16>
    %12 = vector.shape_cast %11 : vector<1x256x128xbf16> to vector<256x128xbf16>
    %13 = vector.shape_cast %10 : vector<256x128xbf16> to vector<1x256x128xbf16>
    tpu.vector_store %arg9[%c0_10, %c0_11, %c0_12], %13 {strides = array<i32>} : memref<4x256x128xbf16, #tpu.memory_space<vmem>>, vector<1x256x128xbf16>,
    %c0_13 = arith.constant 0 : index
    %c1 = arith.constant 1 : index
    %c0_14 = arith.constant 0 : index
    %c0_15 = arith.constant 0 : index
    %14 = vector.load %arg1[%c0_13, %c1, %c0_14, %c0_15] : memref<1x4x256x128xbf16, #tpu.memory_space<vmem>>, vector<1x1x256x128xbf16>
    %15 = vector.shape_cast %14 : vector<1x1x256x128xbf16> to vector<256x128xbf16>
    %c0_16 = arith.constant 0 : index
    %c0_17 = arith.constant 0 : index
    %16 = vector.load %arg2[%c0_16, %c0_17] : memref<128x128xbf16, #tpu.memory_space<vmem>>, vector<128x128xbf16>
    %cst_18 = arith.constant dense<0.000000e+00> : vector<256x128xf32>
    %17 = tpu.matmul %15, %16, %cst_18 {dimension_numbers = #tpu.dot_dimension_numbers<[1], [0], [0], [1], [0, 0, 1, 1], [], []>} : vector<256x128xbf16>, vector<128x128xbf16>, vector<256x128xf32> -> vector<256x128xf32>
    %18 = vector.broadcast %0 : vector<1x128xf32> to vector<256x128xf32>
    %19 = arith.addf %17, %18 : vector<256x128xf32>
    %cst_19 = arith.constant 0.000000e+00 : f32
    %20 = vector.broadcast %cst_19 : f32 to vector<256x128xf32>
    %21 = arith.maximumf %19, %20 : vector<256x128xf32>
    %22 = arith.truncf %21 : vector<256x128xf32> to vector<256x128xbf16>
    %c1_20 = arith.constant 1 : index
    %c0_21 = arith.constant 0 : index
    %c0_22 = arith.constant 0 : index
    %23 = vector.load %arg9[%c1_20, %c0_21, %c0_22] : memref<4x256x128xbf16, #tpu.memory_space<vmem>>, vector<1x256x128xbf16>
    %24 = vector.shape_cast %23 : vector<1x256x128xbf16> to vector<256x128xbf16>
    %25 = vector.shape_cast %22 : vector<256x128xbf16> to vector<1x256x128xbf16>
    tpu.vector_store %arg9[%c1_20, %c0_21, %c0_22], %25 {strides = array<i32>} : memref<4x256x128xbf16, #tpu.memory_space<vmem>>, vector<1x256x128xbf16>,
    %c0_23 = arith.constant 0 : index
    %c2 = arith.constant 2 : index
    %c0_24 = arith.constant 0 : index
    %c0_25 = arith.constant 0 : index
    %26 = vector.load %arg1[%c0_23, %c2, %c0_24, %c0_25] : memref<1x4x256x128xbf16, #tpu.memory_space<vmem>>, vector<1x1x256x128xbf16>
    %27 = vector.shape_cast %26 : vector<1x1x256x128xbf16> to vector<256x128xbf16>
    %c0_26 = arith.constant 0 : index
    %c0_27 = arith.constant 0 : index
    %28 = vector.load %arg2[%c0_26, %c0_27] : memref<128x128xbf16, #tpu.memory_space<vmem>>, vector<128x128xbf16>
    %cst_28 = arith.constant dense<0.000000e+00> : vector<256x128xf32>
    %29 = tpu.matmul %27, %28, %cst_28 {dimension_numbers = #tpu.dot_dimension_numbers<[1], [0], [0], [1], [0, 0, 1, 1], [], []>} : vector<256x128xbf16>, vector<128x128xbf16>, vector<256x128xf32> -> vector<256x128xf32>
    %30 = vector.broadcast %0 : vector<1x128xf32> to vector<256x128xf32>
    %31 = arith.addf %29, %30 : vector<256x128xf32>
    %cst_29 = arith.constant 0.000000e+00 : f32
    %32 = vector.broadcast %cst_29 : f32 to vector<256x128xf32>
    %33 = arith.maximumf %31, %32 : vector<256x128xf32>
    %34 = arith.truncf %33 : vector<256x128xf32> to vector<256x128xbf16>
    %c2_30 = arith.constant 2 : index
    %c0_31 = arith.constant 0 : index
    %c0_32 = arith.constant 0 : index
    %35 = vector.load %arg9[%c2_30, %c0_31, %c0_32] : memref<4x256x128xbf16, #tpu.memory_space<vmem>>, vector<1x256x128xbf16>
    %36 = vector.shape_cast %35 : vector<1x256x128xbf16> to vector<256x128xbf16>
    %37 = vector.shape_cast %34 : vector<256x128xbf16> to vector<1x256x128xbf16>
    tpu.vector_store %arg9[%c2_30, %c0_31, %c0_32], %37 {strides = array<i32>} : memref<4x256x128xbf16, #tpu.memory_space<vmem>>, vector<1x256x128xbf16>,
    %c0_33 = arith.constant 0 : index
    %c3 = arith.constant 3 : index
    %c0_34 = arith.constant 0 : index
    %c0_35 = arith.constant 0 : index
    %38 = vector.load %arg1[%c0_33, %c3, %c0_34, %c0_35] : memref<1x4x256x128xbf16, #tpu.memory_space<vmem>>, vector<1x1x256x128xbf16>
    %39 = vector.shape_cast %38 : vector<1x1x256x128xbf16> to vector<256x128xbf16>
    %c0_36 = arith.constant 0 : index
    %c0_37 = arith.constant 0 : index
    %40 = vector.load %arg2[%c0_36, %c0_37] : memref<128x128xbf16, #tpu.memory_space<vmem>>, vector<128x128xbf16>
    %cst_38 = arith.constant dense<0.000000e+00> : vector<256x128xf32>
    %41 = tpu.matmul %39, %40, %cst_38 {dimension_numbers = #tpu.dot_dimension_numbers<[1], [0], [0], [1], [0, 0, 1, 1], [], []>} : vector<256x128xbf16>, vector<128x128xbf16>, vector<256x128xf32> -> vector<256x128xf32>
    %42 = vector.broadcast %0 : vector<1x128xf32> to vector<256x128xf32>
    %43 = arith.addf %41, %42 : vector<256x128xf32>
    %cst_39 = arith.constant 0.000000e+00 : f32
    %44 = vector.broadcast %cst_39 : f32 to vector<256x128xf32>
    %45 = arith.maximumf %43, %44 : vector<256x128xf32>
    %46 = arith.truncf %45 : vector<256x128xf32> to vector<256x128xbf16>
    %c3_40 = arith.constant 3 : index
    %c0_41 = arith.constant 0 : index
    %c0_42 = arith.constant 0 : index
    %47 = vector.load %arg9[%c3_40, %c0_41, %c0_42] : memref<4x256x128xbf16, #tpu.memory_space<vmem>>, vector<1x256x128xbf16>
    %48 = vector.shape_cast %47 : vector<1x256x128xbf16> to vector<256x128xbf16>
    %49 = vector.shape_cast %46 : vector<256x128xbf16> to vector<1x256x128xbf16>
    tpu.vector_store %arg9[%c3_40, %c0_41, %c0_42], %49 {strides = array<i32>} : memref<4x256x128xbf16, #tpu.memory_space<vmem>>, vector<1x256x128xbf16>,
    %cst_43 = arith.constant 0.000000e+00 : f32
    %50 = vector.broadcast %cst_43 : f32 to vector<256x128xf32>
    %c0_44 = arith.constant 0 : index
    %c0_45 = arith.constant 0 : index
    %51 = vector.load %arg10[%c0_44, %c0_45] : memref<256x128xf32, #tpu.memory_space<vmem>>, vector<256x128xf32>
    tpu.vector_store %arg10[%c0_44, %c0_45], %50 {strides = array<i32>} : memref<256x128xf32, #tpu.memory_space<vmem>>, vector<256x128xf32>,
    %c0_46 = arith.constant 0 : index
    %c0_47 = arith.constant 0 : index
    %c0_48 = arith.constant 0 : index
    %52 = vector.load %arg9[%c0_46, %c0_47, %c0_48] : memref<4x256x128xbf16, #tpu.memory_space<vmem>>, vector<1x16x128xbf16>
    %53 = vector.shape_cast %52 : vector<1x16x128xbf16> to vector<16x128xbf16>
    %54 = arith.extf %53 : vector<16x128xbf16> to vector<16x128xf32>
    %c0_49 = arith.constant 0 : index
    %c16 = arith.constant 16 : index
    %c0_50 = arith.constant 0 : index
    %55 = vector.load %arg9[%c0_49, %c16, %c0_50] : memref<4x256x128xbf16, #tpu.memory_space<vmem>>, vector<1x16x128xbf16>
    %56 = vector.shape_cast %55 : vector<1x16x128xbf16> to vector<16x128xbf16>
    %57 = arith.extf %56 : vector<16x128xbf16> to vector<16x128xf32>
    %58 = arith.maximumf %54, %57 : vector<16x128xf32>
    %c0_51 = arith.constant 0 : index
    %c32 = arith.constant 32 : index
    %c0_52 = arith.constant 0 : index
    %59 = vector.load %arg9[%c0_51, %c32, %c0_52] : memref<4x256x128xbf16, #tpu.memory_space<vmem>>, vector<1x16x128xbf16>
    %60 = vector.shape_cast %59 : vector<1x16x128xbf16> to vector<16x128xbf16>
    %61 = arith.extf %60 : vector<16x128xbf16> to vector<16x128xf32>
    %62 = arith.maximumf %58, %61 : vector<16x128xf32>
    %c0_53 = arith.constant 0 : index
    %c48 = arith.constant 48 : index
    %c0_54 = arith.constant 0 : index
    %63 = vector.load %arg9[%c0_53, %c48, %c0_54] : memref<4x256x128xbf16, #tpu.memory_space<vmem>>, vector<1x16x128xbf16>
    %64 = vector.shape_cast %63 : vector<1x16x128xbf16> to vector<16x128xbf16>
    %65 = arith.extf %64 : vector<16x128xbf16> to vector<16x128xf32>
    %66 = arith.maximumf %62, %65 : vector<16x128xf32>
    %c1_55 = arith.constant 1 : index
    %c0_56 = arith.constant 0 : index
    %c0_57 = arith.constant 0 : index
    %67 = vector.load %arg9[%c1_55, %c0_56, %c0_57] : memref<4x256x128xbf16, #tpu.memory_space<vmem>>, vector<1x16x128xbf16>
    %68 = vector.shape_cast %67 : vector<1x16x128xbf16> to vector<16x128xbf16>
    %69 = arith.extf %68 : vector<16x128xbf16> to vector<16x128xf32>
    %70 = arith.maximumf %66, %69 : vector<16x128xf32>
    %c1_58 = arith.constant 1 : index
    %c16_59 = arith.constant 16 : index
    %c0_60 = arith.constant 0 : index
    %71 = vector.load %arg9[%c1_58, %c16_59, %c0_60] : memref<4x256x128xbf16, #tpu.memory_space<vmem>>, vector<1x16x128xbf16>
    %72 = vector.shape_cast %71 : vector<1x16x128xbf16> to vector<16x128xbf16>
    %73 = arith.extf %72 : vector<16x128xbf16> to vector<16x128xf32>
    %74 = arith.maximumf %70, %73 : vector<16x128xf32>
    %c1_61 = arith.constant 1 : index
    %c32_62 = arith.constant 32 : index
    %c0_63 = arith.constant 0 : index
    %75 = vector.load %arg9[%c1_61, %c32_62, %c0_63] : memref<4x256x128xbf16, #tpu.memory_space<vmem>>, vector<1x16x128xbf16>
    %76 = vector.shape_cast %75 : vector<1x16x128xbf16> to vector<16x128xbf16>
    %77 = arith.extf %76 : vector<16x128xbf16> to vector<16x128xf32>
    %78 = arith.maximumf %74, %77 : vector<16x128xf32>
    %c1_64 = arith.constant 1 : index
    %c48_65 = arith.constant 48 : index
    %c0_66 = arith.constant 0 : index
    %79 = vector.load %arg9[%c1_64, %c48_65, %c0_66] : memref<4x256x128xbf16, #tpu.memory_space<vmem>>, vector<1x16x128xbf16>
    %80 = vector.shape_cast %79 : vector<1x16x128xbf16> to vector<16x128xbf16>
    %81 = arith.extf %80 : vector<16x128xbf16> to vector<16x128xf32>
    %82 = arith.maximumf %78, %81 : vector<16x128xf32>
    %83 = vector.extract_strided_slice %82 {offsets = [0, 0], sizes = [4, 128], strides = [1, 1]} : vector<16x128xf32> to vector<4x128xf32>
    %cst_67 = arith.constant dense<0xFF800000> : vector<128xf32>
    %84 = vector.multi_reduction <maximumf>, %83, %cst_67 [0] : vector<4x128xf32> to vector<128xf32>
    %85 = vector.shape_cast %84 : vector<128xf32> to vector<1x128xf32>
    %86 = vector.extract_strided_slice %82 {offsets = [4, 0], sizes = [4, 128], strides = [1, 1]} : vector<16x128xf32> to vector<4x128xf32>
    %cst_68 = arith.constant dense<0xFF800000> : vector<128xf32>
    %87 = vector.multi_reduction <maximumf>, %86, %cst_68 [0] : vector<4x128xf32> to vector<128xf32>
    %88 = vector.shape_cast %87 : vector<128xf32> to vector<1x128xf32>
    %89 = vector.extract_strided_slice %82 {offsets = [8, 0], sizes = [4, 128], strides = [1, 1]} : vector<16x128xf32> to vector<4x128xf32>
    %cst_69 = arith.constant dense<0xFF800000> : vector<128xf32>
    %90 = vector.multi_reduction <maximumf>, %89, %cst_69 [0] : vector<4x128xf32> to vector<128xf32>
    %91 = vector.shape_cast %90 : vector<128xf32> to vector<1x128xf32>
    %92 = vector.extract_strided_slice %82 {offsets = [12, 0], sizes = [4, 128], strides = [1, 1]} : vector<16x128xf32> to vector<4x128xf32>
    %cst_70 = arith.constant dense<0xFF800000> : vector<128xf32>
    %93 = vector.multi_reduction <maximumf>, %92, %cst_70 [0] : vector<4x128xf32> to vector<128xf32>
    %94 = vector.shape_cast %93 : vector<128xf32> to vector<1x128xf32>
    %95 = tpu.concatenate %85, %88, %91, %94 in 0 : vector<1x128xf32>, vector<1x128xf32>, vector<1x128xf32>, vector<1x128xf32> -> vector<4x128xf32>
    %c73 = arith.constant 73 : index
    %c0_71 = arith.constant 0 : index
    %96 = vector.load %arg10[%c73, %c0_71] : memref<256x128xf32, #tpu.memory_space<vmem>>, vector<4x128xf32>
    tpu.vector_store %arg10[%c73, %c0_71], %95 {strides = array<i32>} : memref<256x128xf32, #tpu.memory_space<vmem>>, vector<4x128xf32>,
    %c0_72 = arith.constant 0 : index
    %c64 = arith.constant 64 : index
    %c0_73 = arith.constant 0 : index
    %97 = vector.load %arg9[%c0_72, %c64, %c0_73] : memref<4x256x128xbf16, #tpu.memory_space<vmem>>, vector<1x16x128xbf16>
    %98 = vector.shape_cast %97 : vector<1x16x128xbf16> to vector<16x128xbf16>
    %99 = arith.extf %98 : vector<16x128xbf16> to vector<16x128xf32>
    %c0_74 = arith.constant 0 : index
    %c80 = arith.constant 80 : index
    %c0_75 = arith.constant 0 : index
    %100 = vector.load %arg9[%c0_74, %c80, %c0_75] : memref<4x256x128xbf16, #tpu.memory_space<vmem>>, vector<1x16x128xbf16>
    %101 = vector.shape_cast %100 : vector<1x16x128xbf16> to vector<16x128xbf16>
    %102 = arith.extf %101 : vector<16x128xbf16> to vector<16x128xf32>
    %103 = arith.maximumf %99, %102 : vector<16x128xf32>
    %c0_76 = arith.constant 0 : index
    %c96 = arith.constant 96 : index
    %c0_77 = arith.constant 0 : index
    %104 = vector.load %arg9[%c0_76, %c96, %c0_77] : memref<4x256x128xbf16, #tpu.memory_space<vmem>>, vector<1x16x128xbf16>
    %105 = vector.shape_cast %104 : vector<1x16x128xbf16> to vector<16x128xbf16>
    %106 = arith.extf %105 : vector<16x128xbf16> to vector<16x128xf32>
    %107 = arith.maximumf %103, %106 : vector<16x128xf32>
    %c0_78 = arith.constant 0 : index
    %c112 = arith.constant 112 : index
    %c0_79 = arith.constant 0 : index
    %108 = vector.load %arg9[%c0_78, %c112, %c0_79] : memref<4x256x128xbf16, #tpu.memory_space<vmem>>, vector<1x16x128xbf16>
    %109 = vector.shape_cast %108 : vector<1x16x128xbf16> to vector<16x128xbf16>
    %110 = arith.extf %109 : vector<16x128xbf16> to vector<16x128xf32>
    %111 = arith.maximumf %107, %110 : vector<16x128xf32>
    %c1_80 = arith.constant 1 : index
    %c64_81 = arith.constant 64 : index
    %c0_82 = arith.constant 0 : index
    %112 = vector.load %arg9[%c1_80, %c64_81, %c0_82] : memref<4x256x128xbf16, #tpu.memory_space<vmem>>, vector<1x16x128xbf16>
    %113 = vector.shape_cast %112 : vector<1x16x128xbf16> to vector<16x128xbf16>
    %114 = arith.extf %113 : vector<16x128xbf16> to vector<16x128xf32>
    %115 = arith.maximumf %111, %114 : vector<16x128xf32>
    %c1_83 = arith.constant 1 : index
    %c80_84 = arith.constant 80 : index
    %c0_85 = arith.constant 0 : index
    %116 = vector.load %arg9[%c1_83, %c80_84, %c0_85] : memref<4x256x128xbf16, #tpu.memory_space<vmem>>, vector<1x16x128xbf16>
    %117 = vector.shape_cast %116 : vector<1x16x128xbf16> to vector<16x128xbf16>
    %118 = arith.extf %117 : vector<16x128xbf16> to vector<16x128xf32>
    %119 = arith.maximumf %115, %118 : vector<16x128xf32>
    %c1_86 = arith.constant 1 : index
    %c96_87 = arith.constant 96 : index
    %c0_88 = arith.constant 0 : index
    %120 = vector.load %arg9[%c1_86, %c96_87, %c0_88] : memref<4x256x128xbf16, #tpu.memory_space<vmem>>, vector<1x16x128xbf16>
    %121 = vector.shape_cast %120 : vector<1x16x128xbf16> to vector<16x128xbf16>
    %122 = arith.extf %121 : vector<16x128xbf16> to vector<16x128xf32>
    %123 = arith.maximumf %119, %122 : vector<16x128xf32>
    %c1_89 = arith.constant 1 : index
    %c112_90 = arith.constant 112 : index
    %c0_91 = arith.constant 0 : index
    %124 = vector.load %arg9[%c1_89, %c112_90, %c0_91] : memref<4x256x128xbf16, #tpu.memory_space<vmem>>, vector<1x16x128xbf16>
    %125 = vector.shape_cast %124 : vector<1x16x128xbf16> to vector<16x128xbf16>
    %126 = arith.extf %125 : vector<16x128xbf16> to vector<16x128xf32>
    %127 = arith.maximumf %123, %126 : vector<16x128xf32>
    %128 = vector.extract_strided_slice %127 {offsets = [0, 0], sizes = [4, 128], strides = [1, 1]} : vector<16x128xf32> to vector<4x128xf32>
    %cst_92 = arith.constant dense<0xFF800000> : vector<128xf32>
    %129 = vector.multi_reduction <maximumf>, %128, %cst_92 [0] : vector<4x128xf32> to vector<128xf32>
    %130 = vector.shape_cast %129 : vector<128xf32> to vector<1x128xf32>
    %131 = vector.extract_strided_slice %127 {offsets = [4, 0], sizes = [4, 128], strides = [1, 1]} : vector<16x128xf32> to vector<4x128xf32>
    %cst_93 = arith.constant dense<0xFF800000> : vector<128xf32>
    %132 = vector.multi_reduction <maximumf>, %131, %cst_93 [0] : vector<4x128xf32> to vector<128xf32>
    %133 = vector.shape_cast %132 : vector<128xf32> to vector<1x128xf32>
    %134 = vector.extract_strided_slice %127 {offsets = [8, 0], sizes = [4, 128], strides = [1, 1]} : vector<16x128xf32> to vector<4x128xf32>
    %cst_94 = arith.constant dense<0xFF800000> : vector<128xf32>
    %135 = vector.multi_reduction <maximumf>, %134, %cst_94 [0] : vector<4x128xf32> to vector<128xf32>
    %136 = vector.shape_cast %135 : vector<128xf32> to vector<1x128xf32>
    %137 = vector.extract_strided_slice %127 {offsets = [12, 0], sizes = [4, 128], strides = [1, 1]} : vector<16x128xf32> to vector<4x128xf32>
    %cst_95 = arith.constant dense<0xFF800000> : vector<128xf32>
    %138 = vector.multi_reduction <maximumf>, %137, %cst_95 [0] : vector<4x128xf32> to vector<128xf32>
    %139 = vector.shape_cast %138 : vector<128xf32> to vector<1x128xf32>
    %140 = tpu.concatenate %130, %133, %136, %139 in 0 : vector<1x128xf32>, vector<1x128xf32>, vector<1x128xf32>, vector<1x128xf32> -> vector<4x128xf32>
    %c81 = arith.constant 81 : index
    %c0_96 = arith.constant 0 : index
    %141 = vector.load %arg10[%c81, %c0_96] : memref<256x128xf32, #tpu.memory_space<vmem>>, vector<4x128xf32>
    tpu.vector_store %arg10[%c81, %c0_96], %140 {strides = array<i32>} : memref<256x128xf32, #tpu.memory_space<vmem>>, vector<4x128xf32>,
    %c0_97 = arith.constant 0 : index
    %c128 = arith.constant 128 : index
    %c0_98 = arith.constant 0 : index
    %142 = vector.load %arg9[%c0_97, %c128, %c0_98] : memref<4x256x128xbf16, #tpu.memory_space<vmem>>, vector<1x16x128xbf16>
    %143 = vector.shape_cast %142 : vector<1x16x128xbf16> to vector<16x128xbf16>
    %144 = arith.extf %143 : vector<16x128xbf16> to vector<16x128xf32>
    %c0_99 = arith.constant 0 : index
    %c144 = arith.constant 144 : index
    %c0_100 = arith.constant 0 : index
    %145 = vector.load %arg9[%c0_99, %c144, %c0_100] : memref<4x256x128xbf16, #tpu.memory_space<vmem>>, vector<1x16x128xbf16>
    %146 = vector.shape_cast %145 : vector<1x16x128xbf16> to vector<16x128xbf16>
    %147 = arith.extf %146 : vector<16x128xbf16> to vector<16x128xf32>
    %148 = arith.maximumf %144, %147 : vector<16x128xf32>
    %c0_101 = arith.constant 0 : index
    %c160 = arith.constant 160 : index
    %c0_102 = arith.constant 0 : index
    %149 = vector.load %arg9[%c0_101, %c160, %c0_102] : memref<4x256x128xbf16, #tpu.memory_space<vmem>>, vector<1x16x128xbf16>
    %150 = vector.shape_cast %149 : vector<1x16x128xbf16> to vector<16x128xbf16>
    %151 = arith.extf %150 : vector<16x128xbf16> to vector<16x128xf32>
    %152 = arith.maximumf %148, %151 : vector<16x128xf32>
    %c0_103 = arith.constant 0 : index
    %c176 = arith.constant 176 : index
    %c0_104 = arith.constant 0 : index
    %153 = vector.load %arg9[%c0_103, %c176, %c0_104] : memref<4x256x128xbf16, #tpu.memory_space<vmem>>, vector<1x16x128xbf16>
    %154 = vector.shape_cast %153 : vector<1x16x128xbf16> to vector<16x128xbf16>
    %155 = arith.extf %154 : vector<16x128xbf16> to vector<16x128xf32>
    %156 = arith.maximumf %152, %155 : vector<16x128xf32>
    %c1_105 = arith.constant 1 : index
    %c128_106 = arith.constant 128 : index
    %c0_107 = arith.constant 0 : index
    %157 = vector.load %arg9[%c1_105, %c128_106, %c0_107] : memref<4x256x128xbf16, #tpu.memory_space<vmem>>, vector<1x16x128xbf16>
    %158 = vector.shape_cast %157 : vector<1x16x128xbf16> to vector<16x128xbf16>
    %159 = arith.extf %158 : vector<16x128xbf16> to vector<16x128xf32>
    %160 = arith.maximumf %156, %159 : vector<16x128xf32>
    %c1_108 = arith.constant 1 : index
    %c144_109 = arith.constant 144 : index
    %c0_110 = arith.constant 0 : index
    %161 = vector.load %arg9[%c1_108, %c144_109, %c0_110] : memref<4x256x128xbf16, #tpu.memory_space<vmem>>, vector<1x16x128xbf16>
    %162 = vector.shape_cast %161 : vector<1x16x128xbf16> to vector<16x128xbf16>
    %163 = arith.extf %162 : vector<16x128xbf16> to vector<16x128xf32>
    %164 = arith.maximumf %160, %163 : vector<16x128xf32>
    %c1_111 = arith.constant 1 : index
    %c160_112 = arith.constant 160 : index
    %c0_113 = arith.constant 0 : index
    %165 = vector.load %arg9[%c1_111, %c160_112, %c0_113] : memref<4x256x128xbf16, #tpu.memory_space<vmem>>, vector<1x16x128xbf16>
    %166 = vector.shape_cast %165 : vector<1x16x128xbf16> to vector<16x128xbf16>
    %167 = arith.extf %166 : vector<16x128xbf16> to vector<16x128xf32>
    %168 = arith.maximumf %164, %167 : vector<16x128xf32>
    %c1_114 = arith.constant 1 : index
    %c176_115 = arith.constant 176 : index
    %c0_116 = arith.constant 0 : index
    %169 = vector.load %arg9[%c1_114, %c176_115, %c0_116] : memref<4x256x128xbf16, #tpu.memory_space<vmem>>, vector<1x16x128xbf16>
    %170 = vector.shape_cast %169 : vector<1x16x128xbf16> to vector<16x128xbf16>
    %171 = arith.extf %170 : vector<16x128xbf16> to vector<16x128xf32>
    %172 = arith.maximumf %168, %171 : vector<16x128xf32>
    %173 = vector.extract_strided_slice %172 {offsets = [0, 0], sizes = [4, 128], strides = [1, 1]} : vector<16x128xf32> to vector<4x128xf32>
    %cst_117 = arith.constant dense<0xFF800000> : vector<128xf32>
    %174 = vector.multi_reduction <maximumf>, %173, %cst_117 [0] : vector<4x128xf32> to vector<128xf32>
    %175 = vector.shape_cast %174 : vector<128xf32> to vector<1x128xf32>
    %176 = vector.extract_strided_slice %172 {offsets = [4, 0], sizes = [4, 128], strides = [1, 1]} : vector<16x128xf32> to vector<4x128xf32>
    %cst_118 = arith.constant dense<0xFF800000> : vector<128xf32>
    %177 = vector.multi_reduction <maximumf>, %176, %cst_118 [0] : vector<4x128xf32> to vector<128xf32>
    %178 = vector.shape_cast %177 : vector<128xf32> to vector<1x128xf32>
    %179 = vector.extract_strided_slice %172 {offsets = [8, 0], sizes = [4, 128], strides = [1, 1]} : vector<16x128xf32> to vector<4x128xf32>
    %cst_119 = arith.constant dense<0xFF800000> : vector<128xf32>
    %180 = vector.multi_reduction <maximumf>, %179, %cst_119 [0] : vector<4x128xf32> to vector<128xf32>
    %181 = vector.shape_cast %180 : vector<128xf32> to vector<1x128xf32>
    %182 = vector.extract_strided_slice %172 {offsets = [12, 0], sizes = [4, 128], strides = [1, 1]} : vector<16x128xf32> to vector<4x128xf32>
    %cst_120 = arith.constant dense<0xFF800000> : vector<128xf32>
    %183 = vector.multi_reduction <maximumf>, %182, %cst_120 [0] : vector<4x128xf32> to vector<128xf32>
    %184 = vector.shape_cast %183 : vector<128xf32> to vector<1x128xf32>
    %185 = tpu.concatenate %175, %178, %181, %184 in 0 : vector<1x128xf32>, vector<1x128xf32>, vector<1x128xf32>, vector<1x128xf32> -> vector<4x128xf32>
    %c89 = arith.constant 89 : index
    %c0_121 = arith.constant 0 : index
    %186 = vector.load %arg10[%c89, %c0_121] : memref<256x128xf32, #tpu.memory_space<vmem>>, vector<4x128xf32>
    tpu.vector_store %arg10[%c89, %c0_121], %185 {strides = array<i32>} : memref<256x128xf32, #tpu.memory_space<vmem>>, vector<4x128xf32>,
    %c0_122 = arith.constant 0 : index
    %c192 = arith.constant 192 : index
    %c0_123 = arith.constant 0 : index
    %187 = vector.load %arg9[%c0_122, %c192, %c0_123] : memref<4x256x128xbf16, #tpu.memory_space<vmem>>, vector<1x16x128xbf16>
    %188 = vector.shape_cast %187 : vector<1x16x128xbf16> to vector<16x128xbf16>
    %189 = arith.extf %188 : vector<16x128xbf16> to vector<16x128xf32>
    %c0_124 = arith.constant 0 : index
    %c208 = arith.constant 208 : index
    %c0_125 = arith.constant 0 : index
    %190 = vector.load %arg9[%c0_124, %c208, %c0_125] : memref<4x256x128xbf16, #tpu.memory_space<vmem>>, vector<1x16x128xbf16>
    %191 = vector.shape_cast %190 : vector<1x16x128xbf16> to vector<16x128xbf16>
    %192 = arith.extf %191 : vector<16x128xbf16> to vector<16x128xf32>
    %193 = arith.maximumf %189, %192 : vector<16x128xf32>
    %c0_126 = arith.constant 0 : index
    %c224 = arith.constant 224 : index
    %c0_127 = arith.constant 0 : index
    %194 = vector.load %arg9[%c0_126, %c224, %c0_127] : memref<4x256x128xbf16, #tpu.memory_space<vmem>>, vector<1x16x128xbf16>
    %195 = vector.shape_cast %194 : vector<1x16x128xbf16> to vector<16x128xbf16>
    %196 = arith.extf %195 : vector<16x128xbf16> to vector<16x128xf32>
    %197 = arith.maximumf %193, %196 : vector<16x128xf32>
    %c0_128 = arith.constant 0 : index
    %c240 = arith.constant 240 : index
    %c0_129 = arith.constant 0 : index
    %198 = vector.load %arg9[%c0_128, %c240, %c0_129] : memref<4x256x128xbf16, #tpu.memory_space<vmem>>, vector<1x16x128xbf16>
    %199 = vector.shape_cast %198 : vector<1x16x128xbf16> to vector<16x128xbf16>
    %200 = arith.extf %199 : vector<16x128xbf16> to vector<16x128xf32>
    %201 = arith.maximumf %197, %200 : vector<16x128xf32>
    %c1_130 = arith.constant 1 : index
    %c192_131 = arith.constant 192 : index
    %c0_132 = arith.constant 0 : index
    %202 = vector.load %arg9[%c1_130, %c192_131, %c0_132] : memref<4x256x128xbf16, #tpu.memory_space<vmem>>, vector<1x16x128xbf16>
    %203 = vector.shape_cast %202 : vector<1x16x128xbf16> to vector<16x128xbf16>
    %204 = arith.extf %203 : vector<16x128xbf16> to vector<16x128xf32>
    %205 = arith.maximumf %201, %204 : vector<16x128xf32>
    %c1_133 = arith.constant 1 : index
    %c208_134 = arith.constant 208 : index
    %c0_135 = arith.constant 0 : index
    %206 = vector.load %arg9[%c1_133, %c208_134, %c0_135] : memref<4x256x128xbf16, #tpu.memory_space<vmem>>, vector<1x16x128xbf16>
    %207 = vector.shape_cast %206 : vector<1x16x128xbf16> to vector<16x128xbf16>
    %208 = arith.extf %207 : vector<16x128xbf16> to vector<16x128xf32>
    %209 = arith.maximumf %205, %208 : vector<16x128xf32>
    %c1_136 = arith.constant 1 : index
    %c224_137 = arith.constant 224 : index
    %c0_138 = arith.constant 0 : index
    %210 = vector.load %arg9[%c1_136, %c224_137, %c0_138] : memref<4x256x128xbf16, #tpu.memory_space<vmem>>, vector<1x16x128xbf16>
    %211 = vector.shape_cast %210 : vector<1x16x128xbf16> to vector<16x128xbf16>
    %212 = arith.extf %211 : vector<16x128xbf16> to vector<16x128xf32>
    %213 = arith.maximumf %209, %212 : vector<16x128xf32>
    %c1_139 = arith.constant 1 : index
    %c240_140 = arith.constant 240 : index
    %c0_141 = arith.constant 0 : index
    %214 = vector.load %arg9[%c1_139, %c240_140, %c0_141] : memref<4x256x128xbf16, #tpu.memory_space<vmem>>, vector<1x16x128xbf16>
    %215 = vector.shape_cast %214 : vector<1x16x128xbf16> to vector<16x128xbf16>
    %216 = arith.extf %215 : vector<16x128xbf16> to vector<16x128xf32>
    %217 = arith.maximumf %213, %216 : vector<16x128xf32>
    %218 = vector.extract_strided_slice %217 {offsets = [0, 0], sizes = [4, 128], strides = [1, 1]} : vector<16x128xf32> to vector<4x128xf32>
    %cst_142 = arith.constant dense<0xFF800000> : vector<128xf32>
    %219 = vector.multi_reduction <maximumf>, %218, %cst_142 [0] : vector<4x128xf32> to vector<128xf32>
    %220 = vector.shape_cast %219 : vector<128xf32> to vector<1x128xf32>
    %221 = vector.extract_strided_slice %217 {offsets = [4, 0], sizes = [4, 128], strides = [1, 1]} : vector<16x128xf32> to vector<4x128xf32>
    %cst_143 = arith.constant dense<0xFF800000> : vector<128xf32>
    %222 = vector.multi_reduction <maximumf>, %221, %cst_143 [0] : vector<4x128xf32> to vector<128xf32>
    %223 = vector.shape_cast %222 : vector<128xf32> to vector<1x128xf32>
    %224 = vector.extract_strided_slice %217 {offsets = [8, 0], sizes = [4, 128], strides = [1, 1]} : vector<16x128xf32> to vector<4x128xf32>
    %cst_144 = arith.constant dense<0xFF800000> : vector<128xf32>
    %225 = vector.multi_reduction <maximumf>, %224, %cst_144 [0] : vector<4x128xf32> to vector<128xf32>
    %226 = vector.shape_cast %225 : vector<128xf32> to vector<1x128xf32>
    %227 = vector.extract_strided_slice %217 {offsets = [12, 0], sizes = [4, 128], strides = [1, 1]} : vector<16x128xf32> to vector<4x128xf32>
    %cst_145 = arith.constant dense<0xFF800000> : vector<128xf32>
    %228 = vector.multi_reduction <maximumf>, %227, %cst_145 [0] : vector<4x128xf32> to vector<128xf32>
    %229 = vector.shape_cast %228 : vector<128xf32> to vector<1x128xf32>
    %230 = tpu.concatenate %220, %223, %226, %229 in 0 : vector<1x128xf32>, vector<1x128xf32>, vector<1x128xf32>, vector<1x128xf32> -> vector<4x128xf32>
    %c97 = arith.constant 97 : index
    %c0_146 = arith.constant 0 : index
    %231 = vector.load %arg10[%c97, %c0_146] : memref<256x128xf32, #tpu.memory_space<vmem>>, vector<4x128xf32>
    tpu.vector_store %arg10[%c97, %c0_146], %230 {strides = array<i32>} : memref<256x128xf32, #tpu.memory_space<vmem>>, vector<4x128xf32>,
    %c2_147 = arith.constant 2 : index
    %c0_148 = arith.constant 0 : index
    %c0_149 = arith.constant 0 : index
    %232 = vector.load %arg9[%c2_147, %c0_148, %c0_149] : memref<4x256x128xbf16, #tpu.memory_space<vmem>>, vector<1x16x128xbf16>
    %233 = vector.shape_cast %232 : vector<1x16x128xbf16> to vector<16x128xbf16>
    %234 = arith.extf %233 : vector<16x128xbf16> to vector<16x128xf32>
    %c2_150 = arith.constant 2 : index
    %c16_151 = arith.constant 16 : index
    %c0_152 = arith.constant 0 : index
    %235 = vector.load %arg9[%c2_150, %c16_151, %c0_152] : memref<4x256x128xbf16, #tpu.memory_space<vmem>>, vector<1x16x128xbf16>
    %236 = vector.shape_cast %235 : vector<1x16x128xbf16> to vector<16x128xbf16>
    %237 = arith.extf %236 : vector<16x128xbf16> to vector<16x128xf32>
    %238 = arith.maximumf %234, %237 : vector<16x128xf32>
    %c2_153 = arith.constant 2 : index
    %c32_154 = arith.constant 32 : index
    %c0_155 = arith.constant 0 : index
    %239 = vector.load %arg9[%c2_153, %c32_154, %c0_155] : memref<4x256x128xbf16, #tpu.memory_space<vmem>>, vector<1x16x128xbf16>
    %240 = vector.shape_cast %239 : vector<1x16x128xbf16> to vector<16x128xbf16>
    %241 = arith.extf %240 : vector<16x128xbf16> to vector<16x128xf32>
    %242 = arith.maximumf %238, %241 : vector<16x128xf32>
    %c2_156 = arith.constant 2 : index
    %c48_157 = arith.constant 48 : index
    %c0_158 = arith.constant 0 : index
    %243 = vector.load %arg9[%c2_156, %c48_157, %c0_158] : memref<4x256x128xbf16, #tpu.memory_space<vmem>>, vector<1x16x128xbf16>
    %244 = vector.shape_cast %243 : vector<1x16x128xbf16> to vector<16x128xbf16>
    %245 = arith.extf %244 : vector<16x128xbf16> to vector<16x128xf32>
    %246 = arith.maximumf %242, %245 : vector<16x128xf32>
    %c3_159 = arith.constant 3 : index
    %c0_160 = arith.constant 0 : index
    %c0_161 = arith.constant 0 : index
    %247 = vector.load %arg9[%c3_159, %c0_160, %c0_161] : memref<4x256x128xbf16, #tpu.memory_space<vmem>>, vector<1x16x128xbf16>
    %248 = vector.shape_cast %247 : vector<1x16x128xbf16> to vector<16x128xbf16>
    %249 = arith.extf %248 : vector<16x128xbf16> to vector<16x128xf32>
    %250 = arith.maximumf %246, %249 : vector<16x128xf32>
    %c3_162 = arith.constant 3 : index
    %c16_163 = arith.constant 16 : index
    %c0_164 = arith.constant 0 : index
    %251 = vector.load %arg9[%c3_162, %c16_163, %c0_164] : memref<4x256x128xbf16, #tpu.memory_space<vmem>>, vector<1x16x128xbf16>
    %252 = vector.shape_cast %251 : vector<1x16x128xbf16> to vector<16x128xbf16>
    %253 = arith.extf %252 : vector<16x128xbf16> to vector<16x128xf32>
    %254 = arith.maximumf %250, %253 : vector<16x128xf32>
    %c3_165 = arith.constant 3 : index
    %c32_166 = arith.constant 32 : index
    %c0_167 = arith.constant 0 : index
    %255 = vector.load %arg9[%c3_165, %c32_166, %c0_167] : memref<4x256x128xbf16, #tpu.memory_space<vmem>>, vector<1x16x128xbf16>
    %256 = vector.shape_cast %255 : vector<1x16x128xbf16> to vector<16x128xbf16>
    %257 = arith.extf %256 : vector<16x128xbf16> to vector<16x128xf32>
    %258 = arith.maximumf %254, %257 : vector<16x128xf32>
    %c3_168 = arith.constant 3 : index
    %c48_169 = arith.constant 48 : index
    %c0_170 = arith.constant 0 : index
    %259 = vector.load %arg9[%c3_168, %c48_169, %c0_170] : memref<4x256x128xbf16, #tpu.memory_space<vmem>>, vector<1x16x128xbf16>
    %260 = vector.shape_cast %259 : vector<1x16x128xbf16> to vector<16x128xbf16>
    %261 = arith.extf %260 : vector<16x128xbf16> to vector<16x128xf32>
    %262 = arith.maximumf %258, %261 : vector<16x128xf32>
    %263 = vector.extract_strided_slice %262 {offsets = [0, 0], sizes = [4, 128], strides = [1, 1]} : vector<16x128xf32> to vector<4x128xf32>
    %cst_171 = arith.constant dense<0xFF800000> : vector<128xf32>
    %264 = vector.multi_reduction <maximumf>, %263, %cst_171 [0] : vector<4x128xf32> to vector<128xf32>
    %265 = vector.shape_cast %264 : vector<128xf32> to vector<1x128xf32>
    %266 = vector.extract_strided_slice %262 {offsets = [4, 0], sizes = [4, 128], strides = [1, 1]} : vector<16x128xf32> to vector<4x128xf32>
    %cst_172 = arith.constant dense<0xFF800000> : vector<128xf32>
    %267 = vector.multi_reduction <maximumf>, %266, %cst_172 [0] : vector<4x128xf32> to vector<128xf32>
    %268 = vector.shape_cast %267 : vector<128xf32> to vector<1x128xf32>
    %269 = vector.extract_strided_slice %262 {offsets = [8, 0], sizes = [4, 128], strides = [1, 1]} : vector<16x128xf32> to vector<4x128xf32>
    %cst_173 = arith.constant dense<0xFF800000> : vector<128xf32>
    %270 = vector.multi_reduction <maximumf>, %269, %cst_173 [0] : vector<4x128xf32> to vector<128xf32>
    %271 = vector.shape_cast %270 : vector<128xf32> to vector<1x128xf32>
    %272 = vector.extract_strided_slice %262 {offsets = [12, 0], sizes = [4, 128], strides = [1, 1]} : vector<16x128xf32> to vector<4x128xf32>
    %cst_174 = arith.constant dense<0xFF800000> : vector<128xf32>
    %273 = vector.multi_reduction <maximumf>, %272, %cst_174 [0] : vector<4x128xf32> to vector<128xf32>
    %274 = vector.shape_cast %273 : vector<128xf32> to vector<1x128xf32>
    %275 = tpu.concatenate %265, %268, %271, %274 in 0 : vector<1x128xf32>, vector<1x128xf32>, vector<1x128xf32>, vector<1x128xf32> -> vector<4x128xf32>
    %c137 = arith.constant 137 : index
    %c0_175 = arith.constant 0 : index
    %276 = vector.load %arg10[%c137, %c0_175] : memref<256x128xf32, #tpu.memory_space<vmem>>, vector<4x128xf32>
    tpu.vector_store %arg10[%c137, %c0_175], %275 {strides = array<i32>} : memref<256x128xf32, #tpu.memory_space<vmem>>, vector<4x128xf32>,
    %c2_176 = arith.constant 2 : index
    %c64_177 = arith.constant 64 : index
    %c0_178 = arith.constant 0 : index
    %277 = vector.load %arg9[%c2_176, %c64_177, %c0_178] : memref<4x256x128xbf16, #tpu.memory_space<vmem>>, vector<1x16x128xbf16>
    %278 = vector.shape_cast %277 : vector<1x16x128xbf16> to vector<16x128xbf16>
    %279 = arith.extf %278 : vector<16x128xbf16> to vector<16x128xf32>
    %c2_179 = arith.constant 2 : index
    %c80_180 = arith.constant 80 : index
    %c0_181 = arith.constant 0 : index
    %280 = vector.load %arg9[%c2_179, %c80_180, %c0_181] : memref<4x256x128xbf16, #tpu.memory_space<vmem>>, vector<1x16x128xbf16>
    %281 = vector.shape_cast %280 : vector<1x16x128xbf16> to vector<16x128xbf16>
    %282 = arith.extf %281 : vector<16x128xbf16> to vector<16x128xf32>
    %283 = arith.maximumf %279, %282 : vector<16x128xf32>
    %c2_182 = arith.constant 2 : index
    %c96_183 = arith.constant 96 : index
    %c0_184 = arith.constant 0 : index
    %284 = vector.load %arg9[%c2_182, %c96_183, %c0_184] : memref<4x256x128xbf16, #tpu.memory_space<vmem>>, vector<1x16x128xbf16>
    %285 = vector.shape_cast %284 : vector<1x16x128xbf16> to vector<16x128xbf16>
    %286 = arith.extf %285 : vector<16x128xbf16> to vector<16x128xf32>
    %287 = arith.maximumf %283, %286 : vector<16x128xf32>
    %c2_185 = arith.constant 2 : index
    %c112_186 = arith.constant 112 : index
    %c0_187 = arith.constant 0 : index
    %288 = vector.load %arg9[%c2_185, %c112_186, %c0_187] : memref<4x256x128xbf16, #tpu.memory_space<vmem>>, vector<1x16x128xbf16>
    %289 = vector.shape_cast %288 : vector<1x16x128xbf16> to vector<16x128xbf16>
    %290 = arith.extf %289 : vector<16x128xbf16> to vector<16x128xf32>
    %291 = arith.maximumf %287, %290 : vector<16x128xf32>
    %c3_188 = arith.constant 3 : index
    %c64_189 = arith.constant 64 : index
    %c0_190 = arith.constant 0 : index
    %292 = vector.load %arg9[%c3_188, %c64_189, %c0_190] : memref<4x256x128xbf16, #tpu.memory_space<vmem>>, vector<1x16x128xbf16>
    %293 = vector.shape_cast %292 : vector<1x16x128xbf16> to vector<16x128xbf16>
    %294 = arith.extf %293 : vector<16x128xbf16> to vector<16x128xf32>
    %295 = arith.maximumf %291, %294 : vector<16x128xf32>
    %c3_191 = arith.constant 3 : index
    %c80_192 = arith.constant 80 : index
    %c0_193 = arith.constant 0 : index
    %296 = vector.load %arg9[%c3_191, %c80_192, %c0_193] : memref<4x256x128xbf16, #tpu.memory_space<vmem>>, vector<1x16x128xbf16>
    %297 = vector.shape_cast %296 : vector<1x16x128xbf16> to vector<16x128xbf16>
    %298 = arith.extf %297 : vector<16x128xbf16> to vector<16x128xf32>
    %299 = arith.maximumf %295, %298 : vector<16x128xf32>
    %c3_194 = arith.constant 3 : index
    %c96_195 = arith.constant 96 : index
    %c0_196 = arith.constant 0 : index
    %300 = vector.load %arg9[%c3_194, %c96_195, %c0_196] : memref<4x256x128xbf16, #tpu.memory_space<vmem>>, vector<1x16x128xbf16>
    %301 = vector.shape_cast %300 : vector<1x16x128xbf16> to vector<16x128xbf16>
    %302 = arith.extf %301 : vector<16x128xbf16> to vector<16x128xf32>
    %303 = arith.maximumf %299, %302 : vector<16x128xf32>
    %c3_197 = arith.constant 3 : index
    %c112_198 = arith.constant 112 : index
    %c0_199 = arith.constant 0 : index
    %304 = vector.load %arg9[%c3_197, %c112_198, %c0_199] : memref<4x256x128xbf16, #tpu.memory_space<vmem>>, vector<1x16x128xbf16>
    %305 = vector.shape_cast %304 : vector<1x16x128xbf16> to vector<16x128xbf16>
    %306 = arith.extf %305 : vector<16x128xbf16> to vector<16x128xf32>
    %307 = arith.maximumf %303, %306 : vector<16x128xf32>
    %308 = vector.extract_strided_slice %307 {offsets = [0, 0], sizes = [4, 128], strides = [1, 1]} : vector<16x128xf32> to vector<4x128xf32>
    %cst_200 = arith.constant dense<0xFF800000> : vector<128xf32>
    %309 = vector.multi_reduction <maximumf>, %308, %cst_200 [0] : vector<4x128xf32> to vector<128xf32>
    %310 = vector.shape_cast %309 : vector<128xf32> to vector<1x128xf32>
    %311 = vector.extract_strided_slice %307 {offsets = [4, 0], sizes = [4, 128], strides = [1, 1]} : vector<16x128xf32> to vector<4x128xf32>
    %cst_201 = arith.constant dense<0xFF800000> : vector<128xf32>
    %312 = vector.multi_reduction <maximumf>, %311, %cst_201 [0] : vector<4x128xf32> to vector<128xf32>
    %313 = vector.shape_cast %312 : vector<128xf32> to vector<1x128xf32>
    %314 = vector.extract_strided_slice %307 {offsets = [8, 0], sizes = [4, 128], strides = [1, 1]} : vector<16x128xf32> to vector<4x128xf32>
    %cst_202 = arith.constant dense<0xFF800000> : vector<128xf32>
    %315 = vector.multi_reduction <maximumf>, %314, %cst_202 [0] : vector<4x128xf32> to vector<128xf32>
    %316 = vector.shape_cast %315 : vector<128xf32> to vector<1x128xf32>
    %317 = vector.extract_strided_slice %307 {offsets = [12, 0], sizes = [4, 128], strides = [1, 1]} : vector<16x128xf32> to vector<4x128xf32>
    %cst_203 = arith.constant dense<0xFF800000> : vector<128xf32>
    %318 = vector.multi_reduction <maximumf>, %317, %cst_203 [0] : vector<4x128xf32> to vector<128xf32>
    %319 = vector.shape_cast %318 : vector<128xf32> to vector<1x128xf32>
    %320 = tpu.concatenate %310, %313, %316, %319 in 0 : vector<1x128xf32>, vector<1x128xf32>, vector<1x128xf32>, vector<1x128xf32> -> vector<4x128xf32>
    %c145 = arith.constant 145 : index
    %c0_204 = arith.constant 0 : index
    %321 = vector.load %arg10[%c145, %c0_204] : memref<256x128xf32, #tpu.memory_space<vmem>>, vector<4x128xf32>
    tpu.vector_store %arg10[%c145, %c0_204], %320 {strides = array<i32>} : memref<256x128xf32, #tpu.memory_space<vmem>>, vector<4x128xf32>,
    %c2_205 = arith.constant 2 : index
    %c128_206 = arith.constant 128 : index
    %c0_207 = arith.constant 0 : index
    %322 = vector.load %arg9[%c2_205, %c128_206, %c0_207] : memref<4x256x128xbf16, #tpu.memory_space<vmem>>, vector<1x16x128xbf16>
    %323 = vector.shape_cast %322 : vector<1x16x128xbf16> to vector<16x128xbf16>
    %324 = arith.extf %323 : vector<16x128xbf16> to vector<16x128xf32>
    %c2_208 = arith.constant 2 : index
    %c144_209 = arith.constant 144 : index
    %c0_210 = arith.constant 0 : index
    %325 = vector.load %arg9[%c2_208, %c144_209, %c0_210] : memref<4x256x128xbf16, #tpu.memory_space<vmem>>, vector<1x16x128xbf16>
    %326 = vector.shape_cast %325 : vector<1x16x128xbf16> to vector<16x128xbf16>
    %327 = arith.extf %326 : vector<16x128xbf16> to vector<16x128xf32>
    %328 = arith.maximumf %324, %327 : vector<16x128xf32>
    %c2_211 = arith.constant 2 : index
    %c160_212 = arith.constant 160 : index
    %c0_213 = arith.constant 0 : index
    %329 = vector.load %arg9[%c2_211, %c160_212, %c0_213] : memref<4x256x128xbf16, #tpu.memory_space<vmem>>, vector<1x16x128xbf16>
    %330 = vector.shape_cast %329 : vector<1x16x128xbf16> to vector<16x128xbf16>
    %331 = arith.extf %330 : vector<16x128xbf16> to vector<16x128xf32>
    %332 = arith.maximumf %328, %331 : vector<16x128xf32>
    %c2_214 = arith.constant 2 : index
    %c176_215 = arith.constant 176 : index
    %c0_216 = arith.constant 0 : index
    %333 = vector.load %arg9[%c2_214, %c176_215, %c0_216] : memref<4x256x128xbf16, #tpu.memory_space<vmem>>, vector<1x16x128xbf16>
    %334 = vector.shape_cast %333 : vector<1x16x128xbf16> to vector<16x128xbf16>
    %335 = arith.extf %334 : vector<16x128xbf16> to vector<16x128xf32>
    %336 = arith.maximumf %332, %335 : vector<16x128xf32>
    %c3_217 = arith.constant 3 : index
    %c128_218 = arith.constant 128 : index
    %c0_219 = arith.constant 0 : index
    %337 = vector.load %arg9[%c3_217, %c128_218, %c0_219] : memref<4x256x128xbf16, #tpu.memory_space<vmem>>, vector<1x16x128xbf16>
    %338 = vector.shape_cast %337 : vector<1x16x128xbf16> to vector<16x128xbf16>
    %339 = arith.extf %338 : vector<16x128xbf16> to vector<16x128xf32>
    %340 = arith.maximumf %336, %339 : vector<16x128xf32>
    %c3_220 = arith.constant 3 : index
    %c144_221 = arith.constant 144 : index
    %c0_222 = arith.constant 0 : index
    %341 = vector.load %arg9[%c3_220, %c144_221, %c0_222] : memref<4x256x128xbf16, #tpu.memory_space<vmem>>, vector<1x16x128xbf16>
    %342 = vector.shape_cast %341 : vector<1x16x128xbf16> to vector<16x128xbf16>
    %343 = arith.extf %342 : vector<16x128xbf16> to vector<16x128xf32>
    %344 = arith.maximumf %340, %343 : vector<16x128xf32>
    %c3_223 = arith.constant 3 : index
    %c160_224 = arith.constant 160 : index
    %c0_225 = arith.constant 0 : index
    %345 = vector.load %arg9[%c3_223, %c160_224, %c0_225] : memref<4x256x128xbf16, #tpu.memory_space<vmem>>, vector<1x16x128xbf16>
    %346 = vector.shape_cast %345 : vector<1x16x128xbf16> to vector<16x128xbf16>
    %347 = arith.extf %346 : vector<16x128xbf16> to vector<16x128xf32>
    %348 = arith.maximumf %344, %347 : vector<16x128xf32>
    %c3_226 = arith.constant 3 : index
    %c176_227 = arith.constant 176 : index
    %c0_228 = arith.constant 0 : index
    %349 = vector.load %arg9[%c3_226, %c176_227, %c0_228] : memref<4x256x128xbf16, #tpu.memory_space<vmem>>, vector<1x16x128xbf16>
    %350 = vector.shape_cast %349 : vector<1x16x128xbf16> to vector<16x128xbf16>
    %351 = arith.extf %350 : vector<16x128xbf16> to vector<16x128xf32>
    %352 = arith.maximumf %348, %351 : vector<16x128xf32>
    %353 = vector.extract_strided_slice %352 {offsets = [0, 0], sizes = [4, 128], strides = [1, 1]} : vector<16x128xf32> to vector<4x128xf32>
    %cst_229 = arith.constant dense<0xFF800000> : vector<128xf32>
    %354 = vector.multi_reduction <maximumf>, %353, %cst_229 [0] : vector<4x128xf32> to vector<128xf32>
    %355 = vector.shape_cast %354 : vector<128xf32> to vector<1x128xf32>
    %356 = vector.extract_strided_slice %352 {offsets = [4, 0], sizes = [4, 128], strides = [1, 1]} : vector<16x128xf32> to vector<4x128xf32>
    %cst_230 = arith.constant dense<0xFF800000> : vector<128xf32>
    %357 = vector.multi_reduction <maximumf>, %356, %cst_230 [0] : vector<4x128xf32> to vector<128xf32>
    %358 = vector.shape_cast %357 : vector<128xf32> to vector<1x128xf32>
    %359 = vector.extract_strided_slice %352 {offsets = [8, 0], sizes = [4, 128], strides = [1, 1]} : vector<16x128xf32> to vector<4x128xf32>
    %cst_231 = arith.constant dense<0xFF800000> : vector<128xf32>
    %360 = vector.multi_reduction <maximumf>, %359, %cst_231 [0] : vector<4x128xf32> to vector<128xf32>
    %361 = vector.shape_cast %360 : vector<128xf32> to vector<1x128xf32>
    %362 = vector.extract_strided_slice %352 {offsets = [12, 0], sizes = [4, 128], strides = [1, 1]} : vector<16x128xf32> to vector<4x128xf32>
    %cst_232 = arith.constant dense<0xFF800000> : vector<128xf32>
    %363 = vector.multi_reduction <maximumf>, %362, %cst_232 [0] : vector<4x128xf32> to vector<128xf32>
    %364 = vector.shape_cast %363 : vector<128xf32> to vector<1x128xf32>
    %365 = tpu.concatenate %355, %358, %361, %364 in 0 : vector<1x128xf32>, vector<1x128xf32>, vector<1x128xf32>, vector<1x128xf32> -> vector<4x128xf32>
    %c153 = arith.constant 153 : index
    %c0_233 = arith.constant 0 : index
    %366 = vector.load %arg10[%c153, %c0_233] : memref<256x128xf32, #tpu.memory_space<vmem>>, vector<4x128xf32>
    tpu.vector_store %arg10[%c153, %c0_233], %365 {strides = array<i32>} : memref<256x128xf32, #tpu.memory_space<vmem>>, vector<4x128xf32>,
    %c2_234 = arith.constant 2 : index
    %c192_235 = arith.constant 192 : index
    %c0_236 = arith.constant 0 : index
    %367 = vector.load %arg9[%c2_234, %c192_235, %c0_236] : memref<4x256x128xbf16, #tpu.memory_space<vmem>>, vector<1x16x128xbf16>
    %368 = vector.shape_cast %367 : vector<1x16x128xbf16> to vector<16x128xbf16>
    %369 = arith.extf %368 : vector<16x128xbf16> to vector<16x128xf32>
    %c2_237 = arith.constant 2 : index
    %c208_238 = arith.constant 208 : index
    %c0_239 = arith.constant 0 : index
    %370 = vector.load %arg9[%c2_237, %c208_238, %c0_239] : memref<4x256x128xbf16, #tpu.memory_space<vmem>>, vector<1x16x128xbf16>
    %371 = vector.shape_cast %370 : vector<1x16x128xbf16> to vector<16x128xbf16>
    %372 = arith.extf %371 : vector<16x128xbf16> to vector<16x128xf32>
    %373 = arith.maximumf %369, %372 : vector<16x128xf32>
    %c2_240 = arith.constant 2 : index
    %c224_241 = arith.constant 224 : index
    %c0_242 = arith.constant 0 : index
    %374 = vector.load %arg9[%c2_240, %c224_241, %c0_242] : memref<4x256x128xbf16, #tpu.memory_space<vmem>>, vector<1x16x128xbf16>
    %375 = vector.shape_cast %374 : vector<1x16x128xbf16> to vector<16x128xbf16>
    %376 = arith.extf %375 : vector<16x128xbf16> to vector<16x128xf32>
    %377 = arith.maximumf %373, %376 : vector<16x128xf32>
    %c2_243 = arith.constant 2 : index
    %c240_244 = arith.constant 240 : index
    %c0_245 = arith.constant 0 : index
    %378 = vector.load %arg9[%c2_243, %c240_244, %c0_245] : memref<4x256x128xbf16, #tpu.memory_space<vmem>>, vector<1x16x128xbf16>
    %379 = vector.shape_cast %378 : vector<1x16x128xbf16> to vector<16x128xbf16>
    %380 = arith.extf %379 : vector<16x128xbf16> to vector<16x128xf32>
    %381 = arith.maximumf %377, %380 : vector<16x128xf32>
    %c3_246 = arith.constant 3 : index
    %c192_247 = arith.constant 192 : index
    %c0_248 = arith.constant 0 : index
    %382 = vector.load %arg9[%c3_246, %c192_247, %c0_248] : memref<4x256x128xbf16, #tpu.memory_space<vmem>>, vector<1x16x128xbf16>
    %383 = vector.shape_cast %382 : vector<1x16x128xbf16> to vector<16x128xbf16>
    %384 = arith.extf %383 : vector<16x128xbf16> to vector<16x128xf32>
    %385 = arith.maximumf %381, %384 : vector<16x128xf32>
    %c3_249 = arith.constant 3 : index
    %c208_250 = arith.constant 208 : index
    %c0_251 = arith.constant 0 : index
    %386 = vector.load %arg9[%c3_249, %c208_250, %c0_251] : memref<4x256x128xbf16, #tpu.memory_space<vmem>>, vector<1x16x128xbf16>
    %387 = vector.shape_cast %386 : vector<1x16x128xbf16> to vector<16x128xbf16>
    %388 = arith.extf %387 : vector<16x128xbf16> to vector<16x128xf32>
    %389 = arith.maximumf %385, %388 : vector<16x128xf32>
    %c3_252 = arith.constant 3 : index
    %c224_253 = arith.constant 224 : index
    %c0_254 = arith.constant 0 : index
    %390 = vector.load %arg9[%c3_252, %c224_253, %c0_254] : memref<4x256x128xbf16, #tpu.memory_space<vmem>>, vector<1x16x128xbf16>
    %391 = vector.shape_cast %390 : vector<1x16x128xbf16> to vector<16x128xbf16>
    %392 = arith.extf %391 : vector<16x128xbf16> to vector<16x128xf32>
    %393 = arith.maximumf %389, %392 : vector<16x128xf32>
    %c3_255 = arith.constant 3 : index
    %c240_256 = arith.constant 240 : index
    %c0_257 = arith.constant 0 : index
    %394 = vector.load %arg9[%c3_255, %c240_256, %c0_257] : memref<4x256x128xbf16, #tpu.memory_space<vmem>>, vector<1x16x128xbf16>
    %395 = vector.shape_cast %394 : vector<1x16x128xbf16> to vector<16x128xbf16>
    %396 = arith.extf %395 : vector<16x128xbf16> to vector<16x128xf32>
    %397 = arith.maximumf %393, %396 : vector<16x128xf32>
    %398 = vector.extract_strided_slice %397 {offsets = [0, 0], sizes = [4, 128], strides = [1, 1]} : vector<16x128xf32> to vector<4x128xf32>
    %cst_258 = arith.constant dense<0xFF800000> : vector<128xf32>
    %399 = vector.multi_reduction <maximumf>, %398, %cst_258 [0] : vector<4x128xf32> to vector<128xf32>
    %400 = vector.shape_cast %399 : vector<128xf32> to vector<1x128xf32>
    %401 = vector.extract_strided_slice %397 {offsets = [4, 0], sizes = [4, 128], strides = [1, 1]} : vector<16x128xf32> to vector<4x128xf32>
    %cst_259 = arith.constant dense<0xFF800000> : vector<128xf32>
    %402 = vector.multi_reduction <maximumf>, %401, %cst_259 [0] : vector<4x128xf32> to vector<128xf32>
    %403 = vector.shape_cast %402 : vector<128xf32> to vector<1x128xf32>
    %404 = vector.extract_strided_slice %397 {offsets = [8, 0], sizes = [4, 128], strides = [1, 1]} : vector<16x128xf32> to vector<4x128xf32>
    %cst_260 = arith.constant dense<0xFF800000> : vector<128xf32>
    %405 = vector.multi_reduction <maximumf>, %404, %cst_260 [0] : vector<4x128xf32> to vector<128xf32>
    %406 = vector.shape_cast %405 : vector<128xf32> to vector<1x128xf32>
    %407 = vector.extract_strided_slice %397 {offsets = [12, 0], sizes = [4, 128], strides = [1, 1]} : vector<16x128xf32> to vector<4x128xf32>
    %cst_261 = arith.constant dense<0xFF800000> : vector<128xf32>
    %408 = vector.multi_reduction <maximumf>, %407, %cst_261 [0] : vector<4x128xf32> to vector<128xf32>
    %409 = vector.shape_cast %408 : vector<128xf32> to vector<1x128xf32>
    %410 = tpu.concatenate %400, %403, %406, %409 in 0 : vector<1x128xf32>, vector<1x128xf32>, vector<1x128xf32>, vector<1x128xf32> -> vector<4x128xf32>
    %c161 = arith.constant 161 : index
    %c0_262 = arith.constant 0 : index
    %411 = vector.load %arg10[%c161, %c0_262] : memref<256x128xf32, #tpu.memory_space<vmem>>, vector<4x128xf32>
    tpu.vector_store %arg10[%c161, %c0_262], %410 {strides = array<i32>} : memref<256x128xf32, #tpu.memory_space<vmem>>, vector<4x128xf32>,
    %cst_263 = arith.constant 0.000000e+00 : f32
    %412 = vector.broadcast %cst_263 : f32 to vector<1x128xf32>
    %cst_264 = arith.constant 0.000000e+00 : f32
    %413 = vector.broadcast %cst_264 : f32 to vector<32x128xf32>
    %c0_265 = arith.constant 0 : index
    %c0_266 = arith.constant 0 : index
    %414 = vector.load %arg10[%c0_265, %c0_266] : memref<256x128xf32, #tpu.memory_space<vmem>>, vector<32x128xf32>
    %415 = arith.truncf %414 : vector<32x128xf32> to vector<32x128xbf16>
    %c0_267 = arith.constant 0 : index
    %c0_268 = arith.constant 0 : index
    %c0_269 = arith.constant 0 : index
    %416 = vector.load %arg4[%c0_267, %c0_268, %c0_269] : memref<27x128x128xbf16, #tpu.memory_space<vmem>>, vector<1x128x128xbf16>
    %417 = vector.shape_cast %416 : vector<1x128x128xbf16> to vector<128x128xbf16>
    %cst_270 = arith.constant dense<0.000000e+00> : vector<32x128xf32>
    %418 = tpu.matmul %415, %417, %cst_270 {dimension_numbers = #tpu.dot_dimension_numbers<[1], [0], [0], [1], [0, 0, 1, 1], [], []>} : vector<32x128xbf16>, vector<128x128xbf16>, vector<32x128xf32> -> vector<32x128xf32>
    %419 = arith.addf %413, %418 : vector<32x128xf32>
    %c1_271 = arith.constant 1 : index
    %c0_272 = arith.constant 0 : index
    %420 = vector.load %arg10[%c1_271, %c0_272] : memref<256x128xf32, #tpu.memory_space<vmem>>, vector<32x128xf32>
    %421 = arith.truncf %420 : vector<32x128xf32> to vector<32x128xbf16>
    %c1_273 = arith.constant 1 : index
    %c0_274 = arith.constant 0 : index
    %c0_275 = arith.constant 0 : index
    %422 = vector.load %arg4[%c1_273, %c0_274, %c0_275] : memref<27x128x128xbf16, #tpu.memory_space<vmem>>, vector<1x128x128xbf16>
    %423 = vector.shape_cast %422 : vector<1x128x128xbf16> to vector<128x128xbf16>
    %cst_276 = arith.constant dense<0.000000e+00> : vector<32x128xf32>
    %424 = tpu.matmul %421, %423, %cst_276 {dimension_numbers = #tpu.dot_dimension_numbers<[1], [0], [0], [1], [0, 0, 1, 1], [], []>} : vector<32x128xbf16>, vector<128x128xbf16>, vector<32x128xf32> -> vector<32x128xf32>
    %425 = arith.addf %419, %424 : vector<32x128xf32>
    %c2_277 = arith.constant 2 : index
    %c0_278 = arith.constant 0 : index
    %426 = vector.load %arg10[%c2_277, %c0_278] : memref<256x128xf32, #tpu.memory_space<vmem>>, vector<32x128xf32>
    %427 = arith.truncf %426 : vector<32x128xf32> to vector<32x128xbf16>
    %c2_279 = arith.constant 2 : index
    %c0_280 = arith.constant 0 : index
    %c0_281 = arith.constant 0 : index
    %428 = vector.load %arg4[%c2_279, %c0_280, %c0_281] : memref<27x128x128xbf16, #tpu.memory_space<vmem>>, vector<1x128x128xbf16>
    %429 = vector.shape_cast %428 : vector<1x128x128xbf16> to vector<128x128xbf16>
    %cst_282 = arith.constant dense<0.000000e+00> : vector<32x128xf32>
    %430 = tpu.matmul %427, %429, %cst_282 {dimension_numbers = #tpu.dot_dimension_numbers<[1], [0], [0], [1], [0, 0, 1, 1], [], []>} : vector<32x128xbf16>, vector<128x128xbf16>, vector<32x128xf32> -> vector<32x128xf32>
    %431 = arith.addf %425, %430 : vector<32x128xf32>
    %c8 = arith.constant 8 : index
    %c0_283 = arith.constant 0 : index
    %432 = vector.load %arg10[%c8, %c0_283] : memref<256x128xf32, #tpu.memory_space<vmem>>, vector<32x128xf32>
    %433 = arith.truncf %432 : vector<32x128xf32> to vector<32x128xbf16>
    %c3_284 = arith.constant 3 : index
    %c0_285 = arith.constant 0 : index
    %c0_286 = arith.constant 0 : index
    %434 = vector.load %arg4[%c3_284, %c0_285, %c0_286] : memref<27x128x128xbf16, #tpu.memory_space<vmem>>, vector<1x128x128xbf16>
    %435 = vector.shape_cast %434 : vector<1x128x128xbf16> to vector<128x128xbf16>
    %cst_287 = arith.constant dense<0.000000e+00> : vector<32x128xf32>
    %436 = tpu.matmul %433, %435, %cst_287 {dimension_numbers = #tpu.dot_dimension_numbers<[1], [0], [0], [1], [0, 0, 1, 1], [], []>} : vector<32x128xbf16>, vector<128x128xbf16>, vector<32x128xf32> -> vector<32x128xf32>
    %437 = arith.addf %431, %436 : vector<32x128xf32>
    %c9 = arith.constant 9 : index
    %c0_288 = arith.constant 0 : index
    %438 = vector.load %arg10[%c9, %c0_288] : memref<256x128xf32, #tpu.memory_space<vmem>>, vector<32x128xf32>
    %439 = arith.truncf %438 : vector<32x128xf32> to vector<32x128xbf16>
    %c4 = arith.constant 4 : index
    %c0_289 = arith.constant 0 : index
    %c0_290 = arith.constant 0 : index
    %440 = vector.load %arg4[%c4, %c0_289, %c0_290] : memref<27x128x128xbf16, #tpu.memory_space<vmem>>, vector<1x128x128xbf16>
    %441 = vector.shape_cast %440 : vector<1x128x128xbf16> to vector<128x128xbf16>
    %cst_291 = arith.constant dense<0.000000e+00> : vector<32x128xf32>
    %442 = tpu.matmul %439, %441, %cst_291 {dimension_numbers = #tpu.dot_dimension_numbers<[1], [0], [0], [1], [0, 0, 1, 1], [], []>} : vector<32x128xbf16>, vector<128x128xbf16>, vector<32x128xf32> -> vector<32x128xf32>
    %443 = arith.addf %437, %442 : vector<32x128xf32>
    %c10 = arith.constant 10 : index
    %c0_292 = arith.constant 0 : index
    %444 = vector.load %arg10[%c10, %c0_292] : memref<256x128xf32, #tpu.memory_space<vmem>>, vector<32x128xf32>
    %445 = arith.truncf %444 : vector<32x128xf32> to vector<32x128xbf16>
    %c5 = arith.constant 5 : index
    %c0_293 = arith.constant 0 : index
    %c0_294 = arith.constant 0 : index
    %446 = vector.load %arg4[%c5, %c0_293, %c0_294] : memref<27x128x128xbf16, #tpu.memory_space<vmem>>, vector<1x128x128xbf16>
    %447 = vector.shape_cast %446 : vector<1x128x128xbf16> to vector<128x128xbf16>
    %cst_295 = arith.constant dense<0.000000e+00> : vector<32x128xf32>
    %448 = tpu.matmul %445, %447, %cst_295 {dimension_numbers = #tpu.dot_dimension_numbers<[1], [0], [0], [1], [0, 0, 1, 1], [], []>} : vector<32x128xbf16>, vector<128x128xbf16>, vector<32x128xf32> -> vector<32x128xf32>
    %449 = arith.addf %443, %448 : vector<32x128xf32>
    %c16_296 = arith.constant 16 : index
    %c0_297 = arith.constant 0 : index
    %450 = vector.load %arg10[%c16_296, %c0_297] : memref<256x128xf32, #tpu.memory_space<vmem>>, vector<32x128xf32>
    %451 = arith.truncf %450 : vector<32x128xf32> to vector<32x128xbf16>
    %c6 = arith.constant 6 : index
    %c0_298 = arith.constant 0 : index
    %c0_299 = arith.constant 0 : index
    %452 = vector.load %arg4[%c6, %c0_298, %c0_299] : memref<27x128x128xbf16, #tpu.memory_space<vmem>>, vector<1x128x128xbf16>
    %453 = vector.shape_cast %452 : vector<1x128x128xbf16> to vector<128x128xbf16>
    %cst_300 = arith.constant dense<0.000000e+00> : vector<32x128xf32>
    %454 = tpu.matmul %451, %453, %cst_300 {dimension_numbers = #tpu.dot_dimension_numbers<[1], [0], [0], [1], [0, 0, 1, 1], [], []>} : vector<32x128xbf16>, vector<128x128xbf16>, vector<32x128xf32> -> vector<32x128xf32>
    %455 = arith.addf %449, %454 : vector<32x128xf32>
    %c17 = arith.constant 17 : index
    %c0_301 = arith.constant 0 : index
    %456 = vector.load %arg10[%c17, %c0_301] : memref<256x128xf32, #tpu.memory_space<vmem>>, vector<32x128xf32>
    %457 = arith.truncf %456 : vector<32x128xf32> to vector<32x128xbf16>
    %c7 = arith.constant 7 : index
    %c0_302 = arith.constant 0 : index
    %c0_303 = arith.constant 0 : index
    %458 = vector.load %arg4[%c7, %c0_302, %c0_303] : memref<27x128x128xbf16, #tpu.memory_space<vmem>>, vector<1x128x128xbf16>
    %459 = vector.shape_cast %458 : vector<1x128x128xbf16> to vector<128x128xbf16>
    %cst_304 = arith.constant dense<0.000000e+00> : vector<32x128xf32>
    %460 = tpu.matmul %457, %459, %cst_304 {dimension_numbers = #tpu.dot_dimension_numbers<[1], [0], [0], [1], [0, 0, 1, 1], [], []>} : vector<32x128xbf16>, vector<128x128xbf16>, vector<32x128xf32> -> vector<32x128xf32>
    %461 = arith.addf %455, %460 : vector<32x128xf32>
    %c18 = arith.constant 18 : index
    %c0_305 = arith.constant 0 : index
    %462 = vector.load %arg10[%c18, %c0_305] : memref<256x128xf32, #tpu.memory_space<vmem>>, vector<32x128xf32>
    %463 = arith.truncf %462 : vector<32x128xf32> to vector<32x128xbf16>
    %c8_306 = arith.constant 8 : index
    %c0_307 = arith.constant 0 : index
    %c0_308 = arith.constant 0 : index
    %464 = vector.load %arg4[%c8_306, %c0_307, %c0_308] : memref<27x128x128xbf16, #tpu.memory_space<vmem>>, vector<1x128x128xbf16>
    %465 = vector.shape_cast %464 : vector<1x128x128xbf16> to vector<128x128xbf16>
    %cst_309 = arith.constant dense<0.000000e+00> : vector<32x128xf32>
    %466 = tpu.matmul %463, %465, %cst_309 {dimension_numbers = #tpu.dot_dimension_numbers<[1], [0], [0], [1], [0, 0, 1, 1], [], []>} : vector<32x128xbf16>, vector<128x128xbf16>, vector<32x128xf32> -> vector<32x128xf32>
    %467 = arith.addf %461, %466 : vector<32x128xf32>
    %c64_310 = arith.constant 64 : index
    %c0_311 = arith.constant 0 : index
    %468 = vector.load %arg10[%c64_310, %c0_311] : memref<256x128xf32, #tpu.memory_space<vmem>>, vector<32x128xf32>
    %469 = arith.truncf %468 : vector<32x128xf32> to vector<32x128xbf16>
    %c9_312 = arith.constant 9 : index
    %c0_313 = arith.constant 0 : index
    %c0_314 = arith.constant 0 : index
    %470 = vector.load %arg4[%c9_312, %c0_313, %c0_314] : memref<27x128x128xbf16, #tpu.memory_space<vmem>>, vector<1x128x128xbf16>
    %471 = vector.shape_cast %470 : vector<1x128x128xbf16> to vector<128x128xbf16>
    %cst_315 = arith.constant dense<0.000000e+00> : vector<32x128xf32>
    %472 = tpu.matmul %469, %471, %cst_315 {dimension_numbers = #tpu.dot_dimension_numbers<[1], [0], [0], [1], [0, 0, 1, 1], [], []>} : vector<32x128xbf16>, vector<128x128xbf16>, vector<32x128xf32> -> vector<32x128xf32>
    %473 = arith.addf %467, %472 : vector<32x128xf32>
    %c65 = arith.constant 65 : index
    %c0_316 = arith.constant 0 : index
    %474 = vector.load %arg10[%c65, %c0_316] : memref<256x128xf32, #tpu.memory_space<vmem>>, vector<32x128xf32>
    %475 = arith.truncf %474 : vector<32x128xf32> to vector<32x128xbf16>
    %c10_317 = arith.constant 10 : index
    %c0_318 = arith.constant 0 : index
    %c0_319 = arith.constant 0 : index
    %476 = vector.load %arg4[%c10_317, %c0_318, %c0_319] : memref<27x128x128xbf16, #tpu.memory_space<vmem>>, vector<1x128x128xbf16>
    %477 = vector.shape_cast %476 : vector<1x128x128xbf16> to vector<128x128xbf16>
    %cst_320 = arith.constant dense<0.000000e+00> : vector<32x128xf32>
    %478 = tpu.matmul %475, %477, %cst_320 {dimension_numbers = #tpu.dot_dimension_numbers<[1], [0], [0], [1], [0, 0, 1, 1], [], []>} : vector<32x128xbf16>, vector<128x128xbf16>, vector<32x128xf32> -> vector<32x128xf32>
    %479 = arith.addf %473, %478 : vector<32x128xf32>
    %c66 = arith.constant 66 : index
    %c0_321 = arith.constant 0 : index
    %480 = vector.load %arg10[%c66, %c0_321] : memref<256x128xf32, #tpu.memory_space<vmem>>, vector<32x128xf32>
    %481 = arith.truncf %480 : vector<32x128xf32> to vector<32x128xbf16>
    %c11 = arith.constant 11 : index
    %c0_322 = arith.constant 0 : index
    %c0_323 = arith.constant 0 : index
    %482 = vector.load %arg4[%c11, %c0_322, %c0_323] : memref<27x128x128xbf16, #tpu.memory_space<vmem>>, vector<1x128x128xbf16>
    %483 = vector.shape_cast %482 : vector<1x128x128xbf16> to vector<128x128xbf16>
    %cst_324 = arith.constant dense<0.000000e+00> : vector<32x128xf32>
    %484 = tpu.matmul %481, %483, %cst_324 {dimension_numbers = #tpu.dot_dimension_numbers<[1], [0], [0], [1], [0, 0, 1, 1], [], []>} : vector<32x128xbf16>, vector<128x128xbf16>, vector<32x128xf32> -> vector<32x128xf32>
    %485 = arith.addf %479, %484 : vector<32x128xf32>
    %c72 = arith.constant 72 : index
    %c0_325 = arith.constant 0 : index
    %486 = vector.load %arg10[%c72, %c0_325] : memref<256x128xf32, #tpu.memory_space<vmem>>, vector<32x128xf32>
    %487 = arith.truncf %486 : vector<32x128xf32> to vector<32x128xbf16>
    %c12 = arith.constant 12 : index
    %c0_326 = arith.constant 0 : index
    %c0_327 = arith.constant 0 : index
    %488 = vector.load %arg4[%c12, %c0_326, %c0_327] : memref<27x128x128xbf16, #tpu.memory_space<vmem>>, vector<1x128x128xbf16>
    %489 = vector.shape_cast %488 : vector<1x128x128xbf16> to vector<128x128xbf16>
    %cst_328 = arith.constant dense<0.000000e+00> : vector<32x128xf32>
    %490 = tpu.matmul %487, %489, %cst_328 {dimension_numbers = #tpu.dot_dimension_numbers<[1], [0], [0], [1], [0, 0, 1, 1], [], []>} : vector<32x128xbf16>, vector<128x128xbf16>, vector<32x128xf32> -> vector<32x128xf32>
    %491 = arith.addf %485, %490 : vector<32x128xf32>
    %c73_329 = arith.constant 73 : index
    %c0_330 = arith.constant 0 : index
    %492 = vector.load %arg10[%c73_329, %c0_330] : memref<256x128xf32, #tpu.memory_space<vmem>>, vector<32x128xf32>
    %493 = arith.truncf %492 : vector<32x128xf32> to vector<32x128xbf16>
    %c13 = arith.constant 13 : index
    %c0_331 = arith.constant 0 : index
    %c0_332 = arith.constant 0 : index
    %494 = vector.load %arg4[%c13, %c0_331, %c0_332] : memref<27x128x128xbf16, #tpu.memory_space<vmem>>, vector<1x128x128xbf16>
    %495 = vector.shape_cast %494 : vector<1x128x128xbf16> to vector<128x128xbf16>
    %cst_333 = arith.constant dense<0.000000e+00> : vector<32x128xf32>
    %496 = tpu.matmul %493, %495, %cst_333 {dimension_numbers = #tpu.dot_dimension_numbers<[1], [0], [0], [1], [0, 0, 1, 1], [], []>} : vector<32x128xbf16>, vector<128x128xbf16>, vector<32x128xf32> -> vector<32x128xf32>
    %497 = arith.addf %491, %496 : vector<32x128xf32>
    %c74 = arith.constant 74 : index
    %c0_334 = arith.constant 0 : index
    %498 = vector.load %arg10[%c74, %c0_334] : memref<256x128xf32, #tpu.memory_space<vmem>>, vector<32x128xf32>
    %499 = arith.truncf %498 : vector<32x128xf32> to vector<32x128xbf16>
    %c14 = arith.constant 14 : index
    %c0_335 = arith.constant 0 : index
    %c0_336 = arith.constant 0 : index
    %500 = vector.load %arg4[%c14, %c0_335, %c0_336] : memref<27x128x128xbf16, #tpu.memory_space<vmem>>, vector<1x128x128xbf16>
    %501 = vector.shape_cast %500 : vector<1x128x128xbf16> to vector<128x128xbf16>
    %cst_337 = arith.constant dense<0.000000e+00> : vector<32x128xf32>
    %502 = tpu.matmul %499, %501, %cst_337 {dimension_numbers = #tpu.dot_dimension_numbers<[1], [0], [0], [1], [0, 0, 1, 1], [], []>} : vector<32x128xbf16>, vector<128x128xbf16>, vector<32x128xf32> -> vector<32x128xf32>
    %503 = arith.addf %497, %502 : vector<32x128xf32>
    %c80_338 = arith.constant 80 : index
    %c0_339 = arith.constant 0 : index
    %504 = vector.load %arg10[%c80_338, %c0_339] : memref<256x128xf32, #tpu.memory_space<vmem>>, vector<32x128xf32>
    %505 = arith.truncf %504 : vector<32x128xf32> to vector<32x128xbf16>
    %c15 = arith.constant 15 : index
    %c0_340 = arith.constant 0 : index
    %c0_341 = arith.constant 0 : index
    %506 = vector.load %arg4[%c15, %c0_340, %c0_341] : memref<27x128x128xbf16, #tpu.memory_space<vmem>>, vector<1x128x128xbf16>
    %507 = vector.shape_cast %506 : vector<1x128x128xbf16> to vector<128x128xbf16>
    %cst_342 = arith.constant dense<0.000000e+00> : vector<32x128xf32>
    %508 = tpu.matmul %505, %507, %cst_342 {dimension_numbers = #tpu.dot_dimension_numbers<[1], [0], [0], [1], [0, 0, 1, 1], [], []>} : vector<32x128xbf16>, vector<128x128xbf16>, vector<32x128xf32> -> vector<32x128xf32>
    %509 = arith.addf %503, %508 : vector<32x128xf32>
    %c81_343 = arith.constant 81 : index
    %c0_344 = arith.constant 0 : index
    %510 = vector.load %arg10[%c81_343, %c0_344] : memref<256x128xf32, #tpu.memory_space<vmem>>, vector<32x128xf32>
    %511 = arith.truncf %510 : vector<32x128xf32> to vector<32x128xbf16>
    %c16_345 = arith.constant 16 : index
    %c0_346 = arith.constant 0 : index
    %c0_347 = arith.constant 0 : index
    %512 = vector.load %arg4[%c16_345, %c0_346, %c0_347] : memref<27x128x128xbf16, #tpu.memory_space<vmem>>, vector<1x128x128xbf16>
    %513 = vector.shape_cast %512 : vector<1x128x128xbf16> to vector<128x128xbf16>
    %cst_348 = arith.constant dense<0.000000e+00> : vector<32x128xf32>
    %514 = tpu.matmul %511, %513, %cst_348 {dimension_numbers = #tpu.dot_dimension_numbers<[1], [0], [0], [1], [0, 0, 1, 1], [], []>} : vector<32x128xbf16>, vector<128x128xbf16>, vector<32x128xf32> -> vector<32x128xf32>
    %515 = arith.addf %509, %514 : vector<32x128xf32>
    %c82 = arith.constant 82 : index
    %c0_349 = arith.constant 0 : index
    %516 = vector.load %arg10[%c82, %c0_349] : memref<256x128xf32, #tpu.memory_space<vmem>>, vector<32x128xf32>
    %517 = arith.truncf %516 : vector<32x128xf32> to vector<32x128xbf16>
    %c17_350 = arith.constant 17 : index
    %c0_351 = arith.constant 0 : index
    %c0_352 = arith.constant 0 : index
    %518 = vector.load %arg4[%c17_350, %c0_351, %c0_352] : memref<27x128x128xbf16, #tpu.memory_space<vmem>>, vector<1x128x128xbf16>
    %519 = vector.shape_cast %518 : vector<1x128x128xbf16> to vector<128x128xbf16>
    %cst_353 = arith.constant dense<0.000000e+00> : vector<32x128xf32>
    %520 = tpu.matmul %517, %519, %cst_353 {dimension_numbers = #tpu.dot_dimension_numbers<[1], [0], [0], [1], [0, 0, 1, 1], [], []>} : vector<32x128xbf16>, vector<128x128xbf16>, vector<32x128xf32> -> vector<32x128xf32>
    %521 = arith.addf %515, %520 : vector<32x128xf32>
    %c128_354 = arith.constant 128 : index
    %c0_355 = arith.constant 0 : index
    %522 = vector.load %arg10[%c128_354, %c0_355] : memref<256x128xf32, #tpu.memory_space<vmem>>, vector<32x128xf32>
    %523 = arith.truncf %522 : vector<32x128xf32> to vector<32x128xbf16>
    %c18_356 = arith.constant 18 : index
    %c0_357 = arith.constant 0 : index
    %c0_358 = arith.constant 0 : index
    %524 = vector.load %arg4[%c18_356, %c0_357, %c0_358] : memref<27x128x128xbf16, #tpu.memory_space<vmem>>, vector<1x128x128xbf16>
    %525 = vector.shape_cast %524 : vector<1x128x128xbf16> to vector<128x128xbf16>
    %cst_359 = arith.constant dense<0.000000e+00> : vector<32x128xf32>
    %526 = tpu.matmul %523, %525, %cst_359 {dimension_numbers = #tpu.dot_dimension_numbers<[1], [0], [0], [1], [0, 0, 1, 1], [], []>} : vector<32x128xbf16>, vector<128x128xbf16>, vector<32x128xf32> -> vector<32x128xf32>
    %527 = arith.addf %521, %526 : vector<32x128xf32>
    %c129 = arith.constant 129 : index
    %c0_360 = arith.constant 0 : index
    %528 = vector.load %arg10[%c129, %c0_360] : memref<256x128xf32, #tpu.memory_space<vmem>>, vector<32x128xf32>
    %529 = arith.truncf %528 : vector<32x128xf32> to vector<32x128xbf16>
    %c19 = arith.constant 19 : index
    %c0_361 = arith.constant 0 : index
    %c0_362 = arith.constant 0 : index
    %530 = vector.load %arg4[%c19, %c0_361, %c0_362] : memref<27x128x128xbf16, #tpu.memory_space<vmem>>, vector<1x128x128xbf16>
    %531 = vector.shape_cast %530 : vector<1x128x128xbf16> to vector<128x128xbf16>
    %cst_363 = arith.constant dense<0.000000e+00> : vector<32x128xf32>
    %532 = tpu.matmul %529, %531, %cst_363 {dimension_numbers = #tpu.dot_dimension_numbers<[1], [0], [0], [1], [0, 0, 1, 1], [], []>} : vector<32x128xbf16>, vector<128x128xbf16>, vector<32x128xf32> -> vector<32x128xf32>
    %533 = arith.addf %527, %532 : vector<32x128xf32>
    %c130 = arith.constant 130 : index
    %c0_364 = arith.constant 0 : index
    %534 = vector.load %arg10[%c130, %c0_364] : memref<256x128xf32, #tpu.memory_space<vmem>>, vector<32x128xf32>
    %535 = arith.truncf %534 : vector<32x128xf32> to vector<32x128xbf16>
    %c20 = arith.constant 20 : index
    %c0_365 = arith.constant 0 : index
    %c0_366 = arith.constant 0 : index
    %536 = vector.load %arg4[%c20, %c0_365, %c0_366] : memref<27x128x128xbf16, #tpu.memory_space<vmem>>, vector<1x128x128xbf16>
    %537 = vector.shape_cast %536 : vector<1x128x128xbf16> to vector<128x128xbf16>
    %cst_367 = arith.constant dense<0.000000e+00> : vector<32x128xf32>
    %538 = tpu.matmul %535, %537, %cst_367 {dimension_numbers = #tpu.dot_dimension_numbers<[1], [0], [0], [1], [0, 0, 1, 1], [], []>} : vector<32x128xbf16>, vector<128x128xbf16>, vector<32x128xf32> -> vector<32x128xf32>
    %539 = arith.addf %533, %538 : vector<32x128xf32>
    %c136 = arith.constant 136 : index
    %c0_368 = arith.constant 0 : index
    %540 = vector.load %arg10[%c136, %c0_368] : memref<256x128xf32, #tpu.memory_space<vmem>>, vector<32x128xf32>
    %541 = arith.truncf %540 : vector<32x128xf32> to vector<32x128xbf16>
    %c21 = arith.constant 21 : index
    %c0_369 = arith.constant 0 : index
    %c0_370 = arith.constant 0 : index
    %542 = vector.load %arg4[%c21, %c0_369, %c0_370] : memref<27x128x128xbf16, #tpu.memory_space<vmem>>, vector<1x128x128xbf16>
    %543 = vector.shape_cast %542 : vector<1x128x128xbf16> to vector<128x128xbf16>
    %cst_371 = arith.constant dense<0.000000e+00> : vector<32x128xf32>
    %544 = tpu.matmul %541, %543, %cst_371 {dimension_numbers = #tpu.dot_dimension_numbers<[1], [0], [0], [1], [0, 0, 1, 1], [], []>} : vector<32x128xbf16>, vector<128x128xbf16>, vector<32x128xf32> -> vector<32x128xf32>
    %545 = arith.addf %539, %544 : vector<32x128xf32>
    %c137_372 = arith.constant 137 : index
    %c0_373 = arith.constant 0 : index
    %546 = vector.load %arg10[%c137_372, %c0_373] : memref<256x128xf32, #tpu.memory_space<vmem>>, vector<32x128xf32>
    %547 = arith.truncf %546 : vector<32x128xf32> to vector<32x128xbf16>
    %c22 = arith.constant 22 : index
    %c0_374 = arith.constant 0 : index
    %c0_375 = arith.constant 0 : index
    %548 = vector.load %arg4[%c22, %c0_374, %c0_375] : memref<27x128x128xbf16, #tpu.memory_space<vmem>>, vector<1x128x128xbf16>
    %549 = vector.shape_cast %548 : vector<1x128x128xbf16> to vector<128x128xbf16>
    %cst_376 = arith.constant dense<0.000000e+00> : vector<32x128xf32>
    %550 = tpu.matmul %547, %549, %cst_376 {dimension_numbers = #tpu.dot_dimension_numbers<[1], [0], [0], [1], [0, 0, 1, 1], [], []>} : vector<32x128xbf16>, vector<128x128xbf16>, vector<32x128xf32> -> vector<32x128xf32>
    %551 = arith.addf %545, %550 : vector<32x128xf32>
    %c138 = arith.constant 138 : index
    %c0_377 = arith.constant 0 : index
    %552 = vector.load %arg10[%c138, %c0_377] : memref<256x128xf32, #tpu.memory_space<vmem>>, vector<32x128xf32>
    %553 = arith.truncf %552 : vector<32x128xf32> to vector<32x128xbf16>
    %c23 = arith.constant 23 : index
    %c0_378 = arith.constant 0 : index
    %c0_379 = arith.constant 0 : index
    %554 = vector.load %arg4[%c23, %c0_378, %c0_379] : memref<27x128x128xbf16, #tpu.memory_space<vmem>>, vector<1x128x128xbf16>
    %555 = vector.shape_cast %554 : vector<1x128x128xbf16> to vector<128x128xbf16>
    %cst_380 = arith.constant dense<0.000000e+00> : vector<32x128xf32>
    %556 = tpu.matmul %553, %555, %cst_380 {dimension_numbers = #tpu.dot_dimension_numbers<[1], [0], [0], [1], [0, 0, 1, 1], [], []>} : vector<32x128xbf16>, vector<128x128xbf16>, vector<32x128xf32> -> vector<32x128xf32>
    %557 = arith.addf %551, %556 : vector<32x128xf32>
    %c144_381 = arith.constant 144 : index
    %c0_382 = arith.constant 0 : index
    %558 = vector.load %arg10[%c144_381, %c0_382] : memref<256x128xf32, #tpu.memory_space<vmem>>, vector<32x128xf32>
    %559 = arith.truncf %558 : vector<32x128xf32> to vector<32x128xbf16>
    %c24 = arith.constant 24 : index
    %c0_383 = arith.constant 0 : index
    %c0_384 = arith.constant 0 : index
    %560 = vector.load %arg4[%c24, %c0_383, %c0_384] : memref<27x128x128xbf16, #tpu.memory_space<vmem>>, vector<1x128x128xbf16>
    %561 = vector.shape_cast %560 : vector<1x128x128xbf16> to vector<128x128xbf16>
    %cst_385 = arith.constant dense<0.000000e+00> : vector<32x128xf32>
    %562 = tpu.matmul %559, %561, %cst_385 {dimension_numbers = #tpu.dot_dimension_numbers<[1], [0], [0], [1], [0, 0, 1, 1], [], []>} : vector<32x128xbf16>, vector<128x128xbf16>, vector<32x128xf32> -> vector<32x128xf32>
    %563 = arith.addf %557, %562 : vector<32x128xf32>
    %c145_386 = arith.constant 145 : index
    %c0_387 = arith.constant 0 : index
    %564 = vector.load %arg10[%c145_386, %c0_387] : memref<256x128xf32, #tpu.memory_space<vmem>>, vector<32x128xf32>
    %565 = arith.truncf %564 : vector<32x128xf32> to vector<32x128xbf16>
    %c25 = arith.constant 25 : index
    %c0_388 = arith.constant 0 : index
    %c0_389 = arith.constant 0 : index
    %566 = vector.load %arg4[%c25, %c0_388, %c0_389] : memref<27x128x128xbf16, #tpu.memory_space<vmem>>, vector<1x128x128xbf16>
    %567 = vector.shape_cast %566 : vector<1x128x128xbf16> to vector<128x128xbf16>
    %cst_390 = arith.constant dense<0.000000e+00> : vector<32x128xf32>
    %568 = tpu.matmul %565, %567, %cst_390 {dimension_numbers = #tpu.dot_dimension_numbers<[1], [0], [0], [1], [0, 0, 1, 1], [], []>} : vector<32x128xbf16>, vector<128x128xbf16>, vector<32x128xf32> -> vector<32x128xf32>
    %569 = arith.addf %563, %568 : vector<32x128xf32>
    %c146 = arith.constant 146 : index
    %c0_391 = arith.constant 0 : index
    %570 = vector.load %arg10[%c146, %c0_391] : memref<256x128xf32, #tpu.memory_space<vmem>>, vector<32x128xf32>
    %571 = arith.truncf %570 : vector<32x128xf32> to vector<32x128xbf16>
    %c26 = arith.constant 26 : index
    %c0_392 = arith.constant 0 : index
    %c0_393 = arith.constant 0 : index
    %572 = vector.load %arg4[%c26, %c0_392, %c0_393] : memref<27x128x128xbf16, #tpu.memory_space<vmem>>, vector<1x128x128xbf16>
    %573 = vector.shape_cast %572 : vector<1x128x128xbf16> to vector<128x128xbf16>
    %cst_394 = arith.constant dense<0.000000e+00> : vector<32x128xf32>
    %574 = tpu.matmul %571, %573, %cst_394 {dimension_numbers = #tpu.dot_dimension_numbers<[1], [0], [0], [1], [0, 0, 1, 1], [], []>} : vector<32x128xbf16>, vector<128x128xbf16>, vector<32x128xf32> -> vector<32x128xf32>
    %575 = arith.addf %569, %574 : vector<32x128xf32>
    %576 = vector.broadcast %1 : vector<1x128xf32> to vector<32x128xf32>
    %577 = arith.addf %575, %576 : vector<32x128xf32>
    %cst_395 = arith.constant 0.000000e+00 : f32
    %578 = vector.broadcast %cst_395 : f32 to vector<32x128xf32>
    %579 = arith.maximumf %577, %578 : vector<32x128xf32>
    %580 = vector.extract_strided_slice %579 {offsets = [0, 0], sizes = [4, 128], strides = [1, 1]} : vector<32x128xf32> to vector<4x128xf32>
    %581 = vector.extract_strided_slice %579 {offsets = [8, 0], sizes = [4, 128], strides = [1, 1]} : vector<32x128xf32> to vector<4x128xf32>
    %582 = arith.addf %580, %581 : vector<4x128xf32>
    %583 = vector.extract_strided_slice %579 {offsets = [16, 0], sizes = [4, 128], strides = [1, 1]} : vector<32x128xf32> to vector<4x128xf32>
    %584 = arith.addf %582, %583 : vector<4x128xf32>
    %585 = vector.extract_strided_slice %579 {offsets = [24, 0], sizes = [4, 128], strides = [1, 1]} : vector<32x128xf32> to vector<4x128xf32>
    %586 = arith.addf %584, %585 : vector<4x128xf32>
    %cst_396 = arith.constant dense<0.000000e+00> : vector<128xf32>
    %587 = vector.multi_reduction <add>, %586, %cst_396 [0] : vector<4x128xf32> to vector<128xf32>
    %588 = vector.shape_cast %587 : vector<128xf32> to vector<1x128xf32>
    %589 = arith.addf %412, %588 : vector<1x128xf32>
    %cst_397 = arith.constant 0.000000e+00 : f32
    %590 = vector.broadcast %cst_397 : f32 to vector<32x128xf32>
    %c64_398 = arith.constant 64 : index
    %c0_399 = arith.constant 0 : index
    %591 = vector.load %arg10[%c64_398, %c0_399] : memref<256x128xf32, #tpu.memory_space<vmem>>, vector<32x128xf32>
    %592 = arith.truncf %591 : vector<32x128xf32> to vector<32x128xbf16>
    %c0_400 = arith.constant 0 : index
    %c0_401 = arith.constant 0 : index
    %c0_402 = arith.constant 0 : index
    %593 = vector.load %arg4[%c0_400, %c0_401, %c0_402] : memref<27x128x128xbf16, #tpu.memory_space<vmem>>, vector<1x128x128xbf16>
    %594 = vector.shape_cast %593 : vector<1x128x128xbf16> to vector<128x128xbf16>
    %cst_403 = arith.constant dense<0.000000e+00> : vector<32x128xf32>
    %595 = tpu.matmul %592, %594, %cst_403 {dimension_numbers = #tpu.dot_dimension_numbers<[1], [0], [0], [1], [0, 0, 1, 1], [], []>} : vector<32x128xbf16>, vector<128x128xbf16>, vector<32x128xf32> -> vector<32x128xf32>
    %596 = arith.addf %590, %595 : vector<32x128xf32>
    %c65_404 = arith.constant 65 : index
    %c0_405 = arith.constant 0 : index
    %597 = vector.load %arg10[%c65_404, %c0_405] : memref<256x128xf32, #tpu.memory_space<vmem>>, vector<32x128xf32>
    %598 = arith.truncf %597 : vector<32x128xf32> to vector<32x128xbf16>
    %c1_406 = arith.constant 1 : index
    %c0_407 = arith.constant 0 : index
    %c0_408 = arith.constant 0 : index
    %599 = vector.load %arg4[%c1_406, %c0_407, %c0_408] : memref<27x128x128xbf16, #tpu.memory_space<vmem>>, vector<1x128x128xbf16>
    %600 = vector.shape_cast %599 : vector<1x128x128xbf16> to vector<128x128xbf16>
    %cst_409 = arith.constant dense<0.000000e+00> : vector<32x128xf32>
    %601 = tpu.matmul %598, %600, %cst_409 {dimension_numbers = #tpu.dot_dimension_numbers<[1], [0], [0], [1], [0, 0, 1, 1], [], []>} : vector<32x128xbf16>, vector<128x128xbf16>, vector<32x128xf32> -> vector<32x128xf32>
    %602 = arith.addf %596, %601 : vector<32x128xf32>
    %c66_410 = arith.constant 66 : index
    %c0_411 = arith.constant 0 : index
    %603 = vector.load %arg10[%c66_410, %c0_411] : memref<256x128xf32, #tpu.memory_space<vmem>>, vector<32x128xf32>
    %604 = arith.truncf %603 : vector<32x128xf32> to vector<32x128xbf16>
    %c2_412 = arith.constant 2 : index
    %c0_413 = arith.constant 0 : index
    %c0_414 = arith.constant 0 : index
    %605 = vector.load %arg4[%c2_412, %c0_413, %c0_414] : memref<27x128x128xbf16, #tpu.memory_space<vmem>>, vector<1x128x128xbf16>
    %606 = vector.shape_cast %605 : vector<1x128x128xbf16> to vector<128x128xbf16>
    %cst_415 = arith.constant dense<0.000000e+00> : vector<32x128xf32>
    %607 = tpu.matmul %604, %606, %cst_415 {dimension_numbers = #tpu.dot_dimension_numbers<[1], [0], [0], [1], [0, 0, 1, 1], [], []>} : vector<32x128xbf16>, vector<128x128xbf16>, vector<32x128xf32> -> vector<32x128xf32>
    %608 = arith.addf %602, %607 : vector<32x128xf32>
    %c72_416 = arith.constant 72 : index
    %c0_417 = arith.constant 0 : index
    %609 = vector.load %arg10[%c72_416, %c0_417] : memref<256x128xf32, #tpu.memory_space<vmem>>, vector<32x128xf32>
    %610 = arith.truncf %609 : vector<32x128xf32> to vector<32x128xbf16>
    %c3_418 = arith.constant 3 : index
    %c0_419 = arith.constant 0 : index
    %c0_420 = arith.constant 0 : index
    %611 = vector.load %arg4[%c3_418, %c0_419, %c0_420] : memref<27x128x128xbf16, #tpu.memory_space<vmem>>, vector<1x128x128xbf16>
    %612 = vector.shape_cast %611 : vector<1x128x128xbf16> to vector<128x128xbf16>
    %cst_421 = arith.constant dense<0.000000e+00> : vector<32x128xf32>
    %613 = tpu.matmul %610, %612, %cst_421 {dimension_numbers = #tpu.dot_dimension_numbers<[1], [0], [0], [1], [0, 0, 1, 1], [], []>} : vector<32x128xbf16>, vector<128x128xbf16>, vector<32x128xf32> -> vector<32x128xf32>
    %614 = arith.addf %608, %613 : vector<32x128xf32>
    %c73_422 = arith.constant 73 : index
    %c0_423 = arith.constant 0 : index
    %615 = vector.load %arg10[%c73_422, %c0_423] : memref<256x128xf32, #tpu.memory_space<vmem>>, vector<32x128xf32>
    %616 = arith.truncf %615 : vector<32x128xf32> to vector<32x128xbf16>
    %c4_424 = arith.constant 4 : index
    %c0_425 = arith.constant 0 : index
    %c0_426 = arith.constant 0 : index
    %617 = vector.load %arg4[%c4_424, %c0_425, %c0_426] : memref<27x128x128xbf16, #tpu.memory_space<vmem>>, vector<1x128x128xbf16>
    %618 = vector.shape_cast %617 : vector<1x128x128xbf16> to vector<128x128xbf16>
    %cst_427 = arith.constant dense<0.000000e+00> : vector<32x128xf32>
    %619 = tpu.matmul %616, %618, %cst_427 {dimension_numbers = #tpu.dot_dimension_numbers<[1], [0], [0], [1], [0, 0, 1, 1], [], []>} : vector<32x128xbf16>, vector<128x128xbf16>, vector<32x128xf32> -> vector<32x128xf32>
    %620 = arith.addf %614, %619 : vector<32x128xf32>
    %c74_428 = arith.constant 74 : index
    %c0_429 = arith.constant 0 : index
    %621 = vector.load %arg10[%c74_428, %c0_429] : memref<256x128xf32, #tpu.memory_space<vmem>>, vector<32x128xf32>
    %622 = arith.truncf %621 : vector<32x128xf32> to vector<32x128xbf16>
    %c5_430 = arith.constant 5 : index
    %c0_431 = arith.constant 0 : index
    %c0_432 = arith.constant 0 : index
    %623 = vector.load %arg4[%c5_430, %c0_431, %c0_432] : memref<27x128x128xbf16, #tpu.memory_space<vmem>>, vector<1x128x128xbf16>
    %624 = vector.shape_cast %623 : vector<1x128x128xbf16> to vector<128x128xbf16>
    %cst_433 = arith.constant dense<0.000000e+00> : vector<32x128xf32>
    %625 = tpu.matmul %622, %624, %cst_433 {dimension_numbers = #tpu.dot_dimension_numbers<[1], [0], [0], [1], [0, 0, 1, 1], [], []>} : vector<32x128xbf16>, vector<128x128xbf16>, vector<32x128xf32> -> vector<32x128xf32>
    %626 = arith.addf %620, %625 : vector<32x128xf32>
    %c80_434 = arith.constant 80 : index
    %c0_435 = arith.constant 0 : index
    %627 = vector.load %arg10[%c80_434, %c0_435] : memref<256x128xf32, #tpu.memory_space<vmem>>, vector<32x128xf32>
    %628 = arith.truncf %627 : vector<32x128xf32> to vector<32x128xbf16>
    %c6_436 = arith.constant 6 : index
    %c0_437 = arith.constant 0 : index
    %c0_438 = arith.constant 0 : index
    %629 = vector.load %arg4[%c6_436, %c0_437, %c0_438] : memref<27x128x128xbf16, #tpu.memory_space<vmem>>, vector<1x128x128xbf16>
    %630 = vector.shape_cast %629 : vector<1x128x128xbf16> to vector<128x128xbf16>
    %cst_439 = arith.constant dense<0.000000e+00> : vector<32x128xf32>
    %631 = tpu.matmul %628, %630, %cst_439 {dimension_numbers = #tpu.dot_dimension_numbers<[1], [0], [0], [1], [0, 0, 1, 1], [], []>} : vector<32x128xbf16>, vector<128x128xbf16>, vector<32x128xf32> -> vector<32x128xf32>
    %632 = arith.addf %626, %631 : vector<32x128xf32>
    %c81_440 = arith.constant 81 : index
    %c0_441 = arith.constant 0 : index
    %633 = vector.load %arg10[%c81_440, %c0_441] : memref<256x128xf32, #tpu.memory_space<vmem>>, vector<32x128xf32>
    %634 = arith.truncf %633 : vector<32x128xf32> to vector<32x128xbf16>
    %c7_442 = arith.constant 7 : index
    %c0_443 = arith.constant 0 : index
    %c0_444 = arith.constant 0 : index
    %635 = vector.load %arg4[%c7_442, %c0_443, %c0_444] : memref<27x128x128xbf16, #tpu.memory_space<vmem>>, vector<1x128x128xbf16>
    %636 = vector.shape_cast %635 : vector<1x128x128xbf16> to vector<128x128xbf16>
    %cst_445 = arith.constant dense<0.000000e+00> : vector<32x128xf32>
    %637 = tpu.matmul %634, %636, %cst_445 {dimension_numbers = #tpu.dot_dimension_numbers<[1], [0], [0], [1], [0, 0, 1, 1], [], []>} : vector<32x128xbf16>, vector<128x128xbf16>, vector<32x128xf32> -> vector<32x128xf32>
    %638 = arith.addf %632, %637 : vector<32x128xf32>
    %c82_446 = arith.constant 82 : index
    %c0_447 = arith.constant 0 : index
    %639 = vector.load %arg10[%c82_446, %c0_447] : memref<256x128xf32, #tpu.memory_space<vmem>>, vector<32x128xf32>
    %640 = arith.truncf %639 : vector<32x128xf32> to vector<32x128xbf16>
    %c8_448 = arith.constant 8 : index
    %c0_449 = arith.constant 0 : index
    %c0_450 = arith.constant 0 : index
    %641 = vector.load %arg4[%c8_448, %c0_449, %c0_450] : memref<27x128x128xbf16, #tpu.memory_space<vmem>>, vector<1x128x128xbf16>
    %642 = vector.shape_cast %641 : vector<1x128x128xbf16> to vector<128x128xbf16>
    %cst_451 = arith.constant dense<0.000000e+00> : vector<32x128xf32>
    %643 = tpu.matmul %640, %642, %cst_451 {dimension_numbers = #tpu.dot_dimension_numbers<[1], [0], [0], [1], [0, 0, 1, 1], [], []>} : vector<32x128xbf16>, vector<128x128xbf16>, vector<32x128xf32> -> vector<32x128xf32>
    %644 = arith.addf %638, %643 : vector<32x128xf32>
    %c128_452 = arith.constant 128 : index
    %c0_453 = arith.constant 0 : index
    %645 = vector.load %arg10[%c128_452, %c0_453] : memref<256x128xf32, #tpu.memory_space<vmem>>, vector<32x128xf32>
    %646 = arith.truncf %645 : vector<32x128xf32> to vector<32x128xbf16>
    %c9_454 = arith.constant 9 : index
    %c0_455 = arith.constant 0 : index
    %c0_456 = arith.constant 0 : index
    %647 = vector.load %arg4[%c9_454, %c0_455, %c0_456] : memref<27x128x128xbf16, #tpu.memory_space<vmem>>, vector<1x128x128xbf16>
    %648 = vector.shape_cast %647 : vector<1x128x128xbf16> to vector<128x128xbf16>
    %cst_457 = arith.constant dense<0.000000e+00> : vector<32x128xf32>
    %649 = tpu.matmul %646, %648, %cst_457 {dimension_numbers = #tpu.dot_dimension_numbers<[1], [0], [0], [1], [0, 0, 1, 1], [], []>} : vector<32x128xbf16>, vector<128x128xbf16>, vector<32x128xf32> -> vector<32x128xf32>
    %650 = arith.addf %644, %649 : vector<32x128xf32>
    %c129_458 = arith.constant 129 : index
    %c0_459 = arith.constant 0 : index
    %651 = vector.load %arg10[%c129_458, %c0_459] : memref<256x128xf32, #tpu.memory_space<vmem>>, vector<32x128xf32>
    %652 = arith.truncf %651 : vector<32x128xf32> to vector<32x128xbf16>
    %c10_460 = arith.constant 10 : index
    %c0_461 = arith.constant 0 : index
    %c0_462 = arith.constant 0 : index
    %653 = vector.load %arg4[%c10_460, %c0_461, %c0_462] : memref<27x128x128xbf16, #tpu.memory_space<vmem>>, vector<1x128x128xbf16>
    %654 = vector.shape_cast %653 : vector<1x128x128xbf16> to vector<128x128xbf16>
    %cst_463 = arith.constant dense<0.000000e+00> : vector<32x128xf32>
    %655 = tpu.matmul %652, %654, %cst_463 {dimension_numbers = #tpu.dot_dimension_numbers<[1], [0], [0], [1], [0, 0, 1, 1], [], []>} : vector<32x128xbf16>, vector<128x128xbf16>, vector<32x128xf32> -> vector<32x128xf32>
    %656 = arith.addf %650, %655 : vector<32x128xf32>
    %c130_464 = arith.constant 130 : index
    %c0_465 = arith.constant 0 : index
    %657 = vector.load %arg10[%c130_464, %c0_465] : memref<256x128xf32, #tpu.memory_space<vmem>>, vector<32x128xf32>
    %658 = arith.truncf %657 : vector<32x128xf32> to vector<32x128xbf16>
    %c11_466 = arith.constant 11 : index
    %c0_467 = arith.constant 0 : index
    %c0_468 = arith.constant 0 : index
    %659 = vector.load %arg4[%c11_466, %c0_467, %c0_468] : memref<27x128x128xbf16, #tpu.memory_space<vmem>>, vector<1x128x128xbf16>
    %660 = vector.shape_cast %659 : vector<1x128x128xbf16> to vector<128x128xbf16>
    %cst_469 = arith.constant dense<0.000000e+00> : vector<32x128xf32>
    %661 = tpu.matmul %658, %660, %cst_469 {dimension_numbers = #tpu.dot_dimension_numbers<[1], [0], [0], [1], [0, 0, 1, 1], [], []>} : vector<32x128xbf16>, vector<128x128xbf16>, vector<32x128xf32> -> vector<32x128xf32>
    %662 = arith.addf %656, %661 : vector<32x128xf32>
    %c136_470 = arith.constant 136 : index
    %c0_471 = arith.constant 0 : index
    %663 = vector.load %arg10[%c136_470, %c0_471] : memref<256x128xf32, #tpu.memory_space<vmem>>, vector<32x128xf32>
    %664 = arith.truncf %663 : vector<32x128xf32> to vector<32x128xbf16>
    %c12_472 = arith.constant 12 : index
    %c0_473 = arith.constant 0 : index
    %c0_474 = arith.constant 0 : index
    %665 = vector.load %arg4[%c12_472, %c0_473, %c0_474] : memref<27x128x128xbf16, #tpu.memory_space<vmem>>, vector<1x128x128xbf16>
    %666 = vector.shape_cast %665 : vector<1x128x128xbf16> to vector<128x128xbf16>
    %cst_475 = arith.constant dense<0.000000e+00> : vector<32x128xf32>
    %667 = tpu.matmul %664, %666, %cst_475 {dimension_numbers = #tpu.dot_dimension_numbers<[1], [0], [0], [1], [0, 0, 1, 1], [], []>} : vector<32x128xbf16>, vector<128x128xbf16>, vector<32x128xf32> -> vector<32x128xf32>
    %668 = arith.addf %662, %667 : vector<32x128xf32>
    %c137_476 = arith.constant 137 : index
    %c0_477 = arith.constant 0 : index
    %669 = vector.load %arg10[%c137_476, %c0_477] : memref<256x128xf32, #tpu.memory_space<vmem>>, vector<32x128xf32>
    %670 = arith.truncf %669 : vector<32x128xf32> to vector<32x128xbf16>
    %c13_478 = arith.constant 13 : index
    %c0_479 = arith.constant 0 : index
    %c0_480 = arith.constant 0 : index
    %671 = vector.load %arg4[%c13_478, %c0_479, %c0_480] : memref<27x128x128xbf16, #tpu.memory_space<vmem>>, vector<1x128x128xbf16>
    %672 = vector.shape_cast %671 : vector<1x128x128xbf16> to vector<128x128xbf16>
    %cst_481 = arith.constant dense<0.000000e+00> : vector<32x128xf32>
    %673 = tpu.matmul %670, %672, %cst_481 {dimension_numbers = #tpu.dot_dimension_numbers<[1], [0], [0], [1], [0, 0, 1, 1], [], []>} : vector<32x128xbf16>, vector<128x128xbf16>, vector<32x128xf32> -> vector<32x128xf32>
    %674 = arith.addf %668, %673 : vector<32x128xf32>
    %c138_482 = arith.constant 138 : index
    %c0_483 = arith.constant 0 : index
    %675 = vector.load %arg10[%c138_482, %c0_483] : memref<256x128xf32, #tpu.memory_space<vmem>>, vector<32x128xf32>
    %676 = arith.truncf %675 : vector<32x128xf32> to vector<32x128xbf16>
    %c14_484 = arith.constant 14 : index
    %c0_485 = arith.constant 0 : index
    %c0_486 = arith.constant 0 : index
    %677 = vector.load %arg4[%c14_484, %c0_485, %c0_486] : memref<27x128x128xbf16, #tpu.memory_space<vmem>>, vector<1x128x128xbf16>
    %678 = vector.shape_cast %677 : vector<1x128x128xbf16> to vector<128x128xbf16>
    %cst_487 = arith.constant dense<0.000000e+00> : vector<32x128xf32>
    %679 = tpu.matmul %676, %678, %cst_487 {dimension_numbers = #tpu.dot_dimension_numbers<[1], [0], [0], [1], [0, 0, 1, 1], [], []>} : vector<32x128xbf16>, vector<128x128xbf16>, vector<32x128xf32> -> vector<32x128xf32>
    %680 = arith.addf %674, %679 : vector<32x128xf32>
    %c144_488 = arith.constant 144 : index
    %c0_489 = arith.constant 0 : index
    %681 = vector.load %arg10[%c144_488, %c0_489] : memref<256x128xf32, #tpu.memory_space<vmem>>, vector<32x128xf32>
    %682 = arith.truncf %681 : vector<32x128xf32> to vector<32x128xbf16>
    %c15_490 = arith.constant 15 : index
    %c0_491 = arith.constant 0 : index
    %c0_492 = arith.constant 0 : index
    %683 = vector.load %arg4[%c15_490, %c0_491, %c0_492] : memref<27x128x128xbf16, #tpu.memory_space<vmem>>, vector<1x128x128xbf16>
    %684 = vector.shape_cast %683 : vector<1x128x128xbf16> to vector<128x128xbf16>
    %cst_493 = arith.constant dense<0.000000e+00> : vector<32x128xf32>
    %685 = tpu.matmul %682, %684, %cst_493 {dimension_numbers = #tpu.dot_dimension_numbers<[1], [0], [0], [1], [0, 0, 1, 1], [], []>} : vector<32x128xbf16>, vector<128x128xbf16>, vector<32x128xf32> -> vector<32x128xf32>
    %686 = arith.addf %680, %685 : vector<32x128xf32>
    %c145_494 = arith.constant 145 : index
    %c0_495 = arith.constant 0 : index
    %687 = vector.load %arg10[%c145_494, %c0_495] : memref<256x128xf32, #tpu.memory_space<vmem>>, vector<32x128xf32>
    %688 = arith.truncf %687 : vector<32x128xf32> to vector<32x128xbf16>
    %c16_496 = arith.constant 16 : index
    %c0_497 = arith.constant 0 : index
    %c0_498 = arith.constant 0 : index
    %689 = vector.load %arg4[%c16_496, %c0_497, %c0_498] : memref<27x128x128xbf16, #tpu.memory_space<vmem>>, vector<1x128x128xbf16>
    %690 = vector.shape_cast %689 : vector<1x128x128xbf16> to vector<128x128xbf16>
    %cst_499 = arith.constant dense<0.000000e+00> : vector<32x128xf32>
    %691 = tpu.matmul %688, %690, %cst_499 {dimension_numbers = #tpu.dot_dimension_numbers<[1], [0], [0], [1], [0, 0, 1, 1], [], []>} : vector<32x128xbf16>, vector<128x128xbf16>, vector<32x128xf32> -> vector<32x128xf32>
    %692 = arith.addf %686, %691 : vector<32x128xf32>
    %c146_500 = arith.constant 146 : index
    %c0_501 = arith.constant 0 : index
    %693 = vector.load %arg10[%c146_500, %c0_501] : memref<256x128xf32, #tpu.memory_space<vmem>>, vector<32x128xf32>
    %694 = arith.truncf %693 : vector<32x128xf32> to vector<32x128xbf16>
    %c17_502 = arith.constant 17 : index
    %c0_503 = arith.constant 0 : index
    %c0_504 = arith.constant 0 : index
    %695 = vector.load %arg4[%c17_502, %c0_503, %c0_504] : memref<27x128x128xbf16, #tpu.memory_space<vmem>>, vector<1x128x128xbf16>
    %696 = vector.shape_cast %695 : vector<1x128x128xbf16> to vector<128x128xbf16>
    %cst_505 = arith.constant dense<0.000000e+00> : vector<32x128xf32>
    %697 = tpu.matmul %694, %696, %cst_505 {dimension_numbers = #tpu.dot_dimension_numbers<[1], [0], [0], [1], [0, 0, 1, 1], [], []>} : vector<32x128xbf16>, vector<128x128xbf16>, vector<32x128xf32> -> vector<32x128xf32>
    %698 = arith.addf %692, %697 : vector<32x128xf32>
    %c192_506 = arith.constant 192 : index
    %c0_507 = arith.constant 0 : index
    %699 = vector.load %arg10[%c192_506, %c0_507] : memref<256x128xf32, #tpu.memory_space<vmem>>, vector<32x128xf32>
    %700 = arith.truncf %699 : vector<32x128xf32> to vector<32x128xbf16>
    %c18_508 = arith.constant 18 : index
    %c0_509 = arith.constant 0 : index
    %c0_510 = arith.constant 0 : index
    %701 = vector.load %arg4[%c18_508, %c0_509, %c0_510] : memref<27x128x128xbf16, #tpu.memory_space<vmem>>, vector<1x128x128xbf16>
    %702 = vector.shape_cast %701 : vector<1x128x128xbf16> to vector<128x128xbf16>
    %cst_511 = arith.constant dense<0.000000e+00> : vector<32x128xf32>
    %703 = tpu.matmul %700, %702, %cst_511 {dimension_numbers = #tpu.dot_dimension_numbers<[1], [0], [0], [1], [0, 0, 1, 1], [], []>} : vector<32x128xbf16>, vector<128x128xbf16>, vector<32x128xf32> -> vector<32x128xf32>
    %704 = arith.addf %698, %703 : vector<32x128xf32>
    %c193 = arith.constant 193 : index
    %c0_512 = arith.constant 0 : index
    %705 = vector.load %arg10[%c193, %c0_512] : memref<256x128xf32, #tpu.memory_space<vmem>>, vector<32x128xf32>
    %706 = arith.truncf %705 : vector<32x128xf32> to vector<32x128xbf16>
    %c19_513 = arith.constant 19 : index
    %c0_514 = arith.constant 0 : index
    %c0_515 = arith.constant 0 : index
    %707 = vector.load %arg4[%c19_513, %c0_514, %c0_515] : memref<27x128x128xbf16, #tpu.memory_space<vmem>>, vector<1x128x128xbf16>
    %708 = vector.shape_cast %707 : vector<1x128x128xbf16> to vector<128x128xbf16>
    %cst_516 = arith.constant dense<0.000000e+00> : vector<32x128xf32>
    %709 = tpu.matmul %706, %708, %cst_516 {dimension_numbers = #tpu.dot_dimension_numbers<[1], [0], [0], [1], [0, 0, 1, 1], [], []>} : vector<32x128xbf16>, vector<128x128xbf16>, vector<32x128xf32> -> vector<32x128xf32>
    %710 = arith.addf %704, %709 : vector<32x128xf32>
    %c194 = arith.constant 194 : index
    %c0_517 = arith.constant 0 : index
    %711 = vector.load %arg10[%c194, %c0_517] : memref<256x128xf32, #tpu.memory_space<vmem>>, vector<32x128xf32>
    %712 = arith.truncf %711 : vector<32x128xf32> to vector<32x128xbf16>
    %c20_518 = arith.constant 20 : index
    %c0_519 = arith.constant 0 : index
    %c0_520 = arith.constant 0 : index
    %713 = vector.load %arg4[%c20_518, %c0_519, %c0_520] : memref<27x128x128xbf16, #tpu.memory_space<vmem>>, vector<1x128x128xbf16>
    %714 = vector.shape_cast %713 : vector<1x128x128xbf16> to vector<128x128xbf16>
    %cst_521 = arith.constant dense<0.000000e+00> : vector<32x128xf32>
    %715 = tpu.matmul %712, %714, %cst_521 {dimension_numbers = #tpu.dot_dimension_numbers<[1], [0], [0], [1], [0, 0, 1, 1], [], []>} : vector<32x128xbf16>, vector<128x128xbf16>, vector<32x128xf32> -> vector<32x128xf32>
    %716 = arith.addf %710, %715 : vector<32x128xf32>
    %c200 = arith.constant 200 : index
    %c0_522 = arith.constant 0 : index
    %717 = vector.load %arg10[%c200, %c0_522] : memref<256x128xf32, #tpu.memory_space<vmem>>, vector<32x128xf32>
    %718 = arith.truncf %717 : vector<32x128xf32> to vector<32x128xbf16>
    %c21_523 = arith.constant 21 : index
    %c0_524 = arith.constant 0 : index
    %c0_525 = arith.constant 0 : index
    %719 = vector.load %arg4[%c21_523, %c0_524, %c0_525] : memref<27x128x128xbf16, #tpu.memory_space<vmem>>, vector<1x128x128xbf16>
    %720 = vector.shape_cast %719 : vector<1x128x128xbf16> to vector<128x128xbf16>
    %cst_526 = arith.constant dense<0.000000e+00> : vector<32x128xf32>
    %721 = tpu.matmul %718, %720, %cst_526 {dimension_numbers = #tpu.dot_dimension_numbers<[1], [0], [0], [1], [0, 0, 1, 1], [], []>} : vector<32x128xbf16>, vector<128x128xbf16>, vector<32x128xf32> -> vector<32x128xf32>
    %722 = arith.addf %716, %721 : vector<32x128xf32>
    %c201 = arith.constant 201 : index
    %c0_527 = arith.constant 0 : index
    %723 = vector.load %arg10[%c201, %c0_527] : memref<256x128xf32, #tpu.memory_space<vmem>>, vector<32x128xf32>
    %724 = arith.truncf %723 : vector<32x128xf32> to vector<32x128xbf16>
    %c22_528 = arith.constant 22 : index
    %c0_529 = arith.constant 0 : index
    %c0_530 = arith.constant 0 : index
    %725 = vector.load %arg4[%c22_528, %c0_529, %c0_530] : memref<27x128x128xbf16, #tpu.memory_space<vmem>>, vector<1x128x128xbf16>
    %726 = vector.shape_cast %725 : vector<1x128x128xbf16> to vector<128x128xbf16>
    %cst_531 = arith.constant dense<0.000000e+00> : vector<32x128xf32>
    %727 = tpu.matmul %724, %726, %cst_531 {dimension_numbers = #tpu.dot_dimension_numbers<[1], [0], [0], [1], [0, 0, 1, 1], [], []>} : vector<32x128xbf16>, vector<128x128xbf16>, vector<32x128xf32> -> vector<32x128xf32>
    %728 = arith.addf %722, %727 : vector<32x128xf32>
    %c202 = arith.constant 202 : index
    %c0_532 = arith.constant 0 : index
    %729 = vector.load %arg10[%c202, %c0_532] : memref<256x128xf32, #tpu.memory_space<vmem>>, vector<32x128xf32>
    %730 = arith.truncf %729 : vector<32x128xf32> to vector<32x128xbf16>
    %c23_533 = arith.constant 23 : index
    %c0_534 = arith.constant 0 : index
    %c0_535 = arith.constant 0 : index
    %731 = vector.load %arg4[%c23_533, %c0_534, %c0_535] : memref<27x128x128xbf16, #tpu.memory_space<vmem>>, vector<1x128x128xbf16>
    %732 = vector.shape_cast %731 : vector<1x128x128xbf16> to vector<128x128xbf16>
    %cst_536 = arith.constant dense<0.000000e+00> : vector<32x128xf32>
    %733 = tpu.matmul %730, %732, %cst_536 {dimension_numbers = #tpu.dot_dimension_numbers<[1], [0], [0], [1], [0, 0, 1, 1], [], []>} : vector<32x128xbf16>, vector<128x128xbf16>, vector<32x128xf32> -> vector<32x128xf32>
    %734 = arith.addf %728, %733 : vector<32x128xf32>
    %c208_537 = arith.constant 208 : index
    %c0_538 = arith.constant 0 : index
    %735 = vector.load %arg10[%c208_537, %c0_538] : memref<256x128xf32, #tpu.memory_space<vmem>>, vector<32x128xf32>
    %736 = arith.truncf %735 : vector<32x128xf32> to vector<32x128xbf16>
    %c24_539 = arith.constant 24 : index
    %c0_540 = arith.constant 0 : index
    %c0_541 = arith.constant 0 : index
    %737 = vector.load %arg4[%c24_539, %c0_540, %c0_541] : memref<27x128x128xbf16, #tpu.memory_space<vmem>>, vector<1x128x128xbf16>
    %738 = vector.shape_cast %737 : vector<1x128x128xbf16> to vector<128x128xbf16>
    %cst_542 = arith.constant dense<0.000000e+00> : vector<32x128xf32>
    %739 = tpu.matmul %736, %738, %cst_542 {dimension_numbers = #tpu.dot_dimension_numbers<[1], [0], [0], [1], [0, 0, 1, 1], [], []>} : vector<32x128xbf16>, vector<128x128xbf16>, vector<32x128xf32> -> vector<32x128xf32>
    %740 = arith.addf %734, %739 : vector<32x128xf32>
    %c209 = arith.constant 209 : index
    %c0_543 = arith.constant 0 : index
    %741 = vector.load %arg10[%c209, %c0_543] : memref<256x128xf32, #tpu.memory_space<vmem>>, vector<32x128xf32>
    %742 = arith.truncf %741 : vector<32x128xf32> to vector<32x128xbf16>
    %c25_544 = arith.constant 25 : index
    %c0_545 = arith.constant 0 : index
    %c0_546 = arith.constant 0 : index
    %743 = vector.load %arg4[%c25_544, %c0_545, %c0_546] : memref<27x128x128xbf16, #tpu.memory_space<vmem>>, vector<1x128x128xbf16>
    %744 = vector.shape_cast %743 : vector<1x128x128xbf16> to vector<128x128xbf16>
    %cst_547 = arith.constant dense<0.000000e+00> : vector<32x128xf32>
    %745 = tpu.matmul %742, %744, %cst_547 {dimension_numbers = #tpu.dot_dimension_numbers<[1], [0], [0], [1], [0, 0, 1, 1], [], []>} : vector<32x128xbf16>, vector<128x128xbf16>, vector<32x128xf32> -> vector<32x128xf32>
    %746 = arith.addf %740, %745 : vector<32x128xf32>
    %c210 = arith.constant 210 : index
    %c0_548 = arith.constant 0 : index
    %747 = vector.load %arg10[%c210, %c0_548] : memref<256x128xf32, #tpu.memory_space<vmem>>, vector<32x128xf32>
    %748 = arith.truncf %747 : vector<32x128xf32> to vector<32x128xbf16>
    %c26_549 = arith.constant 26 : index
    %c0_550 = arith.constant 0 : index
    %c0_551 = arith.constant 0 : index
    %749 = vector.load %arg4[%c26_549, %c0_550, %c0_551] : memref<27x128x128xbf16, #tpu.memory_space<vmem>>, vector<1x128x128xbf16>
    %750 = vector.shape_cast %749 : vector<1x128x128xbf16> to vector<128x128xbf16>
    %cst_552 = arith.constant dense<0.000000e+00> : vector<32x128xf32>
    %751 = tpu.matmul %748, %750, %cst_552 {dimension_numbers = #tpu.dot_dimension_numbers<[1], [0], [0], [1], [0, 0, 1, 1], [], []>} : vector<32x128xbf16>, vector<128x128xbf16>, vector<32x128xf32> -> vector<32x128xf32>
    %752 = arith.addf %746, %751 : vector<32x128xf32>
    %753 = vector.broadcast %1 : vector<1x128xf32> to vector<32x128xf32>
    %754 = arith.addf %752, %753 : vector<32x128xf32>
    %cst_553 = arith.constant 0.000000e+00 : f32
    %755 = vector.broadcast %cst_553 : f32 to vector<32x128xf32>
    %756 = arith.maximumf %754, %755 : vector<32x128xf32>
    %757 = vector.extract_strided_slice %756 {offsets = [0, 0], sizes = [4, 128], strides = [1, 1]} : vector<32x128xf32> to vector<4x128xf32>
    %758 = vector.extract_strided_slice %756 {offsets = [8, 0], sizes = [4, 128], strides = [1, 1]} : vector<32x128xf32> to vector<4x128xf32>
    %759 = arith.addf %757, %758 : vector<4x128xf32>
    %760 = vector.extract_strided_slice %756 {offsets = [16, 0], sizes = [4, 128], strides = [1, 1]} : vector<32x128xf32> to vector<4x128xf32>
    %761 = arith.addf %759, %760 : vector<4x128xf32>
    %762 = vector.extract_strided_slice %756 {offsets = [24, 0], sizes = [4, 128], strides = [1, 1]} : vector<32x128xf32> to vector<4x128xf32>
    %763 = arith.addf %761, %762 : vector<4x128xf32>
    %cst_554 = arith.constant dense<0.000000e+00> : vector<128xf32>
    %764 = vector.multi_reduction <add>, %763, %cst_554 [0] : vector<4x128xf32> to vector<128xf32>
    %765 = vector.shape_cast %764 : vector<128xf32> to vector<1x128xf32>
    %766 = arith.addf %589, %765 : vector<1x128xf32>
    %cst_555 = arith.constant 3.125000e-02 : f32
    %767 = vector.broadcast %cst_555 : f32 to vector<1x128xf32>
    %768 = arith.mulf %766, %767 : vector<1x128xf32>
    %c0_556 = arith.constant 0 : index
    %c0_557 = arith.constant 0 : index
    %769 = vector.load %arg6[%c0_556, %c0_557] : memref<128x128xf32, #tpu.memory_space<vmem>>, vector<128x128xf32>
    %cst_558 = arith.constant dense<0.000000e+00> : vector<1x128xf32>
    %770 = tpu.matmul %768, %769, %cst_558 {dimension_numbers = #tpu.dot_dimension_numbers<[1], [0], [0], [1], [0, 0, 1, 1], [], []>} : vector<1x128xf32>, vector<128x128xf32>, vector<1x128xf32> -> vector<1x128xf32>
    %c0_559 = arith.constant 0 : index
    %c0_560 = arith.constant 0 : index
    %771 = vector.load %arg7[%c0_559, %c0_560] : memref<1x128xf32, #tpu.memory_space<vmem>>, vector<1x128xf32>
    %772 = arith.addf %770, %771 : vector<1x128xf32>
    %c0_561 = arith.constant 0 : index
    %c0_562 = arith.constant 0 : index
    %c0_563 = arith.constant 0 : index
    %773 = vector.load %arg8[%c0_561, %c0_562, %c0_563] : memref<1x1x128xf32, #tpu.memory_space<vmem>>, vector<1x1x128xf32>
    %774 = vector.shape_cast %773 : vector<1x1x128xf32> to vector<1x128xf32>
    %775 = vector.shape_cast %772 : vector<1x128xf32> to vector<1x1x128xf32>
    tpu.vector_store %arg8[%c0_561, %c0_562, %c0_563], %775 {strides = array<i32>} : memref<1x1x128xf32, #tpu.memory_space<vmem>>, vector<1x1x128xf32>,
    return
  }
  func.func @transform_0(%arg0: i32) -> (i32, i32, i32, i32) {
    %c0_i32 = arith.constant 0 : i32
    %c0_i32_0 = arith.constant 0 : i32
    %c0_i32_1 = arith.constant 0 : i32
    %c0_i32_2 = arith.constant 0 : i32
    return %arg0, %c0_i32, %c0_i32_0, %c0_i32_1 : i32, i32, i32, i32
  }
  func.func @transform_1(%arg0: i32) -> (i32, i32) {
    %c0_i32 = arith.constant 0 : i32
    %c0_i32_0 = arith.constant 0 : i32
    %c0_i32_1 = arith.constant 0 : i32
    return %c0_i32, %c0_i32_0 : i32, i32
  }
  func.func @transform_2(%arg0: i32) -> (i32, i32) {
    %c0_i32 = arith.constant 0 : i32
    %c0_i32_0 = arith.constant 0 : i32
    %c0_i32_1 = arith.constant 0 : i32
    return %c0_i32, %c0_i32_0 : i32, i32
  }
  func.func @transform_3(%arg0: i32) -> (i32, i32, i32) {
    %c0_i32 = arith.constant 0 : i32
    %c0_i32_0 = arith.constant 0 : i32
    %c0_i32_1 = arith.constant 0 : i32
    %c0_i32_2 = arith.constant 0 : i32
    return %c0_i32, %c0_i32_0, %c0_i32_1 : i32, i32, i32
  }
  func.func @transform_4(%arg0: i32) -> (i32, i32) {
    %c0_i32 = arith.constant 0 : i32
    %c0_i32_0 = arith.constant 0 : i32
    %c0_i32_1 = arith.constant 0 : i32
    return %c0_i32, %c0_i32_0 : i32, i32
  }
  func.func @transform_5(%arg0: i32) -> (i32, i32) {
    %c0_i32 = arith.constant 0 : i32
    %c0_i32_0 = arith.constant 0 : i32
    %c0_i32_1 = arith.constant 0 : i32
    return %c0_i32, %c0_i32_0 : i32, i32
  }
  func.func @transform_6(%arg0: i32) -> (i32, i32) {
    %c0_i32 = arith.constant 0 : i32
    %c0_i32_0 = arith.constant 0 : i32
    %c0_i32_1 = arith.constant 0 : i32
    return %c0_i32, %c0_i32_0 : i32, i32
  }
  func.func @transform_7(%arg0: i32) -> (i32, i32, i32) {
    %c0_i32 = arith.constant 0 : i32
    %c0_i32_0 = arith.constant 0 : i32
    %c0_i32_1 = arith.constant 0 : i32
    return %arg0, %c0_i32, %c0_i32_0 : i32, i32, i32
  }
}

</mosaic_0001>

<bundles_post_ra>
// kernel: cnn3d_forward.1
= control target key start
LH: loop header
LB: loop body
LE: loop exit
PB: predicated region body
PF: predicated region fallthrough
CT: control target
= control target key end

     0   :  { %12 = vsyncpa [#allocation5], 0  ;;  %s15595_s0 = inlined_call_operand.vmem [shape: bf16[2,4,256,128], index: 0, kind: input, shape index: {}]   ;;  %s15596_s1 = inlined_call_operand.vmem [shape: bf16[128,128], index: 1, kind: input, shape index: {}]   ;;  %s15597_s2 = inlined_call_operand.vmem [shape: f32[1,128], index: 2, kind: input, shape index: {}]   ;;  %s15598_s3 = inlined_call_operand.vmem [shape: bf16[27,128,128], index: 3, kind: input, shape index: {}]   ;;  %s15599_s4 = inlined_call_operand.vmem [shape: f32[1,128], index: 4, kind: input, shape index: {}]   ;;  %s15600_s5 = inlined_call_operand.vmem [shape: f32[128,128], index: 5, kind: input, shape index: {}]   ;;  %s15601_s6 = inlined_call_operand.vmem [shape: f32[1,128], index: 6, kind: input, shape index: {}]   ;;  %s15602_s7 = inlined_call_operand.hbm [shape: f32[2,1,128], index: 7, kind: output, shape index: {}]  }
   0x1   :  { %14 = vsyncpa [#allocation5 + $0x1], 0  ;;  %s12578_s24 = smov 0   ;;  %s12580_s25 = smov 0  }
   0x2   :  { %s12582_s26 = smov 0   ;;  %s12584_s27 = smov 0  }
   0x3 LB: > { %s12599_s28 = sadd.s32 4294967295, %s12533_s27   ;;  %s8149_s29 = sadd.s32 4294967294, %s12533_s27   ;;  %s12533_s27 = sphi %s12584_s27, %s15648_s27   ;;  %s12529_s26 = sphi %s12582_s26, %s15647_s26   ;;  %s12525_s25 = sphi %s12580_s25, %s15646_s25   ;;  %s12521_s24 = sphi %s12578_s24, %s15645_s24  }
   0x4   : > { %s12603_s30 = sadd.s32 1, %s12533_s27   ;;  %s179_s8 = sadd.s32 1, %s12529_s26 }
   0x5   : > { %s176_s9 = ssub.s32 %s12533_s27, %s12603_s30  ;;  %p189_p0 = scmp.ne.s32.totalorder %s12529_s26, %s12525_s25 }
   0x6   : > { %p177_p1 = scmp.eq.s32.totalorder %s176_s9, 0  ;;  %p190_p2 = scmp.eq.s32.totalorder %s12599_s28, 1 }
   0x7   : > { %p195_p3 = scmp.ne.s32.totalorder %s12525_s25, %s12521_s24  ;;  %p196_p4 = scmp.eq.s32.totalorder %s8149_s29, 1 }
   0x8   : > { %s12614_s10 = scalar_select %p177_p1, %s12529_s26, %s179_s8  }
   0x9   : > { %p12616_p5 = por %p190_p2, %p189_p0  ;;  %p12620_p6 = por %p196_p4, %p195_p3 }
   0xa   : > { %p8152_p7 = scmp.ge.s32.totalorder %s12533_s27, 1  ;;  %p240_p8 = scmp.lt.s32.totalorder %s12533_s27, 3 }
   0xc   : > { %p241_p9 = pnand %p8152_p7, %p240_p8 }
   0xe   : > { %244 = sbr.rel (%p241_p9) target bundleno = 1537 (0x601), region = 48 }
  0x13   : > { %v11938_v0 = vld [vmem:[%s15596_s1 + $0x38] sm:$0xff]   ;;  %v11940_v2 = vld [vmem:[%s15596_s1 + $0x30] sm:$0xff]   ;;  %p271_p10 = scmp.lt.s32.totalorder %s12599_s28, 1  ;;  %v11942_v4 = vld [vmem:[%s15596_s1 + $0x28] sm:$0xff]   ;;  %v12535_v16 = vmov 0.0   ;;  %vm2549_vm0 = vcmask 1043456  }
  0x14   : > { %v11939_v1 = vld [vmem:[%s15596_s1 + $0x38] sm:$0xff]   ;;  %10590 = vmatprep.subr.bf16.mxu0 %v11938_v0  ;;  %v11941_v3 = vld [vmem:[%s15596_s1 + $0x30] sm:$0xff]   ;;  %v11943_v5 = vld [vmem:[%s15596_s1 + $0x28] sm:$0xff]   ;;  %2471 = vst [vmem:[#allocation3] sm:$0xff] %v12535_v16  ;;  %vm2557_vm1 = vcmask 1047556   ;;  %vm2579_vm2 = vcmask 1040384  }
  0x15   : > { %10591 = vmatpush3.bf16.msra.mxu0 %v11938_v0  ;;  %10638 = vmatprep.subr.bf16.mxu1 %v11939_v1  ;;  %s272_s8 = scalar_select %p271_p10, %s12599_s28, 1  ;;  %v11944_v6 = vld [vmem:[%s15596_s1 + $0x20] sm:$0xff]   ;;  %v11946_v8 = vld [vmem:[%s15596_s1 + $0x18] sm:$0xff]   ;;  %v11948_v10 = vld [vmem:[%s15596_s1 + $0x10] sm:$0xff]   ;;  %2472 = vst [vmem:[#allocation3 + $0x8] sm:$0xff] %v12535_v16  ;;  %vm2581_vm3 = vcmask 1041408  }
  0x16   : > { %10639 = vmatpush3.bf16.msra.mxu1 %v11939_v1  ;;  %10592 = vmatprep.subr.bf16.mxu0 %v11940_v2  ;;  %v11945_v7 = vld [vmem:[%s15596_s1 + $0x20] sm:$0xff]   ;;  %v11947_v9 = vld [vmem:[%s15596_s1 + $0x18] sm:$0xff]   ;;  %v11949_v12 = vld [vmem:[%s15596_s1 + $0x10] sm:$0xff]   ;;  %2473 = vst [vmem:[#allocation3 + $0x10] sm:$0xff] %v12535_v16  ;;  %vm2583_vm4 = vcmask 1042432   ;;  %vm12536_vm5 = vmmov 0  }
  0x17   : > { %10640 = vmatprep.subr.bf16.mxu1 %v11941_v3  ;;  %s9112_s16 = sshll.u32 %s272_s8, 9  ;;  %v11950_v14 = vld [vmem:[%s15596_s1 + $0x8] sm:$0xff]   ;;  %2474 = vst [vmem:[#allocation3 + $0x18] sm:$0xff] %v12535_v16  ;;  %2475 = vst [vmem:[#allocation3 + $0x20] sm:$0xff] %v12535_v16  ;;  %v11952_v17 = vld [vmem:[%s15596_s1] sm:$0xff]   ;;  %s269_s13 = sand.u32 1, %s12525_s25  }
  0x18   : > { %s12661_s23 = scalar_lea.vmem %s15595_s0, %s9112_s16  ;;  %v11951_v15 = vld [vmem:[%s15596_s1 + $0x8] sm:$0xff]   ;;  %2476 = vst [vmem:[#allocation3 + $0x28] sm:$0xff] %v12535_v16  ;;  %2477 = vst [vmem:[#allocation3 + $0x30] sm:$0xff] %v12535_v16  ;;  %v11953_v18 = vld [vmem:[%s15596_s1] sm:$0xff]   ;;  %s9109_s16 = sshll.u32 %s12599_s28, 4 }
  0x19   : > { %10593 = vmatpush3.bf16.msra.mxu0 %v11940_v2  ;;  %v11954_v11 = vld [vmem:[%s12661_s23] sm:$0xff]   ;;  %2479 = vst [vmem:[#allocation3 + $0x40] sm:$0xff] %v12535_v16  ;;  %2480 = vst [vmem:[#allocation3 + $0x48] sm:$0xff] %v12535_v16  ;;  %v11955_v19 = vld [vmem:[%s12661_s23 + $0x8] sm:$0xff]   ;;  %s270_s17 = scalar_lea.vmem [#allocation4], %s269_s13  ;;  %s15560_s21 = scalar_lea.hbm %s15602_s7, %s9109_s16 }
  0x1a   : > { %10641 = vmatpush3.bf16.msra.mxu1 %v11941_v3  ;;  %10594 = vmatprep.subr.bf16.mxu0 %v11942_v4  ;;  %v11956_v13 = vld [vmem:[%s12661_s23 + $0x80] sm:$0xff]   ;;  %2481 = vst [vmem:[#allocation3 + $0x50] sm:$0xff] %v12535_v16  ;;  %2482 = vst [vmem:[#allocation3 + $0x58] sm:$0xff] %v12535_v16  ;;  %v11957_v20 = vld [vmem:[%s12661_s23 + $0x88] sm:$0xff]   ;;  %s8094_s18 = sshll.u32 %s270_s17, 4  ;;  %s8082_s22 = scalar_lea.sflag [#allocation5], %s269_s13  ;;  %s8095_s18 = int_to_ptr.vmem [resolvable:$true] %s8094_s18 }
  0x1b   : > { %10642 = vmatprep.subr.bf16.mxu1 %v11943_v5  ;;  %10606 = vmatprep.mubr.bf16.mxu0 %v11954_v11  ;;  %2483 = vst [vmem:[#allocation3 + $0x60] sm:$0xff] %v12535_v16  ;;  %2484 = vst [vmem:[#allocation3 + $0x68] sm:$0xff] %v12535_v16  ;;  %v11958_v21 = vld [vmem:[%s12661_s23 + $0x10] sm:$0xff]   ;;  %v11970_v23 = vld [vmem:[%s15596_s1 + $0x38] sm:$0xff]   ;;  %s12473_s29 = scalar_lea.vmem %s8095_s18, 16  ;;  %s12537_s8 = smov [#allocation4]  }
  0x1c   : > { %10654 = vmatprep.mubr.bf16.mxu1 %v11956_v13  ;;  %2485 = vst [vmem:[#allocation3 + $0x70] sm:$0xff] %v12535_v16  ;;  %2487 = vst [vmem:[#allocation3 + $0x80] sm:$0xff] %v12535_v16  ;;  %v11960_v22 = vld [vmem:[%s12661_s23 + $0x90] sm:$0xff]   ;;  %v11971_v24 = vld [vmem:[%s15596_s1 + $0x38] sm:$0xff]   ;;  %p12474_p11 = scmp.ne.s32.totalorder %s8095_s18, %s12473_s29  ;;  %s12477_s28 = sshll.u32 %s12537_s8, 4  ;;  %s12478_s28 = int_to_ptr.vmem [resolvable:$false] %s12477_s28 }
  0x1d   : > { %10595 = vmatpush3.bf16.msra.mxu0 %v11942_v4  ;;  %2488 = vst [vmem:[#allocation3 + $0x88] sm:$0xff] %v12535_v16  ;;  %2489 = vst [vmem:[#allocation3 + $0x90] sm:$0xff] %v12535_v16  ;;  %v11959_v25 = vld [vmem:[%s12661_s23 + $0x18] sm:$0xff]   ;;  %v11962_v27 = vld [vmem:[%s12661_s23 + $0x20] sm:$0xff]   ;;  %p12480_p0 = scmp.lt.s32.totalorder %s8095_s18, %s12478_s28 }
  0x1e   : > { %10643 = vmatpush3.bf16.msra.mxu1 %v11943_v5  ;;  %10596 = vmatprep.subr.bf16.mxu0 %v11944_v6  ;;  %2490 = vst [vmem:[#allocation3 + $0x98] sm:$0xff] %v12535_v16  ;;  %2491 = vst [vmem:[#allocation3 + $0xa0] sm:$0xff] %v12535_v16  ;;  %v11961_v26 = vld [vmem:[%s12661_s23 + $0x98] sm:$0xff]   ;;  %v11976_v28 = vld [vmem:[%s15596_s1 + $0x30] sm:$0xff]   ;;  %p12475_p12 = pnand %p12474_p11, %p12616_p5 }
  0x1f   : > { %10644 = vmatprep.subr.bf16.mxu1 %v11945_v7  ;;  %2492 = vst [vmem:[#allocation3 + $0xa8] sm:$0xff] %v12535_v16  ;;  %2493 = vst [vmem:[#allocation3 + $0xb0] sm:$0xff] %v12535_v16  ;;  %v11977_v29 = vld [vmem:[%s15596_s1 + $0x30] sm:$0xff]   ;;  %v11964_v30 = vld [vmem:[%s12661_s23 + $0xa0] sm:$0xff]  }
  0x20   : > { %2495 = vst [vmem:[#allocation3 + $0xc0] sm:$0xff] %v12535_v16  ;;  %2496 = vst [vmem:[#allocation3 + $0xc8] sm:$0xff] %v12535_v16  ;;  %v11980_v31 = vld [vmem:[%s15596_s1 + $0x28] sm:$0xff]   ;;  %v11966_v34 = vld [vmem:[%s12661_s23 + $0x30] sm:$0xff]   ;;  %p12476_p13 = pneg %p12475_p12 }
  0x21   : > { %10597 = vmatpush3.bf16.msra.mxu0 %v11944_v6  ;;  %2497 = vst [vmem:[#allocation3 + $0xd0] sm:$0xff] %v12535_v16  ;;  %2498 = vst [vmem:[#allocation3 + $0xd8] sm:$0xff] %v12535_v16  ;;  %v11963_v32 = vld [vmem:[%s12661_s23 + $0x28] sm:$0xff]   ;;  %v11984_v36 = vld [vmem:[%s15596_s1 + $0x20] sm:$0xff]  }
  0x22   : > { %10645 = vmatpush3.bf16.msra.mxu1 %v11945_v7  ;;  %10598 = vmatprep.subr.bf16.mxu0 %v11946_v8  ;;  %2499 = vst [vmem:[#allocation3 + $0xe0] sm:$0xff] %v12535_v16  ;;  %2500 = vst [vmem:[#allocation3 + $0xe8] sm:$0xff] %v12535_v16  ;;  %v11965_v33 = vld [vmem:[%s12661_s23 + $0xa8] sm:$0xff]   ;;  %v11985_v37 = vld [vmem:[%s15596_s1 + $0x20] sm:$0xff]  }
  0x23   : > { %10646 = vmatprep.subr.bf16.mxu1 %v11947_v9  ;;  %2501 = vst [vmem:[#allocation3 + $0xf0] sm:$0xff] %v12535_v16  ;;  %v11983_v35 = vld [vmem:[%s15596_s1 + $0x28] sm:$0xff]   ;;  %v11968_v38 = vld [vmem:[%s12661_s23 + $0xb0] sm:$0xff]   ;;  %v11988_v39 = vld [vmem:[%s15596_s1 + $0x18] sm:$0xff]  }
  0x24   : > { %v11967_v40 = vld [vmem:[%s12661_s23 + $0x38] sm:$0xff]   ;;  %v11972_v42 = vld [vmem:[%s12661_s23 + $0x40] sm:$0xff]   ;;  %v11992_v44 = vld [vmem:[%s15596_s1 + $0x10] sm:$0xff]  }
  0x25   : > { %10599 = vmatpush3.bf16.msra.mxu0 %v11946_v8  ;;  %v11969_v41 = vld [vmem:[%s12661_s23 + $0xb8] sm:$0xff]   ;;  %v11993_v45 = vld [vmem:[%s15596_s1 + $0x10] sm:$0xff]   ;;  %v11974_v46 = vld [vmem:[%s12661_s23 + $0xc0] sm:$0xff]  }
  0x26   : > { %10647 = vmatpush3.bf16.msra.mxu1 %v11947_v9  ;;  %10600 = vmatprep.subr.bf16.mxu0 %v11948_v10  ;;  %v11991_v43 = vld [vmem:[%s15596_s1 + $0x18] sm:$0xff]   ;;  %v11996_v47 = vld [vmem:[%s15596_s1 + $0x8] sm:$0xff]   ;;  %v11978_v50 = vld [vmem:[%s12661_s23 + $0x50] sm:$0xff]  }
  0x27   : > { %10648 = vmatprep.subr.bf16.mxu1 %v11949_v12  ;;  %v11973_v48 = vld [vmem:[%s12661_s23 + $0x48] sm:$0xff]   ;;  %v12000_v52 = vld [vmem:[%s15596_s1] sm:$0xff]   ;;  %v11981_v54 = vld [vmem:[%s12661_s23 + $0xd0] sm:$0xff]  }
  0x28   : > { %v11975_v49 = vld [vmem:[%s12661_s23 + $0xc8] sm:$0xff]   ;;  %v12001_v53 = vld [vmem:[%s15596_s1] sm:$0xff]   ;;  %v11979_v55 = vld [vmem:[%s12661_s23 + $0x58] sm:$0xff]  }
  0x29   : > { %10601 = vmatpush3.bf16.msra.mxu0 %v11948_v10  ;;  %v11999_v51 = vld [vmem:[%s15596_s1 + $0x8] sm:$0xff]   ;;  %v11982_v56 = vld [vmem:[%s12661_s23 + $0xd8] sm:$0xff]   ;;  %v11986_v57 = vld [vmem:[%s12661_s23 + $0x60] sm:$0xff]  }
  0x2a   : > { %10649 = vmatpush3.bf16.msra.mxu1 %v11949_v12  ;;  %10602 = vmatprep.subr.bf16.mxu0 %v11950_v14  ;;  %v11989_v58 = vld [vmem:[%s12661_s23 + $0xe0] sm:$0xff]   ;;  %v11987_v59 = vld [vmem:[%s12661_s23 + $0x68] sm:$0xff]   ;;  %v11994_v61 = vld [vmem:[%s12661_s23 + $0x70] sm:$0xff]  }
  0x2b   : > { %10650 = vmatprep.subr.bf16.mxu1 %v11951_v15  ;;  %v11990_v60 = vld [vmem:[%s12661_s23 + $0xe8] sm:$0xff]   ;;  %v11997_v62 = vld [vmem:[%s12661_s23 + $0xf0] sm:$0xff]   ;;  %v12018_v63 = vld [vmem:[%s15598_s3 + $0x78] sm:$0xff]  }
  0x2c   : > { %v12019_v0 = vld [vmem:[%s15598_s3 + $0x38] sm:$0xff]   ;;  %v12002_v3 = vld [vmem:[%s12661_s23 + $0x100] sm:$0xff]   ;;  %v12003_v5 = vld [vmem:[%s12661_s23 + $0x108] sm:$0xff]  }
  0x2d   : > { %10603 = vmatpush3.bf16.msra.mxu0 %v11950_v14  ;;  %v11995_v1 = vld [vmem:[%s12661_s23 + $0x78] sm:$0xff]   ;;  %v12004_v4 = vld [vmem:[%s12661_s23 + $0x180] sm:$0xff]   ;;  %v12005_v6 = vld [vmem:[%s12661_s23 + $0x188] sm:$0xff]  }
  0x2e   : > { %10651 = vmatpush3.bf16.msra.mxu1 %v11951_v15  ;;  %10604 = vmatprep.subr.bf16.mxu0 %v11952_v17  ;;  %v11998_v2 = vld [vmem:[%s12661_s23 + $0xf8] sm:$0xff]   ;;  %v12006_v7 = vld [vmem:[%s12661_s23 + $0x110] sm:$0xff]   ;;  %v12027_v13 = vld [vmem:[%s15598_s3 + $0x68] sm:$0xff]  }
  0x2f   : > { %10652 = vmatprep.subr.bf16.mxu1 %v11953_v18  ;;  %v12008_v8 = vld [vmem:[%s12661_s23 + $0x190] sm:$0xff]   ;;  %v12007_v11 = vld [vmem:[%s12661_s23 + $0x118] sm:$0xff]   ;;  %v12030_v14 = vld [vmem:[%s15598_s3 + $0x28] sm:$0xff]  }
  0x30   : > { %v12024_v9 = vld [vmem:[%s15598_s3 + $0x70] sm:$0xff]   ;;  %v12009_v12 = vld [vmem:[%s12661_s23 + $0x198] sm:$0xff]   ;;  %v12010_v15 = vld [vmem:[%s12661_s23 + $0x120] sm:$0xff]  }
  0x31   : > { %10605 = vmatpush3.bf16.msra.mxu0 %v11952_v17  ;;  %v12025_v10 = vld [vmem:[%s15598_s3 + $0x30] sm:$0xff]   ;;  %v12012_v16 = vld [vmem:[%s12661_s23 + $0x1a0] sm:$0xff]  }
  0x32   : > { %10653 = vmatpush3.bf16.msra.mxu1 %v11953_v18  ;;  %10686 = vmatprep.subr.bf16.mxu0 %v11970_v23  ;;  %v12032_v17 = vld [vmem:[%s15598_s3 + $0x60] sm:$0xff]  }
  0x33   : > { %10734 = vmatprep.subr.bf16.mxu1 %v11971_v24  ;;  %v12033_v18 = vld [vmem:[%s15598_s3 + $0x20] sm:$0xff]  }
  0x34   : > { %10607 = vmatmul.mubr.bf16.vlgmr.msra.gmra.mxu0 %v11955_v19  ;;  %v12011_v19 = vld [vmem:[%s12661_s23 + $0x128] sm:$0xff]  }
  0x35   : > { %10655 = vmatmul.mubr.bf16.vlgmr.msra.gmra.mxu1 %v11957_v20  ;;  %10610 = vmatprep.mubr.bf16.mxu0 %v11958_v21  ;;  %v12013_v20 = vld [vmem:[%s12661_s23 + $0x1a8] sm:$0xff]   ;;  %v12035_v21 = vld [vmem:[%s15598_s3 + $0x58] sm:$0xff]  }
  0x36   : > { %10658 = vmatprep.mubr.bf16.mxu1 %v11960_v22  ;;  %10687 = vmatpush3.bf16.msra.mxu0 %v11970_v23  ;;  %v12038_v22 = vld [vmem:[%s15598_s3 + $0x18] sm:$0xff]   ;;  %v12014_v23 = vld [vmem:[%s12661_s23 + $0x130] sm:$0xff]  }
  0x37   : > { %10735 = vmatpush3.bf16.msra.mxu1 %v11971_v24  ;;  %10688 = vmatprep.subr.bf16.mxu0 %v11976_v28  ;;  %v12016_v24 = vld [vmem:[%s12661_s23 + $0x1b0] sm:$0xff]  }
  0x38   : > { %10736 = vmatprep.subr.bf16.mxu1 %v11977_v29 }
  0x3a   : > { %10689 = vmatpush3.bf16.msra.mxu0 %v11976_v28  ;;  %v12017_v28 = vld [vmem:[%s12661_s23 + $0x1b8] sm:$0xff]  }
  0x3b   : > { %10737 = vmatpush3.bf16.msra.mxu1 %v11977_v29  ;;  %10690 = vmatprep.subr.bf16.mxu0 %v11980_v31  ;;  %v12043_v29 = vld [vmem:[%s15598_s3 + $0x48] sm:$0xff]  }
  0x3c   : > { %10611 = vmatmul.mubr.bf16.gmra.mxu0 %v11959_v25  ;;  %10738 = vmatprep.subr.bf16.mxu1 %v11983_v35  ;;  %v12040_v25 = vld [vmem:[%s15598_s3 + $0x50] sm:$0xff]  }
  0x3d   : > { %10659 = vmatmul.mubr.bf16.gmra.mxu1 %v11961_v26  ;;  %10614 = vmatprep.mubr.bf16.mxu0 %v11962_v27  ;;  %v12041_v26 = vld [vmem:[%s15598_s3 + $0x10] sm:$0xff]   ;;  %v12015_v27 = vld [vmem:[%s12661_s23 + $0x138] sm:$0xff]  }
  0x3e   : > { %10662 = vmatprep.mubr.bf16.mxu1 %v11964_v30  ;;  %10691 = vmatpush3.bf16.msra.mxu0 %v11980_v31  ;;  %v12046_v30 = vld [vmem:[%s15598_s3 + $0x8] sm:$0xff]   ;;  %v12020_v31 = vld [vmem:[%s12661_s23 + $0x140] sm:$0xff]  }
  0x3f   : > { %10739 = vmatpush3.bf16.msra.mxu1 %v11983_v35  ;;  %10692 = vmatprep.subr.bf16.mxu0 %v11984_v36  ;;  %v12021_v35 = vld [vmem:[%s12661_s23 + $0x148] sm:$0xff]  }
  0x40   : > { %10740 = vmatprep.subr.bf16.mxu1 %v11985_v37 }
  0x42   : > { %10693 = vmatpush3.bf16.msra.mxu0 %v11984_v36  ;;  %v12023_v36 = vld [vmem:[%s12661_s23 + $0x1c8] sm:$0xff]  }
  0x43   : > { %10741 = vmatpush3.bf16.msra.mxu1 %v11985_v37  ;;  %10694 = vmatprep.subr.bf16.mxu0 %v11988_v39  ;;  %v12050_v37 = vld [vmem:[%s15598_s3 + $0xb8] sm:$0xff]  }
  0x44   : > { %10615 = vmatmul.mubr.bf16.gmra.mxu0 %v11963_v32  ;;  %10742 = vmatprep.subr.bf16.mxu1 %v11991_v43  ;;  %v12022_v32 = vld [vmem:[%s12661_s23 + $0x1c0] sm:$0xff]  }
  0x45   : > { %10663 = vmatmul.mubr.bf16.gmra.mxu1 %v11965_v33  ;;  %10618 = vmatprep.mubr.bf16.mxu0 %v11966_v34  ;;  %v12048_v33 = vld [vmem:[%s15598_s3 + $0x40] sm:$0xff]  }
  0x46   : > { %10666 = vmatprep.mubr.bf16.mxu1 %v11968_v38  ;;  %10695 = vmatpush3.bf16.msra.mxu0 %v11988_v39  ;;  %v12049_v34 = vld [vmem:[%s15598_s3] sm:$0xff]   ;;  %v12051_v38 = vld [vmem:[%s15598_s3 + $0xf8] sm:$0xff]   ;;  %v12026_v39 = vld [vmem:[%s12661_s23 + $0x150] sm:$0xff]  }
  0x47   : > { %10743 = vmatpush3.bf16.msra.mxu1 %v11991_v43  ;;  %10696 = vmatprep.subr.bf16.mxu0 %v11992_v44  ;;  %v12034_v43 = vld [vmem:[%s12661_s23 + $0x160] sm:$0xff]  }
  0x48   : > { %10744 = vmatprep.subr.bf16.mxu1 %v11993_v45 }
  0x4a   : > { %10697 = vmatpush3.bf16.msra.mxu0 %v11992_v44  ;;  %v12037_v44 = vld [vmem:[%s12661_s23 + $0x1e0] sm:$0xff]  }
  0x4b   : > { %10745 = vmatpush3.bf16.msra.mxu1 %v11993_v45  ;;  %10698 = vmatprep.subr.bf16.mxu0 %v11996_v47  ;;  %v12036_v45 = vld [vmem:[%s12661_s23 + $0x168] sm:$0xff]  }
  0x4c   : > { %10619 = vmatmul.mubr.bf16.gmra.mxu0 %v11967_v40  ;;  %10746 = vmatprep.subr.bf16.mxu1 %v11999_v51  ;;  %v12029_v40 = vld [vmem:[%s12661_s23 + $0x1d0] sm:$0xff]  }
  0x4d   : > { %10667 = vmatmul.mubr.bf16.gmra.mxu1 %v11969_v41  ;;  %10622 = vmatprep.mubr.bf16.mxu0 %v11972_v42  ;;  %v12028_v41 = vld [vmem:[%s12661_s23 + $0x158] sm:$0xff]  }
  0x4e   : > { %10670 = vmatprep.mubr.bf16.mxu1 %v11974_v46  ;;  %10699 = vmatpush3.bf16.msra.mxu0 %v11996_v47  ;;  %v12031_v42 = vld [vmem:[%s12661_s23 + $0x1d8] sm:$0xff]   ;;  %v12039_v46 = vld [vmem:[%s12661_s23 + $0x1e8] sm:$0xff]   ;;  %v12042_v47 = vld [vmem:[%s12661_s23 + $0x170] sm:$0xff]  }
  0x4f   : > { %10747 = vmatpush3.bf16.msra.mxu1 %v11999_v51  ;;  %10700 = vmatprep.subr.bf16.mxu0 %v12000_v52  ;;  %v12044_v51 = vld [vmem:[%s12661_s23 + $0x178] sm:$0xff]  }
  0x50   : > { %10748 = vmatprep.subr.bf16.mxu1 %v12001_v53 }
  0x52   : > { %10701 = vmatpush3.bf16.msra.mxu0 %v12000_v52  ;;  %v12047_v52 = vld [vmem:[%s12661_s23 + $0x1f8] sm:$0xff]  }
  0x53   : > { %10749 = vmatpush3.bf16.msra.mxu1 %v12001_v53  ;;  %10782 = vmatprep.subr.bf16.mxu0 %v12018_v63 }
  0x54   : > { %10623 = vmatmul.mubr.bf16.gmra.mxu0 %v11973_v48  ;;  %10802 = vmatprep.subr.bf16.mxu1 %v12019_v0  ;;  %v12045_v48 = vld [vmem:[%s12661_s23 + $0x1f0] sm:$0xff]   ;;  %s12479_s23 = scalar_lea.vmem %s12478_s28, 32 }
  0x55   : > { %10671 = vmatmul.mubr.bf16.gmra.mxu1 %v11975_v49  ;;  %10626 = vmatprep.mubr.bf16.mxu0 %v11978_v50  ;;  %v3154_v49 = vld [vmem:[#allocation3 + $0x1] sm:$0xff]  ;;  %v12845_v50 = vld [vmem:[#allocation3 + $0x9] sm:$0xff]  ;;  %p12481_p1 = scmp.lt.s32.totalorder %s12479_s23, %s12473_s29 }
  0x56   : > { %10674 = vmatprep.mubr.bf16.mxu1 %v11981_v54  ;;  %v3158_v53 = vpack.c.bf16 %v12845_v50, %v3154_v49  ;;  %v12250_v54 = vld [vmem:[#allocation3] sm:$0xff] }
  0x57   : > { %p12482_p2 = por %p12481_p1, %p12480_p0 }
  0x59   : > { %p12483_p3 = pnand %p12482_p2, %p12476_p13 }
  0x5c   : > { %10627 = vmatmul.mubr.bf16.gmra.mxu0 %v11979_v55  ;;  %v12850_v55 = vpack.c.bf16 %v12250_v54, %v12250_v54 }
  0x5d   : > { %10675 = vmatmul.mubr.bf16.gmra.mxu1 %v11982_v56  ;;  %10630 = vmatprep.mubr.bf16.mxu0 %v11986_v57  ;;  %v12852_v56 = vld [vmem:[#allocation3 + $0x11] sm:$0xff]  ;;  %v12854_v57 = vld [vmem:[#allocation3 + $0x19] sm:$0xff] }
  0x5e   : > { %10678 = vmatprep.mubr.bf16.mxu1 %v11989_v58  ;;  %v3371_v58 = vld [vmem:[#allocation3 + $0x2] sm:$0xff] }
  0x64   : > { %10631 = vmatmul.mubr.bf16.gmra.mxu0 %v11987_v59  ;;  %v3159_v59 = vpack.c.bf16 %v12854_v57, %v12852_v56 }
  0x65   : > { %10679 = vmatmul.mubr.bf16.gmra.mxu1 %v11990_v60  ;;  %10634 = vmatprep.mubr.bf16.mxu0 %v11994_v61  ;;  %v12859_v60 = vld [vmem:[#allocation3 + $0xa] sm:$0xff] }
  0x66   : > { %10682 = vmatprep.mubr.bf16.mxu1 %v11997_v62  ;;  %v12052_v61 = vld [vmem:[%s15598_s3 + $0xb0] sm:$0xff]  }
  0x67   : > { %v12053_v62 = vld [vmem:[%s15598_s3 + $0xf0] sm:$0xff]  }
  0x6c   : > { %10635 = vmatmul.mubr.bf16.gmra.mxu0 %v11995_v1  ;;  %v12055_v1 = vld [vmem:[%s15598_s3 + $0xe8] sm:$0xff]  }
  0x6d   : > { %10683 = vmatmul.mubr.bf16.gmra.mxu1 %v11998_v2  ;;  %10702 = vmatprep.mubr.bf16.mxu0 %v12002_v3  ;;  %v12056_v2 = vld [vmem:[%s15598_s3 + $0xa0] sm:$0xff]  }
  0x6e   : > { %10750 = vmatprep.mubr.bf16.mxu1 %v12004_v4  ;;  %v12057_v3 = vld [vmem:[%s15598_s3 + $0xe0] sm:$0xff]   ;;  %v12058_v4 = vld [vmem:[%s15598_s3 + $0x98] sm:$0xff]  }
  0x74   : > { %10703 = vmatmul.mubr.bf16.vlgmr.msra.gmra.mxu0 %v12003_v5  ;;  %v12059_v5 = vld [vmem:[%s15598_s3 + $0xd8] sm:$0xff]  }
  0x75   : > { %10751 = vmatmul.mubr.bf16.vlgmr.msra.gmra.mxu1 %v12005_v6  ;;  %10706 = vmatprep.mubr.bf16.mxu0 %v12006_v7  ;;  %v12060_v6 = vld [vmem:[%s15598_s3 + $0x90] sm:$0xff]  }
  0x76   : > { %10754 = vmatprep.mubr.bf16.mxu1 %v12008_v8  ;;  %10783 = vmatpush3.bf16.msra.mxu0 %v12018_v63  ;;  %v3375_v63 = vpack.c.bf16 %v12859_v60, %v3371_v58  ;;  %v12061_v7 = vld [vmem:[%s15598_s3 + $0xd0] sm:$0xff]   ;;  %v12062_v8 = vld [vmem:[%s15598_s3 + $0x88] sm:$0xff]  }
  0x77   : > { %10803 = vmatpush3.bf16.msra.mxu1 %v12019_v0  ;;  %10784 = vmatprep.subr.bf16.mxu0 %v12024_v9  ;;  %v12054_v0 = vld [vmem:[%s15598_s3 + $0xa8] sm:$0xff]  }
  0x78   : > { %10804 = vmatprep.subr.bf16.mxu1 %v12025_v10 }
  0x7a   : > { %10785 = vmatpush3.bf16.msra.mxu0 %v12024_v9  ;;  %v12063_v9 = vld [vmem:[%s15598_s3 + $0xc8] sm:$0xff]  }
  0x7b   : > { %10805 = vmatpush3.bf16.msra.mxu1 %v12025_v10  ;;  %10786 = vmatprep.subr.bf16.mxu0 %v12027_v13  ;;  %v12064_v10 = vld [vmem:[%s15598_s3 + $0x80] sm:$0xff]  }
  0x7c   : > { %10707 = vmatmul.mubr.bf16.gmra.mxu0 %v12007_v11  ;;  %10806 = vmatprep.subr.bf16.mxu1 %v12030_v14  ;;  %v12065_v11 = vld [vmem:[%s15598_s3 + $0xc0] sm:$0xff]  }
  0x7d   : > { %10755 = vmatmul.mubr.bf16.gmra.mxu1 %v12009_v12  ;;  %10710 = vmatprep.mubr.bf16.mxu0 %v12010_v15  ;;  %v3373_v12 = vld [vmem:[#allocation3 + $0x12] sm:$0xff] }
  0x7e   : > { %10758 = vmatprep.mubr.bf16.mxu1 %v12012_v16  ;;  %10787 = vmatpush3.bf16.msra.mxu0 %v12027_v13  ;;  %v12906_v13 = vld [vmem:[#allocation3 + $0x1a] sm:$0xff] }
  0x7f   : > { %10807 = vmatpush3.bf16.msra.mxu1 %v12030_v14  ;;  %10788 = vmatprep.subr.bf16.mxu0 %v12032_v17  ;;  %v12066_v14 = vld [vmem:[%s15598_s3 + $0x138] sm:$0xff]   ;;  %v3376_v16 = vpack.c.bf16 %v12906_v13, %v3373_v12 }
  0x80   : > { %10808 = vmatprep.subr.bf16.mxu1 %v12033_v18  ;;  %v12067_v15 = vld [vmem:[%s15598_s3 + $0x178] sm:$0xff]  }
  0x82   : > { %10789 = vmatpush3.bf16.msra.mxu0 %v12032_v17  ;;  %v12068_v17 = vld [vmem:[%s15598_s3 + $0x130] sm:$0xff]  }
  0x83   : > { %10809 = vmatpush3.bf16.msra.mxu1 %v12033_v18  ;;  %10790 = vmatprep.subr.bf16.mxu0 %v12035_v21  ;;  %v12069_v18 = vld [vmem:[%s15598_s3 + $0x170] sm:$0xff]  }
  0x84   : > { %10711 = vmatmul.mubr.bf16.gmra.mxu0 %v12011_v19  ;;  %10810 = vmatprep.subr.bf16.mxu1 %v12038_v22  ;;  %v3623_v19 = vpack.c.bf16 %v12852_v56, %v12845_v50  ;;  %v12088_v56 = vld [vmem:[%s15598_s3 + $0x1a0] sm:$0xff]  }
  0x85   : > { %10759 = vmatmul.mubr.bf16.gmra.mxu1 %v12013_v20  ;;  %10714 = vmatprep.mubr.bf16.mxu0 %v12014_v23  ;;  %v3747_v20 = vpack.c.bf16 %v3373_v12, %v12859_v60  ;;  %v12072_v23 = vld [vmem:[%s15598_s3 + $0x120] sm:$0xff]  }
  0x86   : > { %10762 = vmatprep.mubr.bf16.mxu1 %v12016_v24  ;;  %10791 = vmatpush3.bf16.msra.mxu0 %v12035_v21  ;;  %v12070_v21 = vld [vmem:[%s15598_s3 + $0x128] sm:$0xff]   ;;  %v12073_v24 = vld [vmem:[%s15598_s3 + $0x160] sm:$0xff]  }
  0x87   : > { %10811 = vmatpush3.bf16.msra.mxu1 %v12038_v22  ;;  %10792 = vmatprep.subr.bf16.mxu0 %v12040_v25  ;;  %v12071_v22 = vld [vmem:[%s15598_s3 + $0x168] sm:$0xff]   ;;  %v12089_v60 = vld [vmem:[%s15598_s3 + $0x1e0] sm:$0xff]  }
  0x88   : > { %10812 = vmatprep.subr.bf16.mxu1 %v12041_v26 }
  0x8a   : > { %10793 = vmatpush3.bf16.msra.mxu0 %v12040_v25  ;;  %v12074_v25 = vld [vmem:[%s15598_s3 + $0x118] sm:$0xff]  }
  0x8b   : > { %10813 = vmatpush3.bf16.msra.mxu1 %v12041_v26  ;;  %10794 = vmatprep.subr.bf16.mxu0 %v12043_v29  ;;  %v12075_v26 = vld [vmem:[%s15598_s3 + $0x158] sm:$0xff]  }
  0x8c   : > { %10715 = vmatmul.mubr.bf16.gmra.mxu0 %v12015_v27  ;;  %10814 = vmatprep.subr.bf16.mxu1 %v12046_v30  ;;  %v12076_v27 = vld [vmem:[%s15598_s3 + $0x110] sm:$0xff]  }
  0x8d   : > { %10763 = vmatmul.mubr.bf16.gmra.mxu1 %v12017_v28  ;;  %10718 = vmatprep.mubr.bf16.mxu0 %v12020_v31  ;;  %v12077_v28 = vld [vmem:[%s15598_s3 + $0x150] sm:$0xff]   ;;  %v12080_v31 = vld [vmem:[%s15598_s3 + $0x100] sm:$0xff]  }
  0x8e   : > { %10766 = vmatprep.mubr.bf16.mxu1 %v12022_v32  ;;  %10795 = vmatpush3.bf16.msra.mxu0 %v12043_v29  ;;  %v12078_v29 = vld [vmem:[%s15598_s3 + $0x108] sm:$0xff]   ;;  %v12081_v32 = vld [vmem:[%s15598_s3 + $0x140] sm:$0xff]  }
  0x8f   : > { %10815 = vmatpush3.bf16.msra.mxu1 %v12046_v30  ;;  %10796 = vmatprep.subr.bf16.mxu0 %v12048_v33  ;;  %v12079_v30 = vld [vmem:[%s15598_s3 + $0x148] sm:$0xff]  }
  0x90   : > { %10816 = vmatprep.subr.bf16.mxu1 %v12049_v34 }
  0x92   : > { %10797 = vmatpush3.bf16.msra.mxu0 %v12048_v33  ;;  %v12961_v33 = vld [vmem:[#allocation3 + $0x21] sm:$0xff] }
  0x93   : > { %10817 = vmatpush3.bf16.msra.mxu1 %v12049_v34  ;;  %10822 = vmatprep.subr.bf16.mxu0 %v12050_v37  ;;  %v12082_v34 = vld [vmem:[%s15598_s3 + $0x1b8] sm:$0xff]  }
  0x94   : > { %10719 = vmatmul.mubr.bf16.gmra.mxu0 %v12021_v35  ;;  %10842 = vmatprep.subr.bf16.mxu1 %v12051_v38  ;;  %v3746_v35 = vld [vmem:[#allocation3 + $0x22] sm:$0xff] }
  0x95   : > { %10767 = vmatmul.mubr.bf16.gmra.mxu1 %v12023_v36  ;;  %10722 = vmatprep.mubr.bf16.mxu0 %v12026_v39  ;;  %v12083_v36 = vld [vmem:[%s15598_s3 + $0x1f8] sm:$0xff]  }
  0x96   : > { %10770 = vmatprep.mubr.bf16.mxu1 %v12029_v40  ;;  %v3991_v39 = vld [vmem:[#allocation3 + $0x11] sm:$0xff]  ;;  %v3748_v40 = vpack.c.bf16 %v3746_v35, %v12906_v13 }
  0x9c   : > { %10723 = vmatmul.mubr.bf16.gmra.mxu0 %v12028_v41  ;;  %v12085_v41 = vld [vmem:[%s15598_s3 + $0x1f0] sm:$0xff]  }
  0x9d   : > { %10771 = vmatmul.mubr.bf16.gmra.mxu1 %v12031_v42  ;;  %10726 = vmatprep.mubr.bf16.mxu0 %v12034_v43  ;;  %v3992_v42 = vld [vmem:[#allocation3 + $0x19] sm:$0xff] }
  0x9e   : > { %10774 = vmatprep.mubr.bf16.mxu1 %v12037_v44  ;;  %v12981_v43 = vld [vmem:[%s15597_s2] ss:$0 sm:$0xff] }
  0xa4   : > { %10727 = vmatmul.mubr.bf16.gmra.mxu0 %v12036_v45  ;;  %v12086_v45 = vld [vmem:[%s15598_s3 + $0x1a8] sm:$0xff]  }
  0xa5   : > { %10775 = vmatmul.mubr.bf16.gmra.mxu1 %v12039_v46  ;;  %10730 = vmatprep.mubr.bf16.mxu0 %v12042_v47  ;;  %v3995_v46 = vpack.c.bf16 %v3992_v42, %v3991_v39  ;;  %v12092_v39 = vld [vmem:[%s15598_s3 + $0x190] sm:$0xff]  }
  0xa6   : > { %10778 = vmatprep.mubr.bf16.mxu1 %v12045_v48 }
  0xac   : > { %10731 = vmatmul.mubr.bf16.gmra.mxu0 %v12044_v51 }
  0xad   : > { %10779 = vmatmul.mubr.bf16.gmra.mxu1 %v12047_v52  ;;  %10798 = vmatprep.mubr.bf16.mxu0 %v3158_v53  ;;  %v12087_v52 = vld [vmem:[%s15598_s3 + $0x1e8] sm:$0xff]  }
  0xae   : > { %10818 = vmatprep.mubr.bf16.mxu1 %v12850_v55 }
  0xb4   : > { %10799 = vmatmul.mubr.bf16.vlgmr.msra.gmra.mxu0 %v3159_v59 }
  0xb5   : > { %10823 = vmatpush3.bf16.msra.mxu0 %v12050_v37  ;;  %10819 = vmatmul.mubr.bf16.vlgmr.msra.gmra.mxu1 %v12850_v55  ;;  %v3624_v37 = vpack.c.bf16 %v12961_v33, %v12854_v57 }
  0xb6   : > { %10843 = vmatpush3.bf16.msra.mxu1 %v12051_v38  ;;  %10824 = vmatprep.subr.bf16.mxu0 %v12052_v61  ;;  %v12084_v38 = vld [vmem:[%s15598_s3 + $0x1b0] sm:$0xff]  }
  0xb7   : > { %10844 = vmatprep.subr.bf16.mxu1 %v12053_v62  ;;  %10838 = vmatprep.mubr.bf16.mxu0 %v3375_v63 }
  0xb8   : > { %10858 = vmatprep.mubr.bf16.mxu1 %v12850_v55 }
  0xb9   : > { %10825 = vmatpush3.bf16.msra.mxu0 %v12052_v61 }
  0xba   : > { %10845 = vmatpush3.bf16.msra.mxu1 %v12053_v62  ;;  %10826 = vmatprep.subr.bf16.mxu0 %v12054_v0 }
  0xbb   : > { %10846 = vmatprep.subr.bf16.mxu1 %v12055_v1 }
  0xbd   : > { %10827 = vmatpush3.bf16.msra.mxu0 %v12054_v0  ;;  %v13002_v0 = vld [vmem:[#allocation3 + $0x29] sm:$0xff] }
  0xbe   : > { %10847 = vmatpush3.bf16.msra.mxu1 %v12055_v1  ;;  %10828 = vmatprep.subr.bf16.mxu0 %v12056_v2  ;;  %v13004_v1 = vld [vmem:[#allocation3 + $0x12] sm:$0xff] }
  0xbf   : > { %10848 = vmatprep.subr.bf16.mxu1 %v12057_v3 }
  0xc1   : > { %10829 = vmatpush3.bf16.msra.mxu0 %v12056_v2  ;;  %v13006_v2 = vld [vmem:[#allocation3 + $0x1a] sm:$0xff] }
  0xc2   : > { %10849 = vmatpush3.bf16.msra.mxu1 %v12057_v3  ;;  %10830 = vmatprep.subr.bf16.mxu0 %v12058_v4 }
  0xc3   : > { %10850 = vmatprep.subr.bf16.mxu1 %v12059_v5 }
  0xc5   : > { %10831 = vmatpush3.bf16.msra.mxu0 %v12058_v4 }
  0xc6   : > { %10851 = vmatpush3.bf16.msra.mxu1 %v12059_v5  ;;  %10832 = vmatprep.subr.bf16.mxu0 %v12060_v6 }
  0xc7   : > { %10852 = vmatprep.subr.bf16.mxu1 %v12061_v7 }
  0xc9   : > { %10833 = vmatpush3.bf16.msra.mxu0 %v12060_v6 }
  0xca   : > { %10853 = vmatpush3.bf16.msra.mxu1 %v12061_v7  ;;  %10834 = vmatprep.subr.bf16.mxu0 %v12062_v8  ;;  %v13009_v7 = vld [vmem:[#allocation3 + $0x22] sm:$0xff] }
  0xcb   : > { %10854 = vmatprep.subr.bf16.mxu1 %v12063_v9 }
  0xcd   : > { %10835 = vmatpush3.bf16.msra.mxu0 %v12062_v8  ;;  %v13011_v8 = vld [vmem:[#allocation3 + $0x2a] sm:$0xff] }
  0xce   : > { %10855 = vmatpush3.bf16.msra.mxu1 %v12063_v9  ;;  %10836 = vmatprep.subr.bf16.mxu0 %v12064_v10 }
  0xcf   : > { %10856 = vmatprep.subr.bf16.mxu1 %v12065_v11 }
  0xd1   : > { %10837 = vmatpush3.bf16.msra.mxu0 %v12064_v10 }
  0xd2   : > { %10857 = vmatpush3.bf16.msra.mxu1 %v12065_v11  ;;  %10862 = vmatprep.subr.bf16.mxu0 %v12066_v14 }
  0xd3   : > { %10882 = vmatprep.subr.bf16.mxu1 %v12067_v15 }
  0xd4   : > { %10839 = vmatmul.mubr.bf16.vlgmr.msra.gmra.mxu0 %v3376_v16 }
  0xd5   : > { %10863 = vmatpush3.bf16.msra.mxu0 %v12066_v14  ;;  %10859 = vmatmul.mubr.bf16.vlgmr.msra.gmra.mxu1 %v12850_v55 }
  0xd6   : > { %10883 = vmatpush3.bf16.msra.mxu1 %v12067_v15  ;;  %10864 = vmatprep.subr.bf16.mxu0 %v12068_v17 }
  0xd7   : > { %10884 = vmatprep.subr.bf16.mxu1 %v12069_v18  ;;  %10878 = vmatprep.mubr.bf16.mxu0 %v3623_v19 }
  0xd8   : > { %10898 = vmatprep.mubr.bf16.mxu1 %v3747_v20 }
  0xd9   : > { %10865 = vmatpush3.bf16.msra.mxu0 %v12068_v17 }
  0xda   : > { %10885 = vmatpush3.bf16.msra.mxu1 %v12069_v18  ;;  %10866 = vmatprep.subr.bf16.mxu0 %v12070_v21 }
  0xdb   : > { %10886 = vmatprep.subr.bf16.mxu1 %v12071_v22 }
  0xdd   : > { %10867 = vmatpush3.bf16.msra.mxu0 %v12070_v21  ;;  %v12090_v21 = vld [vmem:[%s15598_s3 + $0x198] sm:$0xff]  }
  0xde   : > { %10887 = vmatpush3.bf16.msra.mxu1 %v12071_v22  ;;  %10868 = vmatprep.subr.bf16.mxu0 %v12072_v23 }
  0xdf   : > { %10888 = vmatprep.subr.bf16.mxu1 %v12073_v24 }
  0xe1   : > { %10869 = vmatpush3.bf16.msra.mxu0 %v12072_v23 }
  0xe2   : > { %10889 = vmatpush3.bf16.msra.mxu1 %v12073_v24  ;;  %10870 = vmatprep.subr.bf16.mxu0 %v12074_v25 }
  0xe3   : > { %10890 = vmatprep.subr.bf16.mxu1 %v12075_v26 }
  0xe5   : > { %10871 = vmatpush3.bf16.msra.mxu0 %v12074_v25  ;;  %v12091_v25 = vld [vmem:[%s15598_s3 + $0x1d8] sm:$0xff]  }
  0xe6   : > { %10891 = vmatpush3.bf16.msra.mxu1 %v12075_v26  ;;  %10872 = vmatprep.subr.bf16.mxu0 %v12076_v27  ;;  %v3996_v26 = vpack.c.bf16 %v13002_v0, %v12961_v33 }
  0xe7   : > { %10892 = vmatprep.subr.bf16.mxu1 %v12077_v28 }
  0xe9   : > { %10873 = vmatpush3.bf16.msra.mxu0 %v12076_v27  ;;  %v4119_v27 = vpack.c.bf16 %v13006_v2, %v13004_v1  ;;  %v12101_v1 = vld [vmem:[%s15598_s3 + $0x220] sm:$0xff]  }
  0xea   : > { %10893 = vmatpush3.bf16.msra.mxu1 %v12077_v28  ;;  %10874 = vmatprep.subr.bf16.mxu0 %v12078_v29 }
  0xeb   : > { %10894 = vmatprep.subr.bf16.mxu1 %v12079_v30 }
  0xed   : > { %10875 = vmatpush3.bf16.msra.mxu0 %v12078_v29 }
  0xee   : > { %10895 = vmatpush3.bf16.msra.mxu1 %v12079_v30  ;;  %10876 = vmatprep.subr.bf16.mxu0 %v12080_v31 }
  0xef   : > { %10896 = vmatprep.subr.bf16.mxu1 %v12081_v32 }
  0xf1   : > { %10877 = vmatpush3.bf16.msra.mxu0 %v12080_v31 }
  0xf2   : > { %10897 = vmatpush3.bf16.msra.mxu1 %v12081_v32  ;;  %10902 = vmatprep.subr.bf16.mxu0 %v12082_v34  ;;  %v4120_v32 = vpack.c.bf16 %v13011_v8, %v13009_v7 }
  0xf3   : > { %10922 = vmatprep.subr.bf16.mxu1 %v12083_v36 }
  0xf4   : > { %10879 = vmatmul.mubr.bf16.vlgmr.msra.gmra.mxu0 %v3624_v37  ;;  %v10608_v44 = vpop.f32.mrf.mxu0 }
  0xf5   : > { %10903 = vmatpush3.bf16.msra.mxu0 %v12082_v34  ;;  %10899 = vmatmul.mubr.bf16.vlgmr.msra.gmra.mxu1 %v3748_v40  ;;  %v10656_v47 = vpop.f32.mrf.mxu1  ;;  %v520_v50 = vadd.f32 %v10608_v44, %v12981_v43 }
  0xf6   : > { %v511_v48 = vpop.f32.mrf.mxu0  ;;  %v1066_v49 = vadd.f32 %v10656_v47, %v12981_v43  ;;  %10923 = vmatpush3.bf16.msra.mxu1 %v12083_v36  ;;  %10904 = vmatprep.subr.bf16.mxu0 %v12084_v38 }
  0xf7   : > { %v1057_v51 = vpop.f32.mrf.mxu1  ;;  %10924 = vmatprep.subr.bf16.mxu1 %v12085_v41  ;;  %10918 = vmatprep.mubr.bf16.mxu0 %v12850_v55  ;;  %v512_v57 = vadd.f32 %v12981_v43, %v511_v48  ;;  %v640_v3 = vmax.f32 %v520_v50, 0.0 }
  0xf8   : > { %v10609_v53 = vpop.f32.mrf.mxu0  ;;  %v1058_v54 = vadd.f32 %v12981_v43, %v1057_v51  ;;  %10938 = vmatprep.mubr.bf16.mxu1 %v3995_v46  ;;  %v1186_v61 = vmax.f32 %v1066_v49, 0.0  ;;  %v12093_v46 = vld [vmem:[%s15598_s3 + $0x1d0] sm:$0xff]  }
  0xf9   : > { %v523_v58 = vadd.f32 %v10609_v53, %v12981_v43  ;;  %10905 = vmatpush3.bf16.msra.mxu0 %v12084_v38  ;;  %v10657_v59 = vpop.f32.mrf.mxu1  ;;  %v638_v13 = vmax.f32 %v512_v57, 0.0 }
  0xfa   : > { %v514_v62 = vpop.f32.mrf.mxu0  ;;  %v1069_v63 = vadd.f32 %v10657_v59, %v12981_v43  ;;  %10925 = vmatpush3.bf16.msra.mxu1 %v12085_v41  ;;  %10906 = vmatprep.subr.bf16.mxu0 %v12086_v45  ;;  %v1184_v9 = vmax.f32 %v1058_v54, 0.0 }
  0xfb   : > { %v641_v4 = vmax.f32 %v523_v58, 0.0  ;;  %v515_v5 = vadd.f32 %v12981_v43, %v514_v62  ;;  %v1060_v6 = vpop.f32.mrf.mxu1  ;;  %10926 = vmatprep.subr.bf16.mxu1 %v12087_v52  ;;  %v12094_v58 = vld [vmem:[%s15598_s3 + $0x188] sm:$0xff]  }
  0xfc   : > { %v1187_v10 = vmax.f32 %v1069_v63, 0.0  ;;  %v10612_v11 = vpop.f32.mrf.mxu0  ;;  %v1061_v12 = vadd.f32 %v12981_v43, %v1060_v6 }
  0xfd   : > { %v13014_v14 = vpack.c.bf16 %v641_v4, %v640_v3  ;;  %v639_v15 = vmax.f32 %v515_v5, 0.0  ;;  %v536_v16 = vadd.f32 %v10612_v11, %v12981_v43  ;;  %10907 = vmatpush3.bf16.msra.mxu0 %v12086_v45  ;;  %v10660_v17 = vpop.f32.mrf.mxu1 }
  0xfe   : > { %v13017_v18 = vpack.c.bf16 %v1187_v10, %v1186_v61  ;;  %v1185_v19 = vmax.f32 %v1061_v12, 0.0  ;;  %v527_v20 = vpop.f32.mrf.mxu0  ;;  %10927 = vmatpush3.bf16.msra.mxu1 %v12087_v52  ;;  %10908 = vmatprep.subr.bf16.mxu0 %v12088_v56  ;;  %v1082_v23 = vadd.f32 %v10660_v17, %v12981_v43 }
  0xff   : > { %v9244_v22 = vpack.c.bf16 %v639_v15, %v638_v13  ;;  %v1073_v24 = vpop.f32.mrf.mxu1  ;;  %10928 = vmatprep.subr.bf16.mxu1 %v12089_v60  ;;  %v9567_v28 = vunpack.c.l.bf16 %v13014_v14  ;;  %v9568_v29 = vunpack.c.h.bf16 %v13014_v14  ;;  %v644_v35 = vmax.f32 %v536_v16, 0.0  ;;  %v12095_v15 = vld [vmem:[%s15598_s3 + $0x1c8] sm:$0xff]  }
 0x100   : > { %v13032_v30 = vpack.c.bf16 %v1185_v19, %v1184_v9  ;;  %v10613_v31 = vpop.f32.mrf.mxu0  ;;  %v9583_v34 = vunpack.c.l.bf16 %v13017_v18  ;;  %v528_v36 = vadd.f32 %v12981_v43, %v527_v20  ;;  %v9584_v42 = vunpack.c.h.bf16 %v13017_v18 }
 0x101   : > { %v539_v37 = vadd.f32 %v10613_v31, %v12981_v43  ;;  %10909 = vmatpush3.bf16.msra.mxu0 %v12088_v56  ;;  %v10661_v38 = vpop.f32.mrf.mxu1  ;;  %v9563_v40 = vunpack.c.l.bf16 %v9244_v22  ;;  %v9564_v41 = vunpack.c.h.bf16 %v9244_v22  ;;  %v1074_v44 = vadd.f32 %v12981_v43, %v1073_v24  ;;  %v12096_v22 = vld [vmem:[%s15598_s3 + $0x180] sm:$0xff]  }
 0x102   : > { %v530_v45 = vpop.f32.mrf.mxu0  ;;  %10929 = vmatpush3.bf16.msra.mxu1 %v12089_v60  ;;  %10910 = vmatprep.subr.bf16.mxu0 %v12090_v21  ;;  %v9579_v47 = vunpack.c.l.bf16 %v13032_v30  ;;  %v1190_v48 = vmax.f32 %v1082_v23, 0.0  ;;  %v9580_v52 = vunpack.c.h.bf16 %v13032_v30  ;;  %v1085_v54 = vadd.f32 %v10661_v38, %v12981_v43 }
 0x103   : > { %v645_v49 = vmax.f32 %v539_v37, 0.0  ;;  %v531_v50 = vadd.f32 %v12981_v43, %v530_v45  ;;  %v1076_v51 = vpop.f32.mrf.mxu1  ;;  %10930 = vmatprep.subr.bf16.mxu1 %v12091_v25  ;;  %v1188_v53 = vmax.f32 %v1074_v44, 0.0  ;;  %v642_v59 = vmax.f32 %v528_v36, 0.0 }
 0x104   : > { %v10616_v56 = vpop.f32.mrf.mxu0  ;;  %v1077_v57 = vadd.f32 %v12981_v43, %v1076_v51  ;;  %v2511_v3 = vmax.f32 %v9563_v40, %v9567_v28  ;;  %v1191_v4 = vmax.f32 %v1085_v54, 0.0  ;;  %v2512_v10 = vmax.f32 %v9564_v41, %v9568_v29  ;;  %v12098_v54 = vld [vmem:[%s15598_s3 + $0x238] sm:$0xff]  }
 0x105   : > { %v9259_v60 = vpack.c.bf16 %v645_v49, %v644_v35  ;;  %v643_v61 = vmax.f32 %v531_v50, 0.0  ;;  %v552_v62 = vadd.f32 %v10616_v56, %v12981_v43  ;;  %10911 = vmatpush3.bf16.msra.mxu0 %v12090_v21  ;;  %v10664_v63 = vpop.f32.mrf.mxu1 }
 0x106   : > { %v1189_v5 = vmax.f32 %v1077_v57, 0.0  ;;  %v543_v6 = vpop.f32.mrf.mxu0  ;;  %v13057_v9 = vadd.f32 %v10664_v63, %v12981_v43  ;;  %10931 = vmatpush3.bf16.msra.mxu1 %v12091_v25  ;;  %10912 = vmatprep.subr.bf16.mxu0 %v12092_v39  ;;  %v13062_v16 = vpack.c.bf16 %v1191_v4, %v1190_v48 }
 0x107   : > { %v9575_v11 = vunpack.c.l.bf16 %v9259_v60  ;;  %v9254_v12 = vpack.c.bf16 %v643_v61, %v642_v59  ;;  %v648_v13 = vmax.f32 %v552_v62, 0.0  ;;  %v1089_v14 = vpop.f32.mrf.mxu1  ;;  %10932 = vmatprep.subr.bf16.mxu1 %v12093_v46  ;;  %v544_v19 = vadd.f32 %v12981_v43, %v543_v6  ;;  %v12106_v6 = vld [vmem:[%s15598_s3 + $0x278] sm:$0xff]  }
 0x108   : > { %v13064_v17 = vpack.c.bf16 %v1189_v5, %v1188_v53  ;;  %v1194_v20 = vmax.f32 %v13057_v9, 0.0  ;;  %v10617_v21 = vpop.f32.mrf.mxu0  ;;  %v1090_v28 = vadd.f32 %v12981_v43, %v1089_v14  ;;  %v9576_v31 = vunpack.c.h.bf16 %v9259_v60 }
 0x109   : > { %v9571_v23 = vunpack.c.l.bf16 %v9254_v12  ;;  %v9572_v24 = vunpack.c.h.bf16 %v9254_v12  ;;  %v555_v25 = vadd.f32 %v10617_v21, %v12981_v43  ;;  %10913 = vmatpush3.bf16.msra.mxu0 %v12092_v39  ;;  %v10665_v29 = vpop.f32.mrf.mxu1  ;;  %v9591_v35 = vunpack.c.l.bf16 %v13062_v16  ;;  %v12097_v39 = vld [vmem:[%s15598_s3 + $0x1c0] sm:$0xff]  }
 0x10a   : > { %v9592_v36 = vunpack.c.h.bf16 %v13062_v16  ;;  %v9587_v37 = vunpack.c.l.bf16 %v13064_v17  ;;  %v546_v38 = vpop.f32.mrf.mxu0  ;;  %10933 = vmatpush3.bf16.msra.mxu1 %v12093_v46  ;;  %10914 = vmatprep.subr.bf16.mxu0 %v12094_v58  ;;  %v646_v44 = vmax.f32 %v544_v19, 0.0  ;;  %v1192_v49 = vmax.f32 %v1090_v28, 0.0 }
 0x10b   : > { %v2517_v40 = vmax.f32 %v2511_v3, %v9571_v23  ;;  %v2518_v41 = vmax.f32 %v2512_v10, %v9572_v24  ;;  %v649_v45 = vmax.f32 %v555_v25, 0.0  ;;  %v1092_v48 = vpop.f32.mrf.mxu1  ;;  %10934 = vmatprep.subr.bf16.mxu1 %v12095_v15  ;;  %v547_v50 = vadd.f32 %v12981_v43, %v546_v38  ;;  %v12099_v23 = vld [vmem:[%s15598_s3 + $0x230] sm:$0xff]  }
 0x10c   : > { %v1101_v51 = vadd.f32 %v10665_v29, %v12981_v43  ;;  %v10620_v53 = vpop.f32.mrf.mxu0  ;;  %v1093_v46 = vadd.f32 %v12981_v43, %v1092_v48  ;;  %v9588_v10 = vunpack.c.h.bf16 %v13064_v17 }
 0x10d   : > { %v2523_v56 = vmax.f32 %v2517_v40, %v9575_v11  ;;  %v2524_v57 = vmax.f32 %v2518_v41, %v9576_v31  ;;  %v9269_v59 = vpack.c.bf16 %v649_v45, %v648_v13  ;;  %v13086_v60 = vadd.f32 %v10620_v53, %v12981_v43  ;;  %10915 = vmatpush3.bf16.msra.mxu0 %v12094_v58  ;;  %v10668_v61 = vpop.f32.mrf.mxu1 }
 0x10e   : > { %v647_v62 = vmax.f32 %v547_v50, 0.0  ;;  %v1195_v63 = vmax.f32 %v1101_v51, 0.0  ;;  %v1193_v3 = vmax.f32 %v1093_v46, 0.0  ;;  %v559_v4 = vpop.f32.mrf.mxu0  ;;  %v13089_v5 = vadd.f32 %v10668_v61, %v12981_v43  ;;  %10935 = vmatpush3.bf16.msra.mxu1 %v12095_v15  ;;  %10916 = vmatprep.subr.bf16.mxu0 %v12096_v22 }
 0x10f   : > { %v2529_v9 = vmax.f32 %v2523_v56, %v9579_v47  ;;  %v2530_v58 = vmax.f32 %v2524_v57, %v9580_v52  ;;  %v9599_v11 = vunpack.c.l.bf16 %v9269_v59  ;;  %v1105_v12 = vpop.f32.mrf.mxu1  ;;  %10936 = vmatprep.subr.bf16.mxu1 %v12097_v39  ;;  %v9600_v13 = vunpack.c.h.bf16 %v9269_v59 }
 0x110   : > { %v9264_v14 = vpack.c.bf16 %v647_v62, %v646_v44  ;;  %v13099_v19 = vpack.c.bf16 %v1195_v63, %v1194_v20  ;;  %v13101_v15 = vpack.c.bf16 %v1193_v3, %v1192_v49  ;;  %v10621_v21 = vpop.f32.mrf.mxu0  ;;  %v652_v52 = vmax.f32 %v13086_v60, 0.0 }
 0x111   : > { %v2535_v30 = vmax.f32 %v2529_v9, %v9583_v34  ;;  %v2536_v47 = vmax.f32 %v2530_v58, %v9584_v42  ;;  %v1198_v17 = vmax.f32 %v13089_v5, 0.0  ;;  %10917 = vmatpush3.bf16.msra.mxu0 %v12096_v22  ;;  %v10669_v20 = vpop.f32.mrf.mxu1  ;;  %v13114_v29 = vadd.f32 %v12981_v43, %v559_v4 }
 0x112   : > { %v9595_v24 = vunpack.c.l.bf16 %v9264_v14  ;;  %v9596_v25 = vunpack.c.h.bf16 %v9264_v14  ;;  %v9615_v28 = vunpack.c.l.bf16 %v13099_v19  ;;  %v562_v31 = vpop.f32.mrf.mxu0  ;;  %10937 = vmatpush3.bf16.msra.mxu1 %v12097_v39  ;;  %10942 = vmatprep.subr.bf16.mxu0 %v12098_v54  ;;  %v9616_v18 = vunpack.c.h.bf16 %v13099_v19  ;;  %v12108_v39 = vld [vmem:[%s15598_s3 + $0x270] sm:$0xff]   ;;  %v12112_v14 = vld [vmem:[%s15598_s3 + $0x260] sm:$0xff]  }
 0x113   : > { %v2541_v34 = vmax.f32 %v2535_v30, %v9587_v37  ;;  %v2542_v38 = vmax.f32 %v2536_v47, %v9588_v10  ;;  %v9611_v42 = vunpack.c.l.bf16 %v13101_v15  ;;  %v1108_v40 = vpop.f32.mrf.mxu1  ;;  %10962 = vmatprep.subr.bf16.mxu1 %v12106_v6  ;;  %v9612_v44 = vunpack.c.h.bf16 %v13101_v15  ;;  %v12100_v37 = vld [vmem:[%s15598_s3 + $0x228] sm:$0xff]   ;;  %v12116_v15 = vld [vmem:[%s15598_s3 + $0x250] sm:$0xff]  }
 0x114   : > { %v13118_v22 = vmax.f32 %v9595_v24, %v9599_v11  ;;  %v13120_v41 = vmax.f32 %v9596_v25, %v9600_v13  ;;  %v571_v45 = vadd.f32 %v10621_v21, %v12981_v43  ;;  %10919 = vmatmul.mubr.bf16.vlgmr.msra.gmra.mxu0 %v12850_v55  ;;  %v10624_v48 = vpop.f32.mrf.mxu0  ;;  %v13136_v51 = vadd.f32 %v12981_v43, %v1105_v12 }
 0x115   : > { %v2547_v49 = vmax.f32 %v2541_v34, %v9591_v35  ;;  %v2548_v50 = vmax.f32 %v2542_v38, %v9592_v36  ;;  %v563_v55 = vadd.f32 %v12981_v43, %v562_v31  ;;  %10943 = vmatpush3.bf16.msra.mxu0 %v12098_v54  ;;  %v13139_v53 = vpop.f32.mrf.mxu1  ;;  %v650_v46 = vmax.f32 %v13114_v29, 0.0  ;;  %10939 = vmatmul.mubr.bf16.vlgmr.msra.gmra.mxu1 %v3996_v26  ;;  %v12110_v35 = vld [vmem:[%s15598_s3 + $0x268] sm:$0xff]   ;;  %v12102_v34 = vld [vmem:[%s15598_s3 + $0x218] sm:$0xff]  }
 0x116   : > { %v653_v56 = vmax.f32 %v571_v45, 0.0  ;;  %v1117_v57 = vadd.f32 %v10669_v20, %v12981_v43  ;;  %v13144_v59 = vadd.f32 %v10624_v48, %v12981_v43  ;;  %v13149_v16 = vpop.f32.mrf.mxu0  ;;  %10944 = vmatprep.subr.bf16.mxu0 %v12099_v23  ;;  %10963 = vmatpush3.bf16.msra.mxu1 %v12106_v6  ;;  %v1196_v9 = vmax.f32 %v13136_v51, 0.0 }
 0x117   : > { %v2550_v36 = vsel %vm2549_vm0, %v2547_v49, -inf  ;;  %v2558_v54 = vsel %vm2557_vm1, %v2547_v49, -inf  ;;  %v2565_v60 = vsel %vm2549_vm0, %v2548_v50, -inf  ;;  %v2572_v61 = vsel %vm2557_vm1, %v2548_v50, -inf  ;;  %v13158_v62 = vpop.f32.mrf.mxu1  ;;  %10958 = vmatprep.mubr.bf16.mxu0 %v4119_v27  ;;  %10964 = vmatprep.subr.bf16.mxu1 %v12108_v39 }
 0x118   : > { %v2551_v33 = vrot.slane %v2550_v36, 4  ;;  %v2559_v0 = vrot.slane %v2558_v54, 4  ;;  %v2566_v26 = vrot.slane %v2565_v60, 4  ;;  %v2573_v63 = vrot.slane %v2572_v61, 4  ;;  %v13163_v3 = vpop.f32.mrf.mxu0 }
 0x119   : > { %v9279_v4 = vpack.c.bf16 %v653_v56, %v652_v52  ;;  %v651_v58 = vmax.f32 %v563_v55, 0.0  ;;  %v1199_v10 = vmax.f32 %v1117_v57, 0.0  ;;  %10945 = vmatpush3.bf16.msra.mxu0 %v12099_v23  ;;  %v13166_v11 = vpop.f32.mrf.mxu1  ;;  %v1109_v47 = vadd.f32 %v12981_v43, %v1108_v40 }
 0x11a   : > { %v2552_v2 = vmax.f32 %v2550_v36, %v2551_v33  ;;  %v2560_v27 = vmax.f32 %v2558_v54, %v2559_v0  ;;  %v2567_v6 = vmax.f32 %v2565_v60, %v2566_v26  ;;  %v2574_v12 = vmax.f32 %v2572_v61, %v2573_v63  ;;  %v13171_v13 = vpop.f32.mrf.mxu0  ;;  %10946 = vmatprep.subr.bf16.mxu0 %v12100_v37  ;;  %v12103_v0 = vld [vmem:[%s15598_s3 + $0x210] sm:$0xff]  }
 0x11b   : > { %v9607_v21 = vunpack.c.l.bf16 %v9279_v4  ;;  %v9274_v23 = vpack.c.bf16 %v651_v58, %v650_v46  ;;  %v13178_v30 = vpack.c.bf16 %v1199_v10, %v1198_v17  ;;  %v13181_v52 = vpop.f32.mrf.mxu1  ;;  %10965 = vmatpush3.bf16.msra.mxu1 %v12108_v39  ;;  %v9608_v38 = vunpack.c.h.bf16 %v9279_v4 }
 0x11c   : > { %v2553_v20 = vrot.slane %v2552_v2, 2  ;;  %v2561_v24 = vrot.slane %v2560_v27, 2  ;;  %v2568_v25 = vrot.slane %v2567_v6, 2  ;;  %v2575_v29 = vrot.slane %v2574_v12, 2  ;;  %v13183_v31 = vpop.f32.mrf.mxu0  ;;  %10966 = vmatprep.subr.bf16.mxu1 %v12110_v35 }
 0x11d   : > { %v9603_v5 = vunpack.c.l.bf16 %v9274_v23  ;;  %v9604_v17 = vunpack.c.h.bf16 %v9274_v23  ;;  %v9623_v45 = vunpack.c.l.bf16 %v13178_v30  ;;  %10947 = vmatpush3.bf16.msra.mxu0 %v12100_v37  ;;  %v13189_v40 = vpop.f32.mrf.mxu1  ;;  %v656_v56 = vmax.f32 %v13144_v59, 0.0 }
 0x11e   : > { %v2554_v48 = vmax.f32 %v2552_v2, %v2553_v20  ;;  %v2562_v39 = vmax.f32 %v2560_v27, %v2561_v24  ;;  %v2569_v49 = vmax.f32 %v2567_v6, %v2568_v25  ;;  %v2576_v50 = vmax.f32 %v2574_v12, %v2575_v29  ;;  %v13191_v51 = vpop.f32.mrf.mxu0  ;;  %10948 = vmatprep.subr.bf16.mxu0 %v12101_v1 }
 0x11f   : > { %v2600_v55 = vmax.f32 %v13118_v22, %v9603_v5  ;;  %v2601_v46 = vmax.f32 %v13120_v41, %v9604_v17  ;;  %v1197_v57 = vmax.f32 %v1109_v47, 0.0  ;;  %v13196_v36 = vpop.f32.mrf.mxu1  ;;  %10967 = vmatpush3.bf16.msra.mxu1 %v12110_v35  ;;  %v12114_v22 = vld [vmem:[%s15598_s3 + $0x258] sm:$0xff]   ;;  %v9624_v26 = vunpack.c.h.bf16 %v13178_v30 }
 0x120   : > { %v2555_v37 = vrot.slane %v2554_v48, 1  ;;  %v2563_v54 = vrot.slane %v2562_v39, 1  ;;  %v2570_v60 = vrot.slane %v2569_v49, 1  ;;  %v2577_v61 = vrot.slane %v2576_v50, 1  ;;  %v13198_v33 = vpop.f32.mrf.mxu0  ;;  %10968 = vmatprep.subr.bf16.mxu1 %v12112_v14 }
 0x121   : > { %v2606_v41 = vmax.f32 %v2600_v55, %v9607_v21  ;;  %v2607_v59 = vmax.f32 %v2601_v46, %v9608_v38  ;;  %v9354_v35 = vpack.c.bf16 %v1197_v57, %v1196_v9  ;;  %10949 = vmatpush3.bf16.msra.mxu0 %v12101_v1  ;;  %v13207_v63 = vpop.f32.mrf.mxu1  ;;  %v576_v2 = vadd.f32 %v12981_v43, %v13149_v16 }
 0x122   : > { %v2556_v4 = vmax.f32 %v2554_v48, %v2555_v37  ;;  %v2564_v58 = vmax.f32 %v2562_v39, %v2563_v54  ;;  %v2571_v10 = vmax.f32 %v2569_v49, %v2570_v60  ;;  %v13211_v27 = vpop.f32.mrf.mxu0  ;;  %10950 = vmatprep.subr.bf16.mxu0 %v12102_v34  ;;  %v2578_v6 = vmax.f32 %v2576_v50, %v2577_v61  ;;  %v12118_v39 = vld [vmem:[%s15598_s3 + $0x248] sm:$0xff]  }
 0x123   : > { %v2612_v12 = vmax.f32 %v2606_v41, %v9611_v42  ;;  %v2613_v21 = vmax.f32 %v2607_v59, %v9612_v44  ;;  %v9619_v9 = vunpack.c.l.bf16 %v9354_v35  ;;  %v13217_v1 = vpop.f32.mrf.mxu1  ;;  %10969 = vmatpush3.bf16.msra.mxu1 %v12112_v14  ;;  %v9620_v47 = vunpack.c.h.bf16 %v9354_v35 }
 0x124   : > { %v2580_v23 = vsel %vm2579_vm2, %v2556_v4, %v2564_v58  ;;  %v1130_v16 = vadd.f32 %v13139_v53, %v12981_v43  ;;  %v587_v20 = vadd.f32 %v13163_v3, %v12981_v43  ;;  %v13224_v24 = vpop.f32.mrf.mxu0  ;;  %10970 = vmatprep.subr.bf16.mxu1 %v12114_v22  ;;  %v13236_v53 = vadd.f32 %v12981_v43, %v13158_v62  ;;  %v12104_v3 = vld [vmem:[%s15598_s3 + $0x208] sm:$0xff]  }
 0x125   : > { %v2582_v42 = vsel %vm2581_vm3, %v2580_v23, %v2571_v10  ;;  %v2618_v44 = vmax.f32 %v2612_v12, %v9615_v28  ;;  %v2619_v14 = vmax.f32 %v2613_v21, %v9616_v18  ;;  %10951 = vmatpush3.bf16.msra.mxu0 %v12102_v34  ;;  %v13241_v25 = vpop.f32.mrf.mxu1  ;;  %v654_v38 = vmax.f32 %v576_v2, 0.0 }
 0x126   : > { %v2584_v29 = vsel %vm2583_vm4, %v2582_v42, %v2578_v6  ;;  %v657_v5 = vmax.f32 %v587_v20, 0.0  ;;  %v579_v28 = vadd.f32 %v12981_v43, %v13171_v13  ;;  %v13246_v19 = vpop.f32.mrf.mxu0  ;;  %10952 = vmatprep.subr.bf16.mxu0 %v12103_v0  ;;  %v1202_v34 = vmax.f32 %v1130_v16, 0.0  ;;  %v12107_v42 = vld [vmem:[%s15598_s3 + $0x2b8] sm:$0xff]  }
 0x127   : > { %2585 = vst [vmem:[#allocation3 + $0x49] sm:$0xf] %v2584_v29  ;;  %v2624_v18 = vmax.f32 %v2618_v44, %v9619_v9  ;;  %v2625_v62 = vmax.f32 %v2619_v14, %v9620_v47  ;;  %v1133_v17 = vadd.f32 %v13166_v11, %v12981_v43  ;;  %v13250_v48 = vpop.f32.mrf.mxu1  ;;  %10971 = vmatpush3.bf16.msra.mxu1 %v12114_v22  ;;  %v1200_v13 = vmax.f32 %v13236_v53, 0.0 }
 0x128   : > { %v9289_v49 = vpack.c.bf16 %v657_v5, %v656_v56  ;;  %v655_v50 = vmax.f32 %v579_v28, 0.0  ;;  %v13258_v55 = vadd.f32 %v13183_v31, %v12981_v43  ;;  %v13260_v46 = vpop.f32.mrf.mxu0  ;;  %10972 = vmatprep.subr.bf16.mxu1 %v12116_v15  ;;  %v1125_v54 = vadd.f32 %v12981_v43, %v13181_v52  ;;  %v12105_v56 = vld [vmem:[%s15598_s3 + $0x200] sm:$0xff]  }
 0x129   : > { %v2630_v11 = vmax.f32 %v2624_v18, %v9623_v45  ;;  %v2631_v57 = vmax.f32 %v2625_v62, %v9624_v26  ;;  %v1203_v37 = vmax.f32 %v1133_v17, 0.0  ;;  %10953 = vmatpush3.bf16.msra.mxu0 %v12103_v0  ;;  %v13269_v60 = vpop.f32.mrf.mxu1  ;;  %v13273_v41 = vadd.f32 %v12981_v43, %v13191_v51  ;;  %v12120_v52 = vld [vmem:[%s15598_s3 + $0x240] sm:$0xff]  }
 0x12a   : > { %v9631_v31 = vunpack.c.l.bf16 %v9289_v49  ;;  %v9632_v61 = vunpack.c.h.bf16 %v9289_v49  ;;  %v9284_v22 = vpack.c.bf16 %v655_v50, %v654_v38  ;;  %v13275_v30 = vpop.f32.mrf.mxu0  ;;  %10954 = vmatprep.subr.bf16.mxu0 %v12104_v3  ;;  %v1201_v21 = vmax.f32 %v1125_v54, 0.0 }
 0x12b   : > { %v2632_v45 = vsel %vm2549_vm0, %v2630_v11, -inf  ;;  %v2639_v0 = vsel %vm2557_vm1, %v2630_v11, -inf  ;;  %v2646_v59 = vsel %vm2549_vm0, %v2631_v57, -inf  ;;  %v2653_v26 = vsel %vm2557_vm1, %v2631_v57, -inf  ;;  %v13284_v35 = vpop.f32.mrf.mxu1  ;;  %10973 = vmatpush3.bf16.msra.mxu1 %v12116_v15  ;;  %v12109_v11 = vld [vmem:[%s15598_s3 + $0x2b0] sm:$0xff]  }
 0x12c   : > { %v2633_v43 = vrot.slane %v2632_v45, 4  ;;  %v2640_v51 = vrot.slane %v2639_v0, 4  ;;  %v2647_v4 = vrot.slane %v2646_v59, 4  ;;  %v2654_v58 = vrot.slane %v2653_v26, 4  ;;  %v13286_v10 = vpop.f32.mrf.mxu0  ;;  %10974 = vmatprep.subr.bf16.mxu1 %v12118_v39 }
 0x12d   : > { %v9627_v2 = vunpack.c.l.bf16 %v9284_v22  ;;  %v9628_v6 = vunpack.c.h.bf16 %v9284_v22  ;;  %v13288_v12 = vpack.c.bf16 %v1203_v37, %v1202_v34  ;;  %10955 = vmatpush3.bf16.msra.mxu0 %v12104_v3  ;;  %v13290_v9 = vpop.f32.mrf.mxu1  ;;  %v660_v3 = vmax.f32 %v13258_v55, 0.0  ;;  %v13310_v34 = vld [vmem:[%s15598_s3 + $0x2f8] sm:$0xff]  }
 0x12e   : > { %v2634_v23 = vmax.f32 %v2632_v45, %v2633_v43  ;;  %v2641_v47 = vmax.f32 %v2639_v0, %v2640_v51  ;;  %v2648_v16 = vmax.f32 %v2646_v59, %v2647_v4  ;;  %v2655_v20 = vmax.f32 %v2653_v26, %v2654_v58  ;;  %v13292_v15 = vpop.f32.mrf.mxu0  ;;  %10956 = vmatprep.subr.bf16.mxu0 %v12105_v56  ;;  %v12111_v4 = vld [vmem:[%s15598_s3 + $0x2a8] sm:$0xff]  }
 0x12f   : > { %v13297_v44 = vmax.f32 %v9627_v2, %v9631_v31  ;;  %v13299_v14 = vmax.f32 %v9628_v6, %v9632_v61  ;;  %v9647_v53 = vunpack.c.l.bf16 %v13288_v12  ;;  %v13303_v29 = vpop.f32.mrf.mxu1  ;;  %10975 = vmatpush3.bf16.msra.mxu1 %v12118_v39  ;;  %v9648_v17 = vunpack.c.h.bf16 %v13288_v12  ;;  %v13318_v39 = vld [vmem:[%s15597_s2] ss:$0 sm:$0xff] }
 0x130   : > { %v2635_v38 = vrot.slane %v2634_v23, 2  ;;  %v2642_v5 = vrot.slane %v2641_v47, 2  ;;  %v2649_v28 = vrot.slane %v2648_v16, 2  ;;  %v2656_v18 = vrot.slane %v2655_v20, 2  ;;  %v13305_v62 = vpop.f32.mrf.mxu0  ;;  %10976 = vmatprep.subr.bf16.mxu1 %v12120_v52 }
 0x131   : > { %v13313_v49 = vpack.c.bf16 %v1201_v21, %v1200_v13  ;;  %v1146_v50 = vadd.f32 %v13318_v39, %v13189_v40  ;;  %v603_v55 = vadd.f32 %v13318_v39, %v13198_v33  ;;  %10957 = vmatpush3.bf16.msra.mxu0 %v12105_v56  ;;  %v13327_v57 = vpop.f32.mrf.mxu1  ;;  %v658_v40 = vmax.f32 %v13273_v41, 0.0 }
 0x132   : > { %v2636_v13 = vmax.f32 %v2634_v23, %v2635_v38  ;;  %v2643_v37 = vmax.f32 %v2641_v47, %v2642_v5  ;;  %v2650_v54 = vmax.f32 %v2648_v16, %v2649_v28  ;;  %v2657_v31 = vmax.f32 %v2655_v20, %v2656_v18  ;;  %v13329_v61 = vpop.f32.mrf.mxu0  ;;  %10982 = vmatprep.subr.bf16.mxu0 %v12107_v42 }
 0x133   : > { %v9643_v22 = vunpack.c.l.bf16 %v13313_v49  ;;  %v1206_v45 = vmax.f32 %v1146_v50, 0.0  ;;  %v661_v33 = vmax.f32 %v603_v55, 0.0  ;;  %v13333_v56 = vpop.f32.mrf.mxu1  ;;  %10977 = vmatpush3.bf16.msra.mxu1 %v12120_v52  ;;  %v1138_v52 = vadd.f32 %v13318_v39, %v13196_v36 }
 0x134   : > { %v2637_v0 = vrot.slane %v2636_v13, 1  ;;  %v2644_v59 = vrot.slane %v2643_v37, 1  ;;  %v2651_v26 = vrot.slane %v2650_v54, 1  ;;  %v2658_v43 = vrot.slane %v2657_v31, 1  ;;  %10959 = vmatmul.mubr.bf16.vlgmr.msra.gmra.mxu0 %v4120_v32  ;;  %v13338_v51 = vpop.f32.mrf.mxu0  ;;  %11002 = vmatprep.subr.bf16.mxu1 %v13310_v34 }
 0x135   : > { %v9299_v41 = vpack.c.bf16 %v661_v33, %v660_v3  ;;  %v595_v58 = vadd.f32 %v13318_v39, %v13211_v27  ;;  %v1149_v2 = vadd.f32 %v13318_v39, %v13207_v63  ;;  %10983 = vmatpush3.bf16.msra.mxu0 %v12107_v42  ;;  %v13350_v7 = vpop.f32.mrf.mxu1  ;;  %v9644_v21 = vunpack.c.h.bf16 %v13313_v49 }
 0x136   : > { %v2638_v8 = vmax.f32 %v2636_v13, %v2637_v0  ;;  %v2645_v32 = vmax.f32 %v2643_v37, %v2644_v59  ;;  %v2652_v6 = vmax.f32 %v2650_v54, %v2651_v26  ;;  %v13353_v23 = vpop.f32.mrf.mxu0  ;;  %10984 = vmatprep.subr.bf16.mxu0 %v12109_v11  ;;  %v2659_v47 = vmax.f32 %v2657_v31, %v2658_v43 }
 0x137   : > { %v9639_v16 = vunpack.c.l.bf16 %v9299_v41  ;;  %v1204_v36 = vmax.f32 %v1138_v52, 0.0  ;;  %v659_v20 = vmax.f32 %v595_v58, 0.0  ;;  %v13355_v3 = vpop.f32.mrf.mxu1  ;;  %v1207_v63 = vmax.f32 %v1149_v2, 0.0 }
 0x138   : > { %v2660_v27 = vsel %vm2579_vm2, %v2638_v8, %v2645_v32  ;;  %v616_v42 = vadd.f32 %v13318_v39, %v13224_v24  ;;  %v1141_v38 = vadd.f32 %v13318_v39, %v13217_v1  ;;  %v13362_v5 = vpop.f32.mrf.mxu0  ;;  %v608_v50 = vadd.f32 %v13318_v39, %v13246_v19 }
 0x139   : > { %v2661_v28 = vsel %vm2581_vm3, %v2660_v27, %v2652_v6  ;;  %v9294_v18 = vpack.c.bf16 %v659_v20, %v658_v40  ;;  %v619_v55 = vadd.f32 %v13318_v39, %v13260_v46  ;;  %10985 = vmatpush3.bf16.msra.mxu0 %v12109_v11  ;;  %v13369_v13 = vpop.f32.mrf.mxu1  ;;  %v13372_v24 = vpack.c.bf16 %v1207_v63, %v1206_v45  ;;  %v12113_v40 = vld [vmem:[%s15598_s3 + $0x2a0] sm:$0xff]  }
 0x13a   : > { %v2662_v37 = vsel %vm2583_vm4, %v2661_v28, %v2659_v47  ;;  %v664_v54 = vmax.f32 %v616_v42, 0.0  ;;  %v1205_v1 = vmax.f32 %v1141_v38, 0.0  ;;  %v13374_v31 = vpop.f32.mrf.mxu0  ;;  %10986 = vmatprep.subr.bf16.mxu0 %v12111_v4  ;;  %v662_v46 = vmax.f32 %v608_v50, 0.0 }
 0x13b   : > { %2663 = vst [vmem:[#allocation3 + $0x51] sm:$0xf] %v2662_v37  ;;  %v9635_v19 = vunpack.c.l.bf16 %v9294_v18  ;;  %v9636_v33 = vunpack.c.h.bf16 %v9294_v18  ;;  %v665_v11 = vmax.f32 %v619_v55, 0.0  ;;  %v13379_v0 = vpop.f32.mrf.mxu1  ;;  %v9640_v59 = vunpack.c.h.bf16 %v9299_v41 }
 0x13c   : > { %v9655_v45 = vunpack.c.l.bf16 %v13372_v24  ;;  %v9374_v26 = vpack.c.bf16 %v1205_v1, %v1204_v36  ;;  %v611_v43 = vadd.f32 %v13318_v39, %v13275_v30  ;;  %v13384_v52 = vpop.f32.mrf.mxu0  ;;  %v632_v32 = vadd.f32 %v13318_v39, %v13286_v10 }
 0x13d   : > { %v2678_v58 = vmax.f32 %v13297_v44, %v9635_v19  ;;  %v2679_v2 = vmax.f32 %v13299_v14, %v9636_v33  ;;  %v9309_v8 = vpack.c.bf16 %v665_v11, %v664_v54  ;;  %10987 = vmatpush3.bf16.msra.mxu0 %v12111_v4  ;;  %v13390_v6 = vpop.f32.mrf.mxu1  ;;  %v9656_v41 = vunpack.c.h.bf16 %v13372_v24  ;;  %v12115_v44 = vld [vmem:[%s15598_s3 + $0x298] sm:$0xff]   ;;  %v13416_v54 = vld [vmem:[#allocation3 + $0x48] sm:$0xff] }
 0x13e   : > { %v9651_v47 = vunpack.c.l.bf16 %v9374_v26  ;;  %v663_v36 = vmax.f32 %v611_v43, 0.0  ;;  %v1162_v30 = vadd.f32 %v13318_v39, %v13241_v25  ;;  %v13395_v20 = vpop.f32.mrf.mxu0  ;;  %10988 = vmatprep.subr.bf16.mxu0 %v12113_v40  ;;  %v9652_v10 = vunpack.c.h.bf16 %v9374_v26  ;;  %15609 = vst [vmem:[#allocation7_spill] sm:$0xff] %v13416_v54  ;;  %v12252_v43 = vld [vmem:[#allocation3] sm:$0xff] }
 0x13f   : > { %v2684_v14 = vmax.f32 %v2678_v58, %v9639_v16  ;;  %v2685_v27 = vmax.f32 %v2679_v2, %v9640_v59  ;;  %v9663_v4 = vunpack.c.l.bf16 %v9309_v8  ;;  %v13400_v63 = vpop.f32.mrf.mxu1  ;;  %v9664_v42 = vunpack.c.h.bf16 %v9309_v8 }
 0x140   : > { %v9304_v38 = vpack.c.bf16 %v663_v36, %v662_v46  ;;  %v668_v28 = vmax.f32 %v632_v32, 0.0  ;;  %v13404_v18 = vadd.f32 %v13318_v39, %v13292_v15  ;;  %v13406_v25 = vpop.f32.mrf.mxu0  ;;  %v13412_v16 = vadd.f32 %v13318_v39, %v13250_v48  ;;  %v12117_v46 = vld [vmem:[%s15598_s3 + $0x290] sm:$0xff]  }
 0x141   : > { %v2690_v50 = vmax.f32 %v2684_v14, %v9643_v22  ;;  %v2691_v55 = vmax.f32 %v2685_v27, %v9644_v21  ;;  %v635_v37 = vadd.f32 %v13318_v39, %v13305_v62  ;;  %10989 = vmatpush3.bf16.msra.mxu0 %v12113_v40  ;;  %v13418_v1 = vpop.f32.mrf.mxu1  ;;  %v1210_v33 = vmax.f32 %v1162_v30, 0.0 }
 0x142   : > { %v9659_v15 = vunpack.c.l.bf16 %v9304_v38  ;;  %v9660_v19 = vunpack.c.h.bf16 %v9304_v38  ;;  %v1165_v49 = vadd.f32 %v13318_v39, %v13269_v60  ;;  %v13422_v22 = vpop.f32.mrf.mxu0  ;;  %10990 = vmatprep.subr.bf16.mxu0 %v12115_v44  ;;  %v666_v21 = vmax.f32 %v13404_v18, 0.0 }
 0x143   : > { %v2696_v48 = vmax.f32 %v2690_v50, %v9647_v53  ;;  %v2697_v62 = vmax.f32 %v2691_v55, %v9648_v17  ;;  %v669_v40 = vmax.f32 %v635_v37, 0.0  ;;  %v13432_v11 = vpop.f32.mrf.mxu1  ;;  %v1208_v60 = vmax.f32 %v13412_v16, 0.0 }
 0x144   : > { %v13434_v59 = vmax.f32 %v9659_v15, %v9663_v4  ;;  %v1211_v26 = vmax.f32 %v1165_v49, 0.0  ;;  %v13438_v53 = vpack.c.bf16 %v13416_v54, %v12252_v43  ;;  %v13440_v12 = vpop.f32.mrf.mxu0  ;;  %v627_v8 = vadd.f32 %v13318_v39, %v13329_v61  ;;  %v12119_v61 = vld [vmem:[%s15598_s3 + $0x288] sm:$0xff]   ;;  %v12121_v49 = vld [vmem:[%s15598_s3 + $0x280] sm:$0xff]  }
 0x145   : > { %v2702_v17 = vmax.f32 %v2696_v48, %v9651_v47  ;;  %v2703_v58 = vmax.f32 %v2697_v62, %v9652_v10  ;;  %v13442_v2 = vpack.c.bf16 %v669_v40, %v668_v28  ;;  %10991 = vmatpush3.bf16.msra.mxu0 %v12115_v44  ;;  %v13446_v32 = vpop.f32.mrf.mxu1  ;;  %v2751_v36 = vmax.f32 %v9660_v19, %v9664_v42 }
 0x146   : > { %15610 = vst [vmem:[#allocation8_spill] sm:$0xff] %v13438_v53  ;;  %v13448_v30 = vpack.c.bf16 %v1211_v26, %v1210_v33  ;;  %10978 = vmatprep.mubr.bf16.mxu1 %v13438_v53  ;;  %v1157_v14 = vadd.f32 %v13318_v39, %v13284_v35  ;;  %v13455_v47 = vadd.f32 %v13318_v39, %v13290_v9  ;;  %v13457_v27 = vpop.f32.mrf.mxu0  ;;  %v667_v28 = vmax.f32 %v627_v8, 0.0  ;;  %v4363_v8 = vld [vmem:[#allocation3 + $0x41] sm:$0xff] }
 0x147   : > { %v2708_v44 = vmax.f32 %v2702_v17, %v9655_v45  ;;  %v2709_v10 = vmax.f32 %v2703_v58, %v9656_v41  ;;  %v9671_v4 = vunpack.c.l.bf16 %v13442_v2  ;;  %v13467_v42 = vadd.f32 %v13318_v39, %v13338_v51  ;;  %10992 = vmatprep.subr.bf16.mxu0 %v12117_v46  ;;  %v13469_v35 = vpop.f32.mrf.mxu1 }
 0x148   : > { %v9672_v9 = vunpack.c.h.bf16 %v13442_v2  ;;  %v1209_v18 = vmax.f32 %v1157_v14, 0.0  ;;  %v13473_v50 = vpop.f32.mrf.mxu0  ;;  %v9314_v62 = vpack.c.bf16 %v667_v28, %v666_v21  ;;  %v1214_v26 = vmax.f32 %v13455_v47, 0.0  ;;  %v4364_v14 = vld [vmem:[#allocation3 + $0x49] sm:$0xff] }
 0x149   : > { %v2710_v24 = vsel %vm2549_vm0, %v2708_v44, -inf  ;;  %v2717_v45 = vsel %vm2557_vm1, %v2708_v44, -inf  ;;  %v2724_v41 = vsel %vm2549_vm0, %v2709_v10, -inf  ;;  %v2731_v51 = vsel %vm2557_vm1, %v2709_v10, -inf  ;;  %10993 = vmatpush3.bf16.msra.mxu0 %v12117_v46  ;;  %v13479_v55 = vpop.f32.mrf.mxu1 }
 0x14a   : > { %v2711_v16 = vrot.slane %v2710_v24, 4  ;;  %v2718_v37 = vrot.slane %v2717_v45, 4  ;;  %v2725_v15 = vrot.slane %v2724_v41, 4  ;;  %v2732_v19 = vrot.slane %v2731_v51, 4  ;;  %v13481_v33 = vpop.f32.mrf.mxu0  ;;  %10994 = vmatprep.subr.bf16.mxu0 %v12119_v61 }
 0x14b   : > { %v9384_v40 = vpack.c.bf16 %v1209_v18, %v1208_v60  ;;  %v13488_v46 = vpop.f32.mrf.mxu1  ;;  %v9667_v10 = vunpack.c.l.bf16 %v9314_v62  ;;  %v9668_v38 = vunpack.c.h.bf16 %v9314_v62  ;;  %v13497_v18 = vld [vmem:[%s15598_s3 + $0x338] sm:$0xff]  }
 0x14c   : > { %v2712_v43 = vmax.f32 %v2710_v24, %v2711_v16  ;;  %v2719_v17 = vmax.f32 %v2717_v45, %v2718_v37  ;;  %v2726_v58 = vmax.f32 %v2724_v41, %v2725_v15  ;;  %v2733_v2 = vmax.f32 %v2731_v51, %v2732_v19  ;;  %v13490_v44 = vpop.f32.mrf.mxu0 }
 0x14d   : > { %v9675_v53 = vunpack.c.l.bf16 %v9384_v40  ;;  %v9676_v54 = vunpack.c.h.bf16 %v9384_v40  ;;  %10995 = vmatpush3.bf16.msra.mxu0 %v12119_v61  ;;  %v13492_v48 = vpop.f32.mrf.mxu1  ;;  %v2756_v24 = vmax.f32 %v13434_v59, %v9667_v10  ;;  %v2757_v45 = vmax.f32 %v2751_v36, %v9668_v38 }
 0x14e   : > { %15611 = vst [vmem:[#allocation9_spill] sm:$0xff] %v13492_v48  ;;  %v2713_v21 = vrot.slane %v2712_v43, 2  ;;  %v2720_v60 = vrot.slane %v2719_v17, 2  ;;  %v2727_v47 = vrot.slane %v2726_v58, 2  ;;  %v2734_v28 = vrot.slane %v2733_v2, 2  ;;  %10996 = vmatprep.subr.bf16.mxu0 %v12121_v49  ;;  %v13504_v51 = vpop.f32.mrf.mxu0 }
 0x14f   : > { %v13500_v41 = vpack.c.bf16 %v4364_v14, %v4363_v8  ;;  %v1170_v61 = vadd.f32 %v13318_v39, %v13303_v29  ;;  %v2762_v62 = vmax.f32 %v2756_v24, %v9671_v4  ;;  %v2763_v40 = vmax.f32 %v2757_v45, %v9672_v9  ;;  %v13510_v36 = vpop.f32.mrf.mxu1 }
 0x150   : > { %v2714_v16 = vmax.f32 %v2712_v43, %v2713_v21  ;;  %v2721_v37 = vmax.f32 %v2719_v17, %v2720_v60  ;;  %v2728_v15 = vmax.f32 %v2726_v58, %v2727_v47  ;;  %v2735_v19 = vmax.f32 %v2733_v2, %v2734_v28  ;;  %v13515_v9 = vpop.f32.mrf.mxu0 }
 0x151   : > { %v1733_v48 = vmax.f32 %v13467_v42, 0.0  ;;  %10998 = vmatprep.mubr.bf16.mxu0 %v13500_v41  ;;  %v1605_v59 = vadd.f32 %v13318_v39, %v13353_v23  ;;  %10997 = vmatpush3.bf16.msra.mxu0 %v12121_v49  ;;  %v2768_v43 = vmax.f32 %v2762_v62, %v9675_v53  ;;  %v2769_v17 = vmax.f32 %v2763_v40, %v9676_v54  ;;  %v13521_v53 = vpop.f32.mrf.mxu1 }
 0x152   : > { %v2715_v38 = vrot.slane %v2714_v16, 1  ;;  %v2722_v29 = vrot.slane %v2721_v37, 1  ;;  %v2729_v8 = vrot.slane %v2728_v15, 1  ;;  %v2736_v14 = vrot.slane %v2735_v19, 1  ;;  %11022 = vmatprep.subr.bf16.mxu0 %v13497_v18 }
 0x153   : > { %v1212_v4 = vmax.f32 %v1170_v61, 0.0  ;;  %v1181_v42 = vadd.f32 %v13318_v39, %v13327_v57  ;;  %v1731_v49 = vmax.f32 %v1605_v59, 0.0  ;;  %v1616_v60 = vadd.f32 %v13318_v39, %v13362_v5 }
 0x154   : > { %v2716_v58 = vmax.f32 %v2714_v16, %v2715_v38  ;;  %v2723_v2 = vmax.f32 %v2721_v37, %v2722_v29  ;;  %v2730_v23 = vmax.f32 %v2728_v15, %v2729_v8  ;;  %v2737_v10 = vmax.f32 %v2735_v19, %v2736_v14  ;;  %v13531_v15 = vpop.f32.mrf.mxu0  ;;  %v13538_v8 = vpop.f32.mrf.mxu1 }
 0x155   : > { %v1215_v21 = vmax.f32 %v1181_v42, 0.0  ;;  %v1173_v47 = vadd.f32 %v13318_v39, %v13333_v56  ;;  %v15612_v57 = vunpack.c.l.bf16 %v13448_v30  ;;  %v1608_v24 = vadd.f32 %v13318_v39, %v13374_v31 }
 0x156   : > { %v2738_v54 = vsel %vm2579_vm2, %v2716_v58, %v2723_v2  ;;  %v1629_v45 = vadd.f32 %v13318_v39, %v13384_v52  ;;  %v1734_v5 = vmax.f32 %v1616_v60, 0.0  ;;  %v15613_v19 = vunpack.c.h.bf16 %v13448_v30 }
 0x157   : > { %v2774_v28 = vmax.f32 %v2768_v43, %v15612_v57  ;;  %v2739_v61 = vsel %vm2581_vm3, %v2738_v54, %v2730_v23  ;;  %v9399_v16 = vpack.c.bf16 %v1215_v21, %v1214_v26  ;;  %v1213_v37 = vmax.f32 %v1173_v47, 0.0  ;;  %v13550_v47 = vpop.f32.mrf.mxu1 }
 0x158   : > { %v2740_v56 = vsel %vm2583_vm4, %v2739_v61, %v2737_v10  ;;  %v2775_v62 = vmax.f32 %v2769_v17, %v15613_v19  ;;  %v1732_v40 = vmax.f32 %v1608_v24, 0.0  ;;  %v2160_v59 = vadd.f32 %v13318_v39, %v13350_v7  ;;  %v13544_v7 = vpop.f32.mrf.mxu0 }
 0x159   : > { %2741 = vst [vmem:[#allocation3 + $0x59] sm:$0xf] %v2740_v56  ;;  %v9687_v31 = vunpack.c.l.bf16 %v9399_v16  ;;  %v9409_v38 = vpack.c.bf16 %v1734_v5, %v1733_v48  ;;  %v9394_v52 = vpack.c.bf16 %v1213_v37, %v1212_v4  ;;  %v1737_v29 = vmax.f32 %v1629_v45, 0.0 }
 0x15a   : > { %v9688_v26 = vunpack.c.h.bf16 %v9399_v16  ;;  %v9404_v14 = vpack.c.bf16 %v1732_v40, %v1731_v49  ;;  %v1621_v43 = vadd.f32 %v13318_v39, %v13395_v20  ;;  %v2152_v30 = vadd.f32 %v13318_v39, %v13355_v3  ;;  %v13556_v5 = vpop.f32.mrf.mxu0  ;;  %v13566_v40 = vpop.f32.mrf.mxu1 }
 0x15b   : > { %v9695_v17 = vunpack.c.l.bf16 %v9409_v38  ;;  %v9683_v42 = vunpack.c.l.bf16 %v9394_v52  ;;  %v9684_v58 = vunpack.c.h.bf16 %v9394_v52  ;;  %v2280_v2 = vmax.f32 %v2160_v59, 0.0 }
 0x15c   : > { %v9696_v23 = vunpack.c.h.bf16 %v9409_v38  ;;  %v9691_v48 = vunpack.c.l.bf16 %v9404_v14  ;;  %v9692_v4 = vunpack.c.h.bf16 %v9404_v14  ;;  %v1735_v10 = vmax.f32 %v1621_v43, 0.0 }
 0x15d   : > { %v2780_v21 = vmax.f32 %v2774_v28, %v9683_v42  ;;  %v2781_v60 = vmax.f32 %v2775_v62, %v9684_v58  ;;  %v1632_v49 = vadd.f32 %v13318_v39, %v13406_v25  ;;  %v2163_v20 = vadd.f32 %v13318_v39, %v13369_v13 }
 0x15e   : > { %v2828_v3 = vmax.f32 %v9691_v48, %v9695_v17  ;;  %v2278_v54 = vmax.f32 %v2152_v30, 0.0  ;;  %v1624_v57 = vadd.f32 %v13318_v39, %v13422_v22  ;;  %v2155_v24 = vadd.f32 %v13318_v39, %v13379_v0  ;;  %v13570_v30 = vpop.f32.mrf.mxu0 }
 0x15f   : > { %v2786_v45 = vmax.f32 %v2780_v21, %v9687_v31  ;;  %v2787_v61 = vmax.f32 %v2781_v60, %v9688_v26  ;;  %v1738_v28 = vmax.f32 %v1632_v49, 0.0  ;;  %v2281_v16 = vmax.f32 %v2163_v20, 0.0  ;;  %v13575_v49 = vpop.f32.mrf.mxu1 }
 0x160   : > { %v2829_v25 = vmax.f32 %v9692_v4, %v9696_v23  ;;  %v1736_v37 = vmax.f32 %v1624_v57, 0.0  ;;  %v2279_v56 = vmax.f32 %v2155_v24, 0.0  ;;  %v13560_v13 = vadd.f32 %v13318_v39, %v13440_v12 }
 0x161   : > { %v2788_v19 = vsel %vm2549_vm0, %v2786_v45, -inf  ;;  %v2795_v22 = vsel %vm2557_vm1, %v2786_v45, -inf  ;;  %v2802_v62 = vsel %vm2549_vm0, %v2787_v61, -inf  ;;  %v2809_v0 = vsel %vm2557_vm1, %v2787_v61, -inf  ;;  %v13578_v61 = vpop.f32.mrf.mxu0 }
 0x162   : > { %v2789_v59 = vrot.slane %v2788_v19, 4  ;;  %v2796_v31 = vrot.slane %v2795_v22, 4  ;;  %v2803_v38 = vrot.slane %v2802_v62, 4  ;;  %v2810_v52 = vrot.slane %v2809_v0, 4 }
 0x163   : > { %v9419_v26 = vpack.c.bf16 %v1738_v28, %v1737_v29  ;;  %v13568_v14 = vpack.c.bf16 %v2281_v16, %v2280_v2  ;;  %v9414_v43 = vpack.c.bf16 %v1736_v37, %v1735_v10  ;;  %v9484_v12 = vpack.c.bf16 %v2279_v56, %v2278_v54 }
 0x164   : > { %v2790_v17 = vmax.f32 %v2788_v19, %v2789_v59  ;;  %v2797_v42 = vmax.f32 %v2795_v22, %v2796_v31  ;;  %v2804_v58 = vmax.f32 %v2802_v62, %v2803_v38  ;;  %v2811_v23 = vmax.f32 %v2809_v0, %v2810_v52  ;;  %v13581_v0 = vpop.f32.mrf.mxu1 }
 0x165   : > { %v9703_v48 = vunpack.c.l.bf16 %v9419_v26  ;;  %v9704_v4 = vunpack.c.h.bf16 %v9419_v26  ;;  %v9711_v21 = vunpack.c.l.bf16 %v13568_v14  ;;  %v2176_v60 = vadd.f32 %v13318_v39, %v13390_v6 }
 0x166   : > { %v2791_v29 = vrot.slane %v2790_v17, 2  ;;  %v2798_v2 = vrot.slane %v2797_v42, 2  ;;  %v2805_v20 = vrot.slane %v2804_v58, 2  ;;  %v2812_v10 = vrot.slane %v2811_v23, 2 }
 0x167   : > { %v9712_v54 = vunpack.c.h.bf16 %v13568_v14  ;;  %v9699_v57 = vunpack.c.l.bf16 %v9414_v43  ;;  %v9700_v24 = vunpack.c.h.bf16 %v9414_v43  ;;  %v9707_v45 = vunpack.c.l.bf16 %v9484_v12 }
 0x168   : > { %v2792_v28 = vmax.f32 %v2790_v17, %v2791_v29  ;;  %v2799_v16 = vmax.f32 %v2797_v42, %v2798_v2  ;;  %v2806_v37 = vmax.f32 %v2804_v58, %v2805_v20  ;;  %v2813_v56 = vmax.f32 %v2811_v23, %v2812_v10  ;;  %v13587_v42 = vpop.f32.mrf.mxu0  ;;  %v13589_v20 = vpop.f32.mrf.mxu1 }
 0x169   : > { %v2834_v19 = vmax.f32 %v2828_v3, %v9699_v57  ;;  %v2835_v22 = vmax.f32 %v2829_v25, %v9700_v24  ;;  %v9708_v6 = vunpack.c.h.bf16 %v9484_v12  ;;  %v1741_v62 = vmax.f32 %v13560_v13, 0.0 }
 0x16a   : > { %v2793_v59 = vrot.slane %v2792_v28, 1  ;;  %v2800_v31 = vrot.slane %v2799_v16, 1  ;;  %v2807_v38 = vrot.slane %v2806_v37, 1  ;;  %v2814_v52 = vrot.slane %v2813_v56, 1 }
 0x16b   : > { %v2840_v26 = vmax.f32 %v2834_v19, %v9703_v48  ;;  %v2841_v14 = vmax.f32 %v2835_v22, %v9704_v4  ;;  %v1637_v43 = vadd.f32 %v13318_v39, %v13457_v27  ;;  %v2168_v17 = vadd.f32 %v13318_v39, %v13400_v63 }
 0x16c   : > { %v2794_v3 = vmax.f32 %v2792_v28, %v2793_v59  ;;  %v2801_v25 = vmax.f32 %v2799_v16, %v2800_v31  ;;  %v2808_v12 = vmax.f32 %v2806_v37, %v2807_v38  ;;  %v2284_v13 = vmax.f32 %v2176_v60, 0.0 }
 0x16d   : > { %v2815_v58 = vmax.f32 %v2813_v56, %v2814_v52  ;;  %v2846_v23 = vmax.f32 %v2840_v26, %v9707_v45  ;;  %v2847_v29 = vmax.f32 %v2841_v14, %v9708_v6  ;;  %v1739_v2 = vmax.f32 %v1637_v43, 0.0  ;;  %v13601_v45 = vpop.f32.mrf.mxu0 }
 0x16e   : > { %v2816_v48 = vsel %vm2579_vm2, %v2794_v3, %v2801_v25  ;;  %v1648_v27 = vadd.f32 %v13318_v39, %v13473_v50  ;;  %v2179_v63 = vadd.f32 %v13318_v39, %v13418_v1  ;;  %v1640_v4 = vadd.f32 %v13318_v39, %v13481_v33 }
 0x16f   : > { %v2817_v10 = vsel %vm2581_vm3, %v2816_v48, %v2808_v12  ;;  %v2282_v60 = vmax.f32 %v2168_v17, 0.0  ;;  %v2171_v57 = vadd.f32 %v13318_v39, %v13432_v11  ;;  %v2852_v24 = vmax.f32 %v2846_v23, %v9711_v21  ;;  %v13612_v11 = vpop.f32.mrf.mxu1  ;;  %v13624_v26 = vpop.f32.mrf.mxu0  ;;  %v13630_v12 = vld [vmem:[#allocation3 + $0x50] sm:$0xff]  ;;  %v13645_v48 = vld [vmem:[#allocation3 + $0x59] sm:$0xff] }
 0x170   : > { %v2818_v28 = vsel %vm2583_vm4, %v2817_v10, %v2815_v58  ;;  %v1742_v16 = vmax.f32 %v1648_v27, 0.0  ;;  %v2285_v37 = vmax.f32 %v2179_v63, 0.0  ;;  %v1740_v50 = vmax.f32 %v1640_v4, 0.0  ;;  %v12124_v27 = vld [vmem:[%s15598_s3 + $0x2f0] sm:$0xff]  }
 0x171   : > { %2819 = vst [vmem:[#allocation3 + $0x61] sm:$0xf] %v2818_v28  ;;  %v2283_v56 = vmax.f32 %v2171_v57, 0.0  ;;  %v1661_v1 = vadd.f32 %v13318_v39, %v13490_v44  ;;  %v2192_v33 = vadd.f32 %v13318_v39, %v13446_v32  ;;  %v13610_v19 = vadd.f32 %v13318_v39, %v13504_v51  ;;  %v13622_v32 = vld [vmem:[#allocation3 + $0x58] sm:$0xff] }
 0x172   : > { %v13614_v21 = vpack.c.bf16 %v1742_v16, %v1741_v62  ;;  %v9499_v22 = vpack.c.bf16 %v2285_v37, %v2284_v13  ;;  %v13616_v6 = vpack.c.bf16 %v1740_v50, %v1739_v2  ;;  %v2853_v59 = vmax.f32 %v2847_v29, %v9712_v54  ;;  %v13643_v2 = vld [vmem:[#allocation3 + $0x4a] sm:$0xff]  ;;  %v4487_v37 = vld [vmem:[#allocation3 + $0x42] sm:$0xff] }
 0x173   : > { %v9494_v31 = vpack.c.bf16 %v2283_v56, %v2282_v60  ;;  %v1745_v38 = vmax.f32 %v1661_v1, 0.0  ;;  %v2288_v52 = vmax.f32 %v2192_v33, 0.0  ;;  %v13620_v44 = vadd.f32 %v13318_v39, %v13469_v35  ;;  %v13632_v35 = vpop.f32.mrf.mxu1  ;;  %v13653_v60 = vpop.f32.mrf.mxu0  ;;  %v13660_v50 = vld [vmem:[#allocation3 + $0x51] sm:$0xff] }
 0x174   : > { %v9727_v51 = vunpack.c.l.bf16 %v13614_v21  ;;  %v9728_v62 = vunpack.c.h.bf16 %v13614_v21  ;;  %v9719_v14 = vunpack.c.l.bf16 %v9499_v22  ;;  %v1743_v43 = vmax.f32 %v13610_v19, 0.0 }
 0x175   : > { %v9720_v17 = vunpack.c.h.bf16 %v9499_v22  ;;  %v9723_v54 = vunpack.c.l.bf16 %v13616_v6  ;;  %v9715_v3 = vunpack.c.l.bf16 %v9494_v31  ;;  %v9716_v25 = vunpack.c.h.bf16 %v9494_v31  ;;  %v13673_v21 = vpop.f32.mrf.mxu1 }
 0x176   : > { %v9724_v13 = vunpack.c.h.bf16 %v13616_v6  ;;  %v1664_v58 = vadd.f32 %v13318_v39, %v13515_v9  ;;  %v2195_v23 = vadd.f32 %v13318_v39, %v13479_v55  ;;  %v13641_v29 = vpack.c.bf16 %v13622_v32, %v13630_v12 }
 0x177   : > { %v13650_v63 = vmax.f32 %v9723_v54, %v9727_v51  ;;  %v2858_v4 = vmax.f32 %v2852_v24, %v9715_v3  ;;  %v2859_v10 = vmax.f32 %v2853_v59, %v9716_v25  ;;  %v2286_v9 = vmax.f32 %v13620_v44, 0.0 }
 0x178   : > { %15614 = vst [vmem:[#allocation10_spill] sm:$0xff] %v13641_v29  ;;  %v1746_v55 = vmax.f32 %v1664_v58, 0.0  ;;  %v2289_v57 = vmax.f32 %v2195_v23, 0.0  ;;  %10979 = vmatmul.mubr.bf16.vlgmr.msra.gmra.mxu1 %v13641_v29  ;;  %v1656_v28 = vadd.f32 %v13318_v39, %v13531_v15  ;;  %v2187_v16 = vadd.f32 %v13318_v39, %v13488_v46  ;;  %v12125_v15 = vld [vmem:[%s15598_s3 + $0x330] sm:$0xff]  }
 0x179   : > { %v2864_v56 = vmax.f32 %v2858_v4, %v9719_v14  ;;  %v2865_v24 = vmax.f32 %v2859_v10, %v9720_v17  ;;  %11003 = vmatpush3.bf16.msra.mxu1 %v13310_v34  ;;  %v13664_v1 = vpack.c.bf16 %v13643_v2, %v4487_v37  ;;  %v13668_v33 = vpack.c.bf16 %v13645_v48, %v13660_v50  ;;  %v12126_v34 = vld [vmem:[%s15598_s3 + $0x2e8] sm:$0xff]  }
 0x17a   : > { %v13675_v46 = vpack.c.bf16 %v1746_v55, %v1745_v38  ;;  %v13677_v22 = vpack.c.bf16 %v2289_v57, %v2288_v52  ;;  %v1744_v6 = vmax.f32 %v1656_v28, 0.0  ;;  %v2287_v59 = vmax.f32 %v2187_v16, 0.0  ;;  %11004 = vmatprep.subr.bf16.mxu1 %v12124_v27  ;;  %v13688_v38 = vpop.f32.mrf.mxu0  ;;  %v12127_v10 = vld [vmem:[%s15598_s3 + $0x328] sm:$0xff]   ;;  %v13697_v55 = vpop.f32.mrf.mxu1 }
 0x17b   : > { %v2866_v31 = vsel %vm2549_vm0, %v2864_v56, -inf  ;;  %v2873_v44 = vsel %vm2557_vm1, %v2864_v56, -inf  ;;  %v2880_v51 = vsel %vm2549_vm0, %v2865_v24, -inf  ;;  %v2887_v14 = vsel %vm2557_vm1, %v2865_v24, -inf  ;;  %11018 = vmatprep.mubr.bf16.mxu1 %v13664_v1  ;;  %10999 = vmatmul.mubr.bf16.vlgmr.msra.gmra.mxu0 %v13668_v33 }
 0x17c   : > { %v2867_v52 = vrot.slane %v2866_v31, 4  ;;  %v2874_v17 = vrot.slane %v2873_v44, 4  ;;  %v2881_v54 = vrot.slane %v2880_v51, 4  ;;  %v2888_v3 = vrot.slane %v2887_v14, 4  ;;  %11023 = vmatpush3.bf16.msra.mxu0 %v13497_v18  ;;  %v12128_v18 = vld [vmem:[%s15598_s3 + $0x2e0] sm:$0xff]   ;;  %v13709_v24 = vpop.f32.mrf.mxu0  ;;  %v13715_v19 = vpop.f32.mrf.mxu1 }
 0x17d   : > { %v2907_v25 = vmax.f32 %v9724_v13, %v9728_v62  ;;  %v9735_v58 = vunpack.c.l.bf16 %v13675_v46  ;;  %v9736_v23 = vunpack.c.h.bf16 %v13675_v46  ;;  %11005 = vmatpush3.bf16.msra.mxu1 %v12124_v27  ;;  %11024 = vmatprep.subr.bf16.mxu0 %v12125_v15  ;;  %v9434_v13 = vpack.c.bf16 %v1744_v6, %v1743_v43 }
 0x17e   : > { %v2868_v57 = vmax.f32 %v2866_v31, %v2867_v52  ;;  %v2875_v28 = vmax.f32 %v2873_v44, %v2874_v17  ;;  %v2882_v16 = vmax.f32 %v2880_v51, %v2881_v54  ;;  %v2889_v37 = vmax.f32 %v2887_v14, %v2888_v3  ;;  %11006 = vmatprep.subr.bf16.mxu1 %v12126_v34  ;;  %v15615_v54 = vld [vmem:[#allocation9_spill] sm:$0xff]  ;;  %v13725_v4 = vpop.f32.mrf.mxu0 }
 0x17f   : > { %v9504_v27 = vpack.c.bf16 %v2287_v59, %v2286_v9  ;;  %v13707_v56 = vadd.f32 %v13318_v39, %v13544_v7  ;;  %v9731_v14 = vunpack.c.l.bf16 %v9434_v13  ;;  %v9732_v52 = vunpack.c.h.bf16 %v9434_v13 }
 0x180   : > { %v2869_v46 = vrot.slane %v2868_v57, 2  ;;  %v2876_v31 = vrot.slane %v2875_v28, 2  ;;  %v2883_v44 = vrot.slane %v2882_v16, 2  ;;  %v2890_v51 = vrot.slane %v2889_v37, 2  ;;  %11025 = vmatpush3.bf16.msra.mxu0 %v12125_v15  ;;  %v12129_v15 = vld [vmem:[%s15598_s3 + $0x320] sm:$0xff]  }
 0x181   : > { %v9739_v17 = vunpack.c.l.bf16 %v9504_v27  ;;  %v13713_v3 = vadd.f32 %v13318_v39, %v15615_v54  ;;  %11007 = vmatpush3.bf16.msra.mxu1 %v12126_v34  ;;  %11026 = vmatprep.subr.bf16.mxu0 %v12127_v10  ;;  %v2912_v59 = vmax.f32 %v13650_v63, %v9731_v14  ;;  %v2913_v13 = vmax.f32 %v2907_v25, %v9732_v52  ;;  %v12130_v34 = vld [vmem:[%s15598_s3 + $0x2d8] sm:$0xff]  }
 0x182   : > { %v2870_v7 = vmax.f32 %v2868_v57, %v2869_v46  ;;  %v2877_v43 = vmax.f32 %v2875_v28, %v2876_v31  ;;  %v2884_v9 = vmax.f32 %v2882_v16, %v2883_v44  ;;  %v2891_v6 = vmax.f32 %v2889_v37, %v2890_v51  ;;  %11008 = vmatprep.subr.bf16.mxu1 %v12128_v18  ;;  %v15616_v44 = vld [vmem:[#allocation7_spill] sm:$0xff] }
 0x183   : > { %v9740_v62 = vunpack.c.h.bf16 %v9504_v27  ;;  %v1749_v54 = vmax.f32 %v13707_v56, 0.0  ;;  %v2918_v46 = vmax.f32 %v2912_v59, %v9735_v58  ;;  %v2919_v31 = vmax.f32 %v2913_v13, %v9736_v23  ;;  %v12131_v27 = vld [vmem:[%s15598_s3 + $0x318] sm:$0xff]   ;;  %v13736_v56 = vpop.f32.mrf.mxu1  ;;  %v13745_v59 = vpop.f32.mrf.mxu0 }
 0x184   : > { %v2871_v57 = vrot.slane %v2870_v7, 1  ;;  %v2878_v28 = vrot.slane %v2877_v43, 1  ;;  %v2885_v16 = vrot.slane %v2884_v9, 1  ;;  %v2892_v37 = vrot.slane %v2891_v6, 1  ;;  %11027 = vmatpush3.bf16.msra.mxu0 %v12127_v10 }
 0x185   : > { %v13729_v63 = vpack.c.bf16 %v13630_v12, %v15616_v44  ;;  %v1669_v25 = vadd.f32 %v13318_v39, %v13556_v5  ;;  %11009 = vmatpush3.bf16.msra.mxu1 %v12128_v18  ;;  %11028 = vmatprep.subr.bf16.mxu0 %v12129_v15  ;;  %v12132_v12 = vld [vmem:[%s15598_s3 + $0x2d0] sm:$0xff]   ;;  %v2924_v58 = vmax.f32 %v2918_v46, %v9739_v17  ;;  %v2292_v23 = vmax.f32 %v13713_v3, 0.0 }
 0x186   : > { %v2872_v51 = vmax.f32 %v2870_v7, %v2871_v57  ;;  %v2879_v14 = vmax.f32 %v2877_v43, %v2878_v28  ;;  %v2886_v52 = vmax.f32 %v2884_v9, %v2885_v16  ;;  %v2893_v10 = vmax.f32 %v2891_v6, %v2892_v37  ;;  %11010 = vmatprep.subr.bf16.mxu1 %v12130_v34  ;;  %v12134_v28 = vld [vmem:[%s15598_s3 + $0x2c8] sm:$0xff]  }
 0x187   : > { %15617 = vst [vmem:[#allocation9_spill] sm:$0xff] %v13729_v63  ;;  %11038 = vmatprep.mubr.bf16.mxu0 %v13729_v63  ;;  %v1747_v5 = vmax.f32 %v1669_v25, 0.0  ;;  %v2200_v18 = vadd.f32 %v13318_v39, %v13510_v36  ;;  %v1680_v43 = vadd.f32 %v13318_v39, %v13570_v30  ;;  %v2211_v9 = vadd.f32 %v13318_v39, %v13521_v53  ;;  %v13758_v36 = vld [vmem:[%s15597_s2] ss:$0 sm:$0xff]  ;;  %v12133_v53 = vld [vmem:[%s15598_s3 + $0x310] sm:$0xff]  }
 0x188   : > { %v2894_v7 = vsel %vm2579_vm2, %v2872_v51, %v2879_v14  ;;  %v1672_v17 = vadd.f32 %v13318_v39, %v13578_v61  ;;  %11029 = vmatpush3.bf16.msra.mxu0 %v12129_v15  ;;  %v2925_v6 = vmax.f32 %v2919_v31, %v9740_v62  ;;  %v2203_v57 = vadd.f32 %v13758_v36, %v13538_v8  ;;  %v13765_v39 = vpop.f32.mrf.mxu1  ;;  %v13777_v31 = vpop.f32.mrf.mxu0 }
 0x189   : > { %v2895_v3 = vsel %vm2581_vm3, %v2894_v7, %v2886_v52  ;;  %v2290_v13 = vmax.f32 %v2200_v18, 0.0  ;;  %11011 = vmatpush3.bf16.msra.mxu1 %v12130_v34  ;;  %11030 = vmatprep.subr.bf16.mxu0 %v12131_v27  ;;  %v1750_v61 = vmax.f32 %v1680_v43, 0.0  ;;  %v2293_v62 = vmax.f32 %v2211_v9, 0.0 }
 0x18a   : > { %v2896_v30 = vsel %vm2583_vm4, %v2895_v3, %v2893_v10  ;;  %v1748_v15 = vmax.f32 %v1672_v17, 0.0  ;;  %11012 = vmatprep.subr.bf16.mxu1 %v12132_v12  ;;  %v2291_v8 = vmax.f32 %v2203_v57, 0.0  ;;  %v15618_v34 = vunpack.c.l.bf16 %v13677_v22  ;;  %v13797_v9 = vpop.f32.mrf.mxu0 }
 0x18b   : > { %2897 = vst [vmem:[#allocation3 + $0x89] sm:$0xf] %v2896_v30  ;;  %v1693_v37 = vadd.f32 %v13758_v36, %v13587_v42  ;;  %v2224_v46 = vadd.f32 %v13758_v36, %v13550_v47  ;;  %v9449_v44 = vpack.c.bf16 %v1750_v61, %v1749_v54  ;;  %v9519_v25 = vpack.c.bf16 %v2293_v62, %v2292_v23  ;;  %v13789_v47 = vpop.f32.mrf.mxu1 }
 0x18c   : > { %v2930_v16 = vmax.f32 %v2924_v58, %v15618_v34  ;;  %v9444_v51 = vpack.c.bf16 %v1748_v15, %v1747_v5  ;;  %v13781_v14 = vadd.f32 %v13758_v36, %v13601_v45  ;;  %11031 = vmatpush3.bf16.msra.mxu0 %v12131_v27  ;;  %v9514_v52 = vpack.c.bf16 %v2291_v8, %v2290_v13  ;;  %v12135_v45 = vld [vmem:[%s15598_s3 + $0x308] sm:$0xff]   ;;  %v12137_v15 = vld [vmem:[%s15598_s3 + $0x300] sm:$0xff]  }
 0x18d   : > { %v15619_v10 = vunpack.c.h.bf16 %v13677_v22  ;;  %v1753_v18 = vmax.f32 %v1693_v37, 0.0  ;;  %v13787_v42 = vadd.f32 %v13758_v36, %v13566_v40  ;;  %11013 = vmatpush3.bf16.msra.mxu1 %v12132_v12  ;;  %11032 = vmatprep.subr.bf16.mxu0 %v12133_v53  ;;  %v9759_v54 = vunpack.c.l.bf16 %v9449_v44  ;;  %v12136_v22 = vld [vmem:[%s15598_s3 + $0x2c0] sm:$0xff]   ;;  %v13810_v8 = vpop.f32.mrf.mxu1 }
 0x18e   : > { %v9760_v23 = vunpack.c.h.bf16 %v9449_v44  ;;  %v9751_v5 = vunpack.c.l.bf16 %v9519_v25  ;;  %v9752_v7 = vunpack.c.h.bf16 %v9519_v25  ;;  %11014 = vmatprep.subr.bf16.mxu1 %v12134_v28  ;;  %v9755_v27 = vunpack.c.l.bf16 %v9444_v51  ;;  %v13825_v25 = vpop.f32.mrf.mxu0 }
 0x18f   : > { %v2931_v58 = vmax.f32 %v2925_v6, %v15619_v10  ;;  %v9756_v40 = vunpack.c.h.bf16 %v9444_v51  ;;  %v9747_v43 = vunpack.c.l.bf16 %v9514_v52  ;;  %v9748_v12 = vunpack.c.h.bf16 %v9514_v52 }
 0x190   : > { %v2296_v17 = vmax.f32 %v2224_v46, 0.0  ;;  %v1751_v3 = vmax.f32 %v13781_v14, 0.0  ;;  %v1696_v6 = vadd.f32 %v13758_v36, %v13624_v26  ;;  %v2227_v13 = vadd.f32 %v13758_v36, %v13575_v49  ;;  %11033 = vmatpush3.bf16.msra.mxu0 %v12133_v53  ;;  %v13819_v53 = vld [vmem:[%s15598_s3 + $0x378] sm:$0xff]  }
 0x191   : > { %v13804_v57 = vmax.f32 %v9755_v27, %v9759_v54  ;;  %v2936_v30 = vmax.f32 %v2930_v16, %v9747_v43  ;;  %v2937_v61 = vmax.f32 %v2931_v58, %v9748_v12  ;;  %v2294_v62 = vmax.f32 %v13787_v42, 0.0  ;;  %11015 = vmatpush3.bf16.msra.mxu1 %v12134_v28  ;;  %11034 = vmatprep.subr.bf16.mxu0 %v12135_v45  ;;  %v13846_v43 = vpop.f32.mrf.mxu0 }
 0x192   : > { %v1754_v34 = vmax.f32 %v1696_v6, 0.0  ;;  %v2297_v37 = vmax.f32 %v2227_v13, 0.0  ;;  %v1688_v26 = vadd.f32 %v13758_v36, %v13653_v60  ;;  %v2219_v49 = vadd.f32 %v13758_v36, %v13581_v0  ;;  %11016 = vmatprep.subr.bf16.mxu1 %v12136_v22 }
 0x193   : > { %v2985_v28 = vmax.f32 %v9756_v40, %v9760_v23  ;;  %v2942_v16 = vmax.f32 %v2936_v30, %v9751_v5  ;;  %v2943_v46 = vmax.f32 %v2937_v61, %v9752_v7  ;;  %v13823_v44 = vadd.f32 %v13758_v36, %v13688_v38  ;;  %v13836_v38 = vld [vmem:[%s15598_s3 + $0x3b8] sm:$0xff]  }
 0x194   : > { %v9459_v60 = vpack.c.bf16 %v1754_v34, %v1753_v18  ;;  %v13827_v51 = vpack.c.bf16 %v2297_v37, %v2296_v17  ;;  %v1752_v0 = vmax.f32 %v1688_v26, 0.0  ;;  %v2295_v14 = vmax.f32 %v2219_v49, 0.0  ;;  %11035 = vmatpush3.bf16.msra.mxu0 %v12135_v45  ;;  %v13838_v18 = vpop.f32.mrf.mxu1  ;;  %v13853_v49 = vpop.f32.mrf.mxu0 }
 0x195   : > { %v2944_v52 = vsel %vm2549_vm0, %v2942_v16, -inf  ;;  %v2951_v10 = vsel %vm2557_vm1, %v2942_v16, -inf  ;;  %v2958_v58 = vsel %vm2549_vm0, %v2943_v46, -inf  ;;  %v2965_v42 = vsel %vm2557_vm1, %v2943_v46, -inf  ;;  %11017 = vmatpush3.bf16.msra.mxu1 %v12136_v22  ;;  %11036 = vmatprep.subr.bf16.mxu0 %v12137_v15 }
 0x196   : > { %v2945_v54 = vrot.slane %v2944_v52, 4  ;;  %v2952_v23 = vrot.slane %v2951_v10, 4  ;;  %v2959_v5 = vrot.slane %v2958_v58, 4  ;;  %v2966_v7 = vrot.slane %v2965_v42, 4  ;;  %11042 = vmatprep.subr.bf16.mxu1 %v13819_v53  ;;  %v13851_v26 = vpop.f32.mrf.mxu1 }
 0x197   : > { %v9767_v45 = vunpack.c.l.bf16 %v9459_v60  ;;  %v9768_v27 = vunpack.c.h.bf16 %v9459_v60  ;;  %v13844_v22 = vadd.f32 %v13758_v36, %v13589_v20  ;;  %v9776_v30 = vunpack.c.h.bf16 %v13827_v51 }
 0x198   : > { %v2946_v12 = vmax.f32 %v2944_v52, %v2945_v54  ;;  %v2953_v17 = vmax.f32 %v2951_v10, %v2952_v23  ;;  %v2960_v6 = vmax.f32 %v2958_v58, %v2959_v5  ;;  %v2967_v13 = vmax.f32 %v2965_v42, %v2966_v7  ;;  %11037 = vmatpush3.bf16.msra.mxu0 %v12137_v15  ;;  %v13855_v42 = vpop.f32.mrf.mxu1  ;;  %v13862_v7 = vpop.f32.mrf.mxu0 }
 0x199   : > { %v9454_v61 = vpack.c.bf16 %v1752_v0, %v1751_v3  ;;  %v9524_v34 = vpack.c.bf16 %v2295_v14, %v2294_v62  ;;  %v1757_v37 = vmax.f32 %v13823_v44, 0.0  ;;  %11062 = vmatprep.subr.bf16.mxu0 %v13836_v38  ;;  %v1701_v23 = vadd.f32 %v13758_v36, %v13709_v24 }
 0x19a   : > { %v2947_v20 = vrot.slane %v2946_v12, 2  ;;  %v2954_v16 = vrot.slane %v2953_v17, 2  ;;  %v2961_v46 = vrot.slane %v2960_v6, 2  ;;  %v2968_v60 = vrot.slane %v2967_v13, 2 }
 0x19b   : > { %v9763_v52 = vunpack.c.l.bf16 %v9454_v61  ;;  %v9764_v10 = vunpack.c.h.bf16 %v9454_v61  ;;  %v9771_v58 = vunpack.c.l.bf16 %v9524_v34  ;;  %v9772_v15 = vunpack.c.h.bf16 %v9524_v34 }
 0x19c   : > { %v2948_v3 = vmax.f32 %v2946_v12, %v2947_v20  ;;  %v2955_v62 = vmax.f32 %v2953_v17, %v2954_v16  ;;  %v2962_v0 = vmax.f32 %v2960_v6, %v2961_v46  ;;  %v2969_v44 = vmax.f32 %v2967_v13, %v2968_v60  ;;  %v13865_v13 = vpop.f32.mrf.mxu1 }
 0x19d   : > { %v2990_v14 = vmax.f32 %v13804_v57, %v9763_v52  ;;  %v2991_v54 = vmax.f32 %v2985_v28, %v9764_v10  ;;  %v2232_v5 = vadd.f32 %v13758_v36, %v13612_v11  ;;  %v2300_v17 = vmax.f32 %v13844_v22, 0.0  ;;  %v13871_v52 = vpop.f32.mrf.mxu0 }
 0x19e   : > { %v2949_v61 = vrot.slane %v2948_v3, 1  ;;  %v2956_v40 = vrot.slane %v2955_v62, 1  ;;  %v2963_v34 = vrot.slane %v2962_v0, 1  ;;  %v2970_v63 = vrot.slane %v2969_v44, 1 }
 0x19f   : > { %v2996_v29 = vmax.f32 %v2990_v14, %v9767_v45  ;;  %v2997_v12 = vmax.f32 %v2991_v54, %v9768_v27  ;;  %v1755_v6 = vmax.f32 %v1701_v23, 0.0  ;;  %v1712_v11 = vadd.f32 %v13758_v36, %v13725_v4  ;;  %v13890_v54 = vpop.f32.mrf.mxu0 }
 0x1a0   : > { %v2950_v57 = vmax.f32 %v2948_v3, %v2949_v61  ;;  %v2957_v28 = vmax.f32 %v2955_v62, %v2956_v40  ;;  %v2964_v20 = vmax.f32 %v2962_v0, %v2963_v34  ;;  %v2971_v24 = vmax.f32 %v2969_v44, %v2970_v63 }
 0x1a1   : > { %v3002_v16 = vmax.f32 %v2996_v29, %v9771_v58  ;;  %v3003_v46 = vmax.f32 %v2997_v12, %v9772_v15  ;;  %v2243_v60 = vadd.f32 %v13758_v36, %v13632_v35  ;;  %v2298_v27 = vmax.f32 %v2232_v5, 0.0  ;;  %v13881_v58 = vpop.f32.mrf.mxu1  ;;  %v13903_v12 = vpop.f32.mrf.mxu0 }
 0x1a2   : > { %v2972_v45 = vsel %vm2579_vm2, %v2950_v57, %v2957_v28  ;;  %v1704_v22 = vadd.f32 %v13758_v36, %v13745_v59  ;;  %v2235_v40 = vadd.f32 %v13758_v36, %v13673_v21  ;;  %v1758_v63 = vmax.f32 %v1712_v11, 0.0  ;;  %v13905_v28 = vld [vmem:[#allocation3 + $0x5a] sm:$0xff] }
 0x1a3   : > { %v2973_v29 = vsel %vm2581_vm3, %v2972_v45, %v2964_v20  ;;  %v2301_v10 = vmax.f32 %v2243_v60, 0.0  ;;  %v1725_v4 = vadd.f32 %v13758_v36, %v13777_v31  ;;  %v15620_v62 = vunpack.c.l.bf16 %v13827_v51 }
 0x1a4   : > { %v2974_v35 = vsel %vm2583_vm4, %v2973_v29, %v2971_v24  ;;  %v1756_v15 = vmax.f32 %v1704_v22, 0.0  ;;  %v2299_v3 = vmax.f32 %v2235_v40, 0.0  ;;  %v13886_v59 = vpack.c.bf16 %v1758_v63, %v1757_v37  ;;  %v13916_v22 = vld [vmem:[#allocation3 + $0x60] sm:$0xff] }
 0x1a5   : > { %v3008_v0 = vmax.f32 %v3002_v16, %v15620_v62  ;;  %2975 = vst [vmem:[#allocation3 + $0x91] sm:$0xf] %v2974_v35  ;;  %v9539_v21 = vpack.c.bf16 %v2301_v10, %v2300_v17  ;;  %v3009_v44 = vmax.f32 %v3003_v46, %v9776_v30  ;;  %v2256_v14 = vadd.f32 %v13758_v36, %v13697_v55  ;;  %v13901_v30 = vpop.f32.mrf.mxu1  ;;  %v4735_v10 = vld [vmem:[#allocation3 + $0x49] sm:$0xff]  ;;  %v13929_v35 = vpop.f32.mrf.mxu0 }
 0x1a6   : > { %v9464_v31 = vpack.c.bf16 %v1756_v15, %v1755_v6  ;;  %v9534_v23 = vpack.c.bf16 %v2299_v3, %v2298_v27  ;;  %v13894_v5 = vadd.f32 %v13758_v36, %v13797_v9  ;;  %v13898_v51 = vadd.f32 %v13758_v36, %v13715_v19  ;;  %v13914_v27 = vld [vmem:[#allocation3 + $0x52] sm:$0xff] }
 0x1a7   : > { %v9791_v37 = vunpack.c.l.bf16 %v13886_v59  ;;  %v9783_v61 = vunpack.c.l.bf16 %v9539_v21  ;;  %v1761_v34 = vmax.f32 %v1725_v4, 0.0  ;;  %v9784_v55 = vunpack.c.h.bf16 %v9539_v21  ;;  %v13910_v16 = vpop.f32.mrf.mxu1  ;;  %v12140_v4 = vld [vmem:[%s15598_s3 + $0x370] sm:$0xff]  }
 0x1a8   : > { %v9787_v17 = vunpack.c.l.bf16 %v9464_v31  ;;  %v9779_v6 = vunpack.c.l.bf16 %v9534_v23  ;;  %v9780_v57 = vunpack.c.h.bf16 %v9534_v23  ;;  %v9792_v9 = vunpack.c.h.bf16 %v13886_v59 }
 0x1a9   : > { %v9788_v20 = vunpack.c.h.bf16 %v9464_v31  ;;  %v2304_v24 = vmax.f32 %v2256_v14, 0.0  ;;  %v1728_v19 = vadd.f32 %v13758_v36, %v13825_v25  ;;  %v1759_v60 = vmax.f32 %v13894_v5, 0.0  ;;  %v13948_v14 = vpop.f32.mrf.mxu1 }
 0x1aa   : > { %v3014_v46 = vmax.f32 %v3008_v0, %v9779_v6  ;;  %v3015_v11 = vmax.f32 %v3009_v44, %v9780_v57  ;;  %v2302_v45 = vmax.f32 %v13898_v51, 0.0  ;;  %v13918_v40 = vmax.f32 %v9787_v17, %v9791_v37 }
 0x1ab   : > { %v1762_v29 = vmax.f32 %v1728_v19, 0.0  ;;  %v2259_v63 = vadd.f32 %v13758_v36, %v13736_v56  ;;  %v13924_v25 = vpack.c.bf16 %v13905_v28, %v13914_v27  ;;  %v13932_v62 = vpack.c.bf16 %v13660_v50, %v4735_v10  ;;  %v12141_v50 = vld [vmem:[%s15598_s3 + $0x3b0] sm:$0xff]  }
 0x1ac   : > { %v3020_v15 = vmax.f32 %v3014_v46, %v9783_v61  ;;  %v3021_v3 = vmax.f32 %v3015_v11, %v9784_v55  ;;  %v1720_v0 = vadd.f32 %v13758_v36, %v13846_v43  ;;  %v2251_v21 = vadd.f32 %v13758_v36, %v13765_v39  ;;  %v12142_v61 = vld [vmem:[%s15598_s3 + $0x368] sm:$0xff]  }
 0x1ad   : > { %v13936_v56 = vpack.c.bf16 %v1762_v29, %v1761_v34  ;;  %v2305_v59 = vmax.f32 %v2259_v63, 0.0  ;;  %11019 = vmatmul.mubr.bf16.vlgmr.msra.gmra.mxu1 %v13924_v25  ;;  %v13943_v44 = vpack.c.bf16 %v13916_v22, %v13622_v32  ;;  %v13960_v34 = vpop.f32.mrf.mxu0  ;;  %v3063_v55 = vmax.f32 %v9788_v20, %v9792_v9  ;;  %v12143_v29 = vld [vmem:[%s15598_s3 + $0x3a8] sm:$0xff]   ;;  %v13972_v63 = vpop.f32.mrf.mxu1 }
 0x1ae   : > { %v3022_v43 = vsel %vm2549_vm0, %v3020_v15, -inf  ;;  %v3029_v31 = vsel %vm2557_vm1, %v3020_v15, -inf  ;;  %v3036_v23 = vsel %vm2549_vm0, %v3021_v3, -inf  ;;  %v3043_v5 = vsel %vm2557_vm1, %v3021_v3, -inf  ;;  %11043 = vmatpush3.bf16.msra.mxu1 %v13819_v53  ;;  %11058 = vmatprep.mubr.bf16.mxu1 %v13932_v62 }
 0x1af   : > { %v3023_v32 = vrot.slane %v3022_v43, 4  ;;  %v3030_v39 = vrot.slane %v3029_v31, 4  ;;  %v3037_v51 = vrot.slane %v3036_v23, 4  ;;  %v3044_v37 = vrot.slane %v3043_v5, 4  ;;  %11039 = vmatmul.mubr.bf16.vlgmr.msra.gmra.mxu0 %v13943_v44  ;;  %11044 = vmatprep.subr.bf16.mxu1 %v12140_v4 }
 0x1b0   : > { %v13962_v17 = vpack.c.bf16 %v2305_v59, %v2304_v24  ;;  %v1760_v6 = vmax.f32 %v1720_v0, 0.0  ;;  %v13966_v53 = vadd.f32 %v13758_v36, %v13789_v47  ;;  %11063 = vmatpush3.bf16.msra.mxu0 %v13836_v38  ;;  %v9799_v9 = vunpack.c.l.bf16 %v13936_v56  ;;  %v12144_v0 = vld [vmem:[%s15598_s3 + $0x360] sm:$0xff]   ;;  %v13979_v59 = vpop.f32.mrf.mxu0 }
 0x1b1   : > { %v3024_v57 = vmax.f32 %v3022_v43, %v3023_v32  ;;  %v3031_v19 = vmax.f32 %v3029_v31, %v3030_v39  ;;  %v3038_v46 = vmax.f32 %v3036_v23, %v3037_v51  ;;  %v3045_v11 = vmax.f32 %v3043_v5, %v3044_v37  ;;  %11064 = vmatprep.subr.bf16.mxu0 %v12141_v50  ;;  %v12145_v32 = vld [vmem:[%s15598_s3 + $0x3a0] sm:$0xff]   ;;  %v13985_v39 = vpop.f32.mrf.mxu1 }
 0x1b2   : > { %v9800_v20 = vunpack.c.h.bf16 %v13936_v56  ;;  %v9474_v24 = vpack.c.bf16 %v1760_v6, %v1759_v60  ;;  %v2303_v47 = vmax.f32 %v2251_v21, 0.0  ;;  %11045 = vmatpush3.bf16.msra.mxu1 %v12140_v4 }
 0x1b3   : > { %v3025_v10 = vrot.slane %v3024_v57, 2  ;;  %v3032_v38 = vrot.slane %v3031_v19, 2  ;;  %v3039_v15 = vrot.slane %v3038_v46, 2  ;;  %v3046_v3 = vrot.slane %v3045_v11, 2  ;;  %11046 = vmatprep.subr.bf16.mxu1 %v12142_v61 }
 0x1b4   : > { %v9795_v31 = vunpack.c.l.bf16 %v9474_v24  ;;  %v9796_v23 = vunpack.c.h.bf16 %v9474_v24  ;;  %v9544_v5 = vpack.c.bf16 %v2303_v47, %v2302_v45  ;;  %11065 = vmatpush3.bf16.msra.mxu0 %v12141_v50  ;;  %v13987_v51 = vpop.f32.mrf.mxu0 }
 0x1b5   : > { %v3026_v60 = vmax.f32 %v3024_v57, %v3025_v10  ;;  %v3033_v56 = vmax.f32 %v3031_v19, %v3032_v38  ;;  %v3040_v4 = vmax.f32 %v3038_v46, %v3039_v15  ;;  %v3047_v21 = vmax.f32 %v3045_v11, %v3046_v3  ;;  %11066 = vmatprep.subr.bf16.mxu0 %v12143_v29  ;;  %v12146_v46 = vld [vmem:[%s15598_s3 + $0x358] sm:$0xff]   ;;  %v13993_v11 = vpop.f32.mrf.mxu1 }
 0x1b6   : > { %v3068_v37 = vmax.f32 %v13918_v40, %v9795_v31  ;;  %v3069_v6 = vmax.f32 %v3063_v55, %v9796_v23  ;;  %v9803_v43 = vunpack.c.l.bf16 %v9544_v5  ;;  %v9804_v24 = vunpack.c.h.bf16 %v9544_v5  ;;  %11047 = vmatpush3.bf16.msra.mxu1 %v12142_v61  ;;  %v12147_v31 = vld [vmem:[%s15598_s3 + $0x398] sm:$0xff]   ;;  %v3724_v23 = vpop.f32.mrf.mxu0 }
 0x1b7   : > { %v3027_v45 = vrot.slane %v3026_v60, 1  ;;  %v3034_v50 = vrot.slane %v3033_v56, 1  ;;  %v3041_v57 = vrot.slane %v3040_v4, 1  ;;  %v3048_v19 = vrot.slane %v3047_v21, 1  ;;  %11048 = vmatprep.subr.bf16.mxu1 %v12144_v0 }
 0x1b8   : > { %v3074_v47 = vmax.f32 %v3068_v37, %v9799_v9  ;;  %v3075_v10 = vmax.f32 %v3069_v6, %v9800_v20  ;;  %v13997_v40 = vpack.c.bf16 %v13914_v27, %v13643_v2  ;;  %v2264_v61 = vadd.f32 %v13758_v36, %v13810_v8  ;;  %11067 = vmatpush3.bf16.msra.mxu0 %v12143_v29  ;;  %v10881_v6 = vpop.f32.mrf.mxu0 }
 0x1b9   : > { %v3028_v55 = vmax.f32 %v3026_v60, %v3027_v45  ;;  %v3035_v38 = vmax.f32 %v3033_v56, %v3034_v50  ;;  %v3042_v15 = vmax.f32 %v3040_v4, %v3041_v57  ;;  %v3049_v3 = vmax.f32 %v3047_v21, %v3048_v19  ;;  %11068 = vmatprep.subr.bf16.mxu0 %v12145_v32  ;;  %v3848_v56 = vpop.f32.mrf.mxu1  ;;  %v12150_v50 = vld [vmem:[%s15598_s3 + $0x348] sm:$0xff]  }
 0x1ba   : > { %v9808_v9 = vunpack.c.h.bf16 %v13962_v17  ;;  %v3080_v20 = vmax.f32 %v3074_v47, %v9803_v43  ;;  %v2308_v2 = vmax.f32 %v13966_v53, 0.0  ;;  %11078 = vmatprep.mubr.bf16.mxu0 %v13997_v40  ;;  %v2275_v8 = vadd.f32 %v13758_v36, %v13838_v18  ;;  %11049 = vmatpush3.bf16.msra.mxu1 %v12144_v0  ;;  %v12148_v43 = vld [vmem:[%s15598_s3 + $0x350] sm:$0xff]   ;;  %v12151_v47 = vld [vmem:[%s15598_s3 + $0x388] sm:$0xff]  }
 0x1bb   : > { %v3050_v27 = vsel %vm2579_vm2, %v3028_v55, %v3035_v38  ;;  %v3081_v29 = vmax.f32 %v3075_v10, %v9804_v24  ;;  %v2306_v5 = vmax.f32 %v2264_v61, 0.0  ;;  %v2267_v60 = vadd.f32 %v13758_v36, %v13851_v26  ;;  %11050 = vmatprep.subr.bf16.mxu1 %v12146_v46  ;;  %v12149_v36 = vld [vmem:[%s15598_s3 + $0x390] sm:$0xff]  }
 0x1bc   : > { %v3051_v53 = vsel %vm2581_vm3, %v3050_v27, %v3042_v15  ;;  %v2309_v4 = vmax.f32 %v2275_v8, 0.0  ;;  %11069 = vmatpush3.bf16.msra.mxu0 %v12145_v32  ;;  %v3365_v18 = vadd.f32 %v13855_v42, %v13853_v49  ;;  %v3357_v0 = vadd.f32 %v13865_v13, %v13862_v7 }
 0x1bd   : > { %v3052_v21 = vsel %vm2583_vm4, %v3051_v53, %v3049_v3  ;;  %v2307_v37 = vmax.f32 %v2267_v60, 0.0  ;;  %11070 = vmatprep.subr.bf16.mxu0 %v12147_v31  ;;  %v3368_v26 = vadd.f32 %v13881_v58, %v13871_v52  ;;  %v3360_v32 = vadd.f32 %v13901_v30, %v13890_v54  ;;  %v10901_v54 = vpop.f32.mrf.mxu1 }
 0x1be   : > { %3053 = vst [vmem:[#allocation3 + $0x99] sm:$0xf] %v3052_v21  ;;  %v9559_v49 = vpack.c.bf16 %v2309_v4, %v2308_v2  ;;  %v15621_v42 = vunpack.c.l.bf16 %v13962_v17  ;;  %11051 = vmatpush3.bf16.msra.mxu1 %v12146_v46  ;;  %v3493_v13 = vadd.f32 %v13903_v12, %v3365_v18  ;;  %v3087_v45 = vmax.f32 %v3081_v29, %v9808_v9  ;;  %v14067_v4 = vld [vmem:[#allocation3 + $0x61] sm:$0xff]  ;;  %v12155_v18 = vld [vmem:[%s15598_s3 + $0x438] sm:$0xff]  }
 0x1bf   : > { %v9554_v24 = vpack.c.bf16 %v2307_v37, %v2306_v5  ;;  %11052 = vmatprep.subr.bf16.mxu1 %v12148_v43  ;;  %v3491_v52 = vadd.f32 %v13929_v35, %v3357_v0  ;;  %v3494_v58 = vadd.f32 %v13960_v34, %v3368_v26  ;;  %v3492_v19 = vadd.f32 %v13979_v59, %v3360_v32  ;;  %v3727_v34 = vpop.f32.mrf.mxu0  ;;  %v12152_v59 = vld [vmem:[%s15598_s3 + $0x340] sm:$0xff]   ;;  %v3851_v3 = vpop.f32.mrf.mxu1  ;;  %v12154_v5 = vld [vmem:[%s15598_s3 + $0x3f8] sm:$0xff]  }
 0x1c0   : > { %v3086_v7 = vmax.f32 %v3080_v20, %v15621_v42  ;;  %v9815_v30 = vunpack.c.l.bf16 %v9559_v49  ;;  %v9816_v57 = vunpack.c.h.bf16 %v9559_v49  ;;  %11071 = vmatpush3.bf16.msra.mxu0 %v12147_v31  ;;  %v3617_v17 = vadd.f32 %v13910_v16, %v3493_v13  ;;  %v4984_v26 = vld [vmem:[#allocation3 + $0x58] sm:$0xff]  ;;  %v14072_v32 = vld [vmem:[#allocation3 + $0x62] sm:$0xff] }
 0x1c1   : > { %v9811_v12 = vunpack.c.l.bf16 %v9554_v24  ;;  %v9812_v46 = vunpack.c.h.bf16 %v9554_v24  ;;  %11072 = vmatprep.subr.bf16.mxu0 %v12149_v36  ;;  %v3615_v10 = vadd.f32 %v13948_v14, %v3491_v52  ;;  %v3618_v35 = vadd.f32 %v13972_v63, %v3494_v58  ;;  %v4983_v24 = vld [vmem:[#allocation3 + $0x50] sm:$0xff] }
 0x1c2   : > { %11053 = vmatpush3.bf16.msra.mxu1 %v12148_v43  ;;  %v3616_v61 = vadd.f32 %v13985_v39, %v3492_v19  ;;  %v3741_v55 = vadd.f32 %v13987_v51, %v3617_v17  ;;  %v12153_v39 = vld [vmem:[%s15598_s3 + $0x380] sm:$0xff]   ;;  %v14086_v52 = vpack.c.bf16 %v14072_v32, %v13905_v28  ;;  %v12158_v17 = vld [vmem:[%s15598_s3 + $0x3e8] sm:$0xff]  }
 0x1c3   : > { %v3092_v16 = vmax.f32 %v3086_v7, %v9811_v12  ;;  %v3093_v38 = vmax.f32 %v3087_v45, %v9812_v46  ;;  %11054 = vmatprep.subr.bf16.mxu1 %v12150_v50  ;;  %v3739_v15 = vadd.f32 %v3724_v23, %v3615_v10  ;;  %v3742_v63 = vadd.f32 %v10881_v6, %v3618_v35  ;;  %v12156_v45 = vld [vmem:[%s15598_s3 + $0x3f0] sm:$0xff]  }
 0x1c4   : > { %11073 = vmatpush3.bf16.msra.mxu0 %v12149_v36  ;;  %v14049_v14 = vadd.f32 %v13993_v11, %v3741_v55  ;;  %v3740_v31 = vadd.f32 %v3727_v34, %v3616_v61  ;;  %v14076_v6 = vpack.c.bf16 %v14067_v4, %v13645_v48  ;;  %v12157_v48 = vld [vmem:[%s15598_s3 + $0x430] sm:$0xff]   ;;  %v12160_v55 = vld [vmem:[%s15598_s3 + $0x3e0] sm:$0xff]  }
 0x1c5   : > { %v3098_v9 = vmax.f32 %v3092_v16, %v9815_v30  ;;  %v3099_v20 = vmax.f32 %v3093_v38, %v9816_v57  ;;  %11074 = vmatprep.subr.bf16.mxu0 %v12151_v47  ;;  %v14054_v51 = vadd.f32 %v3848_v56, %v3739_v15  ;;  %v14056_v2 = vadd.f32 %v10901_v54, %v3742_v63  ;;  %v12161_v15 = vld [vmem:[%s15598_s3 + $0x420] sm:$0xff]  }
 0x1c6   : > { %11055 = vmatpush3.bf16.msra.mxu1 %v12150_v50  ;;  %v14058_v23 = vadd.f32 %v3851_v3, %v3740_v31  ;;  %v14082_v50 = vpack.c.bf16 %v4984_v26, %v4983_v24  ;;  %v5110_v26 = vld [vmem:[#allocation3 + $0x69] sm:$0xff] }
 0x1c7   : > { %v3100_v8 = vsel %vm2549_vm0, %v3098_v9, -inf  ;;  %v3107_v11 = vsel %vm2557_vm1, %v3098_v9, -inf  ;;  %v3114_v27 = vsel %vm2549_vm0, %v3099_v20, -inf  ;;  %v3121_v29 = vsel %vm2557_vm1, %v3099_v20, -inf  ;;  %11056 = vmatprep.subr.bf16.mxu1 %v12152_v59  ;;  %v12162_v20 = vld [vmem:[%s15598_s3 + $0x3d8] sm:$0xff]  }
 0x1c8   : > { %v3101_v60 = vrot.slane %v3100_v8, 4  ;;  %v3108_v43 = vrot.slane %v3107_v11, 4  ;;  %v3115_v56 = vrot.slane %v3114_v27, 4  ;;  %v3122_v53 = vrot.slane %v3121_v29, 4  ;;  %11075 = vmatpush3.bf16.msra.mxu0 %v12151_v47  ;;  %v12159_v47 = vld [vmem:[%s15598_s3 + $0x428] sm:$0xff]  }
 0x1c9   : > { %11076 = vmatprep.subr.bf16.mxu0 %v12153_v39  ;;  %v14164_v24 = vpack.c.bf16 %v5110_v26, %v14067_v4  ;;  %v12174_v4 = vld [vmem:[%s15598_s3 + $0x468] sm:$0xff]  }
 0x1ca   : > { %v3102_v0 = vmax.f32 %v3100_v8, %v3101_v60  ;;  %v3109_v21 = vmax.f32 %v3107_v11, %v3108_v43  ;;  %v3116_v37 = vmax.f32 %v3114_v27, %v3115_v56  ;;  %v3123_v36 = vmax.f32 %v3121_v29, %v3122_v53  ;;  %11057 = vmatpush3.bf16.msra.mxu1 %v12152_v59  ;;  %v12199_v26 = vld [vmem:[%s15598_s3 + $0x508] sm:$0xff]  }
 0x1cb   : > { %11082 = vmatprep.subr.bf16.mxu1 %v12154_v5 }
 0x1cc   : > { %v3103_v49 = vrot.slane %v3102_v0, 2  ;;  %v3110_v42 = vrot.slane %v3109_v21, 2  ;;  %v3117_v7 = vrot.slane %v3116_v37, 2  ;;  %v3124_v13 = vrot.slane %v3123_v36, 2  ;;  %11077 = vmatpush3.bf16.msra.mxu0 %v12153_v39 }
 0x1cd   : > { %11059 = vmatmul.mubr.bf16.vlgmr.msra.gmra.mxu1 %v14076_v6  ;;  %11102 = vmatprep.subr.bf16.mxu0 %v12155_v18 }
 0x1ce   : > { %v3104_v58 = vmax.f32 %v3102_v0, %v3103_v49  ;;  %v3111_v54 = vmax.f32 %v3109_v21, %v3110_v42  ;;  %v3118_v30 = vmax.f32 %v3116_v37, %v3117_v7  ;;  %v3125_v57 = vmax.f32 %v3123_v36, %v3124_v13  ;;  %11083 = vmatpush3.bf16.msra.mxu1 %v12154_v5  ;;  %v12168_v0 = vld [vmem:[%s15598_s3 + $0x3c0] sm:$0xff]   ;;  %v12170_v37 = vld [vmem:[%s15598_s3 + $0x478] sm:$0xff]   ;;  %v12172_v7 = vld [vmem:[%s15598_s3 + $0x470] sm:$0xff]  }
 0x1cf   : > { %11098 = vmatprep.mubr.bf16.mxu1 %v14082_v50  ;;  %11079 = vmatmul.mubr.bf16.vlgmr.msra.gmra.mxu0 %v14086_v52  ;;  %v12169_v21 = vld [vmem:[%s15598_s3 + $0x400] sm:$0xff]   ;;  %v12171_v36 = vld [vmem:[%s15598_s3 + $0x4b8] sm:$0xff]   ;;  %v14160_v13 = vld [vmem:[#allocation3 + $0x88] sm:$0xff] }
 0x1d0   : > { %v3105_v28 = vrot.slane %v3104_v58, 1  ;;  %v3112_v19 = vrot.slane %v3111_v54, 1  ;;  %v3119_v12 = vrot.slane %v3118_v30, 1  ;;  %v3126_v46 = vrot.slane %v3125_v57, 1  ;;  %11084 = vmatprep.subr.bf16.mxu1 %v12156_v45  ;;  %11103 = vmatpush3.bf16.msra.mxu0 %v12155_v18  ;;  %v12166_v18 = vld [vmem:[%s15598_s3 + $0x3c8] sm:$0xff]   ;;  %v14151_v49 = vld [vmem:[#allocation3] sm:$0xff] }
 0x1d1   : > { %11118 = vmatprep.mubr.bf16.mxu0 %v13668_v33  ;;  %11104 = vmatprep.subr.bf16.mxu0 %v12157_v48  ;;  %v14155_v42 = vpack.c.bf16 %v14151_v49, %v13916_v22  ;;  %v14172_v22 = vpack.c.bf16 %v14160_v13, %v14151_v49 }
 0x1d2   : > { %v3106_v10 = vmax.f32 %v3104_v58, %v3105_v28  ;;  %v3113_v35 = vmax.f32 %v3111_v54, %v3112_v19  ;;  %v3120_v34 = vmax.f32 %v3118_v30, %v3119_v12  ;;  %v3127_v61 = vmax.f32 %v3125_v57, %v3126_v46  ;;  %11085 = vmatpush3.bf16.msra.mxu1 %v12156_v45  ;;  %v12173_v45 = vld [vmem:[%s15598_s3 + $0x4b0] sm:$0xff]   ;;  %v12176_v58 = vld [vmem:[%s15598_s3 + $0x460] sm:$0xff]   ;;  %v12178_v19 = vld [vmem:[%s15598_s3 + $0x458] sm:$0xff]  }
 0x1d3   : > { %11086 = vmatprep.subr.bf16.mxu1 %v12158_v17  ;;  %v12177_v30 = vld [vmem:[%s15598_s3 + $0x4a0] sm:$0xff]  }
 0x1d4   : > { %v3128_v16 = vsel %vm2579_vm2, %v3106_v10, %v3113_v35  ;;  %11105 = vmatpush3.bf16.msra.mxu0 %v12157_v48  ;;  %v10920_v38 = vpop.f32.mrf.mxu0  ;;  %v12175_v48 = vld [vmem:[%s15598_s3 + $0x4a8] sm:$0xff]  }
 0x1d5   : > { %v3129_v59 = vsel %vm2581_vm3, %v3128_v16, %v3120_v34  ;;  %11106 = vmatprep.subr.bf16.mxu0 %v12159_v47  ;;  %v3989_v3 = vadd.f32 %v10920_v38, %v14049_v14  ;;  %v10940_v9 = vpop.f32.mrf.mxu1  ;;  %v12163_v14 = vld [vmem:[%s15598_s3 + $0x418] sm:$0xff]   ;;  %v12181_v16 = vld [vmem:[%s15598_s3 + $0x490] sm:$0xff]   ;;  %v12182_v38 = vld [vmem:[%s15598_s3 + $0x448] sm:$0xff]  }
 0x1d6   : > { %v3130_v63 = vsel %vm2583_vm4, %v3129_v59, %v3127_v61  ;;  %11087 = vmatpush3.bf16.msra.mxu1 %v12158_v17  ;;  %v3972_v31 = vpop.f32.mrf.mxu0  ;;  %v12180_v61 = vld [vmem:[%s15598_s3 + $0x450] sm:$0xff]   ;;  %v12183_v59 = vld [vmem:[%s15598_s3 + $0x488] sm:$0xff]  }
 0x1d7   : > { %3131 = vst [vmem:[#allocation3 + $0xa1] sm:$0xf] %v3130_v63  ;;  %11088 = vmatprep.subr.bf16.mxu1 %v12160_v55  ;;  %v3987_v39 = vadd.f32 %v3972_v31, %v14054_v51  ;;  %v14114_v8 = vadd.f32 %v10940_v9, %v3989_v3  ;;  %v4096_v27 = vpop.f32.mrf.mxu1  ;;  %v12164_v51 = vld [vmem:[%s15598_s3 + $0x3d0] sm:$0xff]   ;;  %v12185_v3 = vld [vmem:[%s15598_s3 + $0x480] sm:$0xff]   ;;  %v12186_v63 = vld [vmem:[%s15598_s3 + $0x4f8] sm:$0xff]  }
 0x1d8   : > { %11107 = vmatpush3.bf16.msra.mxu0 %v12159_v47  ;;  %v10921_v11 = vpop.f32.mrf.mxu0  ;;  %v12179_v47 = vld [vmem:[%s15598_s3 + $0x498] sm:$0xff]   ;;  %v5234_v31 = vld [vmem:[#allocation3 + $0x6a] sm:$0xff]  ;;  %v5479_v9 = vld [vmem:[#allocation3 + $0x81] sm:$0xff] }
 0x1d9   : > { %11108 = vmatprep.subr.bf16.mxu0 %v12161_v15  ;;  %v3990_v29 = vadd.f32 %v10921_v11, %v14056_v2  ;;  %v14120_v5 = vadd.f32 %v4096_v27, %v3987_v39  ;;  %v10941_v43 = vpop.f32.mrf.mxu1  ;;  %v12165_v2 = vld [vmem:[%s15598_s3 + $0x410] sm:$0xff]   ;;  %v12187_v39 = vld [vmem:[%s15598_s3 + $0x538] sm:$0xff]   ;;  %v14235_v11 = vpack.c.bf16 %v5234_v31, %v14072_v32  ;;  %v5603_v32 = vld [vmem:[#allocation3 + $0x82] sm:$0xff] }
 0x1da   : > { %11089 = vmatpush3.bf16.msra.mxu1 %v12160_v55  ;;  %v3975_v60 = vpop.f32.mrf.mxu0  ;;  %v12188_v27 = vld [vmem:[%s15598_s3 + $0x4f0] sm:$0xff]  }
 0x1db   : > { %11090 = vmatprep.subr.bf16.mxu1 %v12162_v20  ;;  %v14126_v56 = vadd.f32 %v3975_v60, %v14058_v23  ;;  %v14128_v53 = vadd.f32 %v10941_v43, %v3990_v29  ;;  %v12167_v23 = vld [vmem:[%s15598_s3 + $0x408] sm:$0xff]   ;;  %v4099_v17 = vpop.f32.mrf.mxu1  ;;  %v12189_v43 = vld [vmem:[%s15598_s3 + $0x530] sm:$0xff]  }
 0x1dc   : > { %11109 = vmatpush3.bf16.msra.mxu0 %v12161_v15  ;;  %v12184_v15 = vld [vmem:[%s15598_s3 + $0x440] sm:$0xff]  }
 0x1dd   : > { %11110 = vmatprep.subr.bf16.mxu0 %v12163_v14  ;;  %v4112_v10 = vadd.f32 %v4099_v17, %v14126_v56  ;;  %v12190_v56 = vld [vmem:[%s15598_s3 + $0x4e8] sm:$0xff]  }
 0x1de   : > { %11091 = vmatpush3.bf16.msra.mxu1 %v12162_v20  ;;  %v14227_v20 = vld [vmem:[#allocation3 + $0x89] sm:$0xff] }
 0x1df   : > { %11092 = vmatprep.subr.bf16.mxu1 %v12164_v51  ;;  %v14243_v29 = vpack.c.bf16 %v14227_v20, %v5479_v9  ;;  %v12212_v9 = vld [vmem:[%s15598_s3 + $0x550] sm:$0xff]  }
 0x1e0   : > { %11111 = vmatpush3.bf16.msra.mxu0 %v12163_v14  ;;  %v14240_v14 = vld [vmem:[#allocation3 + $0x8a] sm:$0xff] }
 0x1e1   : > { %11112 = vmatprep.subr.bf16.mxu0 %v12165_v2 }
 0x1e2   : > { %11093 = vmatpush3.bf16.msra.mxu1 %v12164_v51  ;;  %v14254_v51 = vpack.c.bf16 %v14240_v14, %v5603_v32  ;;  %v12213_v32 = vld [vmem:[%s15598_s3 + $0x590] sm:$0xff]  }
 0x1e3   : > { %11094 = vmatprep.subr.bf16.mxu1 %v12166_v18 }
 0x1e4   : > { %11113 = vmatpush3.bf16.msra.mxu0 %v12165_v2  ;;  %v12192_v2 = vld [vmem:[%s15598_s3 + $0x4e0] sm:$0xff]  }
 0x1e5   : > { %11114 = vmatprep.subr.bf16.mxu0 %v12167_v23 }
 0x1e6   : > { %11095 = vmatpush3.bf16.msra.mxu1 %v12166_v18  ;;  %v12193_v18 = vld [vmem:[%s15598_s3 + $0x520] sm:$0xff]  }
 0x1e7   : > { %11096 = vmatprep.subr.bf16.mxu1 %v12168_v0 }
 0x1e8   : > { %11115 = vmatpush3.bf16.msra.mxu0 %v12167_v23  ;;  %v12194_v23 = vld [vmem:[%s15598_s3 + $0x4d8] sm:$0xff]  }
 0x1e9   : > { %11116 = vmatprep.subr.bf16.mxu0 %v12169_v21 }
 0x1ea   : > { %11097 = vmatpush3.bf16.msra.mxu1 %v12168_v0  ;;  %v12195_v0 = vld [vmem:[%s15598_s3 + $0x518] sm:$0xff]  }
 0x1eb   : > { %11122 = vmatprep.subr.bf16.mxu1 %v12170_v37 }
 0x1ec   : > { %11117 = vmatpush3.bf16.msra.mxu0 %v12169_v21  ;;  %v12196_v21 = vld [vmem:[%s15598_s3 + $0x4d0] sm:$0xff]  }
 0x1ed   : > { %11099 = vmatmul.mubr.bf16.vlgmr.msra.gmra.mxu1 %v14155_v42  ;;  %11142 = vmatprep.subr.bf16.mxu0 %v12171_v36 }
 0x1ee   : > { %11123 = vmatpush3.bf16.msra.mxu1 %v12170_v37  ;;  %11138 = vmatprep.mubr.bf16.mxu1 %v13924_v25  ;;  %v12197_v37 = vld [vmem:[%s15598_s3 + $0x510] sm:$0xff]  }
 0x1ef   : > { %11119 = vmatmul.mubr.bf16.vlgmr.msra.gmra.mxu0 %v14164_v24  ;;  %11124 = vmatprep.subr.bf16.mxu1 %v12172_v7 }
 0x1f0   : > { %11143 = vmatpush3.bf16.msra.mxu0 %v12171_v36  ;;  %11158 = vmatprep.mubr.bf16.mxu0 %v14172_v22  ;;  %v12198_v36 = vld [vmem:[%s15598_s3 + $0x4c8] sm:$0xff]  }
 0x1f1   : > { %11144 = vmatprep.subr.bf16.mxu0 %v12173_v45 }
 0x1f2   : > { %11125 = vmatpush3.bf16.msra.mxu1 %v12172_v7  ;;  %v12200_v7 = vld [vmem:[%s15598_s3 + $0x4c0] sm:$0xff]  }
 0x1f3   : > { %11126 = vmatprep.subr.bf16.mxu1 %v12174_v4 }
 0x1f4   : > { %11145 = vmatpush3.bf16.msra.mxu0 %v12173_v45  ;;  %v10960_v54 = vpop.f32.mrf.mxu0  ;;  %v12201_v45 = vld [vmem:[%s15598_s3 + $0x500] sm:$0xff]  }
 0x1f5   : > { %11146 = vmatprep.subr.bf16.mxu0 %v12175_v48  ;;  %v14189_v57 = vadd.f32 %v10960_v54, %v14114_v8  ;;  %v14232_v8 = vld [vmem:[#allocation3 + $0x98] sm:$0xff] }
 0x1f6   : > { %11127 = vmatpush3.bf16.msra.mxu1 %v12174_v4  ;;  %v4220_v28 = vpop.f32.mrf.mxu0  ;;  %v12202_v4 = vld [vmem:[%s15598_s3 + $0x578] sm:$0xff]  }
 0x1f7   : > { %11128 = vmatprep.subr.bf16.mxu1 %v12176_v58  ;;  %v14195_v12 = vadd.f32 %v4220_v28, %v14120_v5  ;;  %v5357_v5 = vld [vmem:[#allocation3 + $0x90] sm:$0xff] }
 0x1f8   : > { %11147 = vmatpush3.bf16.msra.mxu0 %v12175_v48  ;;  %v10961_v46 = vpop.f32.mrf.mxu0  ;;  %v14247_v60 = vpack.c.bf16 %v14232_v8, %v5357_v5  ;;  %v14297_v48 = vld [vmem:[#allocation3 + $0x99] sm:$0xff]  ;;  %v5481_v54 = vld [vmem:[#allocation3 + $0x91] sm:$0xff] }
 0x1f9   : > { %11148 = vmatprep.subr.bf16.mxu0 %v12177_v30  ;;  %v14202_v35 = vadd.f32 %v10961_v46, %v14128_v53  ;;  %v12191_v53 = vld [vmem:[%s15598_s3 + $0x528] sm:$0xff]   ;;  %v14305_v17 = vpack.c.bf16 %v14297_v48, %v5481_v54  ;;  %v12204_v28 = vld [vmem:[%s15598_s3 + $0x570] sm:$0xff]  }
 0x1fa   : > { %11129 = vmatpush3.bf16.msra.mxu1 %v12176_v58  ;;  %v4223_v34 = vpop.f32.mrf.mxu0  ;;  %v12203_v58 = vld [vmem:[%s15598_s3 + $0x5b8] sm:$0xff]  }
 0x1fb   : > { %11130 = vmatprep.subr.bf16.mxu1 %v12178_v19  ;;  %v14207_v55 = vadd.f32 %v4223_v34, %v4112_v10  ;;  %v14313_v46 = vld [vmem:[#allocation3 + $0x92] sm:$0xff]  ;;  %v14325_v34 = vpack.c.bf16 %v5481_v54, %v14227_v20 }
 0x1fc   : > { %11149 = vmatpush3.bf16.msra.mxu0 %v12177_v30  ;;  %v14302_v30 = vld [vmem:[#allocation3 + $0x9a] sm:$0xff]  ;;  %v12205_v10 = vld [vmem:[%s15598_s3 + $0x5b0] sm:$0xff]   ;;  %v14396_v54 = vpack.c.bf16 %v14313_v46, %v14240_v14  ;;  %v12222_v14 = vld [vmem:[%s15598_s3 + $0x5e8] sm:$0xff]  }
 0x1fd   : > { %11150 = vmatprep.subr.bf16.mxu0 %v12179_v47 }
 0x1fe   : > { %11131 = vmatpush3.bf16.msra.mxu1 %v12178_v19  ;;  %v14311_v19 = vpack.c.bf16 %v5357_v5, %v14160_v13  ;;  %v12206_v13 = vld [vmem:[%s15598_s3 + $0x568] sm:$0xff]  }
 0x1ff   : > { %11132 = vmatprep.subr.bf16.mxu1 %v12180_v61 }
 0x200   : > { %11151 = vmatpush3.bf16.msra.mxu0 %v12179_v47  ;;  %v14318_v47 = vpack.c.bf16 %v14302_v30, %v14313_v46  ;;  %v12224_v46 = vld [vmem:[%s15598_s3 + $0x5e0] sm:$0xff]  }
 0x201   : > { %11152 = vmatprep.subr.bf16.mxu0 %v12181_v16 }
 0x202   : > { %11133 = vmatpush3.bf16.msra.mxu1 %v12180_v61  ;;  %v12207_v61 = vld [vmem:[%s15598_s3 + $0x5a8] sm:$0xff]  }
 0x203   : > { %11134 = vmatprep.subr.bf16.mxu1 %v12182_v38 }
 0x204   : > { %11153 = vmatpush3.bf16.msra.mxu0 %v12181_v16  ;;  %v12208_v16 = vld [vmem:[%s15598_s3 + $0x560] sm:$0xff]  }
 0x205   : > { %11154 = vmatprep.subr.bf16.mxu0 %v12183_v59 }
 0x206   : > { %11135 = vmatpush3.bf16.msra.mxu1 %v12182_v38  ;;  %v12209_v38 = vld [vmem:[%s15598_s3 + $0x5a0] sm:$0xff]  }
 0x207   : > { %11136 = vmatprep.subr.bf16.mxu1 %v12184_v15 }
 0x208   : > { %11155 = vmatpush3.bf16.msra.mxu0 %v12183_v59  ;;  %v12210_v59 = vld [vmem:[%s15598_s3 + $0x558] sm:$0xff]  }
 0x209   : > { %11156 = vmatprep.subr.bf16.mxu0 %v12185_v3 }
 0x20a   : > { %11137 = vmatpush3.bf16.msra.mxu1 %v12184_v15 }
 0x20b   : > { %11162 = vmatprep.subr.bf16.mxu1 %v12186_v63 }
 0x20c   : > { %11157 = vmatpush3.bf16.msra.mxu0 %v12185_v3  ;;  %v12211_v3 = vld [vmem:[%s15598_s3 + $0x598] sm:$0xff]  }
 0x20d   : > { %11139 = vmatmul.mubr.bf16.vlgmr.msra.gmra.mxu1 %v14235_v11  ;;  %11182 = vmatprep.subr.bf16.mxu0 %v12187_v39 }
 0x20e   : > { %11163 = vmatpush3.bf16.msra.mxu1 %v12186_v63  ;;  %11178 = vmatprep.mubr.bf16.mxu1 %v14243_v29 }
 0x20f   : > { %11159 = vmatmul.mubr.bf16.vlgmr.msra.gmra.mxu0 %v14247_v60  ;;  %11164 = vmatprep.subr.bf16.mxu1 %v12188_v27 }
 0x210   : > { %11183 = vmatpush3.bf16.msra.mxu0 %v12187_v39  ;;  %11198 = vmatprep.mubr.bf16.mxu0 %v14254_v51 }
 0x211   : > { %11184 = vmatprep.subr.bf16.mxu0 %v12189_v43 }
 0x212   : > { %11165 = vmatpush3.bf16.msra.mxu1 %v12188_v27 }
 0x213   : > { %11166 = vmatprep.subr.bf16.mxu1 %v12190_v56 }
 0x214   : > { %11185 = vmatpush3.bf16.msra.mxu0 %v12189_v43 }
 0x215   : > { %11186 = vmatprep.subr.bf16.mxu0 %v12191_v53 }
 0x216   : > { %11167 = vmatpush3.bf16.msra.mxu1 %v12190_v56 }
 0x217   : > { %11168 = vmatprep.subr.bf16.mxu1 %v12192_v2 }
 0x218   : > { %11187 = vmatpush3.bf16.msra.mxu0 %v12191_v53 }
 0x219   : > { %11188 = vmatprep.subr.bf16.mxu0 %v12193_v18 }
 0x21a   : > { %11169 = vmatpush3.bf16.msra.mxu1 %v12192_v2 }
 0x21b   : > { %11170 = vmatprep.subr.bf16.mxu1 %v12194_v23 }
 0x21c   : > { %11189 = vmatpush3.bf16.msra.mxu0 %v12193_v18 }
 0x21d   : > { %11190 = vmatprep.subr.bf16.mxu0 %v12195_v0 }
 0x21e   : > { %11171 = vmatpush3.bf16.msra.mxu1 %v12194_v23 }
 0x21f   : > { %11172 = vmatprep.subr.bf16.mxu1 %v12196_v21 }
 0x220   : > { %11191 = vmatpush3.bf16.msra.mxu0 %v12195_v0 }
 0x221   : > { %11192 = vmatprep.subr.bf16.mxu0 %v12197_v37 }
 0x222   : > { %11173 = vmatpush3.bf16.msra.mxu1 %v12196_v21 }
 0x223   : > { %11174 = vmatprep.subr.bf16.mxu1 %v12198_v36 }
 0x224   : > { %11193 = vmatpush3.bf16.msra.mxu0 %v12197_v37  ;;  %v12216_v37 = vld [vmem:[%s15598_s3 + $0x540] sm:$0xff]  }
 0x225   : > { %11194 = vmatprep.subr.bf16.mxu0 %v12199_v26 }
 0x226   : > { %11175 = vmatpush3.bf16.msra.mxu1 %v12198_v36  ;;  %v12218_v36 = vld [vmem:[%s15598_s3 + $0x5f8] sm:$0xff]  }
 0x227   : > { %11176 = vmatprep.subr.bf16.mxu1 %v12200_v7 }
 0x228   : > { %11195 = vmatpush3.bf16.msra.mxu0 %v12199_v26  ;;  %v14380_v26 = vld [vmem:[#allocation3 + $0xa0] sm:$0xff] }
 0x229   : > { %11196 = vmatprep.subr.bf16.mxu0 %v12201_v45 }
 0x22a   : > { %11177 = vmatpush3.bf16.msra.mxu1 %v12200_v7  ;;  %v12219_v7 = vld [vmem:[%s15598_s3 + $0x638] sm:$0xff]  }
 0x22b   : > { %11202 = vmatprep.subr.bf16.mxu1 %v12202_v4 }
 0x22c   : > { %11197 = vmatpush3.bf16.msra.mxu0 %v12201_v45  ;;  %v14385_v45 = vld [vmem:[#allocation3 + $0xa1] sm:$0xff] }
 0x22d   : > { %11179 = vmatmul.mubr.bf16.vlgmr.msra.gmra.mxu1 %v14305_v17  ;;  %11222 = vmatprep.subr.bf16.mxu0 %v12203_v58 }
 0x22e   : > { %11203 = vmatpush3.bf16.msra.mxu1 %v12202_v4  ;;  %11218 = vmatprep.mubr.bf16.mxu1 %v14311_v19  ;;  %v14389_v4 = vpack.c.bf16 %v14380_v26, %v14232_v8  ;;  %v12221_v8 = vld [vmem:[%s15598_s3 + $0x630] sm:$0xff]  }
 0x22f   : > { %11199 = vmatmul.mubr.bf16.vlgmr.msra.gmra.mxu0 %v14318_v47  ;;  %11204 = vmatprep.subr.bf16.mxu1 %v12204_v28 }
 0x230   : > { %11223 = vmatpush3.bf16.msra.mxu0 %v12203_v58  ;;  %11238 = vmatprep.mubr.bf16.mxu0 %v14325_v34  ;;  %v12220_v58 = vld [vmem:[%s15598_s3 + $0x5f0] sm:$0xff]  }
 0x231   : > { %11224 = vmatprep.subr.bf16.mxu0 %v12205_v10 }
 0x232   : > { %11205 = vmatpush3.bf16.msra.mxu1 %v12204_v28  ;;  %v14401_v28 = vpack.c.bf16 %v14385_v45, %v14297_v48  ;;  %v12223_v48 = vld [vmem:[%s15598_s3 + $0x628] sm:$0xff]  }
 0x233   : > { %11206 = vmatprep.subr.bf16.mxu1 %v12206_v13 }
 0x234   : > { %11225 = vmatpush3.bf16.msra.mxu0 %v12205_v10  ;;  %v12225_v10 = vld [vmem:[%s15598_s3 + $0x620] sm:$0xff]  }
 0x235   : > { %11226 = vmatprep.subr.bf16.mxu0 %v12207_v61 }
 0x236   : > { %11207 = vmatpush3.bf16.msra.mxu1 %v12206_v13  ;;  %v12226_v13 = vld [vmem:[%s15598_s3 + $0x5d8] sm:$0xff]  }
 0x237   : > { %11208 = vmatprep.subr.bf16.mxu1 %v12208_v16 }
 0x238   : > { %11227 = vmatpush3.bf16.msra.mxu0 %v12207_v61  ;;  %v10980_v15 = vpop.f32.mrf.mxu1  ;;  %v12227_v61 = vld [vmem:[%s15598_s3 + $0x618] sm:$0xff]  }
 0x239   : > { %11228 = vmatprep.subr.bf16.mxu0 %v12209_v38  ;;  %v4361_v63 = vadd.f32 %v10980_v15, %v14189_v57  ;;  %v12231_v15 = vld [vmem:[%s15598_s3 + $0x608] sm:$0xff]  }
 0x23a   : > { %11209 = vmatpush3.bf16.msra.mxu1 %v12208_v16  ;;  %v4344_v31 = vpop.f32.mrf.mxu1  ;;  %v12228_v16 = vld [vmem:[%s15598_s3 + $0x5d0] sm:$0xff]  }
 0x23b   : > { %11210 = vmatprep.subr.bf16.mxu1 %v12210_v59  ;;  %v4359_v20 = vadd.f32 %v4344_v31, %v14195_v12  ;;  %v11000_v39 = vpop.f32.mrf.mxu0  ;;  %v12214_v12 = vld [vmem:[%s15598_s3 + $0x548] sm:$0xff]   ;;  %v12234_v31 = vld [vmem:[%s15598_s3 + $0x678] sm:$0xff]  }
 0x23c   : > { %11229 = vmatpush3.bf16.msra.mxu0 %v12209_v38  ;;  %v14352_v27 = vadd.f32 %v11000_v39, %v4361_v63  ;;  %v10981_v5 = vpop.f32.mrf.mxu1  ;;  %v12229_v38 = vld [vmem:[%s15598_s3 + $0x610] sm:$0xff]   ;;  %v12233_v63 = vld [vmem:[%s15598_s3 + $0x600] sm:$0xff]  }
 0x23d   : > { %11230 = vmatprep.subr.bf16.mxu0 %v12211_v3  ;;  %v4362_v57 = vadd.f32 %v10981_v5, %v14202_v35  ;;  %v4468_v43 = vpop.f32.mrf.mxu0  ;;  %v12215_v35 = vld [vmem:[%s15598_s3 + $0x588] sm:$0xff]   ;;  %v12236_v5 = vld [vmem:[%s15598_s3 + $0x670] sm:$0xff]  }
 0x23e   : > { %11211 = vmatpush3.bf16.msra.mxu1 %v12210_v59  ;;  %v14358_v56 = vadd.f32 %v4468_v43, %v4359_v20  ;;  %v4347_v53 = vpop.f32.mrf.mxu1  ;;  %v12230_v59 = vld [vmem:[%s15598_s3 + $0x5c8] sm:$0xff]   ;;  %v12235_v20 = vld [vmem:[%s15598_s3 + $0x6b8] sm:$0xff]   ;;  %v12237_v43 = vld [vmem:[%s15598_s3 + $0x6b0] sm:$0xff]  }
 0x23f   : > { %11212 = vmatprep.subr.bf16.mxu1 %v12212_v9  ;;  %v4360_v2 = vadd.f32 %v4347_v53, %v14207_v55  ;;  %v11001_v18 = vpop.f32.mrf.mxu0  ;;  %v12217_v55 = vld [vmem:[%s15598_s3 + $0x580] sm:$0xff]  }
 0x240   : > { %11231 = vmatpush3.bf16.msra.mxu0 %v12211_v3  ;;  %v14364_v23 = vadd.f32 %v11001_v18, %v4362_v57  ;;  %v12232_v3 = vld [vmem:[%s15598_s3 + $0x5c0] sm:$0xff]   ;;  %v14463_v57 = vpack.c.bf16 %v14151_v49, %v14380_v26  ;;  %v12238_v49 = vld [vmem:[%s15598_s3 + $0x668] sm:$0xff]  }
 0x241   : > { %11232 = vmatprep.subr.bf16.mxu0 %v12213_v32  ;;  %v4471_v0 = vpop.f32.mrf.mxu0 }
 0x242   : > { %11213 = vmatpush3.bf16.msra.mxu1 %v12212_v9  ;;  %v14369_v21 = vadd.f32 %v4471_v0, %v4360_v2  ;;  %v14448_v9 = vld [vmem:[#allocation3 + $0xa2] sm:$0xff] }
 0x243   : > { %11214 = vmatprep.subr.bf16.mxu1 %v12214_v12  ;;  %v14455_v39 = vpack.c.bf16 %v14448_v9, %v14302_v30  ;;  %v12239_v0 = vld [vmem:[%s15598_s3 + $0x6a8] sm:$0xff]  }
 0x244   : > { %11233 = vmatpush3.bf16.msra.mxu0 %v12213_v32 }
 0x245   : > { %11234 = vmatprep.subr.bf16.mxu0 %v12215_v35 }
 0x246   : > { %11215 = vmatpush3.bf16.msra.mxu1 %v12214_v12 }
 0x247   : > { %11216 = vmatprep.subr.bf16.mxu1 %v12216_v37 }
 0x248   : > { %11235 = vmatpush3.bf16.msra.mxu0 %v12215_v35 }
 0x249   : > { %11236 = vmatprep.subr.bf16.mxu0 %v12217_v55 }
 0x24a   : > { %11217 = vmatpush3.bf16.msra.mxu1 %v12216_v37 }
 0x24b   : > { %11242 = vmatprep.subr.bf16.mxu1 %v12218_v36 }
 0x24c   : > { %11237 = vmatpush3.bf16.msra.mxu0 %v12217_v55 }
 0x24d   : > { %11219 = vmatmul.mubr.bf16.vlgmr.msra.gmra.mxu1 %v14389_v4  ;;  %11262 = vmatprep.subr.bf16.mxu0 %v12219_v7 }
 0x24e   : > { %11243 = vmatpush3.bf16.msra.mxu1 %v12218_v36  ;;  %11258 = vmatprep.mubr.bf16.mxu1 %v14396_v54 }
 0x24f   : > { %11239 = vmatmul.mubr.bf16.vlgmr.msra.gmra.mxu0 %v14401_v28  ;;  %11244 = vmatprep.subr.bf16.mxu1 %v12220_v58 }
 0x250   : > { %11263 = vmatpush3.bf16.msra.mxu0 %v12219_v7  ;;  %11278 = vmatprep.mubr.bf16.mxu0 %v14247_v60 }
 0x251   : > { %11264 = vmatprep.subr.bf16.mxu0 %v12221_v8 }
 0x252   : > { %11245 = vmatpush3.bf16.msra.mxu1 %v12220_v58 }
 0x253   : > { %11246 = vmatprep.subr.bf16.mxu1 %v12222_v14 }
 0x254   : > { %11265 = vmatpush3.bf16.msra.mxu0 %v12221_v8 }
 0x255   : > { %11266 = vmatprep.subr.bf16.mxu0 %v12223_v48 }
 0x256   : > { %11247 = vmatpush3.bf16.msra.mxu1 %v12222_v14  ;;  %v12241_v14 = vld [vmem:[%s15598_s3 + $0x6a0] sm:$0xff]  }
 0x257   : > { %11248 = vmatprep.subr.bf16.mxu1 %v12224_v46 }
 0x258   : > { %11267 = vmatpush3.bf16.msra.mxu0 %v12223_v48  ;;  %v12242_v48 = vld [vmem:[%s15598_s3 + $0x658] sm:$0xff]  }
 0x259   : > { %11268 = vmatprep.subr.bf16.mxu0 %v12225_v10 }
 0x25a   : > { %11249 = vmatpush3.bf16.msra.mxu1 %v12224_v46  ;;  %v12244_v46 = vld [vmem:[%s15598_s3 + $0x650] sm:$0xff]  }
 0x25b   : > { %11250 = vmatprep.subr.bf16.mxu1 %v12226_v13 }
 0x25c   : > { %11269 = vmatpush3.bf16.msra.mxu0 %v12225_v10  ;;  %v12245_v10 = vld [vmem:[%s15598_s3 + $0x690] sm:$0xff]  }
 0x25d   : > { %11270 = vmatprep.subr.bf16.mxu0 %v12227_v61 }
 0x25e   : > { %11251 = vmatpush3.bf16.msra.mxu1 %v12226_v13  ;;  %v12246_v13 = vld [vmem:[%s15598_s3 + $0x648] sm:$0xff]  }
 0x25f   : > { %11252 = vmatprep.subr.bf16.mxu1 %v12228_v16 }
 0x260   : > { %11271 = vmatpush3.bf16.msra.mxu0 %v12227_v61  ;;  %v12247_v61 = vld [vmem:[%s15598_s3 + $0x688] sm:$0xff]  }
 0x261   : > { %11272 = vmatprep.subr.bf16.mxu0 %v12229_v38 }
 0x262   : > { %11253 = vmatpush3.bf16.msra.mxu1 %v12228_v16  ;;  %v12248_v16 = vld [vmem:[%s15598_s3 + $0x640] sm:$0xff]  }
 0x263   : > { %11254 = vmatprep.subr.bf16.mxu1 %v12230_v59 }
 0x264   : > { %11273 = vmatpush3.bf16.msra.mxu0 %v12229_v38  ;;  %v12249_v38 = vld [vmem:[%s15598_s3 + $0x680] sm:$0xff]  }
 0x265   : > { %11274 = vmatprep.subr.bf16.mxu0 %v12231_v15 }
 0x266   : > { %11255 = vmatpush3.bf16.msra.mxu1 %v12230_v59  ;;  %v6226_v59 = vld [vmem:[#allocation3 + $0xa9] sm:$0xff] }
 0x267   : > { %11256 = vmatprep.subr.bf16.mxu1 %v12232_v3 }
 0x268   : > { %11275 = vmatpush3.bf16.msra.mxu0 %v12231_v15  ;;  %v6350_v15 = vld [vmem:[#allocation3 + $0xaa] sm:$0xff] }
 0x269   : > { %11276 = vmatprep.subr.bf16.mxu0 %v12233_v63 }
 0x26a   : > { %11257 = vmatpush3.bf16.msra.mxu1 %v12232_v3  ;;  %v14514_v3 = vpack.c.bf16 %v6226_v59, %v14385_v45  ;;  %v12272_v59 = vld [vmem:[%s15598_s3 + $0xf8] sm:$0xff]  }
 0x26b   : > { %11282 = vmatprep.subr.bf16.mxu1 %v12234_v31 }
 0x26c   : > { %11277 = vmatpush3.bf16.msra.mxu0 %v12233_v63  ;;  %v12255_v63 = vld [vmem:[%s15598_s3 + $0x78] sm:$0xff]  }
 0x26d   : > { %v11020_v32 = vpop.f32.mrf.mxu1  ;;  %11259 = vmatmul.mubr.bf16.vlgmr.msra.gmra.mxu1 %v14455_v39  ;;  %11302 = vmatprep.subr.bf16.mxu0 %v12235_v20 }
 0x26e   : > { %v4609_v30 = vadd.f32 %v11020_v32, %v14352_v27  ;;  %11283 = vmatpush3.bf16.msra.mxu1 %v12234_v31  ;;  %11298 = vmatprep.mubr.bf16.mxu1 %v14305_v17 }
 0x26f   : > { %v4592_v53 = vpop.f32.mrf.mxu1  ;;  %v11040_v12 = vpop.f32.mrf.mxu0  ;;  %11279 = vmatmul.mubr.bf16.vlgmr.msra.gmra.mxu0 %v14463_v57  ;;  %11284 = vmatprep.subr.bf16.mxu1 %v12236_v5 }
 0x270   : > { %v4607_v2 = vadd.f32 %v4592_v53, %v14358_v56  ;;  %v4733_v18 = vadd.f32 %v11040_v12, %v4609_v30  ;;  %11303 = vmatpush3.bf16.msra.mxu0 %v12235_v20  ;;  %11318 = vmatprep.mubr.bf16.mxu0 %v14318_v47  ;;  %v12240_v56 = vld [vmem:[%s15598_s3 + $0x660] sm:$0xff]   ;;  %v14521_v20 = vpack.c.bf16 %v6350_v15, %v14448_v9  ;;  %v12257_v30 = vld [vmem:[%s15598_s3 + $0x70] sm:$0xff]  }
 0x271   : > { %v11021_v35 = vpop.f32.mrf.mxu1  ;;  %v4716_v27 = vpop.f32.mrf.mxu0  ;;  %11304 = vmatprep.subr.bf16.mxu0 %v12237_v43  ;;  %v15622_v12 = vld [vmem:[#allocation8_spill] sm:$0xff] }
 0x272   : > { %v4610_v37 = vadd.f32 %v11021_v35, %v14364_v23  ;;  %v4731_v55 = vadd.f32 %v4716_v27, %v4607_v2  ;;  %11285 = vmatpush3.bf16.msra.mxu1 %v12236_v5  ;;  %v12256_v5 = vld [vmem:[%s15598_s3 + $0x38] sm:$0xff]  }
 0x273   : > { %v4595_v36 = vpop.f32.mrf.mxu1  ;;  %v11041_v26 = vpop.f32.mrf.mxu0  ;;  %11286 = vmatprep.subr.bf16.mxu1 %v12238_v49 }
 0x274   : > { %v4608_v7 = vadd.f32 %v4595_v36, %v14369_v21  ;;  %v4734_v58 = vadd.f32 %v11041_v26, %v4610_v37  ;;  %11305 = vmatpush3.bf16.msra.mxu0 %v12237_v43  ;;  %v12243_v21 = vld [vmem:[%s15598_s3 + $0x698] sm:$0xff]   ;;  %v12259_v37 = vld [vmem:[%s15598_s3 + $0x68] sm:$0xff]  }
 0x275   : > { %v4719_v8 = vpop.f32.mrf.mxu0  ;;  %11306 = vmatprep.subr.bf16.mxu0 %v12239_v0 }
 0x276   : > { %v14487_v23 = vadd.f32 %v4719_v8, %v4608_v7  ;;  %11287 = vmatpush3.bf16.msra.mxu1 %v12238_v49  ;;  %v12262_v8 = vld [vmem:[%s15598_s3 + $0x20] sm:$0xff]  }
 0x277   : > { %11288 = vmatprep.subr.bf16.mxu1 %v12240_v56 }
 0x278   : > { %11307 = vmatpush3.bf16.msra.mxu0 %v12239_v0 }
 0x279   : > { %11308 = vmatprep.subr.bf16.mxu0 %v12241_v14 }
 0x27a   : > { %11289 = vmatpush3.bf16.msra.mxu1 %v12240_v56  ;;  %v12260_v56 = vld [vmem:[%s15598_s3 + $0x28] sm:$0xff]  }
 0x27b   : > { %11290 = vmatprep.subr.bf16.mxu1 %v12242_v48 }
 0x27c   : > { %11309 = vmatpush3.bf16.msra.mxu0 %v12241_v14  ;;  %v12263_v14 = vld [vmem:[%s15598_s3 + $0x58] sm:$0xff]  }
 0x27d   : > { %11310 = vmatprep.subr.bf16.mxu0 %v12243_v21 }
 0x27e   : > { %11291 = vmatpush3.bf16.msra.mxu1 %v12242_v48  ;;  %v12265_v48 = vld [vmem:[%s15598_s3 + $0x50] sm:$0xff]  }
 0x27f   : > { %11292 = vmatprep.subr.bf16.mxu1 %v12244_v46 }
 0x280   : > { %11311 = vmatpush3.bf16.msra.mxu0 %v12243_v21  ;;  %v12266_v21 = vld [vmem:[%s15598_s3 + $0x10] sm:$0xff]  }
 0x281   : > { %11312 = vmatprep.subr.bf16.mxu0 %v12245_v10 }
 0x282   : > { %11293 = vmatpush3.bf16.msra.mxu1 %v12244_v46  ;;  %v12267_v46 = vld [vmem:[%s15598_s3 + $0x48] sm:$0xff]  }
 0x283   : > { %11294 = vmatprep.subr.bf16.mxu1 %v12246_v13 }
 0x284   : > { %11313 = vmatpush3.bf16.msra.mxu0 %v12245_v10  ;;  %v12268_v10 = vld [vmem:[%s15598_s3 + $0x8] sm:$0xff]  }
 0x285   : > { %11314 = vmatprep.subr.bf16.mxu0 %v12247_v61 }
 0x286   : > { %11295 = vmatpush3.bf16.msra.mxu1 %v12246_v13  ;;  %v12269_v13 = vld [vmem:[%s15598_s3 + $0x40] sm:$0xff]  }
 0x287   : > { %11296 = vmatprep.subr.bf16.mxu1 %v12248_v16 }
 0x288   : > { %11315 = vmatpush3.bf16.msra.mxu0 %v12247_v61  ;;  %v12270_v61 = vld [vmem:[%s15598_s3] sm:$0xff]  }
 0x289   : > { %11316 = vmatprep.subr.bf16.mxu0 %v12249_v38 }
 0x28a   : > { %11297 = vmatpush3.bf16.msra.mxu1 %v12248_v16  ;;  %v12271_v16 = vld [vmem:[%s15598_s3 + $0xb8] sm:$0xff]  }
 0x28b   : > { %11322 = vmatprep.subr.bf16.mxu1 %v12255_v63 }
 0x28c   : > { %11317 = vmatpush3.bf16.msra.mxu0 %v12249_v38 }
 0x28d   : > { %v11060_v31 = vpop.f32.mrf.mxu1  ;;  %11299 = vmatmul.mubr.bf16.vlgmr.msra.gmra.mxu1 %v14514_v3  ;;  %11342 = vmatprep.subr.bf16.mxu0 %v12256_v5 }
 0x28e   : > { %v4857_v32 = vadd.f32 %v11060_v31, %v4733_v18  ;;  %11323 = vmatpush3.bf16.msra.mxu1 %v12255_v63  ;;  %11338 = vmatprep.mubr.bf16.mxu1 %v13500_v41  ;;  %v12258_v41 = vld [vmem:[%s15598_s3 + $0x30] sm:$0xff]  }
 0x28f   : > { %v4840_v45 = vpop.f32.mrf.mxu1  ;;  %v11080_v43 = vpop.f32.mrf.mxu0  ;;  %11319 = vmatmul.mubr.bf16.vlgmr.msra.gmra.mxu0 %v14521_v20  ;;  %11324 = vmatprep.subr.bf16.mxu1 %v12257_v30 }
 0x290   : > { %v4855_v9 = vadd.f32 %v4840_v45, %v4731_v55  ;;  %v4981_v53 = vadd.f32 %v11080_v43, %v4857_v32  ;;  %11343 = vmatpush3.bf16.msra.mxu0 %v12256_v5  ;;  %11358 = vmatprep.mubr.bf16.mxu0 %v15622_v12  ;;  %v15623_v5 = vld [vmem:[#allocation10_spill] sm:$0xff]  ;;  %v12273_v32 = vld [vmem:[%s15598_s3 + $0xb0] sm:$0xff]  }
 0x291   : > { %v11061_v49 = vpop.f32.mrf.mxu1  ;;  %v4964_v2 = vpop.f32.mrf.mxu0  ;;  %11344 = vmatprep.subr.bf16.mxu0 %v12258_v41 }
 0x292   : > { %v4858_v18 = vadd.f32 %v11061_v49, %v4734_v58  ;;  %v4979_v35 = vadd.f32 %v4964_v2, %v4855_v9  ;;  %11325 = vmatpush3.bf16.msra.mxu1 %v12257_v30  ;;  %v12261_v58 = vld [vmem:[%s15598_s3 + $0x60] sm:$0xff]   ;;  %v15624_v30 = vld [vmem:[#allocation9_spill] sm:$0xff] }
 0x293   : > { %v4843_v27 = vpop.f32.mrf.mxu1  ;;  %v11081_v0 = vpop.f32.mrf.mxu0  ;;  %11326 = vmatprep.subr.bf16.mxu1 %v12259_v37 }
 0x294   : > { %v4856_v55 = vadd.f32 %v4843_v27, %v14487_v23  ;;  %v4982_v36 = vadd.f32 %v11081_v0, %v4858_v18  ;;  %11345 = vmatpush3.bf16.msra.mxu0 %v12258_v41  ;;  %v12264_v23 = vld [vmem:[%s15598_s3 + $0x18] sm:$0xff]   ;;  %v12275_v18 = vld [vmem:[%s15598_s3 + $0xa8] sm:$0xff]  }
 0x295   : > { %v4967_v26 = vpop.f32.mrf.mxu0  ;;  %11346 = vmatprep.subr.bf16.mxu0 %v12260_v56 }
 0x296   : > { %v4980_v7 = vadd.f32 %v4967_v26, %v4856_v55  ;;  %11327 = vmatpush3.bf16.msra.mxu1 %v12259_v37  ;;  %v12276_v37 = vld [vmem:[%s15598_s3 + $0xe8] sm:$0xff]   ;;  %v12278_v26 = vld [vmem:[%s15598_s3 + $0xe0] sm:$0xff]  }
 0x297   : > { %11328 = vmatprep.subr.bf16.mxu1 %v12261_v58 }
 0x298   : > { %11347 = vmatpush3.bf16.msra.mxu0 %v12260_v56  ;;  %v12279_v56 = vld [vmem:[%s15598_s3 + $0x98] sm:$0xff]  }
 0x299   : > { %11348 = vmatprep.subr.bf16.mxu0 %v12262_v8 }
 0x29a   : > { %11329 = vmatpush3.bf16.msra.mxu1 %v12261_v58  ;;  %v12281_v58 = vld [vmem:[%s15598_s3 + $0x90] sm:$0xff]  }
 0x29b   : > { %11330 = vmatprep.subr.bf16.mxu1 %v12263_v14 }
 0x29c   : > { %11349 = vmatpush3.bf16.msra.mxu0 %v12262_v8  ;;  %v12282_v8 = vld [vmem:[%s15598_s3 + $0xd0] sm:$0xff]  }
 0x29d   : > { %11350 = vmatprep.subr.bf16.mxu0 %v12264_v23 }
 0x29e   : > { %11331 = vmatpush3.bf16.msra.mxu1 %v12263_v14  ;;  %v12283_v14 = vld [vmem:[%s15598_s3 + $0x88] sm:$0xff]  }
 0x29f   : > { %11332 = vmatprep.subr.bf16.mxu1 %v12265_v48 }
 0x2a0   : > { %11351 = vmatpush3.bf16.msra.mxu0 %v12264_v23  ;;  %v12284_v23 = vld [vmem:[%s15598_s3 + $0xc8] sm:$0xff]  }
 0x2a1   : > { %11352 = vmatprep.subr.bf16.mxu0 %v12266_v21 }
 0x2a2   : > { %11333 = vmatpush3.bf16.msra.mxu1 %v12265_v48  ;;  %v12285_v48 = vld [vmem:[%s15598_s3 + $0x80] sm:$0xff]  }
 0x2a3   : > { %11334 = vmatprep.subr.bf16.mxu1 %v12267_v46 }
 0x2a4   : > { %11353 = vmatpush3.bf16.msra.mxu0 %v12266_v21  ;;  %v12286_v21 = vld [vmem:[%s15598_s3 + $0xc0] sm:$0xff]  }
 0x2a5   : > { %11354 = vmatprep.subr.bf16.mxu0 %v12268_v10 }
 0x2a6   : > { %11335 = vmatpush3.bf16.msra.mxu1 %v12267_v46  ;;  %v12287_v46 = vld [vmem:[%s15598_s3 + $0x138] sm:$0xff]  }
 0x2a7   : > { %11336 = vmatprep.subr.bf16.mxu1 %v12269_v13 }
 0x2a8   : > { %11355 = vmatpush3.bf16.msra.mxu0 %v12268_v10 }
 0x2a9   : > { %11356 = vmatprep.subr.bf16.mxu0 %v12270_v61 }
 0x2aa   : > { %11337 = vmatpush3.bf16.msra.mxu1 %v12269_v13  ;;  %v12288_v13 = vld [vmem:[%s15598_s3 + $0x178] sm:$0xff]  }
 0x2ab   : > { %11362 = vmatprep.subr.bf16.mxu1 %v12271_v16 }
 0x2ac   : > { %11357 = vmatpush3.bf16.msra.mxu0 %v12270_v61 }
 0x2ad   : > { %v11100_v38 = vpop.f32.mrf.mxu1  ;;  %11339 = vmatmul.mubr.bf16.vlgmr.msra.gmra.mxu1 %v13668_v33  ;;  %11382 = vmatprep.subr.bf16.mxu0 %v12272_v59 }
 0x2ae   : > { %v5105_v15 = vadd.f32 %v11100_v38, %v4981_v53  ;;  %11363 = vmatpush3.bf16.msra.mxu1 %v12271_v16  ;;  %11378 = vmatprep.mubr.bf16.mxu1 %v13664_v1  ;;  %v12274_v1 = vld [vmem:[%s15598_s3 + $0xf0] sm:$0xff]  }
 0x2af   : > { %v5088_v63 = vpop.f32.mrf.mxu1  ;;  %v11120_v31 = vpop.f32.mrf.mxu0  ;;  %11359 = vmatmul.mubr.bf16.vlgmr.msra.gmra.mxu0 %v15623_v5  ;;  %11364 = vmatprep.subr.bf16.mxu1 %v12273_v32 }
 0x2b0   : > { %v5103_v45 = vadd.f32 %v5088_v63, %v4979_v35  ;;  %v5229_v43 = vadd.f32 %v11120_v31, %v5105_v15  ;;  %11383 = vmatpush3.bf16.msra.mxu0 %v12272_v59  ;;  %11398 = vmatprep.mubr.bf16.mxu0 %v15624_v30  ;;  %v12289_v59 = vld [vmem:[%s15598_s3 + $0x130] sm:$0xff]   ;;  %v12291_v30 = vld [vmem:[%s15598_s3 + $0x128] sm:$0xff]  }
 0x2b1   : > { %v11101_v9 = vpop.f32.mrf.mxu1  ;;  %v5212_v12 = vpop.f32.mrf.mxu0  ;;  %11384 = vmatprep.subr.bf16.mxu0 %v12274_v1 }
 0x2b2   : > { %v5106_v53 = vadd.f32 %v11101_v9, %v4982_v36  ;;  %v5227_v49 = vadd.f32 %v5212_v12, %v5103_v45  ;;  %11365 = vmatpush3.bf16.msra.mxu1 %v12273_v32  ;;  %v12277_v36 = vld [vmem:[%s15598_s3 + $0xa0] sm:$0xff]  }
 0x2b3   : > { %v5091_v2 = vpop.f32.mrf.mxu1  ;;  %v11121_v41 = vpop.f32.mrf.mxu0  ;;  %11366 = vmatprep.subr.bf16.mxu1 %v12275_v18 }
 0x2b4   : > { %v5104_v35 = vadd.f32 %v5091_v2, %v4980_v7  ;;  %v5230_v27 = vadd.f32 %v11121_v41, %v5106_v53  ;;  %11385 = vmatpush3.bf16.msra.mxu0 %v12274_v1  ;;  %v12280_v7 = vld [vmem:[%s15598_s3 + $0xd8] sm:$0xff]   ;;  %v12292_v1 = vld [vmem:[%s15598_s3 + $0x168] sm:$0xff]   ;;  %v12294_v2 = vld [vmem:[%s15598_s3 + $0x160] sm:$0xff]  }
 0x2b5   : > { %v5215_v0 = vpop.f32.mrf.mxu0  ;;  %11386 = vmatprep.subr.bf16.mxu0 %v12276_v37  ;;  %v12295_v41 = vld [vmem:[%s15598_s3 + $0x118] sm:$0xff]  }
 0x2b6   : > { %v5228_v55 = vadd.f32 %v5215_v0, %v5104_v35  ;;  %11367 = vmatpush3.bf16.msra.mxu1 %v12275_v18  ;;  %v12296_v18 = vld [vmem:[%s15598_s3 + $0x158] sm:$0xff]   ;;  %v12297_v35 = vld [vmem:[%s15598_s3 + $0x110] sm:$0xff]   ;;  %v12299_v0 = vld [vmem:[%s15598_s3 + $0x108] sm:$0xff]  }
 0x2b7   : > { %11368 = vmatprep.subr.bf16.mxu1 %v12277_v36 }
 0x2b8   : > { %11387 = vmatpush3.bf16.msra.mxu0 %v12276_v37  ;;  %v12300_v37 = vld [vmem:[%s15598_s3 + $0x148] sm:$0xff]  }
 0x2b9   : > { %11388 = vmatprep.subr.bf16.mxu0 %v12278_v26 }
 0x2ba   : > { %11369 = vmatpush3.bf16.msra.mxu1 %v12277_v36  ;;  %v12302_v36 = vld [vmem:[%s15598_s3 + $0x140] sm:$0xff]  }
 0x2bb   : > { %11370 = vmatprep.subr.bf16.mxu1 %v12279_v56 }
 0x2bc   : > { %11389 = vmatpush3.bf16.msra.mxu0 %v12278_v26  ;;  %v12303_v26 = vld [vmem:[%s15598_s3 + $0x1b8] sm:$0xff]  }
 0x2bd   : > { %11390 = vmatprep.subr.bf16.mxu0 %v12280_v7 }
 0x2be   : > { %11371 = vmatpush3.bf16.msra.mxu1 %v12279_v56 }
 0x2bf   : > { %11372 = vmatprep.subr.bf16.mxu1 %v12281_v58 }
 0x2c0   : > { %11391 = vmatpush3.bf16.msra.mxu0 %v12280_v7  ;;  %v12304_v7 = vld [vmem:[%s15598_s3 + $0x1f8] sm:$0xff]  }
 0x2c1   : > { %11392 = vmatprep.subr.bf16.mxu0 %v12282_v8 }
 0x2c2   : > { %11373 = vmatpush3.bf16.msra.mxu1 %v12281_v58 }
 0x2c3   : > { %11374 = vmatprep.subr.bf16.mxu1 %v12283_v14 }
 0x2c4   : > { %11393 = vmatpush3.bf16.msra.mxu0 %v12282_v8 }
 0x2c5   : > { %11394 = vmatprep.subr.bf16.mxu0 %v12284_v23 }
 0x2c6   : > { %11375 = vmatpush3.bf16.msra.mxu1 %v12283_v14 }
 0x2c7   : > { %11376 = vmatprep.subr.bf16.mxu1 %v12285_v48 }
 0x2c8   : > { %11395 = vmatpush3.bf16.msra.mxu0 %v12284_v23  ;;  %v12305_v23 = vld [vmem:[%s15598_s3 + $0x1b0] sm:$0xff]  }
 0x2c9   : > { %11396 = vmatprep.subr.bf16.mxu0 %v12286_v21 }
 0x2ca   : > { %11377 = vmatpush3.bf16.msra.mxu1 %v12285_v48 }
 0x2cb   : > { %11402 = vmatprep.subr.bf16.mxu1 %v12287_v46 }
 0x2cc   : > { %11397 = vmatpush3.bf16.msra.mxu0 %v12286_v21 }
 0x2cd   : > { %v11140_v10 = vpop.f32.mrf.mxu1  ;;  %11379 = vmatmul.mubr.bf16.vlgmr.msra.gmra.mxu1 %v13924_v25  ;;  %11422 = vmatprep.subr.bf16.mxu0 %v12288_v13 }
 0x2ce   : > { %v5353_v61 = vadd.f32 %v11140_v10, %v5229_v43  ;;  %11403 = vmatpush3.bf16.msra.mxu1 %v12287_v46  ;;  %11418 = vmatprep.mubr.bf16.mxu1 %v13932_v62  ;;  %v12290_v62 = vld [vmem:[%s15598_s3 + $0x170] sm:$0xff]  }
 0x2cf   : > { %v5336_v16 = vpop.f32.mrf.mxu1  ;;  %v11160_v38 = vpop.f32.mrf.mxu0  ;;  %11399 = vmatmul.mubr.bf16.vlgmr.msra.gmra.mxu0 %v13943_v44  ;;  %11404 = vmatprep.subr.bf16.mxu1 %v12289_v59 }
 0x2d0   : > { %v5351_v15 = vadd.f32 %v5336_v16, %v5227_v49  ;;  %v5477_v63 = vadd.f32 %v11160_v38, %v5353_v61  ;;  %11423 = vmatpush3.bf16.msra.mxu0 %v12288_v13  ;;  %11438 = vmatprep.mubr.bf16.mxu0 %v13997_v40  ;;  %v12293_v49 = vld [vmem:[%s15598_s3 + $0x120] sm:$0xff]   ;;  %v12307_v16 = vld [vmem:[%s15598_s3 + $0x1a8] sm:$0xff]  }
 0x2d1   : > { %v11141_v31 = vpop.f32.mrf.mxu1  ;;  %v5460_v5 = vpop.f32.mrf.mxu0  ;;  %11424 = vmatprep.subr.bf16.mxu0 %v12290_v62 }
 0x2d2   : > { %v5354_v32 = vadd.f32 %v11141_v31, %v5230_v27  ;;  %v5475_v45 = vadd.f32 %v5460_v5, %v5351_v15  ;;  %11405 = vmatpush3.bf16.msra.mxu1 %v12289_v59  ;;  %v12298_v27 = vld [vmem:[%s15598_s3 + $0x150] sm:$0xff]   ;;  %v12308_v15 = vld [vmem:[%s15598_s3 + $0x1e8] sm:$0xff]   ;;  %v12309_v31 = vld [vmem:[%s15598_s3 + $0x1a0] sm:$0xff]  }
 0x2d3   : > { %v5339_v44 = vpop.f32.mrf.mxu1  ;;  %v11161_v43 = vpop.f32.mrf.mxu0  ;;  %11406 = vmatprep.subr.bf16.mxu1 %v12291_v30  ;;  %v12310_v5 = vld [vmem:[%s15598_s3 + $0x1e0] sm:$0xff]  }
 0x2d4   : > { %v5352_v9 = vadd.f32 %v5339_v44, %v5228_v55  ;;  %v5478_v12 = vadd.f32 %v11161_v43, %v5354_v32  ;;  %11425 = vmatpush3.bf16.msra.mxu0 %v12290_v62  ;;  %v12301_v55 = vld [vmem:[%s15598_s3 + $0x100] sm:$0xff]   ;;  %v12311_v62 = vld [vmem:[%s15598_s3 + $0x198] sm:$0xff]   ;;  %v12314_v44 = vld [vmem:[%s15598_s3 + $0x1d0] sm:$0xff]  }
 0x2d5   : > { %v5463_v40 = vpop.f32.mrf.mxu0  ;;  %11426 = vmatprep.subr.bf16.mxu0 %v12292_v1  ;;  %v12312_v32 = vld [vmem:[%s15598_s3 + $0x1d8] sm:$0xff]   ;;  %v12315_v43 = vld [vmem:[%s15598_s3 + $0x188] sm:$0xff]  }
 0x2d6   : > { %v5476_v53 = vadd.f32 %v5463_v40, %v5352_v9  ;;  %11407 = vmatpush3.bf16.msra.mxu1 %v12291_v30  ;;  %v12316_v30 = vld [vmem:[%s15598_s3 + $0x1c8] sm:$0xff]   ;;  %v12317_v9 = vld [vmem:[%s15598_s3 + $0x180] sm:$0xff]   ;;  %v12319_v40 = vld [vmem:[%s15598_s3 + $0x238] sm:$0xff]  }
 0x2d7   : > { %11408 = vmatprep.subr.bf16.mxu1 %v12293_v49 }
 0x2d8   : > { %11427 = vmatpush3.bf16.msra.mxu0 %v12292_v1 }
 0x2d9   : > { %11428 = vmatprep.subr.bf16.mxu0 %v12294_v2 }
 0x2da   : > { %11409 = vmatpush3.bf16.msra.mxu1 %v12293_v49 }
 0x2db   : > { %11410 = vmatprep.subr.bf16.mxu1 %v12295_v41 }
 0x2dc   : > { %11429 = vmatpush3.bf16.msra.mxu0 %v12294_v2 }
 0x2dd   : > { %11430 = vmatprep.subr.bf16.mxu0 %v12296_v18 }
 0x2de   : > { %11411 = vmatpush3.bf16.msra.mxu1 %v12295_v41 }
 0x2df   : > { %11412 = vmatprep.subr.bf16.mxu1 %v12297_v35 }
 0x2e0   : > { %11431 = vmatpush3.bf16.msra.mxu0 %v12296_v18  ;;  %v12321_v18 = vld [vmem:[%s15598_s3 + $0x230] sm:$0xff]  }
 0x2e1   : > { %11432 = vmatprep.subr.bf16.mxu0 %v12298_v27 }
 0x2e2   : > { %11413 = vmatpush3.bf16.msra.mxu1 %v12297_v35 }
 0x2e3   : > { %11414 = vmatprep.subr.bf16.mxu1 %v12299_v0 }
 0x2e4   : > { %11433 = vmatpush3.bf16.msra.mxu0 %v12298_v27 }
 0x2e5   : > { %11434 = vmatprep.subr.bf16.mxu0 %v12300_v37 }
 0x2e6   : > { %11415 = vmatpush3.bf16.msra.mxu1 %v12299_v0 }
 0x2e7   : > { %11416 = vmatprep.subr.bf16.mxu1 %v12301_v55 }
 0x2e8   : > { %11435 = vmatpush3.bf16.msra.mxu0 %v12300_v37 }
 0x2e9   : > { %11436 = vmatprep.subr.bf16.mxu0 %v12302_v36 }
 0x2ea   : > { %11417 = vmatpush3.bf16.msra.mxu1 %v12301_v55 }
 0x2eb   : > { %11442 = vmatprep.subr.bf16.mxu1 %v12303_v26 }
 0x2ec   : > { %11437 = vmatpush3.bf16.msra.mxu0 %v12302_v36 }
 0x2ed   : > { %v11180_v56 = vpop.f32.mrf.mxu1  ;;  %11419 = vmatmul.mubr.bf16.vlgmr.msra.gmra.mxu1 %v14076_v6  ;;  %11462 = vmatprep.subr.bf16.mxu0 %v12304_v7 }
 0x2ee   : > { %v5601_v58 = vadd.f32 %v11180_v56, %v5477_v63  ;;  %11443 = vmatpush3.bf16.msra.mxu1 %v12303_v26  ;;  %11458 = vmatprep.mubr.bf16.mxu1 %v14082_v50  ;;  %v12306_v50 = vld [vmem:[%s15598_s3 + $0x1f0] sm:$0xff]   ;;  %v12323_v26 = vld [vmem:[%s15598_s3 + $0x228] sm:$0xff]  }
 0x2ef   : > { %v5584_v8 = vpop.f32.mrf.mxu1  ;;  %v11200_v14 = vpop.f32.mrf.mxu0  ;;  %11439 = vmatmul.mubr.bf16.vlgmr.msra.gmra.mxu0 %v14086_v52  ;;  %11444 = vmatprep.subr.bf16.mxu1 %v12305_v23 }
 0x2f0   : > { %v5599_v48 = vadd.f32 %v5584_v8, %v5475_v45  ;;  %v5725_v6 = vadd.f32 %v11200_v14, %v5601_v58  ;;  %11463 = vmatpush3.bf16.msra.mxu0 %v12304_v7  ;;  %11478 = vmatprep.mubr.bf16.mxu0 %v13668_v33  ;;  %v12313_v45 = vld [vmem:[%s15598_s3 + $0x190] sm:$0xff]   ;;  %v12324_v58 = vld [vmem:[%s15598_s3 + $0x268] sm:$0xff]   ;;  %v12325_v14 = vld [vmem:[%s15598_s3 + $0x220] sm:$0xff]  }
 0x2f1   : > { %v11181_v21 = vpop.f32.mrf.mxu1  ;;  %v5708_v46 = vpop.f32.mrf.mxu0  ;;  %11464 = vmatprep.subr.bf16.mxu0 %v12306_v50 }
 0x2f2   : > { %v5602_v10 = vadd.f32 %v11181_v21, %v5478_v12  ;;  %v5723_v13 = vadd.f32 %v5708_v46, %v5599_v48  ;;  %11445 = vmatpush3.bf16.msra.mxu1 %v12305_v23  ;;  %v12318_v12 = vld [vmem:[%s15598_s3 + $0x1c0] sm:$0xff]   ;;  %v12327_v48 = vld [vmem:[%s15598_s3 + $0x218] sm:$0xff]   ;;  %v12329_v21 = vld [vmem:[%s15598_s3 + $0x210] sm:$0xff]  }
 0x2f3   : > { %v5587_v52 = vpop.f32.mrf.mxu1  ;;  %v11201_v61 = vpop.f32.mrf.mxu0  ;;  %11446 = vmatprep.subr.bf16.mxu1 %v12307_v16  ;;  %v12326_v23 = vld [vmem:[%s15598_s3 + $0x260] sm:$0xff]   ;;  %v12330_v46 = vld [vmem:[%s15598_s3 + $0x250] sm:$0xff]  }
 0x2f4   : > { %v5600_v38 = vadd.f32 %v5587_v52, %v5476_v53  ;;  %v5726_v59 = vadd.f32 %v11201_v61, %v5602_v10  ;;  %11465 = vmatpush3.bf16.msra.mxu0 %v12306_v50  ;;  %v12320_v53 = vld [vmem:[%s15598_s3 + $0x278] sm:$0xff]   ;;  %v12331_v50 = vld [vmem:[%s15598_s3 + $0x208] sm:$0xff]   ;;  %v12334_v52 = vld [vmem:[%s15598_s3 + $0x240] sm:$0xff]  }
 0x2f5   : > { %v5711_v33 = vpop.f32.mrf.mxu0  ;;  %11466 = vmatprep.subr.bf16.mxu0 %v12308_v15  ;;  %v12332_v10 = vld [vmem:[%s15598_s3 + $0x248] sm:$0xff]   ;;  %v12335_v61 = vld [vmem:[%s15598_s3 + $0x2b8] sm:$0xff]  }
 0x2f6   : > { %v5724_v63 = vadd.f32 %v5711_v33, %v5600_v38  ;;  %11447 = vmatpush3.bf16.msra.mxu1 %v12307_v16  ;;  %v12336_v38 = vld [vmem:[%s15598_s3 + $0x2f8] sm:$0xff]  }
 0x2f7   : > { %11448 = vmatprep.subr.bf16.mxu1 %v12309_v31 }
 0x2f8   : > { %11467 = vmatpush3.bf16.msra.mxu0 %v12308_v15 }
 0x2f9   : > { %11468 = vmatprep.subr.bf16.mxu0 %v12310_v5 }
 0x2fa   : > { %11449 = vmatpush3.bf16.msra.mxu1 %v12309_v31 }
 0x2fb   : > { %11450 = vmatprep.subr.bf16.mxu1 %v12311_v62 }
 0x2fc   : > { %11469 = vmatpush3.bf16.msra.mxu0 %v12310_v5 }
 0x2fd   : > { %11470 = vmatprep.subr.bf16.mxu0 %v12312_v32 }
 0x2fe   : > { %11451 = vmatpush3.bf16.msra.mxu1 %v12311_v62 }
 0x2ff   : > { %11452 = vmatprep.subr.bf16.mxu1 %v12313_v45 }
 0x300   : > { %11471 = vmatpush3.bf16.msra.mxu0 %v12312_v32 }
 0x301   : > { %11472 = vmatprep.subr.bf16.mxu0 %v12314_v44 }
 0x302   : > { %11453 = vmatpush3.bf16.msra.mxu1 %v12313_v45 }
 0x303   : > { %11454 = vmatprep.subr.bf16.mxu1 %v12315_v43 }
 0x304   : > { %11473 = vmatpush3.bf16.msra.mxu0 %v12314_v44 }
 0x305   : > { %11474 = vmatprep.subr.bf16.mxu0 %v12316_v30 }
 0x306   : > { %11455 = vmatpush3.bf16.msra.mxu1 %v12315_v43 }
 0x307   : > { %11456 = vmatprep.subr.bf16.mxu1 %v12317_v9 }
 0x308   : > { %11475 = vmatpush3.bf16.msra.mxu0 %v12316_v30  ;;  %v12339_v30 = vld [vmem:[%s15598_s3 + $0x2a8] sm:$0xff]  }
 0x309   : > { %11476 = vmatprep.subr.bf16.mxu0 %v12318_v12 }
 0x30a   : > { %11457 = vmatpush3.bf16.msra.mxu1 %v12317_v9 }
 0x30b   : > { %11482 = vmatprep.subr.bf16.mxu1 %v12319_v40 }
 0x30c   : > { %11477 = vmatpush3.bf16.msra.mxu0 %v12318_v12 }
 0x30d   : > { %v11220_v1 = vpop.f32.mrf.mxu1  ;;  %11459 = vmatmul.mubr.bf16.vlgmr.msra.gmra.mxu1 %v14155_v42  ;;  %11502 = vmatprep.subr.bf16.mxu0 %v12320_v53 }
 0x30e   : > { %v5849_v49 = vadd.f32 %v11220_v1, %v5725_v6  ;;  %11483 = vmatpush3.bf16.msra.mxu1 %v12319_v40  ;;  %11498 = vmatprep.mubr.bf16.mxu1 %v13924_v25  ;;  %v12322_v25 = vld [vmem:[%s15598_s3 + $0x270] sm:$0xff]   ;;  %v12328_v6 = vld [vmem:[%s15598_s3 + $0x258] sm:$0xff]   ;;  %v12340_v40 = vld [vmem:[%s15598_s3 + $0x2e8] sm:$0xff]  }
 0x30f   : > { %v5832_v2 = vpop.f32.mrf.mxu1  ;;  %v11240_v41 = vpop.f32.mrf.mxu0  ;;  %11479 = vmatmul.mubr.bf16.vlgmr.msra.gmra.mxu0 %v14164_v24  ;;  %11484 = vmatprep.subr.bf16.mxu1 %v12321_v18 }
 0x310   : > { %v5847_v35 = vadd.f32 %v5832_v2, %v5723_v13  ;;  %v5973_v42 = vadd.f32 %v11240_v41, %v5849_v49  ;;  %11503 = vmatpush3.bf16.msra.mxu0 %v12320_v53  ;;  %11518 = vmatprep.mubr.bf16.mxu0 %v14172_v22  ;;  %v12333_v13 = vld [vmem:[%s15598_s3 + $0x200] sm:$0xff]   ;;  %v12343_v2 = vld [vmem:[%s15598_s3 + $0x298] sm:$0xff]  }
 0x311   : > { %v11221_v27 = vpop.f32.mrf.mxu1  ;;  %v5956_v0 = vpop.f32.mrf.mxu0  ;;  %11504 = vmatprep.subr.bf16.mxu0 %v12322_v25  ;;  %v12341_v53 = vld [vmem:[%s15598_s3 + $0x2a0] sm:$0xff]   ;;  %v12344_v41 = vld [vmem:[%s15598_s3 + $0x2d8] sm:$0xff]  }
 0x312   : > { %v5850_v37 = vadd.f32 %v11221_v27, %v5726_v59  ;;  %v5971_v55 = vadd.f32 %v5956_v0, %v5847_v35  ;;  %11485 = vmatpush3.bf16.msra.mxu1 %v12321_v18  ;;  %v12342_v49 = vld [vmem:[%s15598_s3 + $0x2e0] sm:$0xff]   ;;  %v12345_v18 = vld [vmem:[%s15598_s3 + $0x290] sm:$0xff]   ;;  %v12348_v27 = vld [vmem:[%s15598_s3 + $0x2c8] sm:$0xff]  }
 0x313   : > { %v5835_v24 = vpop.f32.mrf.mxu1  ;;  %v11241_v36 = vpop.f32.mrf.mxu0  ;;  %11486 = vmatprep.subr.bf16.mxu1 %v12323_v26  ;;  %v12346_v35 = vld [vmem:[%s15598_s3 + $0x2d0] sm:$0xff]   ;;  %v12349_v0 = vld [vmem:[%s15598_s3 + $0x280] sm:$0xff]  }
 0x314   : > { %v5848_v56 = vadd.f32 %v5835_v24, %v5724_v63  ;;  %v5974_v7 = vadd.f32 %v11241_v36, %v5850_v37  ;;  %11505 = vmatpush3.bf16.msra.mxu0 %v12322_v25  ;;  %v12337_v63 = vld [vmem:[%s15598_s3 + $0x2b0] sm:$0xff]   ;;  %v12350_v25 = vld [vmem:[%s15598_s3 + $0x2c0] sm:$0xff]   ;;  %v12351_v37 = vld [vmem:[%s15598_s3 + $0x338] sm:$0xff]  }
 0x315   : > { %v5959_v22 = vpop.f32.mrf.mxu0  ;;  %11506 = vmatprep.subr.bf16.mxu0 %v12324_v58  ;;  %v12352_v24 = vld [vmem:[%s15598_s3 + $0x378] sm:$0xff]  }
 0x316   : > { %v5972_v8 = vadd.f32 %v5959_v22, %v5848_v56  ;;  %11487 = vmatpush3.bf16.msra.mxu1 %v12323_v26 }
 0x317   : > { %11488 = vmatprep.subr.bf16.mxu1 %v12325_v14 }
 0x318   : > { %11507 = vmatpush3.bf16.msra.mxu0 %v12324_v58 }
 0x319   : > { %11508 = vmatprep.subr.bf16.mxu0 %v12326_v23 }
 0x31a   : > { %11489 = vmatpush3.bf16.msra.mxu1 %v12325_v14 }
 0x31b   : > { %11490 = vmatprep.subr.bf16.mxu1 %v12327_v48 }
 0x31c   : > { %11509 = vmatpush3.bf16.msra.mxu0 %v12326_v23 }
 0x31d   : > { %11510 = vmatprep.subr.bf16.mxu0 %v12328_v6 }
 0x31e   : > { %11491 = vmatpush3.bf16.msra.mxu1 %v12327_v48 }
 0x31f   : > { %11492 = vmatprep.subr.bf16.mxu1 %v12329_v21 }
 0x320   : > { %11511 = vmatpush3.bf16.msra.mxu0 %v12328_v6 }
 0x321   : > { %11512 = vmatprep.subr.bf16.mxu0 %v12330_v46 }
 0x322   : > { %11493 = vmatpush3.bf16.msra.mxu1 %v12329_v21 }
 0x323   : > { %11494 = vmatprep.subr.bf16.mxu1 %v12331_v50 }
 0x324   : > { %11513 = vmatpush3.bf16.msra.mxu0 %v12330_v46  ;;  %v12355_v46 = vld [vmem:[%s15598_s3 + $0x328] sm:$0xff]  }
 0x325   : > { %11514 = vmatprep.subr.bf16.mxu0 %v12332_v10 }
 0x326   : > { %11495 = vmatpush3.bf16.msra.mxu1 %v12331_v50 }
 0x327   : > { %11496 = vmatprep.subr.bf16.mxu1 %v12333_v13 }
 0x328   : > { %11515 = vmatpush3.bf16.msra.mxu0 %v12332_v10 }
 0x329   : > { %11516 = vmatprep.subr.bf16.mxu0 %v12334_v52 }
 0x32a   : > { %11497 = vmatpush3.bf16.msra.mxu1 %v12333_v13 }
 0x32b   : > { %11522 = vmatprep.subr.bf16.mxu1 %v12335_v61 }
 0x32c   : > { %11517 = vmatpush3.bf16.msra.mxu0 %v12334_v52  ;;  %v12356_v52 = vld [vmem:[%s15598_s3 + $0x368] sm:$0xff]  }
 0x32d   : > { %v11260_v16 = vpop.f32.mrf.mxu1  ;;  %11499 = vmatmul.mubr.bf16.vlgmr.msra.gmra.mxu1 %v14235_v11  ;;  %11542 = vmatprep.subr.bf16.mxu0 %v12336_v38 }
 0x32e   : > { %v6097_v59 = vadd.f32 %v11260_v16, %v5973_v42  ;;  %11523 = vmatpush3.bf16.msra.mxu1 %v12335_v61  ;;  %11538 = vmatprep.mubr.bf16.mxu1 %v14243_v29  ;;  %v12338_v29 = vld [vmem:[%s15598_s3 + $0x2f0] sm:$0xff]   ;;  %v12347_v42 = vld [vmem:[%s15598_s3 + $0x288] sm:$0xff]  }
 0x32f   : > { %v6080_v33 = vpop.f32.mrf.mxu1  ;;  %v11280_v15 = vpop.f32.mrf.mxu0  ;;  %11519 = vmatmul.mubr.bf16.vlgmr.msra.gmra.mxu0 %v14247_v60  ;;  %11524 = vmatprep.subr.bf16.mxu1 %v12337_v63 }
 0x330   : > { %v6095_v31 = vadd.f32 %v6080_v33, %v5971_v55  ;;  %v6221_v11 = vadd.f32 %v11280_v15, %v6097_v59  ;;  %11543 = vmatpush3.bf16.msra.mxu0 %v12336_v38  ;;  %11558 = vmatprep.mubr.bf16.mxu0 %v14254_v51  ;;  %v12357_v38 = vld [vmem:[%s15598_s3 + $0x320] sm:$0xff]  }
 0x331   : > { %v11261_v5 = vpop.f32.mrf.mxu1  ;;  %v6204_v62 = vpop.f32.mrf.mxu0  ;;  %11544 = vmatprep.subr.bf16.mxu0 %v12338_v29  ;;  %v12358_v15 = vld [vmem:[%s15598_s3 + $0x360] sm:$0xff]  }
 0x332   : > { %v6098_v32 = vadd.f32 %v11261_v5, %v5974_v7  ;;  %v6219_v45 = vadd.f32 %v6204_v62, %v6095_v31  ;;  %11525 = vmatpush3.bf16.msra.mxu1 %v12337_v63  ;;  %v12353_v7 = vld [vmem:[%s15598_s3 + $0x330] sm:$0xff]   ;;  %v12359_v5 = vld [vmem:[%s15598_s3 + $0x318] sm:$0xff]  }
 0x333   : > { %v6083_v44 = vpop.f32.mrf.mxu1  ;;  %v11281_v43 = vpop.f32.mrf.mxu0  ;;  %11526 = vmatprep.subr.bf16.mxu1 %v12339_v30 }
 0x334   : > { %v6096_v9 = vadd.f32 %v6083_v44, %v5972_v8  ;;  %v6222_v12 = vadd.f32 %v11281_v43, %v6098_v32  ;;  %11545 = vmatpush3.bf16.msra.mxu0 %v12338_v29  ;;  %v12360_v32 = vld [vmem:[%s15598_s3 + $0x358] sm:$0xff]   ;;  %v12361_v43 = vld [vmem:[%s15598_s3 + $0x310] sm:$0xff]  }
 0x335   : > { %v6207_v51 = vpop.f32.mrf.mxu0  ;;  %11546 = vmatprep.subr.bf16.mxu0 %v12340_v40 }
 0x336   : > { %v6220_v1 = vadd.f32 %v6207_v51, %v6096_v9  ;;  %11527 = vmatpush3.bf16.msra.mxu1 %v12339_v30  ;;  %v12362_v9 = vld [vmem:[%s15598_s3 + $0x350] sm:$0xff]   ;;  %v12364_v51 = vld [vmem:[%s15598_s3 + $0x348] sm:$0xff]  }
 0x337   : > { %11528 = vmatprep.subr.bf16.mxu1 %v12341_v53 }
 0x338   : > { %11547 = vmatpush3.bf16.msra.mxu0 %v12340_v40  ;;  %v12365_v40 = vld [vmem:[%s15598_s3 + $0x300] sm:$0xff]  }
 0x339   : > { %11548 = vmatprep.subr.bf16.mxu0 %v12342_v49 }
 0x33a   : > { %11529 = vmatpush3.bf16.msra.mxu1 %v12341_v53  ;;  %v12367_v53 = vld [vmem:[%s15598_s3 + $0x3b8] sm:$0xff]  }
 0x33b   : > { %11530 = vmatprep.subr.bf16.mxu1 %v12343_v2 }
 0x33c   : > { %11549 = vmatpush3.bf16.msra.mxu0 %v12342_v49  ;;  %v12368_v49 = vld [vmem:[%s15598_s3 + $0x3f8] sm:$0xff]  }
 0x33d   : > { %11550 = vmatprep.subr.bf16.mxu0 %v12344_v41 }
 0x33e   : > { %11531 = vmatpush3.bf16.msra.mxu1 %v12343_v2  ;;  %v12369_v2 = vld [vmem:[%s15598_s3 + $0x3b0] sm:$0xff]  }
 0x33f   : > { %11532 = vmatprep.subr.bf16.mxu1 %v12345_v18 }
 0x340   : > { %11551 = vmatpush3.bf16.msra.mxu0 %v12344_v41  ;;  %v12374_v41 = vld [vmem:[%s15598_s3 + $0x3e0] sm:$0xff]  }
 0x341   : > { %11552 = vmatprep.subr.bf16.mxu0 %v12346_v35 }
 0x342   : > { %11533 = vmatpush3.bf16.msra.mxu1 %v12345_v18  ;;  %v12375_v18 = vld [vmem:[%s15598_s3 + $0x398] sm:$0xff]  }
 0x343   : > { %11534 = vmatprep.subr.bf16.mxu1 %v12347_v42 }
 0x344   : > { %11553 = vmatpush3.bf16.msra.mxu0 %v12346_v35  ;;  %v12376_v35 = vld [vmem:[%s15598_s3 + $0x3d8] sm:$0xff]  }
 0x345   : > { %11554 = vmatprep.subr.bf16.mxu0 %v12348_v27 }
 0x346   : > { %11535 = vmatpush3.bf16.msra.mxu1 %v12347_v42  ;;  %v12377_v42 = vld [vmem:[%s15598_s3 + $0x390] sm:$0xff]  }
 0x347   : > { %11536 = vmatprep.subr.bf16.mxu1 %v12349_v0 }
 0x348   : > { %11555 = vmatpush3.bf16.msra.mxu0 %v12348_v27  ;;  %v12378_v27 = vld [vmem:[%s15598_s3 + $0x3d0] sm:$0xff]  }
 0x349   : > { %11556 = vmatprep.subr.bf16.mxu0 %v12350_v25 }
 0x34a   : > { %11537 = vmatpush3.bf16.msra.mxu1 %v12349_v0  ;;  %v12379_v0 = vld [vmem:[%s15598_s3 + $0x388] sm:$0xff]  }
 0x34b   : > { %11562 = vmatprep.subr.bf16.mxu1 %v12351_v37 }
 0x34c   : > { %11557 = vmatpush3.bf16.msra.mxu0 %v12350_v25  ;;  %v12380_v25 = vld [vmem:[%s15598_s3 + $0x3c8] sm:$0xff]  }
 0x34d   : > { %v11300_v55 = vpop.f32.mrf.mxu1  ;;  %11539 = vmatmul.mubr.bf16.vlgmr.msra.gmra.mxu1 %v14305_v17  ;;  %11582 = vmatprep.subr.bf16.mxu0 %v12352_v24 }
 0x34e   : > { %v6345_v36 = vadd.f32 %v11300_v55, %v6221_v11  ;;  %11563 = vmatpush3.bf16.msra.mxu1 %v12351_v37  ;;  %11578 = vmatprep.mubr.bf16.mxu1 %v14311_v19  ;;  %v12354_v19 = vld [vmem:[%s15598_s3 + $0x370] sm:$0xff]   ;;  %v12381_v37 = vld [vmem:[%s15598_s3 + $0x380] sm:$0xff]  }
 0x34f   : > { %v6328_v26 = vpop.f32.mrf.mxu1  ;;  %v11320_v56 = vpop.f32.mrf.mxu0  ;;  %11559 = vmatmul.mubr.bf16.vlgmr.msra.gmra.mxu0 %v14318_v47  ;;  %11564 = vmatprep.subr.bf16.mxu1 %v12353_v7  ;;  %v12382_v55 = vld [vmem:[%s15598_s3 + $0x3c0] sm:$0xff]  }
 0x350   : > { %v6343_v22 = vadd.f32 %v6328_v26, %v6219_v45  ;;  %v6469_v58 = vadd.f32 %v11320_v56, %v6345_v36  ;;  %11583 = vmatpush3.bf16.msra.mxu0 %v12352_v24  ;;  %11598 = vmatprep.mubr.bf16.mxu0 %v14325_v34  ;;  %v9108_v34 = vld [vmem:[%s15599_s4] ss:$0 sm:$0xff]  ;;  %v12383_v24 = vld [vmem:[%s15598_s3 + $0x438] sm:$0xff]   ;;  %v12385_v26 = vld [vmem:[%s15598_s3 + $0x430] sm:$0xff]  }
 0x351   : > { %v11301_v8 = vpop.f32.mrf.mxu1  ;;  %v6452_v14 = vpop.f32.mrf.mxu0  ;;  %11584 = vmatprep.subr.bf16.mxu0 %v12354_v19  ;;  %v12384_v36 = vld [vmem:[%s15598_s3 + $0x478] sm:$0xff]   ;;  %v12390_v56 = vld [vmem:[%s15598_s3 + $0x460] sm:$0xff]  }
 0x352   : > { %v6346_v23 = vadd.f32 %v11301_v8, %v6222_v12  ;;  %v6467_v48 = vadd.f32 %v6452_v14, %v6343_v22  ;;  %11565 = vmatpush3.bf16.msra.mxu1 %v12353_v7  ;;  %v6479_v59 = vadd.f32 %v9108_v34, %v6469_v58  ;;  %v12363_v12 = vld [vmem:[%s15598_s3 + $0x308] sm:$0xff]   ;;  %v12391_v7 = vld [vmem:[%s15598_s3 + $0x418] sm:$0xff]   ;;  %v12393_v58 = vld [vmem:[%s15598_s3 + $0x410] sm:$0xff]  }
 0x353   : > { %v6331_v6 = vpop.f32.mrf.mxu1  ;;  %v11321_v21 = vpop.f32.mrf.mxu0  ;;  %11566 = vmatprep.subr.bf16.mxu1 %v12355_v46  ;;  %v12392_v22 = vld [vmem:[%s15598_s3 + $0x458] sm:$0xff]   ;;  %v12394_v8 = vld [vmem:[%s15598_s3 + $0x450] sm:$0xff]   ;;  %v12395_v14 = vld [vmem:[%s15598_s3 + $0x408] sm:$0xff]  }
 0x354   : > { %v6344_v50 = vadd.f32 %v6331_v6, %v6220_v1  ;;  %v6470_v10 = vadd.f32 %v11321_v21, %v6346_v23  ;;  %11585 = vmatpush3.bf16.msra.mxu0 %v12354_v19  ;;  %v6477_v61 = vadd.f32 %v9108_v34, %v6467_v48  ;;  %v6483_v62 = vmax.f32 %v6479_v59, 0.0  ;;  %v12366_v1 = vld [vmem:[%s15598_s3 + $0x340] sm:$0xff]   ;;  %v12396_v19 = vld [vmem:[%s15598_s3 + $0x448] sm:$0xff]   ;;  %v12408_v59 = vld [vmem:[%s15598_s3 + $0x498] sm:$0xff]  }
 0x355   : > { %v6455_v13 = vpop.f32.mrf.mxu0  ;;  %11586 = vmatprep.subr.bf16.mxu0 %v12356_v52  ;;  %v12397_v23 = vld [vmem:[%s15598_s3 + $0x400] sm:$0xff]   ;;  %v14993_v21 = vld [vmem:[#allocation3 + $0xc9] sm:$0xff] }
 0x356   : > { %v6468_v16 = vadd.f32 %v6455_v13, %v6344_v50  ;;  %11567 = vmatpush3.bf16.msra.mxu1 %v12355_v46  ;;  %v6481_v63 = vmax.f32 %v6477_v61, 0.0  ;;  %v6480_v31 = vadd.f32 %v9108_v34, %v6470_v10  ;;  %v12398_v48 = vld [vmem:[%s15598_s3 + $0x440] sm:$0xff]   ;;  %v12400_v10 = vld [vmem:[%s15598_s3 + $0x4b8] sm:$0xff]   ;;  %v12404_v61 = vld [vmem:[%s15598_s3 + $0x4a8] sm:$0xff]  }
 0x357   : > { %11568 = vmatprep.subr.bf16.mxu1 %v12357_v38  ;;  %v7501_v6 = vld [vmem:[#allocation3 + $0xc1] sm:$0xff]  ;;  %v12401_v13 = vld [vmem:[%s15598_s3 + $0x4f8] sm:$0xff]  }
 0x358   : > { %v6478_v33 = vadd.f32 %v9108_v34, %v6468_v16  ;;  %11587 = vmatpush3.bf16.msra.mxu0 %v12356_v52  ;;  %v6484_v45 = vmax.f32 %v6480_v31, 0.0  ;;  %v14995_v46 = vld [vmem:[#allocation3] sm:$0xff]  ;;  %v7505_v34 = vpack.c.bf16 %v14993_v21, %v7501_v6  ;;  %v12402_v52 = vld [vmem:[%s15598_s3 + $0x4b0] sm:$0xff]   ;;  %v12412_v31 = vld [vmem:[%s15598_s3 + $0x488] sm:$0xff]  }
 0x359   : > { %11588 = vmatprep.subr.bf16.mxu0 %v12358_v15  ;;  %v14999_v50 = vpack.c.bf16 %v14995_v46, %v14995_v46  ;;  %v12406_v16 = vld [vmem:[%s15598_s3 + $0x4a0] sm:$0xff]  }
 0x35a   : > { %v6482_v11 = vmax.f32 %v6478_v33, 0.0  ;;  %11569 = vmatpush3.bf16.msra.mxu1 %v12357_v38  ;;  %v12407_v38 = vld [vmem:[%s15598_s3 + $0x4e0] sm:$0xff]   ;;  %v12409_v33 = vld [vmem:[%s15598_s3 + $0x4d8] sm:$0xff]  }
 0x35b   : > { %11570 = vmatprep.subr.bf16.mxu1 %v12359_v5  ;;  %v12446_v6 = vld [vmem:[%s15598_s3 + $0x580] sm:$0xff]  }
 0x35c   : > { %v6485_v29 = vadd.f32 %v6482_v11, %v6481_v63  ;;  %11589 = vmatpush3.bf16.msra.mxu0 %v12358_v15  ;;  %v12410_v15 = vld [vmem:[%s15598_s3 + $0x490] sm:$0xff]   ;;  %v12413_v11 = vld [vmem:[%s15598_s3 + $0x4c8] sm:$0xff]  }
 0x35d   : > { %11590 = vmatprep.subr.bf16.mxu0 %v12360_v32  ;;  %v12411_v63 = vld [vmem:[%s15598_s3 + $0x4d0] sm:$0xff]  }
 0x35e   : > { %v6486_v44 = vadd.f32 %v6485_v29, %v6483_v62  ;;  %11571 = vmatpush3.bf16.msra.mxu1 %v12359_v5  ;;  %v12414_v5 = vld [vmem:[%s15598_s3 + $0x480] sm:$0xff]   ;;  %v15050_v29 = vld [vmem:[#allocation3 + $0xca] sm:$0xff] }
 0x35f   : > { %11572 = vmatprep.subr.bf16.mxu1 %v12361_v43  ;;  %v7560_v62 = vld [vmem:[#allocation3 + $0xc2] sm:$0xff] }
 0x360   : > { %v14872_v30 = vadd.f32 %v6486_v44, %v6484_v45  ;;  %11591 = vmatpush3.bf16.msra.mxu0 %v12360_v32  ;;  %v15052_v32 = vld [vmem:[#allocation3 + $0xd1] sm:$0xff]  ;;  %v15054_v45 = vld [vmem:[#allocation3 + $0xd9] sm:$0xff] }
 0x361   : > { %11592 = vmatprep.subr.bf16.mxu0 %v12362_v9  ;;  %v12415_v44 = vld [vmem:[%s15598_s3 + $0x4c0] sm:$0xff]  }
 0x362   : > { %15625 = vst [vmem:[#allocation7_spill] sm:$0xff] %v14872_v30  ;;  %11573 = vmatpush3.bf16.msra.mxu1 %v12361_v43  ;;  %v7564_v43 = vpack.c.bf16 %v15050_v29, %v7560_v62  ;;  %v12461_v62 = vld [vmem:[%s15598_s3 + $0x648] sm:$0xff]   ;;  %v7996_v30 = vld [vmem:[%s15600_s5 + $0x18] sm:$0xff] }
 0x363   : > { %11574 = vmatprep.subr.bf16.mxu1 %v12363_v12 }
 0x364   : > { %11593 = vmatpush3.bf16.msra.mxu0 %v12362_v9  ;;  %v12416_v9 = vld [vmem:[%s15598_s3 + $0x538] sm:$0xff]  }
 0x365   : > { %11594 = vmatprep.subr.bf16.mxu0 %v12364_v51 }
 0x366   : > { %11575 = vmatpush3.bf16.msra.mxu1 %v12363_v12  ;;  %v15065_v12 = vpack.c.bf16 %v15054_v45, %v15052_v32 }
 0x367   : > { %11576 = vmatprep.subr.bf16.mxu1 %v12365_v40 }
 0x368   : > { %11595 = vmatpush3.bf16.msra.mxu0 %v12364_v51  ;;  %v12417_v51 = vld [vmem:[%s15598_s3 + $0x578] sm:$0xff]  }
 0x369   : > { %11596 = vmatprep.subr.bf16.mxu0 %v12366_v1 }
 0x36a   : > { %11577 = vmatpush3.bf16.msra.mxu1 %v12365_v40  ;;  %v12418_v40 = vld [vmem:[%s15598_s3 + $0x530] sm:$0xff]  }
 0x36b   : > { %11602 = vmatprep.subr.bf16.mxu1 %v12367_v53 }
 0x36c   : > { %11597 = vmatpush3.bf16.msra.mxu0 %v12366_v1  ;;  %v12419_v1 = vld [vmem:[%s15598_s3 + $0x570] sm:$0xff]  }
 0x36d   : > { %11579 = vmatmul.mubr.bf16.vlgmr.msra.gmra.mxu1 %v14389_v4  ;;  %11622 = vmatprep.subr.bf16.mxu0 %v12368_v49  ;;  %v12370_v4 = vld [vmem:[%s15598_s3 + $0x3f0] sm:$0xff]  }
 0x36e   : > { %11603 = vmatpush3.bf16.msra.mxu1 %v12367_v53  ;;  %11618 = vmatprep.mubr.bf16.mxu1 %v14396_v54  ;;  %v12371_v54 = vld [vmem:[%s15598_s3 + $0x3a8] sm:$0xff]  }
 0x36f   : > { %11599 = vmatmul.mubr.bf16.vlgmr.msra.gmra.mxu0 %v14401_v28  ;;  %11604 = vmatprep.subr.bf16.mxu1 %v12369_v2  ;;  %v12372_v28 = vld [vmem:[%s15598_s3 + $0x3e8] sm:$0xff]  }
 0x370   : > { %11623 = vmatpush3.bf16.msra.mxu0 %v12368_v49  ;;  %11638 = vmatprep.mubr.bf16.mxu0 %v14247_v60  ;;  %v12373_v60 = vld [vmem:[%s15598_s3 + $0x3a0] sm:$0xff]   ;;  %v12420_v53 = vld [vmem:[%s15598_s3 + $0x528] sm:$0xff]  }
 0x371   : > { %11624 = vmatprep.subr.bf16.mxu0 %v12370_v4  ;;  %v12421_v49 = vld [vmem:[%s15598_s3 + $0x568] sm:$0xff]  }
 0x372   : > { %11605 = vmatpush3.bf16.msra.mxu1 %v12369_v2  ;;  %v12422_v2 = vld [vmem:[%s15598_s3 + $0x520] sm:$0xff]  }
 0x373   : > { %11606 = vmatprep.subr.bf16.mxu1 %v12371_v54 }
 0x374   : > { %11625 = vmatpush3.bf16.msra.mxu0 %v12370_v4  ;;  %v12423_v4 = vld [vmem:[%s15598_s3 + $0x560] sm:$0xff]  }
 0x375   : > { %11626 = vmatprep.subr.bf16.mxu0 %v12372_v28 }
 0x376   : > { %11607 = vmatpush3.bf16.msra.mxu1 %v12371_v54  ;;  %v12424_v54 = vld [vmem:[%s15598_s3 + $0x518] sm:$0xff]  }
 0x377   : > { %11608 = vmatprep.subr.bf16.mxu1 %v12373_v60 }
 0x378   : > { %11627 = vmatpush3.bf16.msra.mxu0 %v12372_v28  ;;  %v12425_v28 = vld [vmem:[%s15598_s3 + $0x558] sm:$0xff]  }
 0x379   : > { %11628 = vmatprep.subr.bf16.mxu0 %v12374_v41 }
 0x37a   : > { %11609 = vmatpush3.bf16.msra.mxu1 %v12373_v60  ;;  %v12426_v60 = vld [vmem:[%s15598_s3 + $0x510] sm:$0xff]  }
 0x37b   : > { %11610 = vmatprep.subr.bf16.mxu1 %v12375_v18 }
 0x37c   : > { %11629 = vmatpush3.bf16.msra.mxu0 %v12374_v41  ;;  %v12427_v41 = vld [vmem:[%s15598_s3 + $0x550] sm:$0xff]  }
 0x37d   : > { %11630 = vmatprep.subr.bf16.mxu0 %v12376_v35 }
 0x37e   : > { %11611 = vmatpush3.bf16.msra.mxu1 %v12375_v18  ;;  %v12428_v18 = vld [vmem:[%s15598_s3 + $0x508] sm:$0xff]  }
 0x37f   : > { %11612 = vmatprep.subr.bf16.mxu1 %v12377_v42 }
 0x380   : > { %11631 = vmatpush3.bf16.msra.mxu0 %v12376_v35  ;;  %v12429_v35 = vld [vmem:[%s15598_s3 + $0x548] sm:$0xff]  }
 0x381   : > { %11632 = vmatprep.subr.bf16.mxu0 %v12378_v27 }
 0x382   : > { %11613 = vmatpush3.bf16.msra.mxu1 %v12377_v42  ;;  %v7562_v42 = vld [vmem:[#allocation3 + $0xd2] sm:$0xff] }
 0x383   : > { %11614 = vmatprep.subr.bf16.mxu1 %v12379_v0 }
 0x384   : > { %11633 = vmatpush3.bf16.msra.mxu0 %v12378_v27  ;;  %v15109_v27 = vld [vmem:[#allocation3 + $0xda] sm:$0xff] }
 0x385   : > { %11634 = vmatprep.subr.bf16.mxu0 %v12380_v25 }
 0x386   : > { %11615 = vmatpush3.bf16.msra.mxu1 %v12379_v0  ;;  %v12430_v0 = vld [vmem:[%s15598_s3 + $0x500] sm:$0xff]  }
 0x387   : > { %11616 = vmatprep.subr.bf16.mxu1 %v12381_v37 }
 0x388   : > { %11635 = vmatpush3.bf16.msra.mxu0 %v12380_v25  ;;  %v12431_v25 = vld [vmem:[%s15598_s3 + $0x540] sm:$0xff]  }
 0x389   : > { %11636 = vmatprep.subr.bf16.mxu0 %v12382_v55 }
 0x38a   : > { %11617 = vmatpush3.bf16.msra.mxu1 %v12381_v37  ;;  %v15118_v37 = vpack.c.bf16 %v15109_v27, %v7562_v42 }
 0x38b   : > { %11642 = vmatprep.subr.bf16.mxu1 %v12383_v24 }
 0x38c   : > { %11637 = vmatpush3.bf16.msra.mxu0 %v12382_v55  ;;  %v7682_v55 = vpack.c.bf16 %v15052_v32, %v14993_v21  ;;  %v15172_v21 = vld [vmem:[#allocation3 + $0xe2] sm:$0xff] }
 0x38d   : > { %11619 = vmatmul.mubr.bf16.vlgmr.msra.gmra.mxu1 %v14455_v39  ;;  %11662 = vmatprep.subr.bf16.mxu0 %v12384_v36  ;;  %v12386_v39 = vld [vmem:[%s15598_s3 + $0x470] sm:$0xff]  }
 0x38e   : > { %11643 = vmatpush3.bf16.msra.mxu1 %v12383_v24  ;;  %11658 = vmatprep.mubr.bf16.mxu1 %v14305_v17  ;;  %v12387_v17 = vld [vmem:[%s15598_s3 + $0x428] sm:$0xff]   ;;  %v12432_v24 = vld [vmem:[%s15598_s3 + $0x5b8] sm:$0xff]  }
 0x38f   : > { %11639 = vmatmul.mubr.bf16.vlgmr.msra.gmra.mxu0 %v14463_v57  ;;  %11644 = vmatprep.subr.bf16.mxu1 %v12385_v26  ;;  %v12388_v57 = vld [vmem:[%s15598_s3 + $0x468] sm:$0xff]  }
 0x390   : > { %11663 = vmatpush3.bf16.msra.mxu0 %v12384_v36  ;;  %11678 = vmatprep.mubr.bf16.mxu0 %v14318_v47  ;;  %v12389_v47 = vld [vmem:[%s15598_s3 + $0x420] sm:$0xff]   ;;  %v7741_v36 = vpack.c.bf16 %v7562_v42, %v15050_v29  ;;  %v7858_v32 = vld [vmem:[#allocation3 + $0xe9] sm:$0xff] }
 0x391   : > { %11664 = vmatprep.subr.bf16.mxu0 %v12386_v39  ;;  %v12462_v29 = vld [vmem:[%s15598_s3 + $0x600] sm:$0xff]  }
 0x392   : > { %11645 = vmatpush3.bf16.msra.mxu1 %v12385_v26  ;;  %v12433_v26 = vld [vmem:[%s15598_s3 + $0x5f8] sm:$0xff]  }
 0x393   : > { %11646 = vmatprep.subr.bf16.mxu1 %v12387_v17 }
 0x394   : > { %11665 = vmatpush3.bf16.msra.mxu0 %v12386_v39  ;;  %v12434_v39 = vld [vmem:[%s15598_s3 + $0x5b0] sm:$0xff]  }
 0x395   : > { %11666 = vmatprep.subr.bf16.mxu0 %v12388_v57 }
 0x396   : > { %11647 = vmatpush3.bf16.msra.mxu1 %v12387_v17  ;;  %v12435_v17 = vld [vmem:[%s15598_s3 + $0x5f0] sm:$0xff]  }
 0x397   : > { %11648 = vmatprep.subr.bf16.mxu1 %v12389_v47 }
 0x398   : > { %11667 = vmatpush3.bf16.msra.mxu0 %v12388_v57  ;;  %v12436_v57 = vld [vmem:[%s15598_s3 + $0x5a8] sm:$0xff]  }
 0x399   : > { %11668 = vmatprep.subr.bf16.mxu0 %v12390_v56 }
 0x39a   : > { %11649 = vmatpush3.bf16.msra.mxu1 %v12389_v47  ;;  %v12437_v47 = vld [vmem:[%s15598_s3 + $0x5e8] sm:$0xff]  }
 0x39b   : > { %11650 = vmatprep.subr.bf16.mxu1 %v12391_v7 }
 0x39c   : > { %11669 = vmatpush3.bf16.msra.mxu0 %v12390_v56  ;;  %v12438_v56 = vld [vmem:[%s15598_s3 + $0x5a0] sm:$0xff]  }
 0x39d   : > { %11670 = vmatprep.subr.bf16.mxu0 %v12392_v22 }
 0x39e   : > { %11651 = vmatpush3.bf16.msra.mxu1 %v12391_v7  ;;  %v12439_v7 = vld [vmem:[%s15598_s3 + $0x5e0] sm:$0xff]  }
 0x39f   : > { %11652 = vmatprep.subr.bf16.mxu1 %v12393_v58 }
 0x3a0   : > { %11671 = vmatpush3.bf16.msra.mxu0 %v12392_v22  ;;  %v12440_v22 = vld [vmem:[%s15598_s3 + $0x598] sm:$0xff]  }
 0x3a1   : > { %11672 = vmatprep.subr.bf16.mxu0 %v12394_v8 }
 0x3a2   : > { %11653 = vmatpush3.bf16.msra.mxu1 %v12393_v58  ;;  %v12441_v58 = vld [vmem:[%s15598_s3 + $0x5d8] sm:$0xff]  }
 0x3a3   : > { %11654 = vmatprep.subr.bf16.mxu1 %v12395_v14 }
 0x3a4   : > { %11673 = vmatpush3.bf16.msra.mxu0 %v12394_v8  ;;  %v12442_v8 = vld [vmem:[%s15598_s3 + $0x590] sm:$0xff]  }
 0x3a5   : > { %11674 = vmatprep.subr.bf16.mxu0 %v12396_v19 }
 0x3a6   : > { %11655 = vmatpush3.bf16.msra.mxu1 %v12395_v14  ;;  %v12443_v14 = vld [vmem:[%s15598_s3 + $0x5d0] sm:$0xff]  }
 0x3a7   : > { %11656 = vmatprep.subr.bf16.mxu1 %v12397_v23 }
 0x3a8   : > { %11675 = vmatpush3.bf16.msra.mxu0 %v12396_v19  ;;  %v12444_v19 = vld [vmem:[%s15598_s3 + $0x588] sm:$0xff]  }
 0x3a9   : > { %11676 = vmatprep.subr.bf16.mxu0 %v12398_v48 }
 0x3aa   : > { %11657 = vmatpush3.bf16.msra.mxu1 %v12397_v23  ;;  %v12445_v23 = vld [vmem:[%s15598_s3 + $0x5c8] sm:$0xff]  }
 0x3ab   : > { %11682 = vmatprep.subr.bf16.mxu1 %v12400_v10 }
 0x3ac   : > { %11677 = vmatpush3.bf16.msra.mxu0 %v12398_v48  ;;  %v15167_v48 = vld [vmem:[#allocation3 + $0xe1] sm:$0xff] }
 0x3ad   : > { %11659 = vmatmul.mubr.bf16.vlgmr.msra.gmra.mxu1 %v14514_v3  ;;  %11702 = vmatprep.subr.bf16.mxu0 %v12401_v13  ;;  %v12403_v3 = vld [vmem:[%s15598_s3 + $0x4f0] sm:$0xff]  }
 0x3ae   : > { %11683 = vmatpush3.bf16.msra.mxu1 %v12400_v10  ;;  %11698 = vmatprep.mubr.bf16.mxu1 %v14999_v50  ;;  %v12447_v10 = vld [vmem:[%s15598_s3 + $0x5c0] sm:$0xff]  }
 0x3af   : > { %11679 = vmatmul.mubr.bf16.vlgmr.msra.gmra.mxu0 %v14521_v20  ;;  %11684 = vmatprep.subr.bf16.mxu1 %v12402_v52  ;;  %v12405_v20 = vld [vmem:[%s15598_s3 + $0x4e8] sm:$0xff]  }
 0x3b0   : > { %11703 = vmatpush3.bf16.msra.mxu0 %v12401_v13  ;;  %11718 = vmatprep.mubr.bf16.mxu0 %v7505_v34  ;;  %v7683_v34 = vpack.c.bf16 %v15167_v48, %v15054_v45  ;;  %v12448_v13 = vld [vmem:[%s15598_s3 + $0x638] sm:$0xff]   ;;  %v12463_v45 = vld [vmem:[%s15598_s3 + $0x640] sm:$0xff]  }
 0x3b1   : > { %11704 = vmatprep.subr.bf16.mxu0 %v12403_v3 }
 0x3b2   : > { %11685 = vmatpush3.bf16.msra.mxu1 %v12402_v52  ;;  %v7742_v52 = vpack.c.bf16 %v15172_v21, %v15109_v27 }
 0x3b3   : > { %11686 = vmatprep.subr.bf16.mxu1 %v12404_v61 }
 0x3b4   : > { %11705 = vmatpush3.bf16.msra.mxu0 %v12403_v3  ;;  %v12449_v3 = vld [vmem:[%s15598_s3 + $0x678] sm:$0xff]  }
 0x3b5   : > { %11706 = vmatprep.subr.bf16.mxu0 %v12405_v20 }
 0x3b6   : > { %11687 = vmatpush3.bf16.msra.mxu1 %v12404_v61  ;;  %v12450_v61 = vld [vmem:[%s15598_s3 + $0x630] sm:$0xff]  }
 0x3b7   : > { %11688 = vmatprep.subr.bf16.mxu1 %v12406_v16 }
 0x3b8   : > { %11707 = vmatpush3.bf16.msra.mxu0 %v12405_v20  ;;  %v12451_v20 = vld [vmem:[%s15598_s3 + $0x670] sm:$0xff]  }
 0x3b9   : > { %11708 = vmatprep.subr.bf16.mxu0 %v12407_v38 }
 0x3ba   : > { %11689 = vmatpush3.bf16.msra.mxu1 %v12406_v16  ;;  %v12452_v16 = vld [vmem:[%s15598_s3 + $0x628] sm:$0xff]  }
 0x3bb   : > { %11690 = vmatprep.subr.bf16.mxu1 %v12408_v59 }
 0x3bc   : > { %11709 = vmatpush3.bf16.msra.mxu0 %v12407_v38  ;;  %v12453_v38 = vld [vmem:[%s15598_s3 + $0x668] sm:$0xff]  }
 0x3bd   : > { %11710 = vmatprep.subr.bf16.mxu0 %v12409_v33 }
 0x3be   : > { %11691 = vmatpush3.bf16.msra.mxu1 %v12408_v59  ;;  %v12454_v59 = vld [vmem:[%s15598_s3 + $0x620] sm:$0xff]  }
 0x3bf   : > { %11692 = vmatprep.subr.bf16.mxu1 %v12410_v15 }
 0x3c0   : > { %11711 = vmatpush3.bf16.msra.mxu0 %v12409_v33  ;;  %v12455_v33 = vld [vmem:[%s15598_s3 + $0x660] sm:$0xff]  }
 0x3c1   : > { %11712 = vmatprep.subr.bf16.mxu0 %v12411_v63 }
 0x3c2   : > { %11693 = vmatpush3.bf16.msra.mxu1 %v12410_v15  ;;  %v12456_v15 = vld [vmem:[%s15598_s3 + $0x618] sm:$0xff]  }
 0x3c3   : > { %11694 = vmatprep.subr.bf16.mxu1 %v12412_v31 }
 0x3c4   : > { %11713 = vmatpush3.bf16.msra.mxu0 %v12411_v63  ;;  %v12457_v63 = vld [vmem:[%s15598_s3 + $0x658] sm:$0xff]  }
 0x3c5   : > { %11714 = vmatprep.subr.bf16.mxu0 %v12413_v11 }
 0x3c6   : > { %11695 = vmatpush3.bf16.msra.mxu1 %v12412_v31  ;;  %v12458_v31 = vld [vmem:[%s15598_s3 + $0x610] sm:$0xff]  }
 0x3c7   : > { %11696 = vmatprep.subr.bf16.mxu1 %v12414_v5 }
 0x3c8   : > { %11715 = vmatpush3.bf16.msra.mxu0 %v12413_v11  ;;  %v12459_v11 = vld [vmem:[%s15598_s3 + $0x650] sm:$0xff]  }
 0x3c9   : > { %11716 = vmatprep.subr.bf16.mxu0 %v12415_v44 }
 0x3ca   : > { %11697 = vmatpush3.bf16.msra.mxu1 %v12414_v5  ;;  %v12460_v5 = vld [vmem:[%s15598_s3 + $0x608] sm:$0xff]  }
 0x3cb   : > { %11722 = vmatprep.subr.bf16.mxu1 %v12416_v9 }
 0x3cc   : > { %11717 = vmatpush3.bf16.msra.mxu0 %v12415_v44  ;;  %v12464_v44 = vld [vmem:[%s15598_s3 + $0x6b8] sm:$0xff]  }
 0x3cd   : > { %11699 = vmatmul.mubr.bf16.vlgmr.msra.gmra.mxu1 %v14999_v50  ;;  %11742 = vmatprep.subr.bf16.mxu0 %v12417_v51 }
 0x3ce   : > { %11723 = vmatpush3.bf16.msra.mxu1 %v12416_v9  ;;  %11738 = vmatprep.mubr.bf16.mxu1 %v7564_v43  ;;  %v7860_v43 = vpack.c.bf16 %v7858_v32, %v15167_v48  ;;  %v12465_v9 = vld [vmem:[%s15598_s3 + $0x6b0] sm:$0xff]   ;;  %v8006_v32 = vld [vmem:[%s15600_s5 + $0x68] sm:$0xff] }
 0x3cf   : > { %11719 = vmatmul.mubr.bf16.vlgmr.msra.gmra.mxu0 %v15065_v12  ;;  %11724 = vmatprep.subr.bf16.mxu1 %v12418_v40 }
 0x3d0   : > { %11743 = vmatpush3.bf16.msra.mxu0 %v12417_v51  ;;  %11758 = vmatprep.mubr.bf16.mxu0 %v14999_v50  ;;  %v12468_v51 = vld [vmem:[%s15598_s3 + $0x698] sm:$0xff]  }
 0x3d1   : > { %11744 = vmatprep.subr.bf16.mxu0 %v12419_v1 }
 0x3d2   : > { %11725 = vmatpush3.bf16.msra.mxu1 %v12418_v40  ;;  %v12469_v40 = vld [vmem:[%s15598_s3 + $0x690] sm:$0xff]  }
 0x3d3   : > { %11726 = vmatprep.subr.bf16.mxu1 %v12420_v53 }
 0x3d4   : > { %11745 = vmatpush3.bf16.msra.mxu0 %v12419_v1  ;;  %v12470_v1 = vld [vmem:[%s15598_s3 + $0x688] sm:$0xff]  }
 0x3d5   : > { %11746 = vmatprep.subr.bf16.mxu0 %v12421_v49 }
 0x3d6   : > { %11727 = vmatpush3.bf16.msra.mxu1 %v12420_v53  ;;  %v7917_v53 = vld [vmem:[#allocation3 + $0xea] sm:$0xff] }
 0x3d7   : > { %11728 = vmatprep.subr.bf16.mxu1 %v12422_v2 }
 0x3d8   : > { %11747 = vmatpush3.bf16.msra.mxu0 %v12421_v49  ;;  %v12471_v49 = vld [vmem:[%s15598_s3 + $0x680] sm:$0xff]  }
 0x3d9   : > { %11748 = vmatprep.subr.bf16.mxu0 %v12423_v4 }
 0x3da   : > { %11729 = vmatpush3.bf16.msra.mxu1 %v12422_v2  ;;  %v7919_v2 = vpack.c.bf16 %v7917_v53, %v15172_v21 }
 0x3db   : > { %11730 = vmatprep.subr.bf16.mxu1 %v12424_v54 }
 0x3dc   : > { %11749 = vmatpush3.bf16.msra.mxu0 %v12423_v4  ;;  %v15260_v4 = vpop.f32.mrf.mxu1 }
 0x3dd   : > { %11750 = vmatprep.subr.bf16.mxu0 %v12425_v28 }
 0x3de   : > { %11731 = vmatpush3.bf16.msra.mxu1 %v12424_v54  ;;  %v15262_v54 = vpop.f32.mrf.mxu1 }
 0x3df   : > { %11732 = vmatprep.subr.bf16.mxu1 %v12426_v60 }
 0x3e0   : > { %11751 = vmatpush3.bf16.msra.mxu0 %v12425_v28  ;;  %v15264_v28 = vpop.f32.mrf.mxu0 }
 0x3e1   : > { %11752 = vmatprep.subr.bf16.mxu0 %v12427_v41 }
 0x3e2   : > { %11733 = vmatpush3.bf16.msra.mxu1 %v12426_v60  ;;  %v15266_v60 = vpop.f32.mrf.mxu1 }
 0x3e3   : > { %11734 = vmatprep.subr.bf16.mxu1 %v12428_v18 }
 0x3e4   : > { %11753 = vmatpush3.bf16.msra.mxu0 %v12427_v41  ;;  %v15268_v41 = vpop.f32.mrf.mxu0 }
 0x3e5   : > { %11754 = vmatprep.subr.bf16.mxu0 %v12429_v35 }
 0x3e6   : > { %11735 = vmatpush3.bf16.msra.mxu1 %v12428_v18  ;;  %v15270_v18 = vpop.f32.mrf.mxu1 }
 0x3e7   : > { %11736 = vmatprep.subr.bf16.mxu1 %v12430_v0 }
 0x3e8   : > { %11755 = vmatpush3.bf16.msra.mxu0 %v12429_v35  ;;  %v15272_v35 = vpop.f32.mrf.mxu0  ;;  %v15274_v42 = vpop.f32.mrf.mxu1 }
 0x3e9   : > { %11756 = vmatprep.subr.bf16.mxu0 %v12431_v25 }
 0x3ea   : > { %11737 = vmatpush3.bf16.msra.mxu1 %v12430_v0  ;;  %v15276_v27 = vpop.f32.mrf.mxu0  ;;  %v15278_v0 = vpop.f32.mrf.mxu1 }
 0x3eb   : > { %11762 = vmatprep.subr.bf16.mxu1 %v12432_v24 }
 0x3ec   : > { %11757 = vmatpush3.bf16.msra.mxu0 %v12431_v25  ;;  %v15280_v25 = vpop.f32.mrf.mxu0 }
 0x3ed   : > { %11739 = vmatmul.mubr.bf16.vlgmr.msra.gmra.mxu1 %v15118_v37  ;;  %11782 = vmatprep.subr.bf16.mxu0 %v12433_v26 }
 0x3ee   : > { %11763 = vmatpush3.bf16.msra.mxu1 %v12432_v24  ;;  %11778 = vmatprep.mubr.bf16.mxu1 %v7682_v55  ;;  %v15284_v55 = vpop.f32.mrf.mxu0 }
 0x3ef   : > { %11759 = vmatmul.mubr.bf16.vlgmr.msra.gmra.mxu0 %v14999_v50  ;;  %11764 = vmatprep.subr.bf16.mxu1 %v12434_v39 }
 0x3f0   : > { %11783 = vmatpush3.bf16.msra.mxu0 %v12433_v26  ;;  %11798 = vmatprep.mubr.bf16.mxu0 %v7741_v36  ;;  %v15288_v36 = vpop.f32.mrf.mxu0 }
 0x3f1   : > { %11784 = vmatprep.subr.bf16.mxu0 %v12435_v17 }
 0x3f2   : > { %11765 = vmatpush3.bf16.msra.mxu1 %v12434_v39  ;;  %v15292_v39 = vpop.f32.mrf.mxu0 }
 0x3f3   : > { %11766 = vmatprep.subr.bf16.mxu1 %v12436_v57 }
 0x3f4   : > { %11785 = vmatpush3.bf16.msra.mxu0 %v12435_v17 }
 0x3f5   : > { %11786 = vmatprep.subr.bf16.mxu0 %v12437_v47 }
 0x3f6   : > { %11767 = vmatpush3.bf16.msra.mxu1 %v12436_v57  ;;  %v15296_v57 = vpop.f32.mrf.mxu0 }
 0x3f7   : > { %11768 = vmatprep.subr.bf16.mxu1 %v12438_v56 }
 0x3f8   : > { %11787 = vmatpush3.bf16.msra.mxu0 %v12437_v47 }
 0x3f9   : > { %11788 = vmatprep.subr.bf16.mxu0 %v12439_v7 }
 0x3fa   : > { %11769 = vmatpush3.bf16.msra.mxu1 %v12438_v56  ;;  %v15300_v56 = vpop.f32.mrf.mxu0 }
 0x3fb   : > { %11770 = vmatprep.subr.bf16.mxu1 %v12440_v22 }
 0x3fc   : > { %11789 = vmatpush3.bf16.msra.mxu0 %v12439_v7 }
 0x3fd   : > { %11790 = vmatprep.subr.bf16.mxu0 %v12441_v58 }
 0x3fe   : > { %11771 = vmatpush3.bf16.msra.mxu1 %v12440_v22  ;;  %v15304_v22 = vpop.f32.mrf.mxu0 }
 0x3ff   : > { %11772 = vmatprep.subr.bf16.mxu1 %v12442_v8 }
 0x400   : > { %11791 = vmatpush3.bf16.msra.mxu0 %v12441_v58 }
 0x401   : > { %11792 = vmatprep.subr.bf16.mxu0 %v12443_v14 }
 0x402   : > { %11773 = vmatpush3.bf16.msra.mxu1 %v12442_v8  ;;  %v15308_v8 = vpop.f32.mrf.mxu0 }
 0x403   : > { %11774 = vmatprep.subr.bf16.mxu1 %v12444_v19 }
 0x404   : > { %11793 = vmatpush3.bf16.msra.mxu0 %v12443_v14 }
 0x405   : > { %11794 = vmatprep.subr.bf16.mxu0 %v12445_v23 }
 0x406   : > { %11775 = vmatpush3.bf16.msra.mxu1 %v12444_v19  ;;  %v15312_v19 = vpop.f32.mrf.mxu0 }
 0x407   : > { %11776 = vmatprep.subr.bf16.mxu1 %v12446_v6 }
 0x408   : > { %11795 = vmatpush3.bf16.msra.mxu0 %v12445_v23  ;;  %v15316_v48 = vpop.f32.mrf.mxu0 }
 0x409   : > { %11796 = vmatprep.subr.bf16.mxu0 %v12447_v10 }
 0x40a   : > { %11777 = vmatpush3.bf16.msra.mxu1 %v12446_v6  ;;  %v15320_v21 = vpop.f32.mrf.mxu0 }
 0x40b   : > { %11802 = vmatprep.subr.bf16.mxu1 %v12448_v13 }
 0x40c   : > { %11797 = vmatpush3.bf16.msra.mxu0 %v12447_v10 }
 0x40d   : > { %11779 = vmatmul.mubr.bf16.vlgmr.msra.gmra.mxu1 %v7683_v34  ;;  %11822 = vmatprep.subr.bf16.mxu0 %v12449_v3  ;;  %v15324_v34 = vpop.f32.mrf.mxu0 }
 0x40e   : > { %11803 = vmatpush3.bf16.msra.mxu1 %v12448_v13  ;;  %11818 = vmatprep.mubr.bf16.mxu1 %v14999_v50 }
 0x40f   : > { %11799 = vmatmul.mubr.bf16.vlgmr.msra.gmra.mxu0 %v7742_v52  ;;  %11804 = vmatprep.subr.bf16.mxu1 %v12450_v61  ;;  %v15328_v52 = vpop.f32.mrf.mxu0 }
 0x410   : > { %11823 = vmatpush3.bf16.msra.mxu0 %v12449_v3  ;;  %11838 = vmatprep.mubr.bf16.mxu0 %v15065_v12  ;;  %v12466_v12 = vld [vmem:[%s15598_s3 + $0x6a8] sm:$0xff]   ;;  %v8008_v3 = vld [vmem:[%s15600_s5 + $0x78] sm:$0xff] }
 0x411   : > { %11824 = vmatprep.subr.bf16.mxu0 %v12451_v20 }
 0x412   : > { %11805 = vmatpush3.bf16.msra.mxu1 %v12450_v61 }
 0x413   : > { %11806 = vmatprep.subr.bf16.mxu1 %v12452_v16 }
 0x414   : > { %11825 = vmatpush3.bf16.msra.mxu0 %v12451_v20  ;;  %v15335_v20 = vpop.f32.mrf.mxu0 }
 0x415   : > { %11826 = vmatprep.subr.bf16.mxu0 %v12453_v38 }
 0x416   : > { %11807 = vmatpush3.bf16.msra.mxu1 %v12452_v16 }
 0x417   : > { %11808 = vmatprep.subr.bf16.mxu1 %v12454_v59 }
 0x418   : > { %11827 = vmatpush3.bf16.msra.mxu0 %v12453_v38  ;;  %v15340_v38 = vpop.f32.mrf.mxu0 }
 0x419   : > { %11828 = vmatprep.subr.bf16.mxu0 %v12455_v33 }
 0x41a   : > { %11809 = vmatpush3.bf16.msra.mxu1 %v12454_v59 }
 0x41b   : > { %11810 = vmatprep.subr.bf16.mxu1 %v12456_v15 }
 0x41c   : > { %11829 = vmatpush3.bf16.msra.mxu0 %v12455_v33  ;;  %v15344_v33 = vpop.f32.mrf.mxu0 }
 0x41d   : > { %11830 = vmatprep.subr.bf16.mxu0 %v12457_v63 }
 0x41e   : > { %11811 = vmatpush3.bf16.msra.mxu1 %v12456_v15 }
 0x41f   : > { %11812 = vmatprep.subr.bf16.mxu1 %v12458_v31 }
 0x420   : > { %11831 = vmatpush3.bf16.msra.mxu0 %v12457_v63  ;;  %v15348_v63 = vpop.f32.mrf.mxu0 }
 0x421   : > { %11832 = vmatprep.subr.bf16.mxu0 %v12459_v11 }
 0x422   : > { %11813 = vmatpush3.bf16.msra.mxu1 %v12458_v31 }
 0x423   : > { %11814 = vmatprep.subr.bf16.mxu1 %v12460_v5 }
 0x424   : > { %11833 = vmatpush3.bf16.msra.mxu0 %v12459_v11  ;;  %v15352_v11 = vpop.f32.mrf.mxu0 }
 0x425   : > { %11834 = vmatprep.subr.bf16.mxu0 %v12461_v62 }
 0x426   : > { %11815 = vmatpush3.bf16.msra.mxu1 %v12460_v5 }
 0x427   : > { %11816 = vmatprep.subr.bf16.mxu1 %v12462_v29 }
 0x428   : > { %11835 = vmatpush3.bf16.msra.mxu0 %v12461_v62  ;;  %v15356_v62 = vpop.f32.mrf.mxu0 }
 0x429   : > { %11836 = vmatprep.subr.bf16.mxu0 %v12463_v45 }
 0x42a   : > { %11817 = vmatpush3.bf16.msra.mxu1 %v12462_v29  ;;  %v8007_v29 = vld [vmem:[%s15600_s5 + $0x70] sm:$0xff] }
 0x42b   : > { %11842 = vmatprep.subr.bf16.mxu1 %v12464_v44 }
 0x42c   : > { %11837 = vmatpush3.bf16.msra.mxu0 %v12463_v45 }
 0x42d   : > { %11819 = vmatmul.mubr.bf16.vlgmr.msra.gmra.mxu1 %v14999_v50  ;;  %11862 = vmatprep.subr.mxu0 %v14995_v46  ;;  %v12467_v50 = vld [vmem:[%s15598_s3 + $0x6a0] sm:$0xff]  }
 0x42e   : > { %11843 = vmatpush3.bf16.msra.mxu1 %v12464_v44  ;;  %11858 = vmatprep.mubr.bf16.mxu1 %v15118_v37  ;;  %v15282_v37 = vpop.f32.mrf.mxu1  ;;  %v8005_v44 = vld [vmem:[%s15600_s5 + $0x60] sm:$0xff] }
 0x42f   : > { %11839 = vmatmul.mubr.bf16.vlgmr.msra.gmra.mxu0 %v7860_v43  ;;  %11844 = vmatprep.subr.bf16.mxu1 %v12465_v9  ;;  %v15371_v43 = vpop.f32.mrf.mxu0 }
 0x430   : > { %v15286_v24 = vpop.f32.mrf.mxu1  ;;  %11863 = vmatpush3.msra.mxu0 %v8008_v3  ;;  %11894 = vmatprep.mubr.msk.f32.mxu0 %vm12536_vm5, %v14995_v46 }
 0x431   : > { %11864 = vmatprep.subr.mxu0 %v14995_v46 }
 0x432   : > { %11845 = vmatpush3.bf16.msra.mxu1 %v12465_v9  ;;  %v15290_v26 = vpop.f32.mrf.mxu1  ;;  %11865 = vmatpush3.msra.mxu0 %v8007_v29  ;;  %v8004_v9 = vld [vmem:[%s15600_s5 + $0x58] sm:$0xff] }
 0x433   : > { %11846 = vmatprep.subr.bf16.mxu1 %v12466_v12  ;;  %11866 = vmatprep.subr.mxu0 %v14995_v46 }
 0x434   : > { %v15294_v17 = vpop.f32.mrf.mxu1  ;;  %11867 = vmatpush3.msra.mxu0 %v8006_v32  ;;  %v7999_v32 = vld [vmem:[%s15600_s5 + $0x30] sm:$0xff] }
 0x435   : > { %11868 = vmatprep.subr.mxu0 %v14995_v46 }
 0x436   : > { %11847 = vmatpush3.bf16.msra.mxu1 %v12466_v12  ;;  %v15298_v47 = vpop.f32.mrf.mxu1  ;;  %11869 = vmatpush3.msra.mxu0 %v8005_v44 }
 0x437   : > { %11848 = vmatprep.subr.bf16.mxu1 %v12467_v50  ;;  %11870 = vmatprep.subr.mxu0 %v14995_v46 }
 0x438   : > { %v15302_v7 = vpop.f32.mrf.mxu1  ;;  %11871 = vmatpush3.msra.mxu0 %v8004_v9  ;;  %v7998_v9 = vld [vmem:[%s15600_s5 + $0x28] sm:$0xff] }
 0x439   : > { %11872 = vmatprep.subr.mxu0 %v14995_v46 }
 0x43a   : > { %11849 = vmatpush3.bf16.msra.mxu1 %v12467_v50  ;;  %v15306_v58 = vpop.f32.mrf.mxu1  ;;  %v15379_v50 = vpop.f32.mrf.mxu0 }
 0x43b   : > { %11850 = vmatprep.subr.bf16.mxu1 %v12468_v51 }
 0x43c   : > { %v15310_v14 = vpop.f32.mrf.mxu1  ;;  %v15391_v53 = vpop.f32.mrf.mxu0 }
 0x43e   : > { %11851 = vmatpush3.bf16.msra.mxu1 %v12468_v51  ;;  %v15314_v23 = vpop.f32.mrf.mxu1  ;;  %v8003_v51 = vld [vmem:[%s15600_s5 + $0x50] sm:$0xff]  ;;  %v15403_v29 = vpop.f32.mrf.mxu0 }
 0x43f   : > { %11852 = vmatprep.subr.bf16.mxu1 %v12469_v40  ;;  %11873 = vmatpush3.msra.mxu0 %v8003_v51  ;;  %15626 = vst [vmem:[#allocation8_spill] sm:$0xff] %v15403_v29 }
 0x440   : > { %v15318_v6 = vpop.f32.mrf.mxu1  ;;  %11874 = vmatprep.subr.mxu0 %v14995_v46  ;;  %v15415_v51 = vpop.f32.mrf.mxu0 }
 0x441   : > { %15628 = vst [vmem:[#allocation9_spill] sm:$0xff] %v15415_v51 }
 0x442   : > { %11853 = vmatpush3.bf16.msra.mxu1 %v12469_v40  ;;  %v15322_v10 = vpop.f32.mrf.mxu1  ;;  %v8002_v40 = vld [vmem:[%s15600_s5 + $0x48] sm:$0xff] }
 0x443   : > { %11854 = vmatprep.subr.bf16.mxu1 %v12470_v1  ;;  %11875 = vmatpush3.msra.mxu0 %v8002_v40  ;;  %v7997_v40 = vld [vmem:[%s15600_s5 + $0x20] sm:$0xff] }
 0x444   : > { %v15326_v13 = vpop.f32.mrf.mxu1  ;;  %11876 = vmatprep.subr.mxu0 %v14995_v46 }
 0x446   : > { %11855 = vmatpush3.bf16.msra.mxu1 %v12470_v1  ;;  %v15333_v61 = vpop.f32.mrf.mxu1 }
 0x447   : > { %11856 = vmatprep.subr.bf16.mxu1 %v12471_v49 }
 0x448   : > { %v15338_v16 = vpop.f32.mrf.mxu1 }
 0x44a   : > { %11857 = vmatpush3.bf16.msra.mxu1 %v12471_v49  ;;  %v15342_v59 = vpop.f32.mrf.mxu1  ;;  %v8001_v49 = vld [vmem:[%s15600_s5 + $0x40] sm:$0xff] }
 0x44b   : > { %11877 = vmatpush3.msra.mxu0 %v8001_v49 }
 0x44c   : > { %v15346_v15 = vpop.f32.mrf.mxu1  ;;  %11878 = vmatprep.subr.mxu0 %v14995_v46 }
 0x44d   : > { %11859 = vmatmul.mubr.bf16.vlgmr.msra.gmra.mxu1 %v7919_v2  ;;  %v8000_v2 = vld [vmem:[%s15600_s5 + $0x38] sm:$0xff] }
 0x44e   : > { %v15350_v31 = vpop.f32.mrf.mxu1  ;;  %11879 = vmatpush3.msra.mxu0 %v8000_v2 }
 0x44f   : > { %11880 = vmatprep.subr.mxu0 %v14995_v46  ;;  %v15423_v2 = vpop.f32.mrf.mxu0 }
 0x450   : > { %v15354_v5 = vpop.f32.mrf.mxu1  ;;  %11881 = vmatpush3.msra.mxu0 %v7999_v32  ;;  %15630 = vst [vmem:[#allocation12_spill] sm:$0xff] %v15423_v2  ;;  %v7995_v32 = vld [vmem:[%s15600_s5 + $0x10] sm:$0xff]  ;;  %v7994_v2 = vld [vmem:[%s15600_s5 + $0x8] sm:$0xff] }
 0x451   : > { %11882 = vmatprep.subr.mxu0 %v14995_v46 }
 0x452   : > { %v15365_v45 = vpop.f32.mrf.mxu1  ;;  %11883 = vmatpush3.msra.mxu0 %v7998_v9  ;;  %v15435_v9 = vpop.f32.mrf.mxu0 }
 0x453   : > { %11884 = vmatprep.subr.mxu0 %v14995_v46  ;;  %15632 = vst [vmem:[#allocation14_spill] sm:$0xff] %v15435_v9  ;;  %v6580_v9 = vadd.f32 %v15268_v41, %v15262_v54 }
 0x454   : > { %v15377_v12 = vpop.f32.mrf.mxu1  ;;  %11885 = vmatpush3.msra.mxu0 %v7997_v40  ;;  %v7993_v40 = vld [vmem:[%s15600_s5] sm:$0xff] }
 0x455   : > { %11886 = vmatprep.subr.mxu0 %v14995_v46  ;;  %v6643_v29 = vadd.f32 %v15278_v0, %v6580_v9 }
 0x456   : > { %v15389_v1 = vpop.f32.mrf.mxu1  ;;  %11887 = vmatpush3.msra.mxu0 %v7996_v30  ;;  %v15447_v30 = vpop.f32.mrf.mxu0 }
 0x457   : > { %11888 = vmatprep.subr.mxu0 %v14995_v46  ;;  %15634 = vst [vmem:[#allocation16_spill] sm:$0xff] %v15447_v30  ;;  %v6583_v30 = vadd.f32 %v15276_v27, %v15270_v18 }
 0x458   : > { %v15401_v3 = vpop.f32.mrf.mxu1  ;;  %11889 = vmatpush3.msra.mxu0 %v7995_v32  ;;  %v6588_v32 = vadd.f32 %v15264_v28, %v15260_v4  ;;  %v6696_v4 = vadd.f32 %v15284_v55, %v6643_v29 }
 0x459   : > { %11890 = vmatprep.subr.mxu0 %v14995_v46  ;;  %v6644_v28 = vadd.f32 %v15286_v24, %v6583_v30 }
 0x45a   : > { %v15409_v44 = vpop.f32.mrf.mxu1  ;;  %11891 = vmatpush3.msra.mxu0 %v7994_v2  ;;  %v6591_v2 = vadd.f32 %v15272_v35, %v15266_v60  ;;  %v6749_v9 = vadd.f32 %v15294_v17, %v6696_v4 }
 0x45b   : > { %15627 = vst [vmem:[#allocation10_spill] sm:$0xff] %v15409_v44  ;;  %11892 = vmatprep.subr.mxu0 %v14995_v46  ;;  %v6645_v46 = vadd.f32 %v15274_v42, %v6588_v32  ;;  %v6697_v42 = vadd.f32 %v15292_v39, %v6644_v28 }
 0x45c   : > { %v15421_v49 = vpop.f32.mrf.mxu1  ;;  %11893 = vmatpush3.msra.mxu0 %v7993_v40  ;;  %v6646_v41 = vadd.f32 %v15282_v37, %v6591_v2  ;;  %v6802_v55 = vadd.f32 %v15300_v56, %v6749_v9 }
 0x45d   : > { %15629 = vst [vmem:[#allocation11_spill] sm:$0xff] %v15421_v49  ;;  %v15457_v49 = vpop.f32.mrf.mxu0  ;;  %v6698_v0 = vadd.f32 %v15280_v25, %v6645_v46  ;;  %v6750_v24 = vadd.f32 %v15302_v7, %v6697_v42 }
 0x45e   : > { %v15433_v44 = vpop.f32.mrf.mxu1  ;;  %v6699_v18 = vadd.f32 %v15288_v36, %v6646_v41  ;;  %v6855_v40 = vadd.f32 %v15310_v14, %v6802_v55 }
 0x45f   : > { %15631 = vst [vmem:[#allocation13_spill] sm:$0xff] %v15433_v44  ;;  %v6751_v27 = vadd.f32 %v15290_v26, %v6698_v0  ;;  %v6803_v26 = vadd.f32 %v15308_v8, %v6750_v24 }
 0x460   : > { %v15445_v51 = vpop.f32.mrf.mxu1  ;;  %v6752_v37 = vadd.f32 %v15298_v47, %v6699_v18  ;;  %v6908_v7 = vadd.f32 %v15316_v48, %v6855_v40 }
 0x461   : > { %15633 = vst [vmem:[#allocation15_spill] sm:$0xff] %v15445_v51  ;;  %v6804_v17 = vadd.f32 %v15296_v57, %v6751_v27  ;;  %v6856_v32 = vadd.f32 %v15318_v6, %v6803_v26 }
 0x462   : > { %v6805_v36 = vadd.f32 %v15304_v22, %v6752_v37  ;;  %v6961_v46 = vadd.f32 %v15326_v13, %v6908_v7  ;;  %v15638_v26 = vld [vmem:[#allocation10_spill] sm:$0xff] }
 0x463   : > { %v6857_v39 = vadd.f32 %v15306_v58, %v6804_v17  ;;  %v6909_v8 = vadd.f32 %v15324_v34, %v6856_v32  ;;  %v15636_v17 = vld [vmem:[#allocation8_spill] sm:$0xff]  ;;  %v15640_v7 = vld [vmem:[#allocation14_spill] sm:$0xff] }
 0x464   : > { %v6858_v56 = vadd.f32 %v15314_v23, %v6805_v36  ;;  %v7014_v48 = vadd.f32 %v15335_v20, %v6961_v46  ;;  %v15635_v24 = vld [vmem:[#allocation11_spill] sm:$0xff]  ;;  %v15637_v36 = vld [vmem:[#allocation9_spill] sm:$0xff]  ;;  %v15642_v46 = vld [vmem:[#allocation12_spill] sm:$0xff] }
 0x465   : > { %v6910_v14 = vadd.f32 %v15312_v19, %v6857_v39  ;;  %v6962_v6 = vadd.f32 %v15338_v16, %v6909_v8 }
 0x466   : > { %v6911_v22 = vadd.f32 %v15320_v21, %v6858_v56  ;;  %v7067_v19 = vadd.f32 %v15346_v15, %v7014_v48  ;;  %v15639_v56 = vld [vmem:[#allocation13_spill] sm:$0xff] }
 0x467   : > { %v6963_v58 = vadd.f32 %v15322_v10, %v6910_v14  ;;  %v7015_v34 = vadd.f32 %v15344_v33, %v6962_v6 }
 0x468   : > { %v6964_v23 = vadd.f32 %v15333_v61, %v6911_v22  ;;  %v7120_v61 = vadd.f32 %v15352_v11, %v7067_v19  ;;  %v15641_v32 = vld [vmem:[#allocation15_spill] sm:$0xff] }
 0x469   : > { %v7016_v28 = vadd.f32 %v15328_v52, %v6963_v58  ;;  %v7068_v20 = vadd.f32 %v15354_v5, %v7015_v34  ;;  %v15643_v58 = vld [vmem:[#allocation16_spill] sm:$0xff] }
 0x46a   : > { %v7017_v21 = vadd.f32 %v15340_v38, %v6964_v23  ;;  %v7173_v15 = vadd.f32 %v15377_v12, %v7120_v61 }
 0x46b   : > { %v7069_v10 = vadd.f32 %v15342_v59, %v7016_v28  ;;  %v7121_v33 = vadd.f32 %v15371_v43, %v7068_v20 }
 0x46c   : > { %v7070_v18 = vadd.f32 %v15350_v31, %v7017_v21  ;;  %v7226_v31 = vadd.f32 %v15391_v53, %v7173_v15 }
 0x46d   : > { %v15452_v44 = vpop.f32.mrf.mxu1  ;;  %v7122_v52 = vadd.f32 %v15348_v63, %v7069_v10  ;;  %v7174_v11 = vadd.f32 %v15401_v3, %v7121_v33 }
 0x46e   : > { %v7123_v38 = vadd.f32 %v15356_v62, %v7070_v18  ;;  %v7279_v12 = vadd.f32 %v15635_v24, %v7226_v31 }
 0x46f   : > { %v15464_v51 = vpop.f32.mrf.mxu1  ;;  %v15466_v54 = vpop.f32.mrf.mxu0  ;;  %v7175_v59 = vadd.f32 %v15365_v45, %v7122_v52  ;;  %v7227_v62 = vadd.f32 %v15637_v36, %v7174_v11 }
 0x470   : > { %v7176_v37 = vadd.f32 %v15389_v1, %v7123_v38  ;;  %v7332_v53 = vadd.f32 %v15640_v7, %v7279_v12 }
 0x471   : > { %v15473_v60 = vpop.f32.mrf.mxu1  ;;  %v15475_v35 = vpop.f32.mrf.mxu0  ;;  %v7228_v63 = vadd.f32 %v15379_v50, %v7175_v59  ;;  %v7280_v3 = vadd.f32 %v15641_v32, %v7227_v62 }
 0x472   : > { %v7229_v40 = vadd.f32 %v15636_v17, %v7176_v37  ;;  %v7385_v50 = vadd.f32 %v15464_v51, %v7332_v53 }
 0x473   : > { %v15483_v29 = vpop.f32.mrf.mxu1  ;;  %v15485_v25 = vpop.f32.mrf.mxu0  ;;  %v7281_v43 = vadd.f32 %v15638_v26, %v7228_v63  ;;  %v7333_v48 = vadd.f32 %v15457_v49, %v7280_v3 }
 0x474   : > { %v7282_v1 = vadd.f32 %v15639_v56, %v7229_v40  ;;  %v7438_v34 = vadd.f32 %v15475_v35, %v7385_v50 }
 0x475   : > { %v15494_v47 = vpop.f32.mrf.mxu0  ;;  %v7334_v22 = vadd.f32 %v15642_v46, %v7281_v43  ;;  %v7386_v10 = vadd.f32 %v15483_v29, %v7333_v48 }
 0x476   : > { %v7335_v23 = vadd.f32 %v15643_v58, %v7282_v1 }
 0x477   : > { %v7387_v6 = vadd.f32 %v15452_v44, %v7334_v22  ;;  %v7439_v15 = vadd.f32 %v15494_v47, %v7386_v10 }
 0x478   : > { %v7388_v21 = vadd.f32 %v15473_v60, %v7335_v23  ;;  %v12472_v23 = vld [vmem:[%s15599_s4] ss:$0 sm:$0xff] }
 0x479   : > { %v7440_v18 = vadd.f32 %v15466_v54, %v7387_v6 }
 0x47a   : > { %v7441_v52 = vadd.f32 %v15485_v25, %v7388_v21 }
 0x48d   : > { %v15489_v30 = vpop.f32.mrf.mxu1 }
 0x48e   : > { %v7499_v49 = vadd.f32 %v15489_v30, %v7440_v18 }
 0x48f   : > { %v7482_v2 = vpop.f32.mrf.mxu1  ;;  %v15499_v57 = vpop.f32.mrf.mxu0 }
 0x490   : > { %v7497_v61 = vadd.f32 %v7482_v2, %v7438_v34  ;;  %v7558_v35 = vadd.f32 %v15499_v57, %v7499_v49 }
 0x491   : > { %v11701_v41 = vpop.f32.mrf.mxu1  ;;  %v7541_v4 = vpop.f32.mrf.mxu0 }
 0x492   : > { %v7500_v44 = vadd.f32 %v11701_v41, %v7441_v52  ;;  %v7556_v38 = vadd.f32 %v7541_v4, %v7497_v61 }
 0x493   : > { %v7485_v0 = vpop.f32.mrf.mxu1  ;;  %v11721_v13 = vpop.f32.mrf.mxu0 }
 0x494   : > { %v7498_v33 = vadd.f32 %v7485_v0, %v7439_v15  ;;  %v7559_v31 = vadd.f32 %v11721_v13, %v7500_v44 }
 0x495   : > { %v7544_v16 = vpop.f32.mrf.mxu0 }
 0x496   : > { %v7557_v54 = vadd.f32 %v7544_v16, %v7498_v33 }
 0x4ad   : > { %v11740_v9 = vpop.f32.mrf.mxu1 }
 0x4ae   : > { %v7617_v2 = vadd.f32 %v11740_v9, %v7558_v35 }
 0x4af   : > { %v7600_v42 = vpop.f32.mrf.mxu1  ;;  %v11760_v27 = vpop.f32.mrf.mxu0 }
 0x4b0   : > { %v7615_v37 = vadd.f32 %v7600_v42, %v7556_v38  ;;  %v7676_v17 = vadd.f32 %v11760_v27, %v7617_v2 }
 0x4b1   : > { %v11741_v5 = vpop.f32.mrf.mxu1  ;;  %v7659_v55 = vpop.f32.mrf.mxu0 }
 0x4b2   : > { %v7618_v63 = vadd.f32 %v11741_v5, %v7559_v31  ;;  %v7674_v24 = vadd.f32 %v7659_v55, %v7615_v37 }
 0x4b3   : > { %v7603_v39 = vpop.f32.mrf.mxu1  ;;  %v11761_v45 = vpop.f32.mrf.mxu0 }
 0x4b4   : > { %v7616_v25 = vadd.f32 %v7603_v39, %v7557_v54  ;;  %v7677_v41 = vadd.f32 %v11761_v45, %v7618_v63 }
 0x4b5   : > { %v7662_v8 = vpop.f32.mrf.mxu0 }
 0x4b6   : > { %v7675_v4 = vadd.f32 %v7662_v8, %v7616_v25  ;;  %v15644_v8 = vld [vmem:[#allocation7_spill] sm:$0xff]  ;;  %v8009_v25 = vld [vmem:[%s15601_s6] sm:$0x1] }
 0x4b7   : > { %v6488_v58 = vsel %vm2549_vm0, %v15644_v8, 0.0 }
 0x4b8   : > { %v6489_v34 = vrot.slane %v6488_v58, 4 }
 0x4ba   : > { %v6490_v52 = vadd.f32 %v6489_v34, %v6488_v58 }
 0x4bc   : > { %v6491_v38 = vrot.slane %v6490_v52, 2 }
 0x4cd   : > { %v11780_v14 = vpop.f32.mrf.mxu1 }
 0x4ce   : > { %v7735_v0 = vadd.f32 %v11780_v14, %v7676_v17 }
 0x4cf   : > { %v7718_v28 = vpop.f32.mrf.mxu1  ;;  %v11800_v19 = vpop.f32.mrf.mxu0 }
 0x4d0   : > { %v7733_v30 = vadd.f32 %v7718_v28, %v7674_v24  ;;  %v7794_v26 = vadd.f32 %v11800_v19, %v7735_v0 }
 0x4d1   : > { %v11781_v20 = vpop.f32.mrf.mxu1  ;;  %v7777_v51 = vpop.f32.mrf.mxu0 }
 0x4d2   : > { %v7736_v62 = vadd.f32 %v11781_v20, %v7677_v41  ;;  %v7792_v57 = vadd.f32 %v7777_v51, %v7733_v30 }
 0x4d3   : > { %v7721_v59 = vpop.f32.mrf.mxu1  ;;  %v11801_v60 = vpop.f32.mrf.mxu0 }
 0x4d4   : > { %v7734_v42 = vadd.f32 %v7721_v59, %v7675_v4  ;;  %v7795_v43 = vadd.f32 %v11801_v60, %v7736_v62  ;;  %v6492_v60 = vadd.f32 %v6491_v38, %v6490_v52 }
 0x4d5   : > { %v7780_v11 = vpop.f32.mrf.mxu0 }
 0x4d6   : > { %v7793_v5 = vadd.f32 %v7780_v11, %v7734_v42 }
 0x4ed   : > { %v11820_v29 = vpop.f32.mrf.mxu1 }
 0x4ee   : > { %v7853_v55 = vadd.f32 %v11820_v29, %v7794_v26  ;;  %v6493_v29 = vrot.slane %v6492_v60, 1 }
 0x4ef   : > { %v7836_v12 = vpop.f32.mrf.mxu1  ;;  %v11840_v47 = vpop.f32.mrf.mxu0 }
 0x4f0   : > { %v7851_v13 = vadd.f32 %v7836_v12, %v7792_v57  ;;  %v7912_v53 = vadd.f32 %v11840_v47, %v7853_v55  ;;  %v6494_v2 = vadd.f32 %v6493_v29, %v6492_v60 }
 0x4f1   : > { %v11821_v40 = vpop.f32.mrf.mxu1  ;;  %v7895_v36 = vpop.f32.mrf.mxu0 }
 0x4f2   : > { %v7854_v56 = vadd.f32 %v11821_v40, %v7795_v43  ;;  %v7910_v1 = vadd.f32 %v7895_v36, %v7851_v13 }
 0x4f3   : > { %v7839_v16 = vpop.f32.mrf.mxu1  ;;  %v11841_v9 = vpop.f32.mrf.mxu0 }
 0x4f4   : > { %v7852_v27 = vadd.f32 %v7839_v16, %v7793_v5  ;;  %v7913_v14 = vadd.f32 %v11841_v9, %v7854_v56 }
 0x4f5   : > { %v7898_v7 = vpop.f32.mrf.mxu0 }
 0x4f6   : > { %v7911_v46 = vadd.f32 %v7898_v7, %v7852_v27 }
 0x50d   : > { %v11860_v39 = vpop.f32.mrf.mxu1 }
 0x50e   : > { %v7971_v22 = vadd.f32 %v11860_v39, %v7912_v53 }
 0x50f   : > { %v7954_v45 = vpop.f32.mrf.mxu1 }
 0x510   : > { %v7969_v32 = vadd.f32 %v7954_v45, %v7910_v1  ;;  %v7975_v19 = vadd.f32 %v12472_v23, %v7971_v22 }
 0x511   : > { %v11861_v3 = vpop.f32.mrf.mxu1 }
 0x512   : > { %v7973_v48 = vadd.f32 %v12472_v23, %v7969_v32  ;;  %v7972_v6 = vadd.f32 %v11861_v3, %v7913_v14  ;;  %v7979_v20 = vmax.f32 %v7975_v19, 0.0 }
 0x513   : > { %v7957_v50 = vpop.f32.mrf.mxu1 }
 0x514   : > { %v7970_v28 = vadd.f32 %v7957_v50, %v7911_v46  ;;  %v7977_v10 = vmax.f32 %v7973_v48, 0.0  ;;  %v7976_v18 = vadd.f32 %v12472_v23, %v7972_v6 }
 0x516   : > { %v7974_v21 = vadd.f32 %v12472_v23, %v7970_v28  ;;  %v7980_v15 = vmax.f32 %v7976_v18, 0.0 }
 0x518   : > { %v7978_v61 = vmax.f32 %v7974_v21, 0.0 }
 0x51a   : > { %v7981_v51 = vadd.f32 %v7978_v61, %v7977_v10 }
 0x51c   : > { %v7982_v49 = vadd.f32 %v7981_v51, %v7979_v20 }
 0x51e   : > { %v7983_v44 = vadd.f32 %v7982_v49, %v7980_v15 }
 0x520   : > { %v7984_v33 = vsel %vm2549_vm0, %v7983_v44, 0.0 }
 0x521   : > { %v7985_v59 = vrot.slane %v7984_v33, 4 }
 0x523   : > { %v7986_v35 = vadd.f32 %v7985_v59, %v7984_v33 }
 0x525   : > { %v7987_v37 = vrot.slane %v7986_v35, 2 }
 0x527   : > { %v7988_v31 = vadd.f32 %v7987_v37, %v7986_v35 }
 0x529   : > { %v7989_v54 = vrot.slane %v7988_v31, 1 }
 0x52b   : > { %v7990_v11 = vadd.f32 %v7989_v54, %v7988_v31 }
 0x52d   : > { %v7991_v63 = vadd.f32 %v7990_v11, %v6494_v2 }
 0x52f   : > { %v7992_v24 = vmul.f32 0.03125, %v7991_v63 }
 0x531   : > { %11895 = vmatmul.mubr.f32.vlgmr.msra.gmra.mxu0 %v7992_v24 }
 0x5f1   : > { %v8076_v12 = vpop.f32.mrf.mxu0 }
 0x5f2   : > { %v8077_v47 = vadd.f32 %v8076_v12, %v8009_v25 }
 0x5f3   : > { %v11896_v17 = vpop.f32.mrf.mxu0 }
 0x5f4   : > { %8080 = vst [vmem:[%s270_s17] sm:$0x1] %v8077_v47 }
 0x5f5   : > { %12486 = shalt.err (!%p12483_p3)
}
 0x5f6   : > { %s12487_s9 = scalar_lea.hbm %s15560_s21, 16  ;;  %s12491_s15 = scalar_lea.hbm %s15602_s7, 32 }
 0x5f7   : > { %p12488_p4 = scmp.ne.s32.totalorder %s15560_s21, %s12487_s9  ;;  %p12492_p9 = scmp.lt.s32.totalorder %s15560_s21, %s15602_s7 }
 0x5f8   : > { %p12493_p10 = scmp.lt.s32.totalorder %s12491_s15, %s12487_s9 }
 0x5f9   : > { %p12489_p7 = pnand %p12488_p4, %p12616_p5 }
 0x5fa   : > { %p12494_p11 = por %p12493_p10, %p12492_p9 }
 0x5fb   : > { %p12490_p8 = pneg %p12489_p7 }
 0x5fd   : > { %p12495_p12 = pnand %p12494_p11, %p12490_p8 }
 0x5ff   : > { %12498 = shalt.err (!%p12495_p12)
}
 0x600   : > { %11897 = dma.vmem_to_hbm [thread:$0]  (%p12616_p5), %s8095_s18, 16, %s15560_s21, %s8082_s22  }
 0x601 PF: > { %p11903_p13 = scmp.ge.s32.totalorder %s12533_s27, 2  ;;  %s8106_s19 = sand.u32 1, %s12521_s24  }
 0x602   : > { %s8107_s20 = scalar_lea.sflag [#allocation5], %s8106_s19 }
 0x603   : > { %p11900_p0 = pnand %p11903_p13, %p12620_p6 }
 0x605   : > { %p11901_p1 = pneg %p11900_p0 }
 0x607   : > { %12516 = dma.done.wait (%p11901_p1), %s8107_s20, 16  }
 0x608   : > { %12518 = vsyncadd (%p11901_p1), %s8107_s20, 4294967280  ;;  %p17_p2 = scmp.ge.s32.totalorder %s12603_s30, 4   ;;  %s15645_s24 = smov %s12525_s25 }
 0x609   : > { %s15646_s25 = smov %s12529_s26  ;;  %s15647_s26 = smov %s12614_s10 }
 0x60a   : > { %s15648_s27 = smov %s12603_s30  ;;  %19 = sbr.rel (!%p17_p2) target bundleno = 3 (0x3), region = 115 }
 0x60f   :  { %8111 = vsyncpa [#allocation5], 1 }
 0x610   :  { %8113 = vsyncpa [#allocation5 + $0x1], 1 }

</bundles_post_ra>
